<compile_context>
chip_gen: v5e
topology: v5e:2x2
jax: 0.10.0
libtpu: 0.0.40
codegen_flags: <defaults>
</compile_context>

<pallas_src>
import functools

import jax
import jax.numpy as jnp
from jax import lax
from jax.experimental import pallas as pl
from jax.experimental.pallas import tpu as pltpu

_HI = lax.Precision.HIGHEST
_LANE = 128


def _rup(v, m):
    return (v + m - 1) // m * m


def _tap_layout(rates):
    """Slab order for the K-concatenated conv matmul.

    Slab 0 is the (dh=0, dw=0) centre patch (shared by b0's 1x1 conv and the
    centre taps of b1/b2/b3); the remaining slabs are the 8 off-centre taps of
    each dilated branch.  Returns [(branch_or_None, dh, dw), ...].
    """
    taps = [(None, 0, 0)]
    for bi, r in enumerate(rates):
        for kh in range(3):
            for kw in range(3):
                if kh == 1 and kw == 1:
                    continue
                taps.append((bi, (kh - 1) * r, (kw - 1) * r))
    return taps


def _make_kernel(H, W, C, Cp, Co, Po, Pout, pmax, wpad, taps):
    HW = H * W

    def kernel(x_ref, wcat_ref, sb_ref, w4_ref, s4b4_ref, wpm_ref, wp4_ref,
               bp_ref, o_ref, xp_ref, lhs_ref):
        # ---- in-kernel halo + channel zero-padding (no padded copy in HBM) -----
        xp_ref[...] = jnp.zeros(xp_ref.shape, xp_ref.dtype)
        xp_ref[pmax:pmax + H, wpad:wpad + W, :C] = x_ref[0]

        # ---- assemble the K-concatenated LHS: one 128-lane slab per conv tap ---
        # One sublane-shifted column window per distinct kw shift, shared across
        # its row taps; row slices and the (H,W,Cp)->(HW,Cp) reshapes are layout
        # preserving (W % 8 == 0).  Slabs land at 128-aligned lane offsets.
        dws = sorted({dw for (_, _, dw) in taps})
        for dw in dws:
            col = xp_ref[:, wpad + dw:wpad + dw + W, :]          # (Hp, W, Cp)
            for j, (_, dh, dw2) in enumerate(taps):
                if dw2 != dw:
                    continue
                patch = col[pmax + dh:pmax + dh + H].reshape(HW, Cp)
                lhs_ref[:, j * Cp:(j + 1) * Cp] = patch

        # ---- b0 + b1 + b2 + b3: ONE MXU push (HW, nslab*Cp) x (nslab*Cp, Co) ---
        # All four branch outputs live packed inside one 128-lane slab (b0 at
        # lanes 0:Cout, branch i at i*Cout:(i+1)*Cout), so BN/ReLU runs once.
        pre_bn = jnp.dot(lhs_ref[...], wcat_ref[...],
                         preferred_element_type=jnp.float32)      # (HW, Co) f32
        feat = jnp.maximum(pre_bn * sb_ref[0:1] + sb_ref[1:2], 0.0)

        # ---- b4: GAP -> 1x1 conv -> BN -> ReLU.  Constant over HxW, so through
        # the (scale-folded) project conv it reduces to a per-channel bias.
        # GAP is a ones-row MXU matmul (no f32 temp, no multi-pass precision).
        x_core = lhs_ref[:, 0:Cp]                                 # centre patch
        inv_hw = jnp.full((1, HW), 1.0 / HW, dtype=jnp.bfloat16)
        xm = jnp.dot(inv_hw, x_core, preferred_element_type=jnp.float32)
        p4 = jnp.maximum(
            jnp.dot(xm.astype(jnp.bfloat16), w4_ref[...],
                    preferred_element_type=jnp.float32) * s4b4_ref[0:1]
            + s4b4_ref[1:2], 0.0)                                 # (1, Co)
        bias4 = jnp.dot(p4.astype(jnp.bfloat16), wp4_ref[...],
                        preferred_element_type=jnp.float32)       # (1, Po)

        # ---- project 1x1 conv (BN scale folded into weights) + bias + ReLU -----
        pre = jnp.dot(feat.astype(jnp.bfloat16), wpm_ref[...],
                      preferred_element_type=jnp.float32) + (bias4 + bp_ref[...])
        y = jnp.maximum(pre, 0.0)                                 # (HW, Po) f32

        # TODO(synk): Dropout2d(0.5) is identity in eval mode; training-mode
        #             channel dropout is not implemented here.
        # ---- lane-dense output: (real_channels, H*W), channel padding stripped -
        o_ref[...] = jnp.transpose(y)[:Pout].reshape(1, Pout, HW)

    return kernel


@functools.partial(jax.jit, static_argnames=("rates",))
def aspp_forward(x_nchw, params, rates):
    N, C, H, W = x_nchw.shape
    Cout = C // 8
    Pout = 2 * Cout
    pmax = max(rates)
    wpad = _rup(max(pmax, 1), 8)       # sublane-aligned left halo for the W axis
    Cp = _rup(C, _LANE)                # lane-dense input-channel slab width
    Co = _LANE                         # one lane-dense slab holds all 4 branches
    Po = _rup(Pout, _LANE)             # lane-dense project width (internal only)
    HW = H * W
    assert Cout >= 1 and 4 * Cout <= Co and Pout <= Po
    assert W % 8 == 0 and HW % 8 == 0  # layout-preserving (H,W,C)->(HW,C) reshape

    taps = _tap_layout(rates)
    nslab = len(taps)

    p = params
    # --- pack / pad / fold parameters (zero padding keeps the math exact) -------
    # wcat: (nslab*Cp, Co).  Slab 0 carries w0 and the centre taps of w1..w3; the
    # other slabs carry one off-centre tap each.  Branch i's output channels live
    # at lanes i*Cout:(i+1)*Cout of the single Co-wide output slab.
    wcat = jnp.zeros((nslab * Cp, Co), jnp.float32)
    wcat = wcat.at[:C, 0:Cout].set(p["w0"])
    for bi in range(len(rates)):
        wcat = wcat.at[:C, (bi + 1) * Cout:(bi + 2) * Cout].set(p[f"w{bi + 1}"][1, 1])
    for j, (bi, dh, dw) in enumerate(taps[1:], start=1):
        r = rates[bi]
        kh, kw = dh // r + 1, dw // r + 1
        wcat = wcat.at[j * Cp:j * Cp + C,
                       (bi + 1) * Cout:(bi + 2) * Cout].set(p[f"w{bi + 1}"][kh, kw])
    wcat = wcat.astype(jnp.bfloat16)

    sb = jnp.zeros((2, Co), jnp.float32)               # row 0: scale, row 1: bias
    for i in range(4):
        sb = sb.at[0, i * Cout:(i + 1) * Cout].set(p[f"s{i}"][0])
        sb = sb.at[1, i * Cout:(i + 1) * Cout].set(p[f"b{i}"][0])

    w4p = jnp.zeros((Cp, Co), jnp.float32).at[:C, :Cout].set(p["w4"]).astype(jnp.bfloat16)
    s4b4 = jnp.zeros((2, Co), jnp.float32)
    s4b4 = s4b4.at[0, :Cout].set(p["s4"][0]).at[1, :Cout].set(p["b4"][0])

    wp_sc = p["wp"] * p["sp"]                           # fold project BN scale
    wpm = jnp.zeros((Co, Po), jnp.float32)
    for i in range(4):
        wpm = wpm.at[i * Cout:(i + 1) * Cout, :Pout].set(wp_sc[i])
    wpm = wpm.astype(jnp.bfloat16)
    wp4 = jnp.zeros((Co, Po), jnp.float32).at[:Cout, :Pout].set(wp_sc[4]).astype(jnp.bfloat16)
    bpp = jnp.zeros((1, Po), jnp.float32).at[:, :Pout].set(p["bp"])

    # --- activations: NCHW -> NHWC bf16 only; halo/channel pad happens in-kernel -
    x = jnp.transpose(x_nchw, (0, 2, 3, 1)).astype(jnp.bfloat16)    # (N, H, W, C)

    kernel = _make_kernel(H, W, C, Cp, Co, Po, Pout, pmax, wpad, taps)

    def const_spec(shape):
        nd = len(shape)
        # TODO(synk): for large-channel configs, single-buffer these constants
        #             (pipeline_mode=pl.Buffered(1) / manual staging DMA) to keep
        #             v7x's 64 MiB VMEM headroom.
        return pl.BlockSpec(shape, lambda n, _nd=nd: (0,) * _nd)

    consts = (wcat, sb, w4p, s4b4, wpm, wp4, bpp)
    in_specs = [pl.BlockSpec((1, H, W, C), lambda n: (n, 0, 0, 0))]
    in_specs += [const_spec(c.shape) for c in consts]

    # TODO(synk): for large inputs add a haloed H-tile grid axis so per-step blocks
    #             fit v7x's 64 MiB VMEM and the pipeline gets more than N steps.
    out = pl.pallas_call(
        kernel,
        out_shape=jax.ShapeDtypeStruct((N, Pout, HW), jnp.float32),
        grid_spec=pltpu.PrefetchScalarGridSpec(
            num_scalar_prefetch=0,
            grid=(N,),
            in_specs=in_specs,
            out_specs=pl.BlockSpec((1, Pout, HW), lambda n: (n, 0, 0)),
            scratch_shapes=[
                pltpu.VMEM((H + 2 * pmax, W + 2 * wpad, Cp), jnp.bfloat16),  # padded x
                pltpu.VMEM((HW, nslab * Cp), jnp.bfloat16),                  # K-concat LHS
            ]),
        compiler_params=pltpu.CompilerParams(
            dimension_semantics=("parallel",)),
    )(x, *consts)
    # (N, 2*Cout, H*W) -> NCHW is a free reshape (no HBM transpose / slice pass).
    return out.reshape(N, Pout, H, W)


def init_params(key, C, Cout):
    """Deterministic synthetic parameters. BN folded to (scale, bias) per channel."""
    eps = 1e-5
    keys = iter(jax.random.split(key, 32))

    def bn_fold(ch):
        gamma = 1.0 + 0.1 * jax.random.normal(next(keys), (ch,))
        beta = 0.1 * jax.random.normal(next(keys), (ch,))
        mean = 0.1 * jax.random.normal(next(keys), (ch,))
        var = 1.0 + 0.2 * jax.random.uniform(next(keys), (ch,))
        scale = gamma / jnp.sqrt(var + eps)
        bias = beta - mean * scale
        return (scale.reshape(1, ch).astype(jnp.float32),
                bias.reshape(1, ch).astype(jnp.float32))

    p = {}
    p["w0"] = (0.05 * jax.random.normal(next(keys), (C, Cout))).astype(jnp.float32)
    p["s0"], p["b0"] = bn_fold(Cout)
    for i in (1, 2, 3):
        p[f"w{i}"] = (0.05 * jax.random.normal(next(keys), (3, 3, C, Cout))).astype(jnp.float32)
        p[f"s{i}"], p[f"b{i}"] = bn_fold(Cout)
    p["w4"] = (0.05 * jax.random.normal(next(keys), (C, Cout))).astype(jnp.float32)
    p["s4"], p["b4"] = bn_fold(Cout)
    # project weight stored as 5 per-branch blocks of (Cout, 2*Cout)
    p["wp"] = (0.05 * jax.random.normal(next(keys), (5, Cout, 2 * Cout))).astype(jnp.float32)
    p["sp"], p["bp"] = bn_fold(2 * Cout)
    return p


def reference(x_nchw, params, rates):
    """Pure-JAX reference mirroring the kernel's bf16-input / f32-accumulate precision."""
    def b16(a):
        return a.astype(jnp.bfloat16).astype(jnp.float32)

    x = b16(jnp.transpose(x_nchw, (0, 2, 3, 1)).astype(jnp.float32))  # NHWC

    def bn_relu(y, s, b):
        return jnp.maximum(y * s.reshape(1, 1, 1, -1) + b.reshape(1, 1, 1, -1), 0.0)

    def conv1x1(inp, w):
        return jnp.einsum("nhwc,cd->nhwd", inp, w, precision=_HI)

    def dil(inp, w, r):
        return lax.conv_general_dilated(
            inp, w, (1, 1), [(r, r), (r, r)], rhs_dilation=(r, r),
            dimension_numbers=("NHWC", "HWIO", "NHWC"), precision=_HI)

    f0 = bn_relu(conv1x1(x, b16(params["w0"])), params["s0"], params["b0"])
    f1 = bn_relu(dil(x, b16(params["w1"]), rates[0]), params["s1"], params["b1"])
    f2 = bn_relu(dil(x, b16(params["w2"]), rates[1]), params["s2"], params["b2"])
    f3 = bn_relu(dil(x, b16(params["w3"]), rates[2]), params["s3"], params["b3"])
    xm = jnp.mean(x, axis=(1, 2), keepdims=True)
    p4 = bn_relu(conv1x1(b16(xm), b16(params["w4"])), params["s4"], params["b4"])

    wps = b16(params["wp"] * params["sp"])          # BN scale folded into project weight
    pre = conv1x1(b16(p4), wps[4]) + params["bp"].reshape(1, 1, 1, -1)
    for i, f in enumerate((f0, f1, f2, f3)):
        pre = pre + conv1x1(b16(f), wps[i])
    out = jnp.maximum(pre, 0.0)
    return jnp.transpose(out, (0, 3, 1, 2))          # NCHW


if __name__ == "__main__":
    N, C, H, W = 2, 64, 16, 16          # in_channels=64 -> out_channels=8
    rates = (1, 2, 3)

    key = jax.random.PRNGKey(0)
    kx, kp = jax.random.split(key)
    x = jax.random.normal(kx, (N, C, H, W), dtype=jnp.float32)
    params = init_params(kp, C, C // 8)

    y = jax.block_until_ready(aspp_forward(x, params, rates))
    y_ref = jax.block_until_ready(reference(x, params, rates))

    assert y.shape == (N, 2 * (C // 8), H, W), y.shape
    max_err = jnp.max(jnp.abs(y - y_ref))
    assert jnp.allclose(y, y_ref, atol=5e-3, rtol=5e-3), f"max abs err {max_err}"

    print("KERNEL_OK")
</pallas_src>

<mosaic_0001>
module attributes {stable_mosaic.version = 11 : i64} {
  func.func @kernel(%arg0: i32, %arg1: memref<1x16x16x64xbf16, #tpu.memory_space<vmem>>, %arg2: memref<3200x128xbf16, #tpu.memory_space<vmem>>, %arg3: memref<2x128xf32, #tpu.memory_space<vmem>>, %arg4: memref<128x128xbf16, #tpu.memory_space<vmem>>, %arg5: memref<2x128xf32, #tpu.memory_space<vmem>>, %arg6: memref<128x128xbf16, #tpu.memory_space<vmem>>, %arg7: memref<128x128xbf16, #tpu.memory_space<vmem>>, %arg8: memref<1x128xf32, #tpu.memory_space<vmem>>, %arg9: memref<1x16x256xf32, #tpu.memory_space<vmem>>, %arg10: memref<22x32x128xbf16, #tpu.memory_space<vmem>>, %arg11: memref<256x3200xbf16, #tpu.memory_space<vmem>>) attributes {dimension_semantics = [#tpu.dimension_semantics<parallel>], iteration_bounds = array<i64: 2>, scalar_prefetch = 0 : i64, scratch_operands = 2 : i64, tpu.core_type = #tpu.core_type<tc>, window_params = [{transform_indices = @transform_0, window_bounds = array<i64: 1, 16, 16, 64>}, {pipeline_mode = #tpu.pipeline_mode<synchronous>, transform_indices = @transform_1, window_bounds = array<i64: 3200, 128>}, {pipeline_mode = #tpu.pipeline_mode<synchronous>, transform_indices = @transform_2, window_bounds = array<i64: 2, 128>}, {pipeline_mode = #tpu.pipeline_mode<synchronous>, transform_indices = @transform_3, window_bounds = array<i64: 128, 128>}, {pipeline_mode = #tpu.pipeline_mode<synchronous>, transform_indices = @transform_4, window_bounds = array<i64: 2, 128>}, {pipeline_mode = #tpu.pipeline_mode<synchronous>, transform_indices = @transform_5, window_bounds = array<i64: 128, 128>}, {pipeline_mode = #tpu.pipeline_mode<synchronous>, transform_indices = @transform_6, window_bounds = array<i64: 128, 128>}, {pipeline_mode = #tpu.pipeline_mode<synchronous>, transform_indices = @transform_7, window_bounds = array<i64: 1, 128>}, {transform_indices = @transform_8, window_bounds = array<i64: 1, 16, 256>}]} {
    %cst = arith.constant 0.000000e+00 : bf16
    %0 = vector.broadcast %cst : bf16 to vector<22x32x128xbf16>
    %c0 = arith.constant 0 : index
    %c0_0 = arith.constant 0 : index
    %c0_1 = arith.constant 0 : index
    %1 = vector.load %arg10[%c0, %c0_0, %c0_1] : memref<22x32x128xbf16, #tpu.memory_space<vmem>>, vector<22x32x128xbf16>
    tpu.vector_store %arg10[%c0, %c0_0, %c0_1], %0 {strides = array<i32>} : memref<22x32x128xbf16, #tpu.memory_space<vmem>>, vector<22x32x128xbf16>,
    %c0_2 = arith.constant 0 : index
    %c0_3 = arith.constant 0 : index
    %c0_4 = arith.constant 0 : index
    %c0_5 = arith.constant 0 : index
    %2 = vector.load %arg1[%c0_2, %c0_3, %c0_4, %c0_5] : memref<1x16x16x64xbf16, #tpu.memory_space<vmem>>, vector<1x16x16x64xbf16>
    %3 = vector.shape_cast %2 : vector<1x16x16x64xbf16> to vector<16x16x64xbf16>
    %c3 = arith.constant 3 : index
    %c8 = arith.constant 8 : index
    %c0_6 = arith.constant 0 : index
    %4 = vector.load %arg10[%c3, %c8, %c0_6] : memref<22x32x128xbf16, #tpu.memory_space<vmem>>, vector<16x16x64xbf16>
    tpu.vector_store %arg10[%c3, %c8, %c0_6], %3 {strides = array<i32>} : memref<22x32x128xbf16, #tpu.memory_space<vmem>>, vector<16x16x64xbf16>,
    %c0_7 = arith.constant 0 : index
    %c5 = arith.constant 5 : index
    %c0_8 = arith.constant 0 : index
    %5 = vector.load %arg10[%c0_7, %c5, %c0_8] : memref<22x32x128xbf16, #tpu.memory_space<vmem>>, vector<22x16x128xbf16>
    %6 = vector.extract_strided_slice %5 {offsets = [0, 0, 0], sizes = [16, 16, 128], strides = [1, 1, 1]} : vector<22x16x128xbf16> to vector<16x16x128xbf16>
    %7 = vector.shape_cast %6 : vector<16x16x128xbf16> to vector<256x128xbf16>
    %c0_9 = arith.constant 0 : index
    %c2176 = arith.constant 2176 : index
    %8 = vector.load %arg11[%c0_9, %c2176] : memref<256x3200xbf16, #tpu.memory_space<vmem>>, vector<256x128xbf16>
    tpu.vector_store %arg11[%c0_9, %c2176], %7 {strides = array<i32>} : memref<256x3200xbf16, #tpu.memory_space<vmem>>, vector<256x128xbf16>,
    %9 = vector.extract_strided_slice %5 {offsets = [3, 0, 0], sizes = [16, 16, 128], strides = [1, 1, 1]} : vector<22x16x128xbf16> to vector<16x16x128xbf16>
    %10 = vector.shape_cast %9 : vector<16x16x128xbf16> to vector<256x128xbf16>
    %c0_10 = arith.constant 0 : index
    %c2560 = arith.constant 2560 : index
    %11 = vector.load %arg11[%c0_10, %c2560] : memref<256x3200xbf16, #tpu.memory_space<vmem>>, vector<256x128xbf16>
    tpu.vector_store %arg11[%c0_10, %c2560], %10 {strides = array<i32>} : memref<256x3200xbf16, #tpu.memory_space<vmem>>, vector<256x128xbf16>,
    %12 = vector.extract_strided_slice %5 {offsets = [6, 0, 0], sizes = [16, 16, 128], strides = [1, 1, 1]} : vector<22x16x128xbf16> to vector<16x16x128xbf16>
    %13 = vector.shape_cast %12 : vector<16x16x128xbf16> to vector<256x128xbf16>
    %c0_11 = arith.constant 0 : index
    %c2816 = arith.constant 2816 : index
    %14 = vector.load %arg11[%c0_11, %c2816] : memref<256x3200xbf16, #tpu.memory_space<vmem>>, vector<256x128xbf16>
    tpu.vector_store %arg11[%c0_11, %c2816], %13 {strides = array<i32>} : memref<256x3200xbf16, #tpu.memory_space<vmem>>, vector<256x128xbf16>,
    %c0_12 = arith.constant 0 : index
    %c6 = arith.constant 6 : index
    %c0_13 = arith.constant 0 : index
    %15 = vector.load %arg10[%c0_12, %c6, %c0_13] : memref<22x32x128xbf16, #tpu.memory_space<vmem>>, vector<22x16x128xbf16>
    %16 = vector.extract_strided_slice %15 {offsets = [1, 0, 0], sizes = [16, 16, 128], strides = [1, 1, 1]} : vector<22x16x128xbf16> to vector<16x16x128xbf16>
    %17 = vector.shape_cast %16 : vector<16x16x128xbf16> to vector<256x128xbf16>
    %c0_14 = arith.constant 0 : index
    %c1152 = arith.constant 1152 : index
    %18 = vector.load %arg11[%c0_14, %c1152] : memref<256x3200xbf16, #tpu.memory_space<vmem>>, vector<256x128xbf16>
    tpu.vector_store %arg11[%c0_14, %c1152], %17 {strides = array<i32>} : memref<256x3200xbf16, #tpu.memory_space<vmem>>, vector<256x128xbf16>,
    %19 = vector.extract_strided_slice %15 {offsets = [3, 0, 0], sizes = [16, 16, 128], strides = [1, 1, 1]} : vector<22x16x128xbf16> to vector<16x16x128xbf16>
    %20 = vector.shape_cast %19 : vector<16x16x128xbf16> to vector<256x128xbf16>
    %c0_15 = arith.constant 0 : index
    %c1536 = arith.constant 1536 : index
    %21 = vector.load %arg11[%c0_15, %c1536] : memref<256x3200xbf16, #tpu.memory_space<vmem>>, vector<256x128xbf16>
    tpu.vector_store %arg11[%c0_15, %c1536], %20 {strides = array<i32>} : memref<256x3200xbf16, #tpu.memory_space<vmem>>, vector<256x128xbf16>,
    %22 = vector.extract_strided_slice %15 {offsets = [5, 0, 0], sizes = [16, 16, 128], strides = [1, 1, 1]} : vector<22x16x128xbf16> to vector<16x16x128xbf16>
    %23 = vector.shape_cast %22 : vector<16x16x128xbf16> to vector<256x128xbf16>
    %c0_16 = arith.constant 0 : index
    %c1792 = arith.constant 1792 : index
    %24 = vector.load %arg11[%c0_16, %c1792] : memref<256x3200xbf16, #tpu.memory_space<vmem>>, vector<256x128xbf16>
    tpu.vector_store %arg11[%c0_16, %c1792], %23 {strides = array<i32>} : memref<256x3200xbf16, #tpu.memory_space<vmem>>, vector<256x128xbf16>,
    %c0_17 = arith.constant 0 : index
    %c7 = arith.constant 7 : index
    %c0_18 = arith.constant 0 : index
    %25 = vector.load %arg10[%c0_17, %c7, %c0_18] : memref<22x32x128xbf16, #tpu.memory_space<vmem>>, vector<22x16x128xbf16>
    %26 = vector.extract_strided_slice %25 {offsets = [2, 0, 0], sizes = [16, 16, 128], strides = [1, 1, 1]} : vector<22x16x128xbf16> to vector<16x16x128xbf16>
    %27 = vector.shape_cast %26 : vector<16x16x128xbf16> to vector<256x128xbf16>
    %c0_19 = arith.constant 0 : index
    %c128 = arith.constant 128 : index
    %28 = vector.load %arg11[%c0_19, %c128] : memref<256x3200xbf16, #tpu.memory_space<vmem>>, vector<256x128xbf16>
    tpu.vector_store %arg11[%c0_19, %c128], %27 {strides = array<i32>} : memref<256x3200xbf16, #tpu.memory_space<vmem>>, vector<256x128xbf16>,
    %29 = vector.extract_strided_slice %25 {offsets = [3, 0, 0], sizes = [16, 16, 128], strides = [1, 1, 1]} : vector<22x16x128xbf16> to vector<16x16x128xbf16>
    %30 = vector.shape_cast %29 : vector<16x16x128xbf16> to vector<256x128xbf16>
    %c0_20 = arith.constant 0 : index
    %c512 = arith.constant 512 : index
    %31 = vector.load %arg11[%c0_20, %c512] : memref<256x3200xbf16, #tpu.memory_space<vmem>>, vector<256x128xbf16>
    tpu.vector_store %arg11[%c0_20, %c512], %30 {strides = array<i32>} : memref<256x3200xbf16, #tpu.memory_space<vmem>>, vector<256x128xbf16>,
    %32 = vector.extract_strided_slice %25 {offsets = [4, 0, 0], sizes = [16, 16, 128], strides = [1, 1, 1]} : vector<22x16x128xbf16> to vector<16x16x128xbf16>
    %33 = vector.shape_cast %32 : vector<16x16x128xbf16> to vector<256x128xbf16>
    %c0_21 = arith.constant 0 : index
    %c768 = arith.constant 768 : index
    %34 = vector.load %arg11[%c0_21, %c768] : memref<256x3200xbf16, #tpu.memory_space<vmem>>, vector<256x128xbf16>
    tpu.vector_store %arg11[%c0_21, %c768], %33 {strides = array<i32>} : memref<256x3200xbf16, #tpu.memory_space<vmem>>, vector<256x128xbf16>,
    %c0_22 = arith.constant 0 : index
    %c8_23 = arith.constant 8 : index
    %c0_24 = arith.constant 0 : index
    %35 = vector.load %arg10[%c0_22, %c8_23, %c0_24] : memref<22x32x128xbf16, #tpu.memory_space<vmem>>, vector<22x16x128xbf16>
    %36 = vector.extract_strided_slice %35 {offsets = [3, 0, 0], sizes = [16, 16, 128], strides = [1, 1, 1]} : vector<22x16x128xbf16> to vector<16x16x128xbf16>
    %37 = vector.shape_cast %36 : vector<16x16x128xbf16> to vector<256x128xbf16>
    %c0_25 = arith.constant 0 : index
    %c0_26 = arith.constant 0 : index
    %38 = vector.load %arg11[%c0_25, %c0_26] : memref<256x3200xbf16, #tpu.memory_space<vmem>>, vector<256x128xbf16>
    tpu.vector_store %arg11[%c0_25, %c0_26], %37 {strides = array<i32>} : memref<256x3200xbf16, #tpu.memory_space<vmem>>, vector<256x128xbf16>,
    %39 = vector.extract_strided_slice %35 {offsets = [2, 0, 0], sizes = [16, 16, 128], strides = [1, 1, 1]} : vector<22x16x128xbf16> to vector<16x16x128xbf16>
    %40 = vector.shape_cast %39 : vector<16x16x128xbf16> to vector<256x128xbf16>
    %c0_27 = arith.constant 0 : index
    %c256 = arith.constant 256 : index
    %41 = vector.load %arg11[%c0_27, %c256] : memref<256x3200xbf16, #tpu.memory_space<vmem>>, vector<256x128xbf16>
    tpu.vector_store %arg11[%c0_27, %c256], %40 {strides = array<i32>} : memref<256x3200xbf16, #tpu.memory_space<vmem>>, vector<256x128xbf16>,
    %42 = vector.extract_strided_slice %35 {offsets = [4, 0, 0], sizes = [16, 16, 128], strides = [1, 1, 1]} : vector<22x16x128xbf16> to vector<16x16x128xbf16>
    %43 = vector.shape_cast %42 : vector<16x16x128xbf16> to vector<256x128xbf16>
    %c0_28 = arith.constant 0 : index
    %c896 = arith.constant 896 : index
    %44 = vector.load %arg11[%c0_28, %c896] : memref<256x3200xbf16, #tpu.memory_space<vmem>>, vector<256x128xbf16>
    tpu.vector_store %arg11[%c0_28, %c896], %43 {strides = array<i32>} : memref<256x3200xbf16, #tpu.memory_space<vmem>>, vector<256x128xbf16>,
    %45 = vector.extract_strided_slice %35 {offsets = [1, 0, 0], sizes = [16, 16, 128], strides = [1, 1, 1]} : vector<22x16x128xbf16> to vector<16x16x128xbf16>
    %46 = vector.shape_cast %45 : vector<16x16x128xbf16> to vector<256x128xbf16>
    %c0_29 = arith.constant 0 : index
    %c1280 = arith.constant 1280 : index
    %47 = vector.load %arg11[%c0_29, %c1280] : memref<256x3200xbf16, #tpu.memory_space<vmem>>, vector<256x128xbf16>
    tpu.vector_store %arg11[%c0_29, %c1280], %46 {strides = array<i32>} : memref<256x3200xbf16, #tpu.memory_space<vmem>>, vector<256x128xbf16>,
    %48 = vector.extract_strided_slice %35 {offsets = [5, 0, 0], sizes = [16, 16, 128], strides = [1, 1, 1]} : vector<22x16x128xbf16> to vector<16x16x128xbf16>
    %49 = vector.shape_cast %48 : vector<16x16x128xbf16> to vector<256x128xbf16>
    %c0_30 = arith.constant 0 : index
    %c1920 = arith.constant 1920 : index
    %50 = vector.load %arg11[%c0_30, %c1920] : memref<256x3200xbf16, #tpu.memory_space<vmem>>, vector<256x128xbf16>
    tpu.vector_store %arg11[%c0_30, %c1920], %49 {strides = array<i32>} : memref<256x3200xbf16, #tpu.memory_space<vmem>>, vector<256x128xbf16>,
    %51 = vector.extract_strided_slice %35 {offsets = [0, 0, 0], sizes = [16, 16, 128], strides = [1, 1, 1]} : vector<22x16x128xbf16> to vector<16x16x128xbf16>
    %52 = vector.shape_cast %51 : vector<16x16x128xbf16> to vector<256x128xbf16>
    %c0_31 = arith.constant 0 : index
    %c2304 = arith.constant 2304 : index
    %53 = vector.load %arg11[%c0_31, %c2304] : memref<256x3200xbf16, #tpu.memory_space<vmem>>, vector<256x128xbf16>
    tpu.vector_store %arg11[%c0_31, %c2304], %52 {strides = array<i32>} : memref<256x3200xbf16, #tpu.memory_space<vmem>>, vector<256x128xbf16>,
    %54 = vector.extract_strided_slice %35 {offsets = [6, 0, 0], sizes = [16, 16, 128], strides = [1, 1, 1]} : vector<22x16x128xbf16> to vector<16x16x128xbf16>
    %55 = vector.shape_cast %54 : vector<16x16x128xbf16> to vector<256x128xbf16>
    %c0_32 = arith.constant 0 : index
    %c2944 = arith.constant 2944 : index
    %56 = vector.load %arg11[%c0_32, %c2944] : memref<256x3200xbf16, #tpu.memory_space<vmem>>, vector<256x128xbf16>
    tpu.vector_store %arg11[%c0_32, %c2944], %55 {strides = array<i32>} : memref<256x3200xbf16, #tpu.memory_space<vmem>>, vector<256x128xbf16>,
    %c0_33 = arith.constant 0 : index
    %c9 = arith.constant 9 : index
    %c0_34 = arith.constant 0 : index
    %57 = vector.load %arg10[%c0_33, %c9, %c0_34] : memref<22x32x128xbf16, #tpu.memory_space<vmem>>, vector<22x16x128xbf16>
    %58 = vector.extract_strided_slice %57 {offsets = [2, 0, 0], sizes = [16, 16, 128], strides = [1, 1, 1]} : vector<22x16x128xbf16> to vector<16x16x128xbf16>
    %59 = vector.shape_cast %58 : vector<16x16x128xbf16> to vector<256x128xbf16>
    %c0_35 = arith.constant 0 : index
    %c384 = arith.constant 384 : index
    %60 = vector.load %arg11[%c0_35, %c384] : memref<256x3200xbf16, #tpu.memory_space<vmem>>, vector<256x128xbf16>
    tpu.vector_store %arg11[%c0_35, %c384], %59 {strides = array<i32>} : memref<256x3200xbf16, #tpu.memory_space<vmem>>, vector<256x128xbf16>,
    %61 = vector.extract_strided_slice %57 {offsets = [3, 0, 0], sizes = [16, 16, 128], strides = [1, 1, 1]} : vector<22x16x128xbf16> to vector<16x16x128xbf16>
    %62 = vector.shape_cast %61 : vector<16x16x128xbf16> to vector<256x128xbf16>
    %c0_36 = arith.constant 0 : index
    %c640 = arith.constant 640 : index
    %63 = vector.load %arg11[%c0_36, %c640] : memref<256x3200xbf16, #tpu.memory_space<vmem>>, vector<256x128xbf16>
    tpu.vector_store %arg11[%c0_36, %c640], %62 {strides = array<i32>} : memref<256x3200xbf16, #tpu.memory_space<vmem>>, vector<256x128xbf16>,
    %64 = vector.extract_strided_slice %57 {offsets = [4, 0, 0], sizes = [16, 16, 128], strides = [1, 1, 1]} : vector<22x16x128xbf16> to vector<16x16x128xbf16>
    %65 = vector.shape_cast %64 : vector<16x16x128xbf16> to vector<256x128xbf16>
    %c0_37 = arith.constant 0 : index
    %c1024 = arith.constant 1024 : index
    %66 = vector.load %arg11[%c0_37, %c1024] : memref<256x3200xbf16, #tpu.memory_space<vmem>>, vector<256x128xbf16>
    tpu.vector_store %arg11[%c0_37, %c1024], %65 {strides = array<i32>} : memref<256x3200xbf16, #tpu.memory_space<vmem>>, vector<256x128xbf16>,
    %c0_38 = arith.constant 0 : index
    %c10 = arith.constant 10 : index
    %c0_39 = arith.constant 0 : index
    %67 = vector.load %arg10[%c0_38, %c10, %c0_39] : memref<22x32x128xbf16, #tpu.memory_space<vmem>>, vector<22x16x128xbf16>
    %68 = vector.extract_strided_slice %67 {offsets = [1, 0, 0], sizes = [16, 16, 128], strides = [1, 1, 1]} : vector<22x16x128xbf16> to vector<16x16x128xbf16>
    %69 = vector.shape_cast %68 : vector<16x16x128xbf16> to vector<256x128xbf16>
    %c0_40 = arith.constant 0 : index
    %c1408 = arith.constant 1408 : index
    %70 = vector.load %arg11[%c0_40, %c1408] : memref<256x3200xbf16, #tpu.memory_space<vmem>>, vector<256x128xbf16>
    tpu.vector_store %arg11[%c0_40, %c1408], %69 {strides = array<i32>} : memref<256x3200xbf16, #tpu.memory_space<vmem>>, vector<256x128xbf16>,
    %71 = vector.extract_strided_slice %67 {offsets = [3, 0, 0], sizes = [16, 16, 128], strides = [1, 1, 1]} : vector<22x16x128xbf16> to vector<16x16x128xbf16>
    %72 = vector.shape_cast %71 : vector<16x16x128xbf16> to vector<256x128xbf16>
    %c0_41 = arith.constant 0 : index
    %c1664 = arith.constant 1664 : index
    %73 = vector.load %arg11[%c0_41, %c1664] : memref<256x3200xbf16, #tpu.memory_space<vmem>>, vector<256x128xbf16>
    tpu.vector_store %arg11[%c0_41, %c1664], %72 {strides = array<i32>} : memref<256x3200xbf16, #tpu.memory_space<vmem>>, vector<256x128xbf16>,
    %74 = vector.extract_strided_slice %67 {offsets = [5, 0, 0], sizes = [16, 16, 128], strides = [1, 1, 1]} : vector<22x16x128xbf16> to vector<16x16x128xbf16>
    %75 = vector.shape_cast %74 : vector<16x16x128xbf16> to vector<256x128xbf16>
    %c0_42 = arith.constant 0 : index
    %c2048 = arith.constant 2048 : index
    %76 = vector.load %arg11[%c0_42, %c2048] : memref<256x3200xbf16, #tpu.memory_space<vmem>>, vector<256x128xbf16>
    tpu.vector_store %arg11[%c0_42, %c2048], %75 {strides = array<i32>} : memref<256x3200xbf16, #tpu.memory_space<vmem>>, vector<256x128xbf16>,
    %c0_43 = arith.constant 0 : index
    %c11 = arith.constant 11 : index
    %c0_44 = arith.constant 0 : index
    %77 = vector.load %arg10[%c0_43, %c11, %c0_44] : memref<22x32x128xbf16, #tpu.memory_space<vmem>>, vector<22x16x128xbf16>
    %78 = vector.extract_strided_slice %77 {offsets = [0, 0, 0], sizes = [16, 16, 128], strides = [1, 1, 1]} : vector<22x16x128xbf16> to vector<16x16x128xbf16>
    %79 = vector.shape_cast %78 : vector<16x16x128xbf16> to vector<256x128xbf16>
    %c0_45 = arith.constant 0 : index
    %c2432 = arith.constant 2432 : index
    %80 = vector.load %arg11[%c0_45, %c2432] : memref<256x3200xbf16, #tpu.memory_space<vmem>>, vector<256x128xbf16>
    tpu.vector_store %arg11[%c0_45, %c2432], %79 {strides = array<i32>} : memref<256x3200xbf16, #tpu.memory_space<vmem>>, vector<256x128xbf16>,
    %81 = vector.extract_strided_slice %77 {offsets = [3, 0, 0], sizes = [16, 16, 128], strides = [1, 1, 1]} : vector<22x16x128xbf16> to vector<16x16x128xbf16>
    %82 = vector.shape_cast %81 : vector<16x16x128xbf16> to vector<256x128xbf16>
    %c0_46 = arith.constant 0 : index
    %c2688 = arith.constant 2688 : index
    %83 = vector.load %arg11[%c0_46, %c2688] : memref<256x3200xbf16, #tpu.memory_space<vmem>>, vector<256x128xbf16>
    tpu.vector_store %arg11[%c0_46, %c2688], %82 {strides = array<i32>} : memref<256x3200xbf16, #tpu.memory_space<vmem>>, vector<256x128xbf16>,
    %84 = vector.extract_strided_slice %77 {offsets = [6, 0, 0], sizes = [16, 16, 128], strides = [1, 1, 1]} : vector<22x16x128xbf16> to vector<16x16x128xbf16>
    %85 = vector.shape_cast %84 : vector<16x16x128xbf16> to vector<256x128xbf16>
    %c0_47 = arith.constant 0 : index
    %c3072 = arith.constant 3072 : index
    %86 = vector.load %arg11[%c0_47, %c3072] : memref<256x3200xbf16, #tpu.memory_space<vmem>>, vector<256x128xbf16>
    tpu.vector_store %arg11[%c0_47, %c3072], %85 {strides = array<i32>} : memref<256x3200xbf16, #tpu.memory_space<vmem>>, vector<256x128xbf16>,
    %c0_48 = arith.constant 0 : index
    %c0_49 = arith.constant 0 : index
    %87 = vector.load %arg11[%c0_48, %c0_49] : memref<256x3200xbf16, #tpu.memory_space<vmem>>, vector<256x3200xbf16>
    %c0_50 = arith.constant 0 : index
    %c0_51 = arith.constant 0 : index
    %88 = vector.load %arg2[%c0_50, %c0_51] : memref<3200x128xbf16, #tpu.memory_space<vmem>>, vector<3200x128xbf16>
    %cst_52 = arith.constant dense<0.000000e+00> : vector<256x128xf32>
    %89 = tpu.matmul %87, %88, %cst_52 {dimension_numbers = #tpu.dot_dimension_numbers<[1], [0], [0], [1], [0, 0, 1, 1], [], []>} : vector<256x3200xbf16>, vector<3200x128xbf16>, vector<256x128xf32> -> vector<256x128xf32>
    %c0_53 = arith.constant 0 : index
    %c0_54 = arith.constant 0 : index
    %90 = vector.load %arg3[%c0_53, %c0_54] : memref<2x128xf32, #tpu.memory_space<vmem>>, vector<1x128xf32>
    %91 = vector.broadcast %90 : vector<1x128xf32> to vector<256x128xf32>
    %92 = arith.mulf %89, %91 : vector<256x128xf32>
    %c1 = arith.constant 1 : index
    %c0_55 = arith.constant 0 : index
    %93 = vector.load %arg3[%c1, %c0_55] : memref<2x128xf32, #tpu.memory_space<vmem>>, vector<1x128xf32>
    %94 = vector.broadcast %93 : vector<1x128xf32> to vector<256x128xf32>
    %95 = arith.addf %92, %94 : vector<256x128xf32>
    %cst_56 = arith.constant 0.000000e+00 : f32
    %96 = vector.broadcast %cst_56 : f32 to vector<256x128xf32>
    %97 = arith.maximumf %95, %96 : vector<256x128xf32>
    %c0_57 = arith.constant 0 : index
    %c0_58 = arith.constant 0 : index
    %98 = vector.load %arg11[%c0_57, %c0_58] : memref<256x3200xbf16, #tpu.memory_space<vmem>>, vector<256x128xbf16>
    %cst_59 = arith.constant 3.906250e-03 : bf16
    %99 = vector.broadcast %cst_59 : bf16 to vector<1x256xbf16>
    %cst_60 = arith.constant dense<0.000000e+00> : vector<1x128xf32>
    %100 = tpu.matmul %99, %98, %cst_60 {dimension_numbers = #tpu.dot_dimension_numbers<[1], [0], [0], [1], [0, 0, 1, 1], [], []>} : vector<1x256xbf16>, vector<256x128xbf16>, vector<1x128xf32> -> vector<1x128xf32>
    %101 = arith.truncf %100 : vector<1x128xf32> to vector<1x128xbf16>
    %c0_61 = arith.constant 0 : index
    %c0_62 = arith.constant 0 : index
    %102 = vector.load %arg4[%c0_61, %c0_62] : memref<128x128xbf16, #tpu.memory_space<vmem>>, vector<128x128xbf16>
    %cst_63 = arith.constant dense<0.000000e+00> : vector<1x128xf32>
    %103 = tpu.matmul %101, %102, %cst_63 {dimension_numbers = #tpu.dot_dimension_numbers<[1], [0], [0], [1], [0, 0, 1, 1], [], []>} : vector<1x128xbf16>, vector<128x128xbf16>, vector<1x128xf32> -> vector<1x128xf32>
    %c0_64 = arith.constant 0 : index
    %c0_65 = arith.constant 0 : index
    %104 = vector.load %arg5[%c0_64, %c0_65] : memref<2x128xf32, #tpu.memory_space<vmem>>, vector<1x128xf32>
    %105 = arith.mulf %103, %104 : vector<1x128xf32>
    %c1_66 = arith.constant 1 : index
    %c0_67 = arith.constant 0 : index
    %106 = vector.load %arg5[%c1_66, %c0_67] : memref<2x128xf32, #tpu.memory_space<vmem>>, vector<1x128xf32>
    %107 = arith.addf %105, %106 : vector<1x128xf32>
    %cst_68 = arith.constant 0.000000e+00 : f32
    %108 = vector.broadcast %cst_68 : f32 to vector<1x128xf32>
    %109 = arith.maximumf %107, %108 : vector<1x128xf32>
    %110 = arith.truncf %109 : vector<1x128xf32> to vector<1x128xbf16>
    %c0_69 = arith.constant 0 : index
    %c0_70 = arith.constant 0 : index
    %111 = vector.load %arg7[%c0_69, %c0_70] : memref<128x128xbf16, #tpu.memory_space<vmem>>, vector<128x128xbf16>
    %cst_71 = arith.constant dense<0.000000e+00> : vector<1x128xf32>
    %112 = tpu.matmul %110, %111, %cst_71 {dimension_numbers = #tpu.dot_dimension_numbers<[1], [0], [0], [1], [0, 0, 1, 1], [], []>} : vector<1x128xbf16>, vector<128x128xbf16>, vector<1x128xf32> -> vector<1x128xf32>
    %113 = arith.truncf %97 : vector<256x128xf32> to vector<256x128xbf16>
    %c0_72 = arith.constant 0 : index
    %c0_73 = arith.constant 0 : index
    %114 = vector.load %arg6[%c0_72, %c0_73] : memref<128x128xbf16, #tpu.memory_space<vmem>>, vector<128x128xbf16>
    %cst_74 = arith.constant dense<0.000000e+00> : vector<256x128xf32>
    %115 = tpu.matmul %113, %114, %cst_74 {dimension_numbers = #tpu.dot_dimension_numbers<[1], [0], [0], [1], [0, 0, 1, 1], [], []>} : vector<256x128xbf16>, vector<128x128xbf16>, vector<256x128xf32> -> vector<256x128xf32>
    %c0_75 = arith.constant 0 : index
    %c0_76 = arith.constant 0 : index
    %116 = vector.load %arg8[%c0_75, %c0_76] : memref<1x128xf32, #tpu.memory_space<vmem>>, vector<1x128xf32>
    %117 = arith.addf %112, %116 : vector<1x128xf32>
    %118 = vector.broadcast %117 : vector<1x128xf32> to vector<256x128xf32>
    %119 = arith.addf %115, %118 : vector<256x128xf32>
    %cst_77 = arith.constant 0.000000e+00 : f32
    %120 = vector.broadcast %cst_77 : f32 to vector<256x128xf32>
    %121 = arith.maximumf %119, %120 : vector<256x128xf32>
    %122 = tpu.transpose %121, [1, 0] : vector<256x128xf32> -> vector<128x256xf32>
    %123 = vector.extract_strided_slice %122 {offsets = [0, 0], sizes = [16, 256], strides = [1, 1]} : vector<128x256xf32> to vector<16x256xf32>
    %124 = vector.shape_cast %123 : vector<16x256xf32> to vector<1x16x256xf32>
    %c0_78 = arith.constant 0 : index
    %c0_79 = arith.constant 0 : index
    %c0_80 = arith.constant 0 : index
    %125 = vector.load %arg9[%c0_78, %c0_79, %c0_80] : memref<1x16x256xf32, #tpu.memory_space<vmem>>, vector<1x16x256xf32>
    tpu.vector_store %arg9[%c0_78, %c0_79, %c0_80], %124 {strides = array<i32>} : memref<1x16x256xf32, #tpu.memory_space<vmem>>, vector<1x16x256xf32>,
    return
  }
  func.func @transform_0(%arg0: i32) -> (i32, i32, i32, i32) {
    %c0_i32 = arith.constant 0 : i32
    %c0_i32_0 = arith.constant 0 : i32
    %c0_i32_1 = arith.constant 0 : i32
    %c0_i32_2 = arith.constant 0 : i32
    return %arg0, %c0_i32, %c0_i32_0, %c0_i32_1 : i32, i32, i32, i32
  }
  func.func @transform_1(%arg0: i32) -> (i32, i32) {
    %c0_i32 = arith.constant 0 : i32
    %c0_i32_0 = arith.constant 0 : i32
    %c0_i32_1 = arith.constant 0 : i32
    return %c0_i32, %c0_i32_0 : i32, i32
  }
  func.func @transform_2(%arg0: i32) -> (i32, i32) {
    %c0_i32 = arith.constant 0 : i32
    %c0_i32_0 = arith.constant 0 : i32
    %c0_i32_1 = arith.constant 0 : i32
    return %c0_i32, %c0_i32_0 : i32, i32
  }
  func.func @transform_3(%arg0: i32) -> (i32, i32) {
    %c0_i32 = arith.constant 0 : i32
    %c0_i32_0 = arith.constant 0 : i32
    %c0_i32_1 = arith.constant 0 : i32
    return %c0_i32, %c0_i32_0 : i32, i32
  }
  func.func @transform_4(%arg0: i32) -> (i32, i32) {
    %c0_i32 = arith.constant 0 : i32
    %c0_i32_0 = arith.constant 0 : i32
    %c0_i32_1 = arith.constant 0 : i32
    return %c0_i32, %c0_i32_0 : i32, i32
  }
  func.func @transform_5(%arg0: i32) -> (i32, i32) {
    %c0_i32 = arith.constant 0 : i32
    %c0_i32_0 = arith.constant 0 : i32
    %c0_i32_1 = arith.constant 0 : i32
    return %c0_i32, %c0_i32_0 : i32, i32
  }
  func.func @transform_6(%arg0: i32) -> (i32, i32) {
    %c0_i32 = arith.constant 0 : i32
    %c0_i32_0 = arith.constant 0 : i32
    %c0_i32_1 = arith.constant 0 : i32
    return %c0_i32, %c0_i32_0 : i32, i32
  }
  func.func @transform_7(%arg0: i32) -> (i32, i32) {
    %c0_i32 = arith.constant 0 : i32
    %c0_i32_0 = arith.constant 0 : i32
    %c0_i32_1 = arith.constant 0 : i32
    return %c0_i32, %c0_i32_0 : i32, i32
  }
  func.func @transform_8(%arg0: i32) -> (i32, i32, i32) {
    %c0_i32 = arith.constant 0 : i32
    %c0_i32_0 = arith.constant 0 : i32
    %c0_i32_1 = arith.constant 0 : i32
    return %arg0, %c0_i32, %c0_i32_0 : i32, i32, i32
  }
}

</mosaic_0001>

<bundles_post_ra>
// kernel: aspp_forward.1
= control target key start
LH: loop header
LB: loop body
LE: loop exit
PB: predicated region body
PF: predicated region fallthrough
CT: control target
= control target key end

     0   :  { %s14737_s27 = smov 0   ;;  %s18469_s0 = inlined_call_operand.vmem [shape: bf16[2,16,16,64], index: 0, kind: input, shape index: {}]   ;;  %s18470_s1 = inlined_call_operand.vmem [shape: bf16[3200,128], index: 1, kind: input, shape index: {}]   ;;  %s18471_s2 = inlined_call_operand.vmem [shape: f32[2,128], index: 2, kind: input, shape index: {}]   ;;  %s18472_s3 = inlined_call_operand.vmem [shape: bf16[128,128], index: 3, kind: input, shape index: {}]   ;;  %s18473_s4 = inlined_call_operand.vmem [shape: f32[2,128], index: 4, kind: input, shape index: {}]   ;;  %s18474_s5 = inlined_call_operand.vmem [shape: bf16[128,128], index: 5, kind: input, shape index: {}]   ;;  %s18475_s6 = inlined_call_operand.vmem [shape: bf16[128,128], index: 6, kind: input, shape index: {}]   ;;  %s18476_s7 = inlined_call_operand.vmem [shape: f32[1,128], index: 7, kind: input, shape index: {}]   ;;  %s18477_s8 = inlined_call_operand.vmem [shape: f32[2,16,256], index: 8, kind: output, shape index: {}]  }
   0x1 LB: > { %s11382_s28 = sadd.s32 4294967295, %s14688_s27   ;;  %p11386_p0 = scmp.ge.s32.totalorder %s14688_s27, 1  ;;  %s14688_s27 = sphi %s14737_s27, %s18_s27  }
   0x2   : > { %p262_p1 = scmp.lt.s32.totalorder %s14688_s27, 3 }
   0x4   : > { %p263_p2 = pnand %p11386_p0, %p262_p1 }
   0x6   : > { %266 = sbr.rel (%p263_p2) target bundleno = 2454 (0x996), region = 52 }
   0xb   : > { %v14420_v0 = vld [vmem:[%s18470_s1 + $0x38] sm:$0xff]  ;;  %p296_p3 = scmp.lt.s32.totalorder %s11382_s28, 1  ;;  %v14690_v2 = vmov 0   ;;  %v14419_v3 = vld [vmem:[%s18470_s1 + $0x30] sm:$0xff]  ;;  %vm429_vm0 = vcmask 519168   ;;  %v14418_v5 = vld [vmem:[%s18470_s1 + $0x28] sm:$0xff] }
   0xc   : > { %v14436_v1 = vld [vmem:[%s18470_s1 + $0xb8] sm:$0xff]  ;;  %321 = vst [vmem:[#allocation2 + $0x34] sm:$0xf] %v14690_v2  ;;  %8416 = vmatpush.bf16.msra.mxu0 %v14420_v0  ;;  %14653 = vmatpush.bf16.msra.mxu1 %v14420_v0  ;;  %v14435_v4 = vld [vmem:[%s18470_s1 + $0xb0] sm:$0xff]  ;;  %v14434_v8 = vld [vmem:[%s18470_s1 + $0xa8] sm:$0xff]  ;;  %vm1395_vm7 = vcmask 1040384  }
   0xd   : > { %s18648_s28 = smov (!%p296_p3, %s11382_s28), 1  ;;  %322 = vst [vmem:[#allocation2 + $0x38] sm:$0xf] %v14690_v2  ;;  %14661 = vmatpush.bf16.msra.mxu3 %v14436_v1  ;;  %8594 = vmatpush.bf16.msra.mxu2 %v14436_v1  ;;  %v14417_v9 = vld [vmem:[%s18470_s1 + $0x20] sm:$0xff]  ;;  %v14416_v11 = vld [vmem:[%s18470_s1 + $0x18] sm:$0xff]  ;;  %v14415_v15 = vld [vmem:[%s18470_s1 + $0x10] sm:$0xff] }
   0xe   : > { %308 = vst [vmem:[#allocation2] sm:$0xf] %v14690_v2  ;;  %s14011_s15 = sshll.u32 %s18648_s28, 7  ;;  %v14433_v10 = vld [vmem:[%s18470_s1 + $0xa0] sm:$0xff]  ;;  %v14432_v13 = vld [vmem:[%s18470_s1 + $0x98] sm:$0xff]  ;;  %v14431_v16 = vld [vmem:[%s18470_s1 + $0x90] sm:$0xff] }
   0xf   : > { %309 = vst [vmem:[#allocation2 + $0x4] sm:$0xf] %v14690_v2  ;;  %s14770_s20 = scalar_lea.vmem %s18469_s0, %s14011_s15  ;;  %v14414_v17 = vld [vmem:[%s18470_s1 + $0x8] sm:$0xff]  ;;  %v14413_v19 = vld [vmem:[%s18470_s1] sm:$0xff]  ;;  %v14428_v24 = vld [vmem:[%s18470_s1 + $0x78] sm:$0xff]  ;;  %vm1396_vm8 = vcmask 1044484  }
  0x10   : > { %310 = vst [vmem:[#allocation2 + $0x8] sm:$0xf] %v14690_v2  ;;  %8417 = vmatpush.bf16.msra.mxu0 %v14419_v3  ;;  %14654 = vmatpush.bf16.msra.mxu1 %v14419_v3  ;;  %v396_v6 = vld [vmem:[%s14770_s20] sm:$0xf]  ;;  %v397_v7 = vld [vmem:[%s14770_s20 + $0x4] sm:$0xf]  ;;  %vm15880_vm9 = vmor %vm1395_vm7, %vm1396_vm8 }
  0x11   : > { %311 = vst [vmem:[#allocation2 + $0xc] sm:$0xf] %v14690_v2  ;;  %14662 = vmatpush.bf16.msra.mxu3 %v14435_v4  ;;  %8595 = vmatpush.bf16.msra.mxu2 %v14435_v4  ;;  %v14430_v18 = vld [vmem:[%s18470_s1 + $0x88] sm:$0xff]  ;;  %v14429_v22 = vld [vmem:[%s18470_s1 + $0x80] sm:$0xff]  ;;  %v416_v25 = vld [vmem:[%s14770_s20 + $0x50] sm:$0xf] }
  0x12   : > { %430 = vst.msk [vmem:[#allocation2 + $0x34] sm:$0xf] %vm429_vm0, %v396_v6  ;;  %v417_v26 = vld [vmem:[%s14770_s20 + $0x54] sm:$0xf]  ;;  %v410_v27 = vld [vmem:[%s14770_s20 + $0x38] sm:$0xf] }
  0x13   : > { %431 = vst.msk [vmem:[#allocation2 + $0x38] sm:$0xf] %vm429_vm0, %v397_v7  ;;  %v411_v28 = vld [vmem:[%s14770_s20 + $0x3c] sm:$0xf]  ;;  %v398_v29 = vld [vmem:[%s14770_s20 + $0x8] sm:$0xf] }
  0x14   : > { %312 = vst [vmem:[#allocation2 + $0x10] sm:$0xf] %v14690_v2  ;;  %8418 = vmatpush.bf16.msra.mxu0 %v14418_v5  ;;  %14655 = vmatpush.bf16.msra.mxu1 %v14418_v5  ;;  %v399_v30 = vld [vmem:[%s14770_s20 + $0xc] sm:$0xf]  ;;  %v14427_v31 = vld [vmem:[%s18470_s1 + $0x70] sm:$0xff]  ;;  %v14425_v7 = vld [vmem:[%s18470_s1 + $0x60] sm:$0xff] }
  0x15   : > { %313 = vst [vmem:[#allocation2 + $0x14] sm:$0xf] %v14690_v2  ;;  %14663 = vmatpush.bf16.msra.mxu3 %v14434_v8  ;;  %8596 = vmatpush.bf16.msra.mxu2 %v14434_v8  ;;  %v418_v32 = vld [vmem:[%s14770_s20 + $0x58] sm:$0xf]  ;;  %v419_v33 = vld [vmem:[%s14770_s20 + $0x5c] sm:$0xf] }
  0x16   : > { %314 = vst [vmem:[#allocation2 + $0x18] sm:$0xf] %v14690_v2  ;;  %v14426_v51 = vld [vmem:[%s18470_s1 + $0x68] sm:$0xff]  ;;  %v412_v55 = vld [vmem:[%s14770_s20 + $0x40] sm:$0xf]  ;;  %vm3268_vm10 = vcmask 1042432  }
  0x17   : > { %315 = vst [vmem:[#allocation2 + $0x1c] sm:$0xf] %v14690_v2  ;;  %v413_v56 = vld [vmem:[%s14770_s20 + $0x44] sm:$0xf]  ;;  %v400_v57 = vld [vmem:[%s14770_s20 + $0x10] sm:$0xf] }
  0x18   : > { %316 = vst [vmem:[#allocation2 + $0x20] sm:$0xf] %v14690_v2  ;;  %8419 = vmatpush.bf16.msra.mxu0 %v14417_v9  ;;  %14656 = vmatpush.bf16.msra.mxu1 %v14417_v9  ;;  %v401_v58 = vld [vmem:[%s14770_s20 + $0x14] sm:$0xf]  ;;  %v420_v59 = vld [vmem:[%s14770_s20 + $0x60] sm:$0xf] }
  0x19   : > { %v14795_v12 = vld [vmem:[#allocation2 + $0x34] sm:$0xf]  ;;  %317 = vst [vmem:[#allocation2 + $0x24] sm:$0xf] %v14690_v2  ;;  %14664 = vmatpush.bf16.msra.mxu3 %v14433_v10  ;;  %8597 = vmatpush.bf16.msra.mxu2 %v14433_v10  ;;  %v421_v60 = vld [vmem:[%s14770_s20 + $0x64] sm:$0xf] }
  0x1a   : > { %v14801_v14 = vld [vmem:[#allocation2 + $0x38] sm:$0xf]  ;;  %2315 = vst [vmem:[#allocation3] sm:$0xf] %v14795_v12  ;;  %v414_v61 = vld [vmem:[%s14770_s20 + $0x48] sm:$0xf] }
  0x1b   : > { %2316 = vst [vmem:[#allocation3 + $0x64] sm:$0xf] %v14801_v14  ;;  %v415_v62 = vld [vmem:[%s14770_s20 + $0x4c] sm:$0xf]  ;;  %vm1740_vm1 = vsmask.f32 256 }
  0x1c   : > { %318 = vst [vmem:[#allocation2 + $0x28] sm:$0xf] %v14690_v2  ;;  %8420 = vmatpush.bf16.msra.mxu0 %v14416_v11  ;;  %14657 = vmatpush.bf16.msra.mxu1 %v14416_v11  ;;  %vm1741_vm2 = vsmask.f32 4368  ;;  %vm2593_vm4 = vsmask.f32 3328 }
  0x1d   : > { %319 = vst [vmem:[#allocation2 + $0x2c] sm:$0xf] %v14690_v2  ;;  %14665 = vmatpush.bf16.msra.mxu3 %v14432_v13  ;;  %8598 = vmatpush.bf16.msra.mxu2 %v14432_v13  ;;  %vm15009_vm3 = vmor %vm1740_vm1, %vm1741_vm2  ;;  %vm2594_vm5 = vsmask.f32 7440  ;;  %vm3269_vm11 = vcmask 1046532   ;;  %s14012_s12 = sshll.u32 %s18648_s28, 5 }
  0x1e   : > { %320 = vst [vmem:[#allocation2 + $0x30] sm:$0xf] %v14690_v2  ;;  %vm15069_vm6 = vmor %vm2593_vm4, %vm2594_vm5  ;;  %vm528_vm13 = vsmask.f32 1280  ;;  %vm529_vm14 = vsmask.f32 5392  ;;  %s305_s15 = scalar_lea.vmem %s18477_s8, %s14012_s12 }
  0x1f   : > { %323 = vst [vmem:[#allocation2 + $0x3c] sm:$0xf] %v14690_v2  ;;  %vm15961_vm12 = vmor %vm3268_vm10, %vm3269_vm11  ;;  %vm3626_vm1 = vsmask.f32 6416 }
  0x20   : > { %324 = vst [vmem:[#allocation2 + $0x40] sm:$0xf] %v14690_v2  ;;  %8421 = vmatpush.bf16.msra.mxu0 %v14415_v15  ;;  %14658 = vmatpush.bf16.msra.mxu1 %v14415_v15  ;;  %vm16980_vm15 = vmor %vm528_vm13, %vm529_vm14 }
  0x21   : > { %325 = vst [vmem:[#allocation2 + $0x44] sm:$0xf] %v14690_v2  ;;  %14666 = vmatpush.bf16.msra.mxu3 %v14431_v16  ;;  %8599 = vmatpush.bf16.msra.mxu2 %v14431_v16  ;;  %v11451_v20 = vld [vmem:[#allocation3] sm:$0xf] }
  0x22   : > { %326 = vst [vmem:[#allocation2 + $0x48] sm:$0xf] %v14690_v2  ;;  %v14025_v21 = vld [vmem:[#allocation3 + $0x60] sm:$0xf0] }
  0x23   : > { %327 = vst [vmem:[#allocation2 + $0x4c] sm:$0xf] %v14690_v2  ;;  %v11452_v23 = vor.u32 %v14025_v21, %v11451_v20  ;;  %v402_v20 = vld [vmem:[%s14770_s20 + $0x18] sm:$0xf]  ;;  %v403_v21 = vld [vmem:[%s14770_s20 + $0x1c] sm:$0xf] }
  0x24   : > { %328 = vst [vmem:[#allocation2 + $0x50] sm:$0xf] %v14690_v2  ;;  %8422 = vmatpush.bf16.msra.mxu0 %v14414_v17  ;;  %14659 = vmatpush.bf16.msra.mxu1 %v14414_v17 }
  0x25   : > { %329 = vst [vmem:[#allocation2 + $0x54] sm:$0xf] %v14690_v2  ;;  %14667 = vmatpush.bf16.msra.mxu3 %v14430_v18  ;;  %8600 = vmatpush.bf16.msra.mxu2 %v14430_v18 }
  0x26   : > { %330 = vst [vmem:[#allocation2 + $0x58] sm:$0xf] %v14690_v2 }
  0x27   : > { %331 = vst [vmem:[#allocation2 + $0x5c] sm:$0xf] %v14690_v2 }
  0x28   : > { %332 = vst [vmem:[#allocation2 + $0x60] sm:$0xf] %v14690_v2  ;;  %8423 = vmatpush.bf16.msra.mxu0 %v14413_v19  ;;  %14660 = vmatpush.bf16.msra.mxu1 %v14413_v19 }
  0x29   : > { %333 = vst [vmem:[#allocation2 + $0x64] sm:$0xf] %v14690_v2  ;;  %14668 = vmatpush.bf16.msra.mxu3 %v14429_v22  ;;  %8601 = vmatpush.bf16.msra.mxu2 %v14429_v22  ;;  %v422_v22 = vld [vmem:[%s14770_s20 + $0x68] sm:$0xf] }
  0x2a   : > { %334 = vst [vmem:[#allocation2 + $0x68] sm:$0xf] %v14690_v2 }
  0x2b   : > { %335 = vst [vmem:[#allocation2 + $0x6c] sm:$0xf] %v14690_v2  ;;  %8424 = vmatmul.bf16.vlgmr.msra.gmra.mxu0 %v11452_v23  ;;  %v423_v23 = vld [vmem:[%s14770_s20 + $0x6c] sm:$0xf] }
  0x2c   : > { %336 = vst [vmem:[#allocation2 + $0x70] sm:$0xf] %v14690_v2  ;;  %8505 = vmatpush.bf16.msrb.mxu1 %v14428_v24  ;;  %v14424_v24 = vld [vmem:[%s18470_s1 + $0x58] sm:$0xff] }
  0x2d   : > { %337 = vst [vmem:[#allocation2 + $0x74] sm:$0xf] %v14690_v2 }
  0x2e   : > { %338 = vst [vmem:[#allocation2 + $0x78] sm:$0xf] %v14690_v2 }
  0x2f   : > { %339 = vst [vmem:[#allocation2 + $0x7c] sm:$0xf] %v14690_v2 }
  0x30   : > { %340 = vst [vmem:[#allocation2 + $0x80] sm:$0xf] %v14690_v2  ;;  %8506 = vmatpush.bf16.msrb.mxu1 %v14427_v31 }
  0x31   : > { %341 = vst [vmem:[#allocation2 + $0x84] sm:$0xf] %v14690_v2 }
  0x32   : > { %342 = vst [vmem:[#allocation2 + $0x88] sm:$0xf] %v14690_v2 }
  0x33   : > { %343 = vst [vmem:[#allocation2 + $0x8c] sm:$0xf] %v14690_v2 }
  0x34   : > { %344 = vst [vmem:[#allocation2 + $0x90] sm:$0xf] %v14690_v2  ;;  %8507 = vmatpush.bf16.msrb.mxu1 %v14426_v51 }
  0x35   : > { %345 = vst [vmem:[#allocation2 + $0x94] sm:$0xf] %v14690_v2 }
  0x36   : > { %346 = vst [vmem:[#allocation2 + $0x98] sm:$0xf] %v14690_v2 }
  0x37   : > { %347 = vst [vmem:[#allocation2 + $0x9c] sm:$0xf] %v14690_v2 }
  0x38   : > { %348 = vst [vmem:[#allocation2 + $0xa0] sm:$0xf] %v14690_v2  ;;  %8508 = vmatpush.bf16.msrb.mxu1 %v14425_v7 }
  0x39   : > { %349 = vst [vmem:[#allocation2 + $0xa4] sm:$0xf] %v14690_v2 }
  0x3a   : > { %350 = vst [vmem:[#allocation2 + $0xa8] sm:$0xf] %v14690_v2 }
  0x3b   : > { %351 = vst [vmem:[#allocation2 + $0xac] sm:$0xf] %v14690_v2 }
  0x3c   : > { %352 = vst [vmem:[#allocation2 + $0xb0] sm:$0xf] %v14690_v2  ;;  %8509 = vmatpush.bf16.msrb.mxu1 %v14424_v24 }
  0x3d   : > { %353 = vst [vmem:[#allocation2 + $0xb4] sm:$0xf] %v14690_v2 }
  0x3e   : > { %354 = vst [vmem:[#allocation2 + $0xb8] sm:$0xf] %v14690_v2 }
  0x3f   : > { %355 = vst [vmem:[#allocation2 + $0xbc] sm:$0xf] %v14690_v2 }
  0x40   : > { %356 = vst [vmem:[#allocation2 + $0xc0] sm:$0xf] %v14690_v2 }
  0x41   : > { %357 = vst [vmem:[#allocation2 + $0xc4] sm:$0xf] %v14690_v2 }
  0x42   : > { %358 = vst [vmem:[#allocation2 + $0xc8] sm:$0xf] %v14690_v2 }
  0x43   : > { %359 = vst [vmem:[#allocation2 + $0xcc] sm:$0xf] %v14690_v2 }
  0x44   : > { %360 = vst [vmem:[#allocation2 + $0xd0] sm:$0xf] %v14690_v2 }
  0x45   : > { %361 = vst [vmem:[#allocation2 + $0xd4] sm:$0xf] %v14690_v2 }
  0x46   : > { %362 = vst [vmem:[#allocation2 + $0xd8] sm:$0xf] %v14690_v2 }
  0x47   : > { %363 = vst [vmem:[#allocation2 + $0xdc] sm:$0xf] %v14690_v2 }
  0x48   : > { %364 = vst [vmem:[#allocation2 + $0xe0] sm:$0xf] %v14690_v2 }
  0x49   : > { %365 = vst [vmem:[#allocation2 + $0xe4] sm:$0xf] %v14690_v2 }
  0x4a   : > { %366 = vst [vmem:[#allocation2 + $0xe8] sm:$0xf] %v14690_v2 }
  0x4b   : > { %367 = vst [vmem:[#allocation2 + $0xec] sm:$0xf] %v14690_v2 }
  0x4c   : > { %368 = vst [vmem:[#allocation2 + $0xf0] sm:$0xf] %v14690_v2 }
  0x4d   : > { %369 = vst [vmem:[#allocation2 + $0xf4] sm:$0xf] %v14690_v2 }
  0x4e   : > { %370 = vst [vmem:[#allocation2 + $0xf8] sm:$0xf] %v14690_v2 }
  0x4f   : > { %371 = vst [vmem:[#allocation2 + $0xfc] sm:$0xf] %v14690_v2 }
  0x50   : > { %372 = vst [vmem:[#allocation2 + $0x100] sm:$0xf] %v14690_v2 }
  0x51   : > { %373 = vst [vmem:[#allocation2 + $0x104] sm:$0xf] %v14690_v2 }
  0x52   : > { %374 = vst [vmem:[#allocation2 + $0x108] sm:$0xf] %v14690_v2 }
  0x53   : > { %375 = vst [vmem:[#allocation2 + $0x10c] sm:$0xf] %v14690_v2 }
  0x54   : > { %376 = vst [vmem:[#allocation2 + $0x110] sm:$0xf] %v14690_v2 }
  0x55   : > { %377 = vst [vmem:[#allocation2 + $0x114] sm:$0xf] %v14690_v2 }
  0x56   : > { %378 = vst [vmem:[#allocation2 + $0x118] sm:$0xf] %v14690_v2 }
  0x57   : > { %379 = vst [vmem:[#allocation2 + $0x11c] sm:$0xf] %v14690_v2 }
  0x58   : > { %380 = vst [vmem:[#allocation2 + $0x120] sm:$0xf] %v14690_v2 }
  0x59   : > { %381 = vst [vmem:[#allocation2 + $0x124] sm:$0xf] %v14690_v2 }
  0x5a   : > { %382 = vst [vmem:[#allocation2 + $0x128] sm:$0xf] %v14690_v2 }
  0x5b   : > { %383 = vst [vmem:[#allocation2 + $0x12c] sm:$0xf] %v14690_v2 }
  0x5c   : > { %384 = vst [vmem:[#allocation2 + $0x130] sm:$0xf] %v14690_v2 }
  0x5d   : > { %385 = vst [vmem:[#allocation2 + $0x134] sm:$0xf] %v14690_v2 }
  0x5e   : > { %386 = vst [vmem:[#allocation2 + $0x138] sm:$0xf] %v14690_v2 }
  0x5f   : > { %387 = vst [vmem:[#allocation2 + $0x13c] sm:$0xf] %v14690_v2 }
  0x60   : > { %388 = vst [vmem:[#allocation2 + $0x140] sm:$0xf] %v14690_v2 }
  0x61   : > { %389 = vst [vmem:[#allocation2 + $0x144] sm:$0xf] %v14690_v2 }
  0x62   : > { %390 = vst [vmem:[#allocation2 + $0x148] sm:$0xf] %v14690_v2 }
  0x63   : > { %391 = vst [vmem:[#allocation2 + $0x14c] sm:$0xf] %v14690_v2 }
  0x64   : > { %392 = vst [vmem:[#allocation2 + $0x150] sm:$0xf] %v14690_v2 }
  0x65   : > { %393 = vst [vmem:[#allocation2 + $0x154] sm:$0xf] %v14690_v2 }
  0x66   : > { %394 = vst [vmem:[#allocation2 + $0x158] sm:$0xf] %v14690_v2 }
  0x67   : > { %395 = vst [vmem:[#allocation2 + $0x15c] sm:$0xf] %v14690_v2 }
  0x68   : > { %2349 = vst [vmem:[#allocation3 + $0xd0] sm:$0xf] %v14795_v12 }
  0x69   : > { %2350 = vst [vmem:[#allocation3 + $0x134] sm:$0xf] %v14801_v14 }
  0x6a   : > { %2415 = vst [vmem:[#allocation3 + $0x1b8] sm:$0xf] %v14795_v12 }
  0x6b   : > { %2416 = vst [vmem:[#allocation3 + $0x21c] sm:$0xf] %v14801_v14 }
  0x6c   : > { %2481 = vst [vmem:[#allocation3 + $0x2a0] sm:$0xf] %v14795_v12 }
  0x6d   : > { %2482 = vst [vmem:[#allocation3 + $0x304] sm:$0xf] %v14801_v14 }
  0x6e   : > { %450 = vst.msk [vmem:[#allocation2 + $0xd4] sm:$0xf] %vm429_vm0, %v416_v25  ;;  %v404_v25 = vld [vmem:[%s14770_s20 + $0x20] sm:$0xf] }
  0x6f   : > { %451 = vst.msk [vmem:[#allocation2 + $0xd8] sm:$0xf] %vm429_vm0, %v417_v26  ;;  %v405_v26 = vld [vmem:[%s14770_s20 + $0x24] sm:$0xf] }
  0x70   : > { %444 = vst.msk [vmem:[#allocation2 + $0xa4] sm:$0xf] %vm429_vm0, %v410_v27  ;;  %v14423_v27 = vld [vmem:[%s18470_s1 + $0x50] sm:$0xff] }
  0x71   : > { %445 = vst.msk [vmem:[#allocation2 + $0xa8] sm:$0xf] %vm429_vm0, %v411_v28  ;;  %v424_v28 = vld [vmem:[%s14770_s20 + $0x70] sm:$0xf]  ;;  %8510 = vmatpush.bf16.msrb.mxu1 %v14423_v27 }
  0x72   : > { %432 = vst.msk [vmem:[#allocation2 + $0x44] sm:$0xf] %vm429_vm0, %v398_v29  ;;  %v425_v29 = vld [vmem:[%s14770_s20 + $0x74] sm:$0xf] }
  0x73   : > { %433 = vst.msk [vmem:[#allocation2 + $0x48] sm:$0xf] %vm429_vm0, %v399_v30  ;;  %v14443_v27 = vld [vmem:[%s18470_s1 + $0xf0] sm:$0xff] }
  0x74   : > { %452 = vst.msk [vmem:[#allocation2 + $0xe4] sm:$0xf] %vm429_vm0, %v418_v32 }
  0x75   : > { %v2297_v34 = vld [vmem:[#allocation2 + $0xd4] sm:$0xf]  ;;  %453 = vst.msk [vmem:[#allocation2 + $0xe8] sm:$0xf] %vm429_vm0, %v419_v33 }
  0x76   : > { %v2298_v35 = vld [vmem:[#allocation2 + $0xd8] sm:$0xf]  ;;  %2335 = vst [vmem:[#allocation3 + $0x7d0] sm:$0xf] %v2297_v34 }
  0x77   : > { %2336 = vst [vmem:[#allocation3 + $0x834] sm:$0xf] %v2298_v35  ;;  %v2291_v39 = vld [vmem:[#allocation2 + $0xa4] sm:$0xf] }
  0x78   : > { %2369 = vst [vmem:[#allocation3 + $0x8a0] sm:$0xf] %v2297_v34  ;;  %v2292_v40 = vld [vmem:[#allocation2 + $0xa8] sm:$0xf] }
  0x79   : > { %2370 = vst [vmem:[#allocation3 + $0x904] sm:$0xf] %v2298_v35  ;;  %v2279_v44 = vld [vmem:[#allocation2 + $0x44] sm:$0xf] }
  0x7a   : > { %2397 = vst [vmem:[#allocation3 + $0x724] sm:$0xf] %v2297_v34  ;;  %v2280_v45 = vld [vmem:[#allocation2 + $0x48] sm:$0xf] }
  0x7b   : > { %2398 = vst [vmem:[#allocation3 + $0x788] sm:$0xf] %v2298_v35  ;;  %v2299_v47 = vld [vmem:[#allocation2 + $0xe4] sm:$0xf] }
  0x7c   : > { %2435 = vst [vmem:[#allocation3 + $0x988] sm:$0xf] %v2297_v34  ;;  %v2300_v49 = vld [vmem:[#allocation2 + $0xe8] sm:$0xf] }
  0x7d   : > { %v12451_v36 = vld [vmem:[#allocation3 + $0x7d0] sm:$0xf]  ;;  %2436 = vst [vmem:[#allocation3 + $0x9ec] sm:$0xf] %v2298_v35 }
  0x7e   : > { %v14275_v37 = vld [vmem:[#allocation3 + $0x830] sm:$0xf0]  ;;  %2459 = vst [vmem:[#allocation3 + $0x67c] sm:$0xf] %v2297_v34 }
  0x7f   : > { %v12452_v38 = vor.u32 %v14275_v37, %v12451_v36  ;;  %2460 = vst [vmem:[#allocation3 + $0x6e0] sm:$0xf] %v2298_v35  ;;  %v12559_v30 = vld [vmem:[#allocation3 + $0x8a0] sm:$0xf] }
  0x80   : > { %2501 = vst [vmem:[#allocation3 + $0xa70] sm:$0xf] %v2297_v34  ;;  %v14301_v31 = vld [vmem:[#allocation3 + $0x900] sm:$0xf0] }
  0x81   : > { %8474 = vmatmul.bf16.vlgmr.msra.gmra.mxu1 %v12452_v38  ;;  %2502 = vst [vmem:[#allocation3 + $0xad4] sm:$0xf] %v2298_v35 }
  0x82   : > { %2521 = vst [vmem:[#allocation3 + $0x5d4] sm:$0xf] %v2297_v34  ;;  %v12560_v34 = vor.u32 %v14301_v31, %v12559_v30  ;;  %v1689_v30 = vld [vmem:[#allocation2 + $0x30] sm:$0x8] }
  0x83   : > { %2522 = vst [vmem:[#allocation3 + $0x638] sm:$0xf] %v2298_v35 }
  0x84   : > { %2363 = vst [vmem:[#allocation3 + $0x648] sm:$0xf] %v2291_v39 }
  0x85   : > { %2364 = vst [vmem:[#allocation3 + $0x6ac] sm:$0xf] %v2292_v40 }
  0x86   : > { %2329 = vst [vmem:[#allocation3 + $0x578] sm:$0xf] %v2291_v39 }
  0x87   : > { %2330 = vst [vmem:[#allocation3 + $0x5dc] sm:$0xf] %v2292_v40 }
  0x88   : > { %2391 = vst [vmem:[#allocation3 + $0x4cc] sm:$0xf] %v2291_v39 }
  0x89   : > { %2392 = vst [vmem:[#allocation3 + $0x530] sm:$0xf] %v2292_v40 }
  0x8a   : > { %2429 = vst [vmem:[#allocation3 + $0x730] sm:$0xf] %v2291_v39 }
  0x8b   : > { %v12259_v41 = vld [vmem:[#allocation3 + $0x648] sm:$0xf]  ;;  %2430 = vst [vmem:[#allocation3 + $0x794] sm:$0xf] %v2292_v40 }
  0x8c   : > { %v14226_v42 = vld [vmem:[#allocation3 + $0x6a8] sm:$0xf0]  ;;  %2453 = vst [vmem:[#allocation3 + $0x424] sm:$0xf] %v2291_v39 }
  0x8d   : > { %v12260_v43 = vor.u32 %v14226_v42, %v12259_v41  ;;  %2454 = vst [vmem:[#allocation3 + $0x488] sm:$0xf] %v2292_v40 }
  0x8e   : > { %2495 = vst [vmem:[#allocation3 + $0x818] sm:$0xf] %v2291_v39 }
  0x8f   : > { %8642 = vmatmul.bf16.vlgmr.msra.gmra.mxu3 %v12260_v43  ;;  %2496 = vst [vmem:[#allocation3 + $0x87c] sm:$0xf] %v2292_v40  ;;  %v14422_v43 = vld [vmem:[%s18470_s1 + $0x48] sm:$0xff] }
  0x90   : > { %2515 = vst [vmem:[#allocation3 + $0x37c] sm:$0xf] %v2291_v39  ;;  %8511 = vmatpush.bf16.msrb.mxu1 %v14422_v43 }
  0x91   : > { %2516 = vst [vmem:[#allocation3 + $0x3e0] sm:$0xf] %v2292_v40 }
  0x92   : > { %2317 = vst [vmem:[#allocation3 + $0xc8] sm:$0xf] %v2279_v44 }
  0x93   : > { %2318 = vst [vmem:[#allocation3 + $0x12c] sm:$0xf] %v2280_v45 }
  0x94   : > { %2351 = vst [vmem:[#allocation3 + $0x198] sm:$0xf] %v2279_v44 }
  0x95   : > { %2352 = vst [vmem:[#allocation3 + $0x1fc] sm:$0xf] %v2280_v45 }
  0x96   : > { %2379 = vst [vmem:[#allocation3 + $0x1c] sm:$0xf] %v2279_v44 }
  0x97   : > { %2380 = vst [vmem:[#allocation3 + $0x80] sm:$0xf] %v2280_v45 }
  0x98   : > { %2417 = vst [vmem:[#allocation3 + $0x280] sm:$0xf] %v2279_v44 }
  0x99   : > { %v11551_v46 = vld [vmem:[#allocation3 + $0xc8] sm:$0xf]  ;;  %2418 = vst [vmem:[#allocation3 + $0x2e4] sm:$0xf] %v2280_v45 }
  0x9a   : > { %v14050_v48 = vld [vmem:[#allocation3 + $0x128] sm:$0xf0]  ;;  %2483 = vst [vmem:[#allocation3 + $0x368] sm:$0xf] %v2279_v44 }
  0x9b   : > { %v11552_v50 = vor.u32 %v14050_v48, %v11551_v46  ;;  %2484 = vst [vmem:[#allocation3 + $0x3cc] sm:$0xf] %v2280_v45 }
  0x9c   : > { %2337 = vst [vmem:[#allocation3 + $0x898] sm:$0xf] %v2299_v47 }
  0x9d   : > { %8429 = vmatmul.bf16.gmra.mxu0 %v11552_v50  ;;  %2338 = vst [vmem:[#allocation3 + $0x8fc] sm:$0xf] %v2300_v49 }
  0x9e   : > { %2371 = vst [vmem:[#allocation3 + $0x968] sm:$0xf] %v2299_v47 }
  0x9f   : > { %2372 = vst [vmem:[#allocation3 + $0x9cc] sm:$0xf] %v2300_v49 }
  0xa0   : > { %2399 = vst [vmem:[#allocation3 + $0x7ec] sm:$0xf] %v2299_v47 }
  0xa1   : > { %2400 = vst [vmem:[#allocation3 + $0x850] sm:$0xf] %v2300_v49 }
  0xa2   : > { %2437 = vst [vmem:[#allocation3 + $0xa50] sm:$0xf] %v2299_v47 }
  0xa3   : > { %v12551_v52 = vld [vmem:[#allocation3 + $0x898] sm:$0xf]  ;;  %2438 = vst [vmem:[#allocation3 + $0xab4] sm:$0xf] %v2300_v49 }
  0xa4   : > { %v14300_v53 = vld [vmem:[#allocation3 + $0x8f8] sm:$0xf0]  ;;  %2461 = vst [vmem:[#allocation3 + $0x744] sm:$0xf] %v2299_v47 }
  0xa5   : > { %v12552_v54 = vor.u32 %v14300_v53, %v12551_v52  ;;  %2462 = vst [vmem:[#allocation3 + $0x7a8] sm:$0xf] %v2300_v49  ;;  %v12659_v40 = vld [vmem:[#allocation3 + $0x968] sm:$0xf] }
  0xa6   : > { %2503 = vst [vmem:[#allocation3 + $0xb38] sm:$0xf] %v2299_v47  ;;  %v14326_v41 = vld [vmem:[#allocation3 + $0x9c8] sm:$0xf0] }
  0xa7   : > { %8479 = vmatmul.bf16.gmra.mxu1 %v12552_v54  ;;  %2504 = vst [vmem:[#allocation3 + $0xb9c] sm:$0xf] %v2300_v49  ;;  %v12660_v42 = vor.u32 %v14326_v41, %v12659_v40  ;;  %v406_v54 = vld [vmem:[%s14770_s20 + $0x28] sm:$0xf] }
  0xa8   : > { %2523 = vst [vmem:[#allocation3 + $0x69c] sm:$0xf] %v2299_v47 }
  0xa9   : > { %2524 = vst [vmem:[#allocation3 + $0x700] sm:$0xf] %v2300_v49 }
  0xaa   : > { %446 = vst.msk [vmem:[#allocation2 + $0xb4] sm:$0xf] %vm429_vm0, %v412_v55 }
  0xab   : > { %447 = vst.msk [vmem:[#allocation2 + $0xb8] sm:$0xf] %vm429_vm0, %v413_v56  ;;  %v407_v56 = vld [vmem:[%s14770_s20 + $0x2c] sm:$0xf] }
  0xac   : > { %434 = vst.msk [vmem:[#allocation2 + $0x54] sm:$0xf] %vm429_vm0, %v400_v57 }
  0xad   : > { %435 = vst.msk [vmem:[#allocation2 + $0x58] sm:$0xf] %vm429_vm0, %v401_v58 }
  0xae   : > { %454 = vst.msk [vmem:[#allocation2 + $0xf4] sm:$0xf] %vm429_vm0, %v420_v59 }
  0xaf   : > { %455 = vst.msk [vmem:[#allocation2 + $0xf8] sm:$0xf] %vm429_vm0, %v421_v60  ;;  %v426_v60 = vld [vmem:[%s14770_s20 + $0x78] sm:$0xf] }
  0xb0   : > { %448 = vst.msk [vmem:[#allocation2 + $0xc4] sm:$0xf] %vm429_vm0, %v414_v61 }
  0xb1   : > { %v2293_v63 = vld [vmem:[#allocation2 + $0xb4] sm:$0xf]  ;;  %449 = vst.msk [vmem:[#allocation2 + $0xc8] sm:$0xf] %vm429_vm0, %v415_v62  ;;  %v427_v62 = vld [vmem:[%s14770_s20 + $0x7c] sm:$0xf] }
  0xb2   : > { %v2294_v0 = vld [vmem:[#allocation2 + $0xb8] sm:$0xf]  ;;  %2365 = vst [vmem:[#allocation3 + $0x710] sm:$0xf] %v2293_v63 }
  0xb3   : > { %2366 = vst [vmem:[#allocation3 + $0x774] sm:$0xf] %v2294_v0  ;;  %v2281_v4 = vld [vmem:[#allocation2 + $0x54] sm:$0xf] }
  0xb4   : > { %2331 = vst [vmem:[#allocation3 + $0x640] sm:$0xf] %v2293_v63  ;;  %v2282_v5 = vld [vmem:[#allocation2 + $0x58] sm:$0xf] }
  0xb5   : > { %2332 = vst [vmem:[#allocation3 + $0x6a4] sm:$0xf] %v2294_v0  ;;  %v2301_v10 = vld [vmem:[#allocation2 + $0xf4] sm:$0xf] }
  0xb6   : > { %2393 = vst [vmem:[#allocation3 + $0x594] sm:$0xf] %v2293_v63  ;;  %v2302_v11 = vld [vmem:[#allocation2 + $0xf8] sm:$0xf] }
  0xb7   : > { %2394 = vst [vmem:[#allocation3 + $0x5f8] sm:$0xf] %v2294_v0  ;;  %v2295_v15 = vld [vmem:[#allocation2 + $0xc4] sm:$0xf] }
  0xb8   : > { %2431 = vst [vmem:[#allocation3 + $0x7f8] sm:$0xf] %v2293_v63  ;;  %v2296_v16 = vld [vmem:[#allocation2 + $0xc8] sm:$0xf] }
  0xb9   : > { %v12359_v1 = vld [vmem:[#allocation3 + $0x710] sm:$0xf]  ;;  %2432 = vst [vmem:[#allocation3 + $0x85c] sm:$0xf] %v2294_v0 }
  0xba   : > { %v14251_v2 = vld [vmem:[#allocation3 + $0x770] sm:$0xf0]  ;;  %2455 = vst [vmem:[#allocation3 + $0x4ec] sm:$0xf] %v2293_v63 }
  0xbb   : > { %v12360_v3 = vor.u32 %v14251_v2, %v12359_v1  ;;  %2456 = vst [vmem:[#allocation3 + $0x550] sm:$0xf] %v2294_v0  ;;  %v14983_v1 = vld [vmem:[#allocation2 + $0x24] sm:$0xf]  ;;  %v14986_v2 = vld [vmem:[#allocation2 + $0x28] sm:$0xf] }
  0xbc   : > { %2497 = vst [vmem:[#allocation3 + $0x8e0] sm:$0xf] %v2293_v63 }
  0xbd   : > { %8647 = vmatmul.bf16.gmra.mxu3 %v12360_v3  ;;  %2498 = vst [vmem:[#allocation3 + $0x944] sm:$0xf] %v2294_v0 }
  0xbe   : > { %2517 = vst [vmem:[#allocation3 + $0x444] sm:$0xf] %v2293_v63 }
  0xbf   : > { %2518 = vst [vmem:[#allocation3 + $0x4a8] sm:$0xf] %v2294_v0  ;;  %v14421_v0 = vld [vmem:[%s18470_s1 + $0x40] sm:$0xff] }
  0xc0   : > { %2319 = vst [vmem:[#allocation3 + $0x190] sm:$0xf] %v2281_v4  ;;  %8512 = vmatpush.bf16.msrb.mxu1 %v14421_v0 }
  0xc1   : > { %2320 = vst [vmem:[#allocation3 + $0x1f4] sm:$0xf] %v2282_v5 }
  0xc2   : > { %2353 = vst [vmem:[#allocation3 + $0x260] sm:$0xf] %v2281_v4 }
  0xc3   : > { %2354 = vst [vmem:[#allocation3 + $0x2c4] sm:$0xf] %v2282_v5 }
  0xc4   : > { %2381 = vst [vmem:[#allocation3 + $0xe4] sm:$0xf] %v2281_v4 }
  0xc5   : > { %2382 = vst [vmem:[#allocation3 + $0x148] sm:$0xf] %v2282_v5 }
  0xc6   : > { %2419 = vst [vmem:[#allocation3 + $0x348] sm:$0xf] %v2281_v4 }
  0xc7   : > { %v11651_v6 = vld [vmem:[#allocation3 + $0x190] sm:$0xf]  ;;  %2420 = vst [vmem:[#allocation3 + $0x3ac] sm:$0xf] %v2282_v5 }
  0xc8   : > { %v14075_v8 = vld [vmem:[#allocation3 + $0x1f0] sm:$0xf0]  ;;  %2443 = vst [vmem:[#allocation3 + $0x3c] sm:$0xf] %v2281_v4 }
  0xc9   : > { %v11652_v9 = vor.u32 %v14075_v8, %v11651_v6  ;;  %2444 = vst [vmem:[#allocation3 + $0xa0] sm:$0xf] %v2282_v5  ;;  %v1686_v8 = vld [vmem:[#allocation2 + $0x20] sm:$0x8] }
  0xca   : > { %2485 = vst [vmem:[#allocation3 + $0x430] sm:$0xf] %v2281_v4 }
  0xcb   : > { %8434 = vmatmul.bf16.gmra.mxu0 %v11652_v9  ;;  %2486 = vst [vmem:[#allocation3 + $0x494] sm:$0xf] %v2282_v5  ;;  %v1687_v9 = vld [vmem:[#allocation2 + $0x24] sm:$0xf] }
  0xcc   : > { %2339 = vst [vmem:[#allocation3 + $0x960] sm:$0xf] %v2301_v10 }
  0xcd   : > { %2340 = vst [vmem:[#allocation3 + $0x9c4] sm:$0xf] %v2302_v11 }
  0xce   : > { %2373 = vst [vmem:[#allocation3 + $0xa30] sm:$0xf] %v2301_v10 }
  0xcf   : > { %2374 = vst [vmem:[#allocation3 + $0xa94] sm:$0xf] %v2302_v11 }
  0xd0   : > { %2401 = vst [vmem:[#allocation3 + $0x8b4] sm:$0xf] %v2301_v10 }
  0xd1   : > { %2402 = vst [vmem:[#allocation3 + $0x918] sm:$0xf] %v2302_v11 }
  0xd2   : > { %2439 = vst [vmem:[#allocation3 + $0xb18] sm:$0xf] %v2301_v10 }
  0xd3   : > { %v12651_v12 = vld [vmem:[#allocation3 + $0x960] sm:$0xf]  ;;  %2440 = vst [vmem:[#allocation3 + $0xb7c] sm:$0xf] %v2302_v11 }
  0xd4   : > { %v14325_v13 = vld [vmem:[#allocation3 + $0x9c0] sm:$0xf0]  ;;  %2463 = vst [vmem:[#allocation3 + $0x80c] sm:$0xf] %v2301_v10 }
  0xd5   : > { %v12652_v14 = vor.u32 %v14325_v13, %v12651_v12  ;;  %2464 = vst [vmem:[#allocation3 + $0x870] sm:$0xf] %v2302_v11  ;;  %v12759_v58 = vld [vmem:[#allocation3 + $0xa30] sm:$0xf] }
  0xd6   : > { %2505 = vst [vmem:[#allocation3 + $0xc00] sm:$0xf] %v2301_v10  ;;  %v14351_v61 = vld [vmem:[#allocation3 + $0xa90] sm:$0xf0] }
  0xd7   : > { %8484 = vmatmul.bf16.gmra.mxu1 %v12652_v14  ;;  %2506 = vst [vmem:[#allocation3 + $0xc64] sm:$0xf] %v2302_v11  ;;  %v12760_v63 = vor.u32 %v14351_v61, %v12759_v58 }
  0xd8   : > { %2525 = vst [vmem:[#allocation3 + $0x764] sm:$0xf] %v2301_v10 }
  0xd9   : > { %2526 = vst [vmem:[#allocation3 + $0x7c8] sm:$0xf] %v2302_v11  ;;  %v1688_v11 = vld [vmem:[#allocation2 + $0x28] sm:$0xf] }
  0xda   : > { %2367 = vst [vmem:[#allocation3 + $0x7d8] sm:$0xf] %v2295_v15 }
  0xdb   : > { %2368 = vst [vmem:[#allocation3 + $0x83c] sm:$0xf] %v2296_v16 }
  0xdc   : > { %2333 = vst [vmem:[#allocation3 + $0x708] sm:$0xf] %v2295_v15 }
  0xdd   : > { %2334 = vst [vmem:[#allocation3 + $0x76c] sm:$0xf] %v2296_v16 }
  0xde   : > { %2395 = vst [vmem:[#allocation3 + $0x65c] sm:$0xf] %v2295_v15 }
  0xdf   : > { %2396 = vst [vmem:[#allocation3 + $0x6c0] sm:$0xf] %v2296_v16 }
  0xe0   : > { %2433 = vst [vmem:[#allocation3 + $0x8c0] sm:$0xf] %v2295_v15 }
  0xe1   : > { %v12459_v17 = vld [vmem:[#allocation3 + $0x7d8] sm:$0xf]  ;;  %2434 = vst [vmem:[#allocation3 + $0x924] sm:$0xf] %v2296_v16 }
  0xe2   : > { %v14276_v18 = vld [vmem:[#allocation3 + $0x838] sm:$0xf0]  ;;  %2457 = vst [vmem:[#allocation3 + $0x5b4] sm:$0xf] %v2295_v15 }
  0xe3   : > { %v12460_v19 = vor.u32 %v14276_v18, %v12459_v17  ;;  %2458 = vst [vmem:[#allocation3 + $0x618] sm:$0xf] %v2296_v16  ;;  %v1758_v18 = vshrl.u32 %v1688_v11, 16 }
  0xe4   : > { %2499 = vst [vmem:[#allocation3 + $0x9a8] sm:$0xf] %v2295_v15 }
  0xe5   : > { %8652 = vmatmul.bf16.gmra.mxu3 %v12460_v19  ;;  %2500 = vst [vmem:[#allocation3 + $0xa0c] sm:$0xf] %v2296_v16 }
  0xe6   : > { %2519 = vst [vmem:[#allocation3 + $0x50c] sm:$0xf] %v2295_v15  ;;  %v1744_v15 = vshrl.u32 %v1686_v8, 16 }
  0xe7   : > { %2520 = vst [vmem:[#allocation3 + $0x570] sm:$0xf] %v2296_v16  ;;  %v1749_v16 = vshrl.u32 %v1687_v9, 16 }
  0xe8   : > { %436 = vst.msk [vmem:[#allocation2 + $0x64] sm:$0xf] %vm429_vm0, %v402_v20  ;;  %v14444_v20 = vld [vmem:[%s18470_s1 + $0xf8] sm:$0xff]  ;;  %v11411_v43 = vrot.slane %v1744_v15, 11  ;;  %v14438_v15 = vld [vmem:[%s18470_s1 + $0xc8] sm:$0xff] }
  0xe9   : > { %437 = vst.msk [vmem:[#allocation2 + $0x68] sm:$0xf] %vm429_vm0, %v403_v21  ;;  %v1690_v21 = vld [vmem:[#allocation2 + $0x34] sm:$0xf]  ;;  %8683 = vmatpush.bf16.msrb.mxu3 %v14444_v20 }
  0xea   : > { %456 = vst.msk [vmem:[#allocation2 + $0x104] sm:$0xf] %vm429_vm0, %v422_v22 }
  0xeb   : > { %457 = vst.msk [vmem:[#allocation2 + $0x108] sm:$0xf] %vm429_vm0, %v423_v23  ;;  %v1691_v23 = vld [vmem:[#allocation2 + $0x38] sm:$0xf] }
  0xec   : > { %438 = vst.msk [vmem:[#allocation2 + $0x74] sm:$0xf] %vm429_vm0, %v404_v25  ;;  %v1752_v25 = vshll.u32 %v1687_v9, 16  ;;  %v1780_v31 = vshrl.u32 %v1691_v23, 16  ;;  %v1783_v41 = vshll.u32 %v1691_v23, 16 }
  0xed   : > { %439 = vst.msk [vmem:[#allocation2 + $0x78] sm:$0xf] %vm429_vm0, %v405_v26  ;;  %v14460_v26 = vld [vmem:[%s18470_s1 + $0x178] sm:$0xff]  ;;  %8684 = vmatpush.bf16.msrb.mxu3 %v14443_v27  ;;  %v2541_v23 = vld [vmem:[#allocation2 + $0x2c] sm:$0x1] }
  0xee   : > { %458 = vst.msk [vmem:[#allocation2 + $0x114] sm:$0xf] %vm429_vm0, %v424_v28  ;;  %v1771_v28 = vshrl.u32 %v1690_v21, 16  ;;  %8861 = vmatpush.bf16.msra.mxu1 %v14460_v26  ;;  %v1782_v40 = vrot.slane %v1780_v31, 7 }
  0xef   : > { %v2283_v32 = vld [vmem:[#allocation2 + $0x64] sm:$0xf]  ;;  %459 = vst.msk [vmem:[#allocation2 + $0x118] sm:$0xf] %vm429_vm0, %v425_v29  ;;  %v1761_v29 = vshll.u32 %v1688_v11, 16 }
  0xf0   : > { %v2284_v33 = vld [vmem:[#allocation2 + $0x68] sm:$0xf]  ;;  %2321 = vst [vmem:[#allocation3 + $0x258] sm:$0xf] %v2283_v32  ;;  %v11659_v11 = vld [vmem:[#allocation3 + $0x198] sm:$0xf] }
  0xf1   : > { %2322 = vst [vmem:[#allocation3 + $0x2bc] sm:$0xf] %v2284_v33  ;;  %v2303_v38 = vld [vmem:[#allocation2 + $0x104] sm:$0xf] }
  0xf2   : > { %2355 = vst [vmem:[#allocation3 + $0x328] sm:$0xf] %v2283_v32  ;;  %v2304_v39 = vld [vmem:[#allocation2 + $0x108] sm:$0xf] }
  0xf3   : > { %2356 = vst [vmem:[#allocation3 + $0x38c] sm:$0xf] %v2284_v33  ;;  %v2285_v47 = vld [vmem:[#allocation2 + $0x74] sm:$0xf] }
  0xf4   : > { %2383 = vst [vmem:[#allocation3 + $0x1ac] sm:$0xf] %v2283_v32  ;;  %v2286_v48 = vld [vmem:[#allocation2 + $0x78] sm:$0xf] }
  0xf5   : > { %2384 = vst [vmem:[#allocation3 + $0x210] sm:$0xf] %v2284_v33  ;;  %8657 = vmatmul.bf16.gmra.mxu3 %v12560_v34  ;;  %v2305_v52 = vld [vmem:[#allocation2 + $0x114] sm:$0xf]  ;;  %v11559_v34 = vld [vmem:[#allocation3 + $0xd0] sm:$0xf] }
  0xf6   : > { %2421 = vst [vmem:[#allocation3 + $0x410] sm:$0xf] %v2283_v32  ;;  %v2306_v53 = vld [vmem:[#allocation2 + $0x118] sm:$0xf] }
  0xf7   : > { %v11751_v35 = vld [vmem:[#allocation3 + $0x258] sm:$0xf]  ;;  %2422 = vst [vmem:[#allocation3 + $0x474] sm:$0xf] %v2284_v33 }
  0xf8   : > { %v14100_v36 = vld [vmem:[#allocation3 + $0x2b8] sm:$0xf0]  ;;  %2445 = vst [vmem:[#allocation3 + $0x104] sm:$0xf] %v2283_v32 }
  0xf9   : > { %v11752_v37 = vor.u32 %v14100_v36, %v11751_v35  ;;  %2446 = vst [vmem:[#allocation3 + $0x168] sm:$0xf] %v2284_v33  ;;  %v14051_v35 = vld [vmem:[#allocation3 + $0x130] sm:$0xf0]  ;;  %v14442_v36 = vld [vmem:[%s18470_s1 + $0xe8] sm:$0xff] }
  0xfa   : > { %2487 = vst [vmem:[#allocation3 + $0x4f8] sm:$0xf] %v2283_v32  ;;  %8685 = vmatpush.bf16.msrb.mxu3 %v14442_v36 }
  0xfb   : > { %8439 = vmatmul.bf16.gmra.mxu0 %v11752_v37  ;;  %2488 = vst [vmem:[#allocation3 + $0x55c] sm:$0xf] %v2284_v33  ;;  %v1766_v37 = vshrl.u32 %v1689_v30, 16 }
  0xfc   : > { %2507 = vst [vmem:[#allocation3 + $0x5c] sm:$0xf] %v2283_v32  ;;  %v1751_v32 = vrot.slane %v1749_v16, 7 }
  0xfd   : > { %2508 = vst [vmem:[#allocation3 + $0xc0] sm:$0xf] %v2284_v33  ;;  %v1760_v33 = vrot.slane %v1758_v18, 7 }
  0xfe   : > { %2341 = vst [vmem:[#allocation3 + $0xa28] sm:$0xf] %v2303_v38 }
  0xff   : > { %2342 = vst [vmem:[#allocation3 + $0xa8c] sm:$0xf] %v2304_v39 }
 0x100   : > { %2375 = vst [vmem:[#allocation3 + $0xaf8] sm:$0xf] %v2303_v38 }
 0x101   : > { %2376 = vst [vmem:[#allocation3 + $0xb5c] sm:$0xf] %v2304_v39 }
 0x102   : > { %2403 = vst [vmem:[#allocation3 + $0x97c] sm:$0xf] %v2303_v38 }
 0x103   : > { %2404 = vst [vmem:[#allocation3 + $0x9e0] sm:$0xf] %v2304_v39 }
 0x104   : > { %2441 = vst [vmem:[#allocation3 + $0xbe0] sm:$0xf] %v2303_v38 }
 0x105   : > { %v12751_v44 = vld [vmem:[#allocation3 + $0xa28] sm:$0xf]  ;;  %2442 = vst [vmem:[#allocation3 + $0xc44] sm:$0xf] %v2304_v39  ;;  %8662 = vmatmul.bf16.gmra.mxu3 %v12660_v42  ;;  %v408_v42 = vld [vmem:[%s14770_s20 + $0x30] sm:$0xf] }
 0x106   : > { %v14350_v45 = vld [vmem:[#allocation3 + $0xa88] sm:$0xf0]  ;;  %2465 = vst [vmem:[#allocation3 + $0x8d4] sm:$0xf] %v2303_v38 }
 0x107   : > { %v12752_v46 = vor.u32 %v14350_v45, %v12751_v44  ;;  %2466 = vst [vmem:[#allocation3 + $0x938] sm:$0xf] %v2304_v39  ;;  %v12859_v13 = vld [vmem:[#allocation3 + $0xaf8] sm:$0xf]  ;;  %v1754_v44 = vor.u32 %v1752_v25, %v1751_v32  ;;  %v11560_v45 = vor.u32 %v14051_v35, %v11559_v34 }
 0x108   : > { %2527 = vst [vmem:[#allocation3 + $0x82c] sm:$0xf] %v2303_v38  ;;  %v14376_v17 = vld [vmem:[#allocation3 + $0xb58] sm:$0xf0]  ;;  %v1773_v38 = vrot.slane %v1771_v28, 7  ;;  %v14437_v28 = vld [vmem:[%s18470_s1 + $0xc0] sm:$0xff] }
 0x109   : > { %8489 = vmatmul.bf16.gmra.mxu1 %v12752_v46  ;;  %2528 = vst [vmem:[#allocation3 + $0x890] sm:$0xf] %v2304_v39  ;;  %v12860_v19 = vor.u32 %v14376_v17, %v12859_v13  ;;  %v1774_v39 = vshll.u32 %v1690_v21, 16  ;;  %v409_v46 = vld [vmem:[%s14770_s20 + $0x34] sm:$0xf]  ;;  %v1755_v58 = vsel %vm15009_vm3, %v11411_v43, %v1754_v44 }
 0x10a   : > { %2323 = vst [vmem:[#allocation3 + $0x320] sm:$0xf] %v2285_v47  ;;  %v14076_v13 = vld [vmem:[#allocation3 + $0x1f8] sm:$0xf0]  ;;  %v1696_v44 = vld [vmem:[#allocation2 + $0x54] sm:$0xf] }
 0x10b   : > { %2324 = vst [vmem:[#allocation3 + $0x384] sm:$0xf] %v2286_v48  ;;  %v11660_v20 = vor.u32 %v14076_v13, %v11659_v11  ;;  %v2543_v11 = vld [vmem:[#allocation2 + $0x38] sm:$0xf] }
 0x10c   : > { %2357 = vst [vmem:[#allocation3 + $0x3f0] sm:$0xf] %v2285_v47  ;;  %v12151_v13 = vld [vmem:[#allocation3 + $0x578] sm:$0xf] }
 0x10d   : > { %2358 = vst [vmem:[#allocation3 + $0x454] sm:$0xf] %v2286_v48 }
 0x10e   : > { %2385 = vst [vmem:[#allocation3 + $0x274] sm:$0xf] %v2285_v47 }
 0x10f   : > { %2386 = vst [vmem:[#allocation3 + $0x2d8] sm:$0xf] %v2286_v48 }
 0x110   : > { %2423 = vst [vmem:[#allocation3 + $0x4d8] sm:$0xf] %v2285_v47 }
 0x111   : > { %v11851_v49 = vld [vmem:[#allocation3 + $0x320] sm:$0xf]  ;;  %2424 = vst [vmem:[#allocation3 + $0x53c] sm:$0xf] %v2286_v48 }
 0x112   : > { %v14125_v50 = vld [vmem:[#allocation3 + $0x380] sm:$0xf0]  ;;  %2447 = vst [vmem:[#allocation3 + $0x1cc] sm:$0xf] %v2285_v47 }
 0x113   : > { %v11852_v51 = vor.u32 %v14125_v50, %v11851_v49  ;;  %2448 = vst [vmem:[#allocation3 + $0x230] sm:$0xf] %v2286_v48  ;;  %v1763_v49 = vor.u32 %v1761_v29, %v1760_v33  ;;  %v2616_v33 = vshll.u32 %v2541_v23, 16 }
 0x114   : > { %2489 = vst [vmem:[#allocation3 + $0x5c0] sm:$0xf] %v2285_v47 }
 0x115   : > { %8444 = vmatmul.bf16.gmra.mxu0 %v11852_v51  ;;  %2490 = vst [vmem:[#allocation3 + $0x624] sm:$0xf] %v2286_v48  ;;  %8667 = vmatmul.bf16.gmra.mxu3 %v12760_v63  ;;  %v14441_v51 = vld [vmem:[%s18470_s1 + $0xe0] sm:$0xff] }
 0x116   : > { %2509 = vst [vmem:[#allocation3 + $0x124] sm:$0xf] %v2285_v47  ;;  %8686 = vmatpush.bf16.msrb.mxu3 %v14441_v51  ;;  %v15059_v51 = vpop.f32.mrf.mxu3 }
 0x117   : > { %2510 = vst [vmem:[#allocation3 + $0x188] sm:$0xf] %v2286_v48  ;;  %v1756_v48 = vrot.slane %v1751_v32, 4 }
 0x118   : > { %2343 = vst [vmem:[#allocation3 + $0xaf0] sm:$0xf] %v2305_v52 }
 0x119   : > { %2344 = vst [vmem:[#allocation3 + $0xb54] sm:$0xf] %v2306_v53 }
 0x11a   : > { %2377 = vst [vmem:[#allocation3 + $0xbc0] sm:$0xf] %v2305_v52 }
 0x11b   : > { %2378 = vst [vmem:[#allocation3 + $0xc24] sm:$0xf] %v2306_v53 }
 0x11c   : > { %2405 = vst [vmem:[#allocation3 + $0xa44] sm:$0xf] %v2305_v52 }
 0x11d   : > { %2406 = vst [vmem:[#allocation3 + $0xaa8] sm:$0xf] %v2306_v53 }
 0x11e   : > { %2467 = vst [vmem:[#allocation3 + $0x99c] sm:$0xf] %v2305_v52 }
 0x11f   : > { %v12851_v55 = vld [vmem:[#allocation3 + $0xaf0] sm:$0xf]  ;;  %2468 = vst [vmem:[#allocation3 + $0xa00] sm:$0xf] %v2306_v53 }
 0x120   : > { %v14375_v57 = vld [vmem:[#allocation3 + $0xb50] sm:$0xf0]  ;;  %2529 = vst [vmem:[#allocation3 + $0x8f4] sm:$0xf] %v2305_v52  ;;  %v11412_v52 = vrot.slane %v1766_v37, 11 }
 0x121   : > { %v12852_v59 = vor.u32 %v14375_v57, %v12851_v55  ;;  %2530 = vst [vmem:[#allocation3 + $0x958] sm:$0xf] %v2306_v53  ;;  %v1776_v53 = vor.u32 %v1774_v39, %v1773_v38  ;;  %v1778_v55 = vrot.slane %v1773_v38, 4 }
 0x122   : > { %440 = vst.msk [vmem:[#allocation2 + $0x84] sm:$0xf] %vm429_vm0, %v406_v54  ;;  %v14401_v61 = vld [vmem:[#allocation3 + $0xc20] sm:$0xf0] }
 0x123   : > { %8494 = vmatmul.bf16.gmra.mxu1 %v12852_v59  ;;  %441 = vst.msk [vmem:[#allocation2 + $0x88] sm:$0xf] %vm429_vm0, %v407_v56  ;;  %v1785_v56 = vor.u32 %v1783_v41, %v1782_v40  ;;  %v1764_v59 = vsel %vm15009_vm3, %v1756_v48, %v1763_v49  ;;  %v2618_v49 = vrot.slane %v2616_v33, 5 }
 0x124   : > { %460 = vst.msk [vmem:[#allocation2 + $0x124] sm:$0xf] %vm429_vm0, %v426_v60  ;;  %v12959_v60 = vld [vmem:[#allocation3 + $0xbc0] sm:$0xf] }
 0x125   : > { %461 = vst.msk [vmem:[#allocation2 + $0x128] sm:$0xf] %vm429_vm0, %v427_v62  ;;  %8672 = vmatmul.bf16.gmra.mxu3 %v12860_v19  ;;  %v1777_v62 = vsel %vm15009_vm3, %v11412_v52, %v1776_v53  ;;  %v12960_v63 = vor.u32 %v14401_v61, %v12959_v60  ;;  %v1786_v0 = vsel %vm15009_vm3, %v1778_v55, %v1785_v56  ;;  %v1697_v55 = vld [vmem:[#allocation2 + $0x58] sm:$0xf]  ;;  %v14101_v60 = vld [vmem:[#allocation3 + $0x2c0] sm:$0xf0] }
 0x126   : > { %2347 = vst [vmem:[#allocation3 + $0x8] sm:$0xf] %v14983_v1  ;;  %v1695_v61 = vld [vmem:[#allocation2 + $0x50] sm:$0x8] }
 0x127   : > { %2348 = vst [vmem:[#allocation3 + $0x6c] sm:$0xf] %v14986_v2 }
 0x128   : > { %2413 = vst [vmem:[#allocation3 + $0xf0] sm:$0xf] %v14983_v1 }
 0x129   : > { %v2287_v3 = vld [vmem:[#allocation2 + $0x84] sm:$0xf]  ;;  %2414 = vst [vmem:[#allocation3 + $0x154] sm:$0xf] %v14986_v2 }
 0x12a   : > { %v2288_v4 = vld [vmem:[#allocation2 + $0x88] sm:$0xf]  ;;  %2325 = vst [vmem:[#allocation3 + $0x3e8] sm:$0xf] %v2287_v3 }
 0x12b   : > { %2326 = vst [vmem:[#allocation3 + $0x44c] sm:$0xf] %v2288_v4  ;;  %v2307_v22 = vld [vmem:[#allocation2 + $0x124] sm:$0xf] }
 0x12c   : > { %2359 = vst [vmem:[#allocation3 + $0x4b8] sm:$0xf] %v2287_v3  ;;  %v2308_v24 = vld [vmem:[#allocation2 + $0x128] sm:$0xf] }
 0x12d   : > { %2360 = vst [vmem:[#allocation3 + $0x51c] sm:$0xf] %v2288_v4  ;;  %v11459_v5 = vld [vmem:[#allocation3 + $0x8] sm:$0xf] }
 0x12e   : > { %2387 = vst [vmem:[#allocation3 + $0x33c] sm:$0xf] %v2287_v3  ;;  %v14026_v6 = vld [vmem:[#allocation3 + $0x68] sm:$0xf0] }
 0x12f   : > { %2388 = vst [vmem:[#allocation3 + $0x3a0] sm:$0xf] %v2288_v4  ;;  %v11460_v7 = vor.u32 %v14026_v6, %v11459_v5  ;;  %v14439_v5 = vld [vmem:[%s18470_s1 + $0xd0] sm:$0xff] }
 0x130   : > { %2425 = vst [vmem:[#allocation3 + $0x5a0] sm:$0xf] %v2287_v3 }
 0x131   : > { %v11951_v10 = vld [vmem:[#allocation3 + $0x3e8] sm:$0xf]  ;;  %2426 = vst [vmem:[#allocation3 + $0x604] sm:$0xf] %v2288_v4  ;;  %8602 = vmatmul.bf16.vlgmr.msra.gmra.mxu2 %v11460_v7  ;;  %v1692_v7 = vld [vmem:[#allocation2 + $0x40] sm:$0x8] }
 0x132   : > { %v14150_v12 = vld [vmem:[#allocation3 + $0x448] sm:$0xf0]  ;;  %2449 = vst [vmem:[#allocation3 + $0x294] sm:$0xf] %v2287_v3  ;;  %v1788_v16 = vshrl.u32 %v1692_v7, 16 }
 0x133   : > { %v11952_v14 = vor.u32 %v14150_v12, %v11951_v10  ;;  %2450 = vst [vmem:[#allocation3 + $0x2f8] sm:$0xf] %v2288_v4  ;;  %v2542_v7 = vld [vmem:[#allocation2 + $0x34] sm:$0xf] }
 0x134   : > { %2491 = vst [vmem:[#allocation3 + $0x688] sm:$0xf] %v2287_v3  ;;  %v11413_v32 = vrot.slane %v1788_v16, 11 }
 0x135   : > { %8449 = vmatmul.bf16.gmra.mxu0 %v11952_v14  ;;  %2492 = vst [vmem:[#allocation3 + $0x6ec] sm:$0xf] %v2288_v4  ;;  %8677 = vmatmul.bf16.gmra.mxu3 %v12960_v63  ;;  %v2540_v14 = vld [vmem:[#allocation2 + $0x28] sm:$0xf] }
 0x136   : > { %2511 = vst [vmem:[#allocation3 + $0x1ec] sm:$0xf] %v2287_v3  ;;  %v1694_v3 = vld [vmem:[#allocation2 + $0x48] sm:$0xf]  ;;  %v2606_v30 = vshll.u32 %v2540_v14, 16  ;;  %v2610_v31 = vshrl.u32 %v2540_v14, 16 }
 0x137   : > { %2512 = vst [vmem:[#allocation3 + $0x250] sm:$0xf] %v2288_v4  ;;  %v2539_v4 = vld [vmem:[#allocation2 + $0x24] sm:$0xf]  ;;  %v1802_v8 = vshrl.u32 %v1694_v3, 16  ;;  %v1805_v25 = vshll.u32 %v1694_v3, 16 }
 0x138   : > { %2345 = vst [vmem:[#allocation3 + $0xbb8] sm:$0xf] %v2307_v22  ;;  %v2597_v9 = vshrl.u32 %v2539_v4, 16  ;;  %v2600_v17 = vshll.u32 %v2539_v4, 16  ;;  %v15046_v36 = vrot.slane %v2606_v30, 5  ;;  %v2612_v37 = vrot.slane %v2610_v31, 4 }
 0x139   : > { %2346 = vst [vmem:[#allocation3 + $0xc1c] sm:$0xf] %v2308_v24  ;;  %v14450_v63 = vld [vmem:[%s18470_s1 + $0x128] sm:$0xff]  ;;  %v14200_v14 = vld [vmem:[#allocation3 + $0x5d8] sm:$0xf0] }
 0x13a   : > { %2407 = vst [vmem:[#allocation3 + $0xb0c] sm:$0xf] %v2307_v22  ;;  %v2599_v26 = vrot.slane %v2597_v9, 4  ;;  %v2602_v29 = vrot.slane %v2600_v17, 5  ;;  %v2613_v43 = vor.u32 %v2612_v37, %v15046_v36 }
 0x13b   : > { %2408 = vst [vmem:[#allocation3 + $0xb70] sm:$0xf] %v2308_v24 }
 0x13c   : > { %2469 = vst [vmem:[#allocation3 + $0xa64] sm:$0xf] %v2307_v22  ;;  %v2603_v41 = vor.u32 %v2602_v29, %v2599_v26  ;;  %v2614_v56 = vrot.slane %v2613_v43, 4  ;;  %v14449_v26 = vld [vmem:[%s18470_s1 + $0x120] sm:$0xff] }
 0x13d   : > { %2470 = vst [vmem:[#allocation3 + $0xac8] sm:$0xf] %v2308_v24 }
 0x13e   : > { %2531 = vst [vmem:[#allocation3 + $0x9bc] sm:$0xf] %v2307_v22  ;;  %v2604_v53 = vrot.slane %v2603_v41, 4  ;;  %v2619_v16 = vsel %vm15069_vm6, %v2614_v56, %v2618_v49 }
 0x13f   : > { %v12951_v50 = vld [vmem:[#allocation3 + $0xbb8] sm:$0xf]  ;;  %2532 = vst [vmem:[#allocation3 + $0xa20] sm:$0xf] %v2308_v24  ;;  %v1804_v24 = vrot.slane %v1802_v8, 7 }
 0x140   : > { %v14400_v54 = vld [vmem:[#allocation3 + $0xc18] sm:$0xf0]  ;;  %2479 = vst [vmem:[#allocation3 + $0x1d8] sm:$0xf] %v14983_v1  ;;  %v2609_v8 = vsel %vm15069_vm6, %v2604_v53, %v15046_v36 }
 0x141   : > { %v12952_v57 = vor.u32 %v14400_v54, %v12951_v50  ;;  %2480 = vst [vmem:[#allocation3 + $0x23c] sm:$0xf] %v14986_v2  ;;  %8607 = vmatmul.bf16.gmra.mxu2 %v11560_v45  ;;  %v14440_v1 = vld [vmem:[%s18470_s1 + $0xd8] sm:$0xff]  ;;  %v1693_v2 = vld [vmem:[#allocation2 + $0x44] sm:$0xf]  ;;  %v1807_v40 = vor.u32 %v1805_v25, %v1804_v24  ;;  %v14459_v50 = vld [vmem:[%s18470_s1 + $0x170] sm:$0xff] }
 0x142   : > { %442 = vst.msk [vmem:[#allocation2 + $0x94] sm:$0xf] %vm429_vm0, %v408_v42  ;;  %8687 = vmatpush.bf16.msrb.mxu3 %v14440_v1  ;;  %v1793_v6 = vshrl.u32 %v1693_v2, 16  ;;  %v1796_v22 = vshll.u32 %v1693_v2, 16  ;;  %v14452_v45 = vld [vmem:[%s18470_s1 + $0x138] sm:$0xff]  ;;  %v14451_v54 = vld [vmem:[%s18470_s1 + $0x130] sm:$0xff]  ;;  %8862 = vmatpush.bf16.msra.mxu1 %v14459_v50 }
 0x143   : > { %8499 = vmatmul.bf16.gmra.mxu1 %v12952_v57  ;;  %443 = vst.msk [vmem:[#allocation2 + $0x98] sm:$0xf] %vm429_vm0, %v409_v46  ;;  %v1815_v46 = vshrl.u32 %v1696_v44, 16  ;;  %8772 = vmatpush.bf16.msrb.mxu0 %v14452_v45  ;;  %v11759_v57 = vld [vmem:[#allocation3 + $0x260] sm:$0xf]  ;;  %v1818_v1 = vshll.u32 %v1696_v44, 16 }
 0x144   : > { %2127 = vst [vmem:[#allocation3 + $0x4] sm:$0xf] %v1755_v58  ;;  %v1795_v21 = vrot.slane %v1793_v6, 7  ;;  %v1827_v6 = vshll.u32 %v1697_v55, 16  ;;  %v11760_v17 = vor.u32 %v14101_v60, %v11759_v57  ;;  %v2630_v24 = vshll.u32 %v2543_v11, 16  ;;  %v14448_v44 = vld [vmem:[%s18470_s1 + $0x118] sm:$0xff] }
 0x145   : > { %2128 = vst [vmem:[#allocation3 + $0x68] sm:$0xf] %v1764_v59  ;;  %v1817_v58 = vrot.slane %v1815_v46, 7  ;;  %v2634_v25 = vshrl.u32 %v2543_v11, 16  ;;  %v2546_v46 = vld [vmem:[#allocation2 + $0x48] sm:$0xf] }
 0x146   : > { %2129 = vst [vmem:[#allocation3 + $0xcc] sm:$0xf] %v1777_v62  ;;  %8688 = vmatpush.bf16.msrb.mxu3 %v14439_v5  ;;  %v1798_v35 = vor.u32 %v1796_v22, %v1795_v21  ;;  %v1800_v39 = vrot.slane %v1795_v21, 4  ;;  %v1824_v5 = vshrl.u32 %v1697_v55, 16  ;;  %v15085_v21 = vpop.f32.mrf.mxu3  ;;  %v2632_v31 = vrot.slane %v2630_v24, 5  ;;  %v14447_v55 = vld [vmem:[%s18470_s1 + $0x110] sm:$0xff] }
 0x147   : > { %2130 = vst [vmem:[#allocation3 + $0x130] sm:$0xf] %v1786_v0  ;;  %v1822_v2 = vrot.slane %v1817_v58, 4  ;;  %8773 = vmatpush.bf16.msrb.mxu0 %v14451_v54  ;;  %v2654_v60 = vshll.u32 %v2546_v46, 16  ;;  %vm3625_vm0 = vsmask.f32 2304 }
 0x148   : > { %2183 = vst [vmem:[#allocation3 + $0x10] sm:$0xf] %v1777_v62  ;;  %v1799_v48 = vsel %vm15009_vm3, %v11413_v32, %v1798_v35  ;;  %v1808_v52 = vsel %vm15009_vm3, %v1800_v39, %v1807_v40  ;;  %v15073_v62 = vpop.f32.mrf.mxu0  ;;  %v2636_v32 = vrot.slane %v2634_v25, 4  ;;  %v12152_v35 = vor.u32 %v14200_v14, %v12151_v13  ;;  %v2545_v39 = vld [vmem:[#allocation2 + $0x44] sm:$0xf]  ;;  %vm17102_vm2 = vmor %vm3625_vm0, %vm3626_vm1 }
 0x149   : > { %v2289_v10 = vld [vmem:[#allocation2 + $0x94] sm:$0xf]  ;;  %2184 = vst [vmem:[#allocation3 + $0x74] sm:$0xf] %v1786_v0  ;;  %v1810_v0 = vshrl.u32 %v1695_v61, 16  ;;  %v2645_v56 = vshrl.u32 %v2545_v39, 16 }
 0x14a   : > { %v15034_v12 = vld [vmem:[#allocation2 + $0x98] sm:$0xf]  ;;  %2327 = vst [vmem:[#allocation3 + $0x4b0] sm:$0xf] %v2289_v10  ;;  %8689 = vmatpush.bf16.msrb.mxu3 %v14438_v15  ;;  %v15081_v15 = vpop.f32.mrf.mxu1  ;;  %v2637_v36 = vor.u32 %v2636_v32, %v2632_v31  ;;  %v2658_v61 = vshrl.u32 %v2546_v46, 16 }
 0x14b   : > { %2328 = vst [vmem:[#allocation3 + $0x514] sm:$0xf] %v15034_v12  ;;  %v14013_v18 = vld [vmem:[#allocation3 + $0x4] sm:$0xf]  ;;  %v11414_v9 = vrot.slane %v1810_v0, 11  ;;  %8774 = vmatpush.bf16.msrb.mxu0 %v14450_v63  ;;  %v14446_v63 = vld [vmem:[%s18470_s1 + $0x108] sm:$0xff] }
 0x14c   : > { %2361 = vst [vmem:[#allocation3 + $0x580] sm:$0xf] %v2289_v10  ;;  %v11453_v19 = vld [vmem:[#allocation3 + $0x64] sm:$0xf0]  ;;  %v2638_v41 = vrot.slane %v2637_v36, 4 }
 0x14d   : > { %2362 = vst [vmem:[#allocation3 + $0x5e4] sm:$0xf] %v15034_v12  ;;  %v11456_v27 = vor.u32 %v14013_v18, %v11453_v19  ;;  %v14038_v3 = vld [vmem:[#allocation3 + $0xcc] sm:$0xf]  ;;  %v1826_v18 = vrot.slane %v1824_v5, 7 }
 0x14e   : > { %2389 = vst [vmem:[#allocation3 + $0x404] sm:$0xf] %v2289_v10  ;;  %8690 = vmatpush.bf16.msrb.mxu3 %v14437_v28  ;;  %v11553_v4 = vld [vmem:[#allocation3 + $0x12c] sm:$0xf0]  ;;  %v2544_v19 = vld [vmem:[#allocation2 + $0x3c] sm:$0x1]  ;;  %v15103_v50 = vpop.f32.mrf.mxu3 }
 0x14f   : > { %2390 = vst [vmem:[#allocation3 + $0x468] sm:$0xf] %v15034_v12  ;;  %v2640_v29 = vshll.u32 %v2544_v19, 16  ;;  %v11556_v30 = vor.u32 %v14038_v3, %v11553_v4  ;;  %8775 = vmatpush.bf16.msrb.mxu0 %v14449_v26  ;;  %v11859_v0 = vld [vmem:[#allocation3 + $0x328] sm:$0xf]  ;;  %v2660_v19 = vrot.slane %v2658_v61, 4 }
 0x150   : > { %2427 = vst [vmem:[#allocation3 + $0x668] sm:$0xf] %v2289_v10  ;;  %v15094_v40 = vpop.f32.mrf.mxu0  ;;  %v1698_v3 = vld [vmem:[#allocation2 + $0x60] sm:$0x8]  ;;  %v1703_v46 = vld [vmem:[#allocation2 + $0x78] sm:$0xf] }
 0x151   : > { %v12051_v34 = vld [vmem:[#allocation3 + $0x4b0] sm:$0xf]  ;;  %2428 = vst [vmem:[#allocation3 + $0x6cc] sm:$0xf] %v15034_v12  ;;  %8612 = vmatmul.bf16.gmra.mxu2 %v11660_v20  ;;  %v2624_v20 = vshll.u32 %v2542_v7, 16  ;;  %v2642_v37 = vrot.slane %v2640_v29, 5 }
 0x152   : > { %v14175_v38 = vld [vmem:[#allocation3 + $0x510] sm:$0xf0]  ;;  %2451 = vst [vmem:[#allocation3 + $0x35c] sm:$0xf] %v2289_v10  ;;  %v15105_v54 = vpop.f32.mrf.mxu1  ;;  %v14445_v29 = vld [vmem:[%s18470_s1 + $0x100] sm:$0xff] }
 0x153   : > { %v12052_v42 = vor.u32 %v14175_v38, %v12051_v34  ;;  %2452 = vst [vmem:[#allocation3 + $0x3c0] sm:$0xf] %v15034_v12  ;;  %8513 = vmatmul.bf16.vlgmr.msrb.gmra.mxu1 %v11456_v27  ;;  %v1829_v27 = vor.u32 %v1827_v6, %v1826_v18  ;;  %v2626_v28 = vrot.slane %v2624_v20, 5  ;;  %v2643_v49 = vsel %vm15069_vm6, %v2638_v41, %v2642_v37  ;;  %v1701_v61 = vld [vmem:[#allocation2 + $0x70] sm:$0x8] }
 0x154   : > { %2493 = vst [vmem:[#allocation3 + $0x750] sm:$0xf] %v2289_v10  ;;  %8776 = vmatpush.bf16.msrb.mxu0 %v14448_v44  ;;  %v1832_v6 = vshrl.u32 %v1698_v3, 16 }
 0x155   : > { %8454 = vmatmul.bf16.gmra.mxu0 %v12052_v42  ;;  %2494 = vst [vmem:[#allocation3 + $0x7b4] sm:$0xf] %v15034_v12  ;;  %v1830_v33 = vsel %vm15009_vm3, %v1822_v2, %v1829_v27  ;;  %v1699_v42 = vld [vmem:[#allocation2 + $0x64] sm:$0xf]  ;;  %v12251_v27 = vld [vmem:[#allocation3 + $0x640] sm:$0xf] }
 0x156   : > { %2513 = vst [vmem:[#allocation3 + $0x2b4] sm:$0xf] %v2289_v10  ;;  %v1820_v10 = vor.u32 %v1818_v1, %v1817_v58  ;;  %v1837_v45 = vshrl.u32 %v1699_v42, 16  ;;  %v2648_v58 = vshll.u32 %v2545_v39, 16  ;;  %v14126_v1 = vld [vmem:[#allocation3 + $0x388] sm:$0xf0] }
 0x157   : > { %2514 = vst [vmem:[#allocation3 + $0x318] sm:$0xf] %v15034_v12  ;;  %v2621_v12 = vshrl.u32 %v2542_v7, 16  ;;  %v1840_v4 = vshll.u32 %v1699_v42, 16  ;;  %v11415_v18 = vrot.slane %v1832_v6, 11  ;;  %v11860_v24 = vor.u32 %v14126_v1, %v11859_v0 }
 0x158   : > { %2131 = vst [vmem:[#allocation3 + $0x194] sm:$0xf] %v1799_v48  ;;  %v1821_v22 = vsel %vm15009_vm3, %v11414_v9, %v1820_v10  ;;  %v1839_v2 = vrot.slane %v1837_v45, 7  ;;  %8777 = vmatpush.bf16.msrb.mxu0 %v14447_v55  ;;  %v2547_v9 = vld [vmem:[#allocation2 + $0x4c] sm:$0x1]  ;;  %v2647_v10 = vrot.slane %v2645_v56, 4 }
 0x159   : > { %2132 = vst [vmem:[#allocation3 + $0x1f8] sm:$0xf] %v1808_v52  ;;  %v2623_v23 = vrot.slane %v2621_v12, 4  ;;  %v2650_v14 = vrot.slane %v2648_v58, 5  ;;  %v2664_v20 = vshll.u32 %v2547_v9, 16 }
 0x15a   : > { %2185 = vst [vmem:[#allocation3 + $0xd8] sm:$0xf] %v1799_v48  ;;  %v1844_v7 = vrot.slane %v1839_v2, 4  ;;  %v1842_v12 = vor.u32 %v1840_v4, %v1839_v2  ;;  %v15124_v36 = vpop.f32.mrf.mxu1  ;;  %v1702_v45 = vld [vmem:[#allocation2 + $0x74] sm:$0xf]  ;;  %v1854_v2 = vshrl.u32 %v1701_v61, 16 }
 0x15b   : > { %2186 = vst [vmem:[#allocation3 + $0x13c] sm:$0xf] %v1808_v52  ;;  %v2627_v34 = vor.u32 %v2626_v28, %v2623_v23  ;;  %v15115_v23 = vpop.f32.mrf.mxu3  ;;  %v2651_v26 = vor.u32 %v2650_v14, %v2647_v10  ;;  %v14225_v28 = vld [vmem:[#allocation3 + $0x6a0] sm:$0xf0]  ;;  %v11959_v0 = vld [vmem:[#allocation3 + $0x3f0] sm:$0xf] }
 0x15c   : > { %2239 = vst [vmem:[#allocation3 + $0x18] sm:$0xf] %v1799_v48  ;;  %8778 = vmatpush.bf16.msrb.mxu0 %v14446_v63  ;;  %v2549_v63 = vld [vmem:[#allocation2 + $0x58] sm:$0xf]  ;;  %v14151_v1 = vld [vmem:[#allocation3 + $0x450] sm:$0xf0] }
 0x15d   : > { %2240 = vst [vmem:[#allocation3 + $0x7c] sm:$0xf] %v1808_v52  ;;  %v2628_v38 = vrot.slane %v2627_v34, 4  ;;  %v1700_v52 = vld [vmem:[#allocation2 + $0x68] sm:$0xf]  ;;  %v2652_v34 = vrot.slane %v2651_v26, 4  ;;  %v11960_v26 = vor.u32 %v14151_v1, %v11959_v0 }
 0x15e   : > { %3012 = vst [vmem:[#allocation3 + $0xc] sm:$0xf] %v2609_v8  ;;  %v1846_v5 = vshrl.u32 %v1700_v52, 16  ;;  %v1849_v8 = vshll.u32 %v1700_v52, 16  ;;  %v2550_v6 = vld [vmem:[#allocation2 + $0x5c] sm:$0x1] }
 0x15f   : > { %3013 = vst [vmem:[#allocation3 + $0x70] sm:$0xf] %v2619_v16  ;;  %v2633_v43 = vsel %vm15069_vm6, %v2628_v38, %v2632_v31  ;;  %v14063_v11 = vld [vmem:[#allocation3 + $0x194] sm:$0xf]  ;;  %v2656_v16 = vrot.slane %v2654_v60, 5  ;;  %v12252_v38 = vor.u32 %v14225_v28, %v12251_v27  ;;  %v11416_v9 = vrot.slane %v1854_v2, 11 }
 0x160   : > { %2133 = vst [vmem:[#allocation3 + $0x25c] sm:$0xf] %v1821_v22  ;;  %v1848_v13 = vrot.slane %v1846_v5, 7  ;;  %8779 = vmatpush.bf16.msrb.mxu0 %v14445_v29  ;;  %v1871_v5 = vshll.u32 %v1703_v46, 16  ;;  %v2678_v14 = vshll.u32 %v2549_v63, 16 }
 0x161   : > { %8617 = vmatmul.bf16.gmra.mxu2 %v11760_v17  ;;  %2134 = vst [vmem:[#allocation3 + $0x2c0] sm:$0xf] %v1830_v33  ;;  %v11653_v17 = vld [vmem:[#allocation3 + $0x1f4] sm:$0xf0]  ;;  %v2661_v31 = vor.u32 %v2660_v19, %v2656_v16  ;;  %v2657_v42 = vsel %vm15069_vm6, %v2652_v34, %v2656_v16  ;;  %v2682_v16 = vshrl.u32 %v2549_v63, 16 }
 0x162   : > { %2187 = vst [vmem:[#allocation3 + $0x1a0] sm:$0xf] %v1821_v22  ;;  %v1851_v25 = vor.u32 %v1849_v8, %v1848_v13  ;;  %v11656_v32 = vor.u32 %v14063_v11, %v11653_v17  ;;  %v15137_v8 = vpop.f32.mrf.mxu1  ;;  %v2688_v17 = vshll.u32 %v2550_v6, 16  ;;  %v2680_v28 = vrot.slane %v2678_v14, 5  ;;  %v12059_v1 = vld [vmem:[#allocation3 + $0x4b8] sm:$0xf] }
 0x163   : > { %8518 = vmatmul.bf16.gmra.mxu1 %v11556_v30  ;;  %2188 = vst [vmem:[#allocation3 + $0x204] sm:$0xf] %v1830_v33  ;;  %v1843_v30 = vsel %vm15009_vm3, %v11415_v18, %v1842_v12  ;;  %v2662_v37 = vrot.slane %v2661_v31, 4  ;;  %v2684_v29 = vrot.slane %v2682_v16, 4 }
 0x164   : > { %2241 = vst [vmem:[#allocation3 + $0xe0] sm:$0xf] %v1821_v22  ;;  %v15113_v22 = vpop.f32.mrf.mxu0 }
 0x165   : > { %8459 = vmatmul.bf16.gmra.mxu0 %v12152_v35  ;;  %v14014_v48 = vld [vmem:[#allocation3 + $0xc] sm:$0xf]  ;;  %2242 = vst [vmem:[#allocation3 + $0x144] sm:$0xf] %v1830_v33  ;;  %v1852_v33 = vsel %vm15009_vm3, %v1844_v7, %v1851_v25  ;;  %v2666_v35 = vrot.slane %v2664_v20, 5  ;;  %v2685_v34 = vor.u32 %v2684_v29, %v2680_v28 }
 0x166   : > { %v11461_v53 = vld [vmem:[#allocation3 + $0x6c] sm:$0xf0]  ;;  %3014 = vst [vmem:[#allocation3 + $0xd4] sm:$0xf] %v2633_v43  ;;  %v12351_v25 = vld [vmem:[#allocation3 + $0x708] sm:$0xf] }
 0x167   : > { %v11464_v57 = vor.u32 %v14014_v48, %v11461_v53  ;;  %3015 = vst [vmem:[#allocation3 + $0x138] sm:$0xf] %v2643_v49  ;;  %v2667_v44 = vsel %vm15069_vm6, %v2662_v37, %v2666_v35  ;;  %v1859_v48 = vshrl.u32 %v1702_v45, 16  ;;  %v14458_v53 = vld [vmem:[%s18470_s1 + $0x168] sm:$0xff]  ;;  %v14088_v18 = vld [vmem:[#allocation3 + $0x25c] sm:$0xf] }
 0x168   : > { %3070 = vst [vmem:[#allocation3 + $0x14] sm:$0xf] %v2633_v43  ;;  %v2548_v43 = vld [vmem:[#allocation2 + $0x54] sm:$0xf]  ;;  %v15133_v55 = vpop.f32.mrf.mxu3  ;;  %8863 = vmatpush.bf16.msra.mxu1 %v14458_v53  ;;  %v11753_v19 = vld [vmem:[#allocation3 + $0x2bc] sm:$0xf0] }
 0x169   : > { %8691 = vmatmul.bf16.vlgmr.msrb.gmra.mxu3 %v11464_v57  ;;  %3071 = vst [vmem:[#allocation3 + $0x78] sm:$0xf] %v2643_v49  ;;  %v1868_v49 = vshrl.u32 %v1703_v46, 16  ;;  %v2669_v56 = vshrl.u32 %v2548_v43, 16  ;;  %v1862_v57 = vshll.u32 %v1702_v45, 16  ;;  %v2672_v58 = vshll.u32 %v2548_v43, 16 }
 0x16a   : > { %2135 = vst [vmem:[#allocation3 + $0x324] sm:$0xf] %v1843_v30  ;;  %v1861_v3 = vrot.slane %v1859_v48, 7  ;;  %v2690_v35 = vrot.slane %v2688_v17, 5  ;;  %v1705_v45 = vld [vmem:[#allocation2 + $0x84] sm:$0xf]  ;;  %v15151_v48 = vpop.f32.mrf.mxu1 }
 0x16b   : > { %2136 = vst [vmem:[#allocation3 + $0x388] sm:$0xf] %v1852_v33  ;;  %v1870_v4 = vrot.slane %v1868_v49, 7  ;;  %v2671_v7 = vrot.slane %v2669_v56, 4  ;;  %v2674_v12 = vrot.slane %v2672_v58, 5  ;;  %v1881_v49 = vshrl.u32 %v1705_v45, 16 }
 0x16c   : > { %2189 = vst [vmem:[#allocation3 + $0x268] sm:$0xf] %v1843_v30  ;;  %v15135_v60 = vpop.f32.mrf.mxu0  ;;  %v1864_v10 = vor.u32 %v1862_v57, %v1861_v3  ;;  %v1866_v11 = vrot.slane %v1861_v3, 4  ;;  %v1706_v46 = vld [vmem:[#allocation2 + $0x88] sm:$0xf]  ;;  %v1884_v63 = vshll.u32 %v1705_v45, 16 }
 0x16d   : > { %v14039_v39 = vld [vmem:[#allocation3 + $0xd4] sm:$0xf]  ;;  %2190 = vst [vmem:[#allocation3 + $0x2cc] sm:$0xf] %v1852_v33  ;;  %v1873_v13 = vor.u32 %v1871_v5, %v1870_v4  ;;  %v1704_v56 = vld [vmem:[#allocation2 + $0x80] sm:$0x8] }
 0x16e   : > { %v11561_v41 = vld [vmem:[#allocation3 + $0x134] sm:$0xf0]  ;;  %2243 = vst [vmem:[#allocation3 + $0x1a8] sm:$0xf] %v1843_v30  ;;  %v1865_v20 = vsel %vm15009_vm3, %v11416_v9, %v1864_v10  ;;  %v14250_v30 = vld [vmem:[#allocation3 + $0x768] sm:$0xf0] }
 0x16f   : > { %2244 = vst [vmem:[#allocation3 + $0x20c] sm:$0xf] %v1852_v33  ;;  %v11564_v52 = vor.u32 %v14039_v39, %v11561_v41  ;;  %v1874_v27 = vsel %vm15009_vm3, %v1866_v11, %v1873_v13  ;;  %v11756_v33 = vor.u32 %v14088_v18, %v11753_v19  ;;  %v2686_v41 = vrot.slane %v2685_v34, 4  ;;  %v2551_v57 = vld [vmem:[#allocation2 + $0x64] sm:$0xf] }
 0x170   : > { %3016 = vst [vmem:[#allocation3 + $0x19c] sm:$0xf] %v2657_v42  ;;  %v15143_v31 = vpop.f32.mrf.mxu3  ;;  %v1876_v58 = vshrl.u32 %v1704_v56, 16  ;;  %v1883_v61 = vrot.slane %v1881_v49, 7  ;;  %v1893_v3 = vshll.u32 %v1706_v46, 16  ;;  %v2693_v10 = vshrl.u32 %v2551_v57, 16 }
 0x171   : > { %8622 = vmatmul.bf16.gmra.mxu2 %v11860_v24  ;;  %3017 = vst [vmem:[#allocation3 + $0x200] sm:$0xf] %v2667_v44  ;;  %v2675_v24 = vor.u32 %v2674_v12, %v2671_v7  ;;  %v2552_v4 = vld [vmem:[#allocation2 + $0x68] sm:$0xf]  ;;  %v2553_v9 = vld [vmem:[#allocation2 + $0x6c] sm:$0x1] }
 0x172   : > { %3128 = vst [vmem:[#allocation3 + $0x20] sm:$0xf] %v2657_v42  ;;  %v11417_v5 = vrot.slane %v1876_v58, 11  ;;  %v1886_v6 = vor.u32 %v1884_v63, %v1883_v61  ;;  %v1888_v7 = vrot.slane %v1883_v61, 4  ;;  %v14176_v11 = vld [vmem:[#allocation3 + $0x518] sm:$0xf0]  ;;  %v15161_v34 = vpop.f32.mrf.mxu1 }
 0x173   : > { %8523 = vmatmul.bf16.gmra.mxu1 %v11656_v32  ;;  %3129 = vst [vmem:[#allocation3 + $0x84] sm:$0xf] %v2667_v44  ;;  %v2676_v32 = vrot.slane %v2675_v24, 4  ;;  %v2696_v13 = vshll.u32 %v2551_v57, 16  ;;  %v2702_v14 = vshll.u32 %v2552_v4, 16  ;;  %v2706_v16 = vshrl.u32 %v2552_v4, 16 }
 0x174   : > { %3072 = vst [vmem:[#allocation3 + $0xdc] sm:$0xf] %v2657_v42  ;;  %v15147_v39 = vpop.f32.mrf.mxu0  ;;  %v14113_v17 = vld [vmem:[#allocation3 + $0x324] sm:$0xf]  ;;  %v1887_v19 = vsel %vm15009_vm3, %v11417_v5, %v1886_v6  ;;  %v2712_v24 = vshll.u32 %v2553_v9, 16  ;;  %v12060_v29 = vor.u32 %v14176_v11, %v12059_v1 }
 0x175   : > { %8464 = vmatmul.bf16.gmra.mxu0 %v12252_v38  ;;  %3073 = vst [vmem:[#allocation3 + $0x140] sm:$0xf] %v2667_v44  ;;  %v2681_v37 = vsel %vm15069_vm6, %v2676_v32, %v2680_v28  ;;  %v12352_v38 = vor.u32 %v14250_v30, %v12351_v25  ;;  %v2691_v44 = vsel %vm15069_vm6, %v2686_v41, %v2690_v35  ;;  %v11853_v25 = vld [vmem:[#allocation3 + $0x384] sm:$0xf0]  ;;  %v2704_v28 = vrot.slane %v2702_v14, 5  ;;  %v14457_v63 = vld [vmem:[%s18470_s1 + $0x160] sm:$0xff] }
 0x176   : > { %2137 = vst [vmem:[#allocation3 + $0x3ec] sm:$0xf] %v1865_v20  ;;  %v2708_v30 = vrot.slane %v2706_v16, 4  ;;  %v11467_v32 = vld [vmem:[#allocation3 + $0x10] sm:$0xf]  ;;  %v2714_v41 = vrot.slane %v2712_v24, 5  ;;  %8864 = vmatpush.bf16.msra.mxu1 %v14457_v63 }
 0x177   : > { %2138 = vst [vmem:[#allocation3 + $0x450] sm:$0xf] %v1874_v27  ;;  %v14064_v42 = vld [vmem:[#allocation3 + $0x19c] sm:$0xf]  ;;  %v1708_v56 = vld [vmem:[#allocation2 + $0x94] sm:$0xf] }
 0x178   : > { %2191 = vst [vmem:[#allocation3 + $0x330] sm:$0xf] %v1865_v20  ;;  %v11661_v43 = vld [vmem:[#allocation3 + $0x1fc] sm:$0xf0]  ;;  %v15153_v0 = vpop.f32.mrf.mxu3  ;;  %v2554_v57 = vld [vmem:[#allocation2 + $0x74] sm:$0xf] }
 0x179   : > { %8696 = vmatmul.bf16.gmra.mxu3 %v11564_v52  ;;  %2192 = vst [vmem:[#allocation3 + $0x394] sm:$0xf] %v1874_v27  ;;  %v1890_v52 = vshrl.u32 %v1706_v46, 16  ;;  %v11664_v53 = vor.u32 %v14064_v42, %v11661_v43  ;;  %v1709_v1 = vld [vmem:[#allocation2 + $0x98] sm:$0xf] }
 0x17a   : > { %2245 = vst [vmem:[#allocation3 + $0x270] sm:$0xf] %v1865_v20  ;;  %v2695_v20 = vrot.slane %v2693_v10, 4  ;;  %v2555_v4 = vld [vmem:[#allocation2 + $0x78] sm:$0xf]  ;;  %v1912_v10 = vshrl.u32 %v1709_v1, 16 }
 0x17b   : > { %2246 = vst [vmem:[#allocation3 + $0x2d4] sm:$0xf] %v1874_v27  ;;  %v1892_v2 = vrot.slane %v1890_v52, 7  ;;  %v2698_v27 = vrot.slane %v2696_v13, 5  ;;  %v1915_v11 = vshll.u32 %v1709_v1, 16 }
 0x17c   : > { %3018 = vst [vmem:[#allocation3 + $0x264] sm:$0xf] %v2681_v37  ;;  %v15155_v18 = vpop.f32.mrf.mxu0  ;;  %v12159_v13 = vld [vmem:[#allocation3 + $0x580] sm:$0xf]  ;;  %v1914_v24 = vrot.slane %v1912_v10, 7 }
 0x17d   : > { %18483 = vst [vmem:[#allocation4_spill] sm:$0xff] %v15151_v48  ;;  %v1895_v12 = vor.u32 %v1893_v3, %v1892_v2  ;;  %v2699_v35 = vor.u32 %v2698_v27, %v2695_v20  ;;  %v1903_v2 = vshrl.u32 %v1708_v56, 16  ;;  %v1707_v3 = vld [vmem:[#allocation2 + $0x90] sm:$0x8]  ;;  %v14201_v20 = vld [vmem:[#allocation3 + $0x5e0] sm:$0xf0] }
 0x17e   : > { %3019 = vst [vmem:[#allocation3 + $0x2c8] sm:$0xf] %v2691_v44  ;;  %v1898_v5 = vshrl.u32 %v1707_v3, 16  ;;  %v2730_v27 = vshrl.u32 %v2555_v4, 16  ;;  %v2557_v3 = vld [vmem:[#allocation2 + $0x84] sm:$0xf] }
 0x17f   : > { %3074 = vst [vmem:[#allocation3 + $0x1a4] sm:$0xf] %v2681_v37  ;;  %v2700_v42 = vrot.slane %v2699_v35, 4  ;;  %v1905_v6 = vrot.slane %v1903_v2, 7 }
 0x180   : > { %3075 = vst [vmem:[#allocation3 + $0x208] sm:$0xf] %v2691_v44  ;;  %v15163_v49 = vpop.f32.mrf.mxu3  ;;  %v11418_v14 = vrot.slane %v1898_v5, 11 }
 0x181   : > { %8627 = vmatmul.bf16.gmra.mxu2 %v11960_v26  ;;  %3130 = vst [vmem:[#allocation3 + $0xe8] sm:$0xf] %v2681_v37  ;;  %v1896_v26 = vsel %vm15009_vm3, %v1888_v7, %v1895_v12  ;;  %v11856_v37 = vor.u32 %v14113_v17, %v11853_v25  ;;  %v2705_v52 = vsel %vm15069_vm6, %v2700_v42, %v2704_v28  ;;  %v1906_v7 = vshll.u32 %v1708_v56, 16  ;;  %v2556_v12 = vld [vmem:[#allocation2 + $0x7c] sm:$0x1] }
 0x182   : > { %3131 = vst [vmem:[#allocation3 + $0x14c] sm:$0xf] %v2691_v44  ;;  %v1910_v17 = vrot.slane %v1905_v6, 4  ;;  %v2720_v25 = vshll.u32 %v2554_v57, 16  ;;  %v12160_v42 = vor.u32 %v14201_v20, %v12159_v13  ;;  %v2744_v20 = vshll.u32 %v2557_v3, 16 }
 0x183   : > { %8528 = vmatmul.bf16.gmra.mxu1 %v11756_v33  ;;  %2139 = vst [vmem:[#allocation3 + $0x4b4] sm:$0xf] %v1887_v19  ;;  %v14027_v33 = vld [vmem:[#allocation3 + $0x70] sm:$0xf0]  ;;  %v14089_v45 = vld [vmem:[#allocation3 + $0x264] sm:$0xf]  ;;  %v1908_v16 = vor.u32 %v1906_v7, %v1905_v6 }
 0x184   : > { %2140 = vst [vmem:[#allocation3 + $0x518] sm:$0xf] %v1896_v26  ;;  %v11468_v43 = vor.u32 %v14027_v33, %v11467_v32  ;;  %v15169_v58 = vpop.f32.mrf.mxu0  ;;  %v2736_v32 = vshll.u32 %v2556_v12, 16  ;;  %v11953_v33 = vld [vmem:[#allocation3 + $0x44c] sm:$0xf0] }
 0x185   : > { %8469 = vmatmul.bf16.gmra.mxu0 %v12352_v38  ;;  %18484 = vst [vmem:[#allocation5_spill] sm:$0xff] %v15161_v34  ;;  %v2709_v38 = vor.u32 %v2708_v30, %v2704_v28  ;;  %v11761_v46 = vld [vmem:[#allocation3 + $0x2c4] sm:$0xf0]  ;;  %v14138_v28 = vld [vmem:[#allocation3 + $0x3ec] sm:$0xf] }
 0x186   : > { %2193 = vst [vmem:[#allocation3 + $0x3f8] sm:$0xf] %v1887_v19  ;;  %v11764_v61 = vor.u32 %v14089_v45, %v11761_v46  ;;  %v15174_v9 = vpop.f32.mrf.mxu1  ;;  %v14052_v45 = vld [vmem:[#allocation3 + $0x138] sm:$0xf0]  ;;  %v1712_v12 = vld [vmem:[#allocation2 + $0xa8] sm:$0xf] }
 0x187   : > { %2194 = vst [vmem:[#allocation3 + $0x45c] sm:$0xf] %v1896_v26  ;;  %v2710_v44 = vrot.slane %v2709_v38, 4  ;;  %v2722_v38 = vrot.slane %v2720_v25, 5 }
 0x188   : > { %2247 = vst [vmem:[#allocation3 + $0x338] sm:$0xf] %v1887_v19  ;;  %v2717_v19 = vshrl.u32 %v2554_v57, 16  ;;  %v15178_v35 = vpop.f32.mrf.mxu3 }
 0x189   : > { %8701 = vmatmul.bf16.gmra.mxu3 %v11664_v53  ;;  %2248 = vst [vmem:[#allocation3 + $0x39c] sm:$0xf] %v1896_v26  ;;  %v2715_v53 = vsel %vm15069_vm6, %v2710_v44, %v2714_v41  ;;  %v2726_v26 = vshll.u32 %v2555_v4, 16  ;;  %v11567_v44 = vld [vmem:[#allocation3 + $0xd8] sm:$0xf] }
 0x18a   : > { %3020 = vst [vmem:[#allocation3 + $0x32c] sm:$0xf] %v2705_v52  ;;  %v2719_v30 = vrot.slane %v2717_v19, 4  ;;  %v11568_v1 = vor.u32 %v14052_v45, %v11567_v44  ;;  %v1934_v19 = vshrl.u32 %v1712_v12, 16  ;;  %v2559_v44 = vld [vmem:[#allocation2 + $0x8c] sm:$0x1] }
 0x18b   : > { %3021 = vst [vmem:[#allocation3 + $0x390] sm:$0xf] %v2715_v53  ;;  %v2728_v41 = vrot.slane %v2726_v26, 5  ;;  %v2746_v45 = vrot.slane %v2744_v20, 5 }
 0x18c   : > { %3076 = vst [vmem:[#allocation3 + $0x26c] sm:$0xf] %v2705_v52  ;;  %v15182_v56 = vpop.f32.mrf.mxu0 }
 0x18d   : > { %3077 = vst [vmem:[#allocation3 + $0x2d0] sm:$0xf] %v2715_v53 }
 0x18e   : > { %3132 = vst [vmem:[#allocation3 + $0x1b0] sm:$0xf] %v2705_v52  ;;  %v2723_v52 = vor.u32 %v2722_v38, %v2719_v30  ;;  %v15184_v4 = vpop.f32.mrf.mxu1  ;;  %v1937_v30 = vshll.u32 %v1712_v12, 16 }
 0x18f   : > { %18485 = vst [vmem:[#allocation6_spill] sm:$0xff] %v15174_v9 }
 0x190   : > { %3133 = vst [vmem:[#allocation3 + $0x214] sm:$0xf] %v2715_v53  ;;  %v11956_v53 = vor.u32 %v14138_v28, %v11953_v33  ;;  %v2724_v63 = vrot.slane %v2723_v52, 4 }
 0x191   : > { %8632 = vmatmul.bf16.gmra.mxu2 %v12060_v29  ;;  %v1909_v29 = vsel %vm15009_vm3, %v11418_v14, %v1908_v16  ;;  %18486 = vst [vmem:[#allocation7_spill] sm:$0xff] %v15178_v35  ;;  %v14114_v5 = vld [vmem:[#allocation3 + $0x32c] sm:$0xf]  ;;  %v2741_v14 = vshrl.u32 %v2557_v3, 16 }
 0x192   : > { %2141 = vst [vmem:[#allocation3 + $0x57c] sm:$0xf] %v1909_v29  ;;  %v11861_v6 = vld [vmem:[#allocation3 + $0x38c] sm:$0xf0]  ;;  %v2729_v7 = vsel %vm15069_vm6, %v2724_v63, %v2728_v41 }
 0x193   : > { %8533 = vmatmul.bf16.gmra.mxu1 %v11856_v37  ;;  %v1917_v37 = vor.u32 %v1915_v11, %v1914_v24  ;;  %2195 = vst [vmem:[#allocation3 + $0x4c0] sm:$0xf] %v1909_v29  ;;  %v1711_v11 = vld [vmem:[#allocation2 + $0xa4] sm:$0xf]  ;;  %v11864_v16 = vor.u32 %v14114_v5, %v11861_v6  ;;  %v15190_v24 = vpop.f32.mrf.mxu3  ;;  %v2743_v38 = vrot.slane %v2741_v14, 4 }
 0x194   : > { %2249 = vst [vmem:[#allocation3 + $0x400] sm:$0xf] %v1909_v29  ;;  %v1925_v13 = vshrl.u32 %v1711_v11, 16  ;;  %v1928_v28 = vshll.u32 %v1711_v11, 16  ;;  %v1936_v29 = vrot.slane %v1934_v19, 7 }
 0x195   : > { %8780 = vmatmul.bf16.vlgmr.msrb.gmra.mxu0 %v11468_v43  ;;  %v2732_v43 = vrot.slane %v2730_v27, 4  ;;  %v1918_v46 = vsel %vm15009_vm3, %v1910_v17, %v1917_v37  ;;  %18487 = vst [vmem:[#allocation8_spill] sm:$0xff] %v15184_v4  ;;  %v1710_v17 = vld [vmem:[#allocation2 + $0xa0] sm:$0x8]  ;;  %v2558_v27 = vld [vmem:[#allocation2 + $0x88] sm:$0xf] }
 0x196   : > { %2142 = vst [vmem:[#allocation3 + $0x5e0] sm:$0xf] %v1918_v46  ;;  %v1920_v25 = vshrl.u32 %v1710_v17, 16  ;;  %v1927_v26 = vrot.slane %v1925_v13, 7  ;;  %v2754_v52 = vshrl.u32 %v2558_v27, 16 }
 0x197   : > { %v2733_v57 = vor.u32 %v2732_v43, %v2728_v41  ;;  %2196 = vst [vmem:[#allocation3 + $0x524] sm:$0xf] %v1918_v46  ;;  %v15195_v41 = vpop.f32.mrf.mxu0  ;;  %v1939_v43 = vor.u32 %v1937_v30, %v1936_v29  ;;  %v12053_v5 = vld [vmem:[#allocation3 + $0x514] sm:$0xf0]  ;;  %v14077_v11 = vld [vmem:[#allocation3 + $0x200] sm:$0xf0] }
 0x198   : > { %2250 = vst [vmem:[#allocation3 + $0x464] sm:$0xf] %v1918_v46  ;;  %v11419_v33 = vrot.slane %v1920_v25, 11  ;;  %v1932_v37 = vrot.slane %v1927_v26, 4  ;;  %v2750_v46 = vshll.u32 %v2558_v27, 16  ;;  %v2756_v6 = vrot.slane %v2754_v52, 4 }
 0x199   : > { %8706 = vmatmul.bf16.gmra.mxu3 %v11764_v61  ;;  %v2738_v61 = vrot.slane %v2736_v32, 5  ;;  %v2734_v2 = vrot.slane %v2733_v57, 4  ;;  %3022 = vst [vmem:[#allocation3 + $0x3f4] sm:$0xf] %v2729_v7  ;;  %v14468_v32 = vld [vmem:[%s18470_s1 + $0x1b8] sm:$0xff] }
 0x19a   : > { %3078 = vst [vmem:[#allocation3 + $0x334] sm:$0xf] %v2729_v7  ;;  %8950 = vmatpush.bf16.msrb.mxu2 %v14468_v32  ;;  %v14163_v57 = vld [vmem:[#allocation3 + $0x4b4] sm:$0xf]  ;;  %v1940_v63 = vsel %vm15009_vm3, %v1932_v37, %v1939_v43  ;;  %v2561_v37 = vld [vmem:[#allocation2 + $0x98] sm:$0xf] }
 0x19b   : > { %v2739_v10 = vsel %vm15069_vm6, %v2734_v2, %v2738_v61  ;;  %18488 = vst [vmem:[#allocation9_spill] sm:$0xff] %v15190_v24  ;;  %v2752_v2 = vrot.slane %v2750_v46, 5  ;;  %v12056_v14 = vor.u32 %v14163_v57, %v12053_v5  ;;  %v15205_v17 = vpop.f32.mrf.mxu3  ;;  %v1714_v29 = vld [vmem:[#allocation2 + $0xb4] sm:$0xf]  ;;  %v14476_v43 = vld [vmem:[%s18470_s1 + $0x1f8] sm:$0xff] }
 0x19c   : > { %3023 = vst [vmem:[#allocation3 + $0x458] sm:$0xf] %v2739_v10  ;;  %v2560_v30 = vld [vmem:[#allocation2 + $0x94] sm:$0xf]  ;;  %v1947_v52 = vshrl.u32 %v1714_v29, 16  ;;  %9039 = vmatpush.bf16.msra.mxu3 %v14476_v43 }
 0x19d   : > { %3079 = vst [vmem:[#allocation3 + $0x398] sm:$0xf] %v2739_v10  ;;  %v2757_v12 = vor.u32 %v2756_v6, %v2752_v2 }
 0x19e   : > { %3134 = vst [vmem:[#allocation3 + $0x278] sm:$0xf] %v2729_v7  ;;  %v11667_v7 = vld [vmem:[#allocation3 + $0x1a0] sm:$0xf]  ;;  %v1949_v5 = vrot.slane %v1947_v52, 7 }
 0x19f   : > { %3135 = vst [vmem:[#allocation3 + $0x2dc] sm:$0xf] %v2739_v10  ;;  %v2758_v19 = vrot.slane %v2757_v12, 4  ;;  %v11668_v20 = vor.u32 %v14077_v11, %v11667_v7  ;;  %v2768_v7 = vshll.u32 %v2560_v30, 16  ;;  %v2774_v11 = vshll.u32 %v2561_v37, 16 }
 0x1a0   : > { %v15201_v3 = vpop.f32.mrf.mxu1  ;;  %2144 = vst [vmem:[#allocation3 + $0x6a8] sm:$0xf] %v1940_v63  ;;  %v14139_v25 = vld [vmem:[#allocation3 + $0x3f4] sm:$0xf]  ;;  %v2778_v12 = vshrl.u32 %v2561_v37, 16 }
 0x1a1   : > { %8637 = vmatmul.bf16.gmra.mxu2 %v12160_v42  ;;  %v1930_v42 = vor.u32 %v1928_v28, %v1927_v26  ;;  %18489 = vst [vmem:[#allocation10_spill] sm:$0xff] %v15201_v3  ;;  %v15209_v28 = vpop.f32.mrf.mxu0 }
 0x1a2   : > { %2198 = vst [vmem:[#allocation3 + $0x5ec] sm:$0xf] %v1940_v63 }
 0x1a3   : > { %8538 = vmatmul.bf16.gmra.mxu1 %v11956_v53  ;;  %v2760_v53 = vshll.u32 %v2559_v44, 16  ;;  %v1931_v61 = vsel %vm15009_vm3, %v11419_v33, %v1930_v42  ;;  %18490 = vst [vmem:[#allocation11_spill] sm:$0xff] %v15205_v17  ;;  %v11961_v26 = vld [vmem:[#allocation3 + $0x454] sm:$0xf0]  ;;  %v1713_v44 = vld [vmem:[#allocation2 + $0xb0] sm:$0x8] }
 0x1a4   : > { %2143 = vst [vmem:[#allocation3 + $0x644] sm:$0xf] %v1931_v61  ;;  %v1715_v33 = vld [vmem:[#allocation2 + $0xb8] sm:$0xf]  ;;  %v1942_v46 = vshrl.u32 %v1713_v44, 16 }
 0x1a5   : > { %8785 = vmatmul.bf16.gmra.mxu0 %v11568_v1  ;;  %v2747_v1 = vor.u32 %v2746_v45, %v2743_v38  ;;  %2197 = vst [vmem:[#allocation3 + $0x588] sm:$0xf] %v1931_v61  ;;  %v2762_v13 = vrot.slane %v2760_v53, 5  ;;  %v11964_v38 = vor.u32 %v14139_v25, %v11961_v26  ;;  %v14456_v42 = vld [vmem:[%s18470_s1 + $0x158] sm:$0xff]  ;;  %v1950_v53 = vshll.u32 %v1714_v29, 16  ;;  %v14467_v26 = vld [vmem:[%s18470_s1 + $0x1b0] sm:$0xff] }
 0x1a6   : > { %2251 = vst [vmem:[#allocation3 + $0x4c8] sm:$0xf] %v1931_v61  ;;  %v1956_v57 = vshrl.u32 %v1715_v33, 16  ;;  %8865 = vmatpush.bf16.msra.mxu1 %v14456_v42  ;;  %v1959_v61 = vshll.u32 %v1715_v33, 16  ;;  %v2770_v25 = vrot.slane %v2768_v7, 5  ;;  %v2780_v29 = vrot.slane %v2778_v12, 4  ;;  %8951 = vmatpush.bf16.msrb.mxu2 %v14467_v26 }
 0x1a7   : > { %v2748_v10 = vrot.slane %v2747_v1, 4  ;;  %2252 = vst [vmem:[#allocation3 + $0x52c] sm:$0xf] %v1940_v63  ;;  %v2763_v27 = vsel %vm15069_vm6, %v2758_v19, %v2762_v13  ;;  %v2562_v63 = vld [vmem:[#allocation2 + $0x9c] sm:$0x1]  ;;  %v2765_v1 = vshrl.u32 %v2560_v30, 16 }
 0x1a8   : > { %3025 = vst [vmem:[#allocation3 + $0x520] sm:$0xf] %v2763_v27  ;;  %v15219_v45 = vpop.f32.mrf.mxu1  ;;  %v1958_v6 = vrot.slane %v1956_v57, 7  ;;  %v2784_v13 = vshll.u32 %v2562_v63, 16  ;;  %v1954_v19 = vrot.slane %v1949_v5, 4 }
 0x1a9   : > { %8711 = vmatmul.bf16.gmra.mxu3 %v11864_v16  ;;  %v2753_v16 = vsel %vm15069_vm6, %v2748_v10, %v2752_v2  ;;  %3081 = vst [vmem:[#allocation3 + $0x460] sm:$0xf] %v2763_v27  ;;  %v11420_v2 = vrot.slane %v1942_v46, 11  ;;  %v2767_v10 = vrot.slane %v2765_v1, 4  ;;  %v14188_v33 = vld [vmem:[#allocation3 + $0x57c] sm:$0xf] }
 0x1aa   : > { %3024 = vst [vmem:[#allocation3 + $0x4bc] sm:$0xf] %v2753_v16  ;;  %v12153_v42 = vld [vmem:[#allocation3 + $0x5dc] sm:$0xf0]  ;;  %v11767_v44 = vld [vmem:[#allocation3 + $0x268] sm:$0xf] }
 0x1ab   : > { %3080 = vst [vmem:[#allocation3 + $0x3fc] sm:$0xf] %v2753_v16  ;;  %v2786_v52 = vrot.slane %v2784_v13, 5  ;;  %v12156_v63 = vor.u32 %v14188_v33, %v12153_v42  ;;  %v1717_v12 = vld [vmem:[#allocation2 + $0xc4] sm:$0xf] }
 0x1ac   : > { %18491 = vst [vmem:[#allocation12_spill] sm:$0xff] %v15219_v45  ;;  %v1718_v13 = vld [vmem:[#allocation2 + $0xc8] sm:$0xf] }
 0x1ad   : > { %3136 = vst [vmem:[#allocation3 + $0x340] sm:$0xf] %v2753_v16  ;;  %v1952_v16 = vor.u32 %v1950_v53, %v1949_v5  ;;  %v14102_v53 = vld [vmem:[#allocation3 + $0x2c8] sm:$0xf0] }
 0x1ae   : > { %3137 = vst [vmem:[#allocation3 + $0x3a4] sm:$0xf] %v2763_v27  ;;  %v2776_v27 = vrot.slane %v2774_v11, 5 }
 0x1af   : > { %v1953_v30 = vsel %vm15009_vm3, %v11420_v2, %v1952_v16  ;;  %v12061_v11 = vld [vmem:[#allocation3 + $0x51c] sm:$0xf0] }
 0x1b0   : > { %2145 = vst [vmem:[#allocation3 + $0x70c] sm:$0xf] %v1953_v30  ;;  %v2781_v46 = vor.u32 %v2780_v29, %v2776_v27  ;;  %v2564_v29 = vld [vmem:[#allocation2 + $0xa8] sm:$0xf] }
 0x1b1   : > { %2199 = vst [vmem:[#allocation3 + $0x650] sm:$0xf] %v1953_v30 }
 0x1b2   : > { %v15230_v43 = vpop.f32.mrf.mxu0  ;;  %v2782_v1 = vrot.slane %v2781_v46, 4  ;;  %2253 = vst [vmem:[#allocation3 + $0x590] sm:$0xf] %v1953_v30  ;;  %v1972_v30 = vshll.u32 %v1717_v12, 16  ;;  %v2565_v46 = vld [vmem:[#allocation2 + $0xac] sm:$0x1] }
 0x1b3   : > { %8543 = vmatmul.bf16.gmra.mxu1 %v12056_v14  ;;  %v15221_v14 = vpop.f32.mrf.mxu3 }
 0x1b4   : > { %v15211_v32 = vpop.f32.mrf.mxu2  ;;  %18492 = vst [vmem:[#allocation13_spill] sm:$0xff] %v15221_v14  ;;  %v2787_v7 = vsel %vm15069_vm6, %v2782_v1, %v2786_v52 }
 0x1b5   : > { %8790 = vmatmul.bf16.gmra.mxu0 %v11668_v20  ;;  %v1961_v20 = vor.u32 %v1959_v61, %v1958_v6  ;;  %v11768_v6 = vor.u32 %v14102_v53, %v11767_v44  ;;  %3027 = vst [vmem:[#allocation3 + $0x5e8] sm:$0xf] %v2787_v7  ;;  %v1981_v44 = vshll.u32 %v1718_v13, 16 }
 0x1b6   : > { %3083 = vst [vmem:[#allocation3 + $0x528] sm:$0xf] %v2787_v7 }
 0x1b7   : > { %v1962_v37 = vsel %vm15009_vm3, %v1954_v19, %v1961_v20  ;;  %v1969_v19 = vshrl.u32 %v1717_v12, 16  ;;  %v1978_v20 = vshrl.u32 %v1718_v13, 16  ;;  %3139 = vst [vmem:[#allocation3 + $0x46c] sm:$0xf] %v2787_v7  ;;  %v2802_v12 = vshrl.u32 %v2564_v29, 16 }
 0x1b8   : > { %2146 = vst [vmem:[#allocation3 + $0x770] sm:$0xf] %v1962_v37  ;;  %v2808_v13 = vshll.u32 %v2565_v46, 16 }
 0x1b9   : > { %8716 = vmatmul.bf16.gmra.mxu3 %v11964_v38  ;;  %v2771_v38 = vor.u32 %v2770_v25, %v2767_v10  ;;  %2200 = vst [vmem:[#allocation3 + $0x6b4] sm:$0xf] %v1962_v37  ;;  %v14164_v10 = vld [vmem:[#allocation3 + $0x4bc] sm:$0xf]  ;;  %v2563_v25 = vld [vmem:[#allocation2 + $0xa4] sm:$0xf] }
 0x1ba   : > { %2254 = vst [vmem:[#allocation3 + $0x5f4] sm:$0xf] %v1962_v37  ;;  %v12064_v26 = vor.u32 %v14164_v10, %v12061_v11  ;;  %v1971_v42 = vrot.slane %v1969_v19, 7  ;;  %v15242_v37 = vpop.f32.mrf.mxu0  ;;  %v2792_v11 = vshll.u32 %v2563_v25, 16  ;;  %v2798_v19 = vshll.u32 %v2564_v29, 16 }
 0x1bb   : > { %v2772_v61 = vrot.slane %v2771_v38, 4  ;;  %v15240_v16 = vpop.f32.mrf.mxu3  ;;  %v1980_v38 = vrot.slane %v1978_v20, 7  ;;  %v11867_v29 = vld [vmem:[#allocation3 + $0x330] sm:$0xf] }
 0x1bc   : > { %v15232_v57 = vpop.f32.mrf.mxu2  ;;  %18494 = vst [vmem:[#allocation15_spill] sm:$0xff] %v15240_v16  ;;  %v1976_v1 = vrot.slane %v1971_v42, 4  ;;  %v14465_v16 = vld [vmem:[%s18470_s1 + $0x1a0] sm:$0xff] }
 0x1bd   : > { %v2777_v5 = vsel %vm15069_vm6, %v2772_v61, %v2776_v27  ;;  %v1716_v27 = vld [vmem:[#allocation2 + $0xc0] sm:$0x8]  ;;  %v1983_v10 = vor.u32 %v1981_v44, %v1980_v38  ;;  %v14127_v38 = vld [vmem:[#allocation3 + $0x390] sm:$0xf0] }
 0x1be   : > { %3026 = vst [vmem:[#allocation3 + $0x584] sm:$0xf] %v2777_v5  ;;  %v1964_v33 = vshrl.u32 %v1716_v27, 16  ;;  %v14213_v27 = vld [vmem:[#allocation3 + $0x644] sm:$0xf] }
 0x1bf   : > { %3082 = vst [vmem:[#allocation3 + $0x4c4] sm:$0xf] %v2777_v5  ;;  %v1984_v7 = vsel %vm15009_vm3, %v1976_v1, %v1983_v10 }
 0x1c0   : > { %v15234_v2 = vpop.f32.mrf.mxu1  ;;  %3138 = vst [vmem:[#allocation3 + $0x408] sm:$0xf] %v2777_v5  ;;  %v11421_v61 = vrot.slane %v1964_v33, 11  ;;  %v2794_v33 = vrot.slane %v2792_v11, 5 }
 0x1c1   : > { %18493 = vst [vmem:[#allocation14_spill] sm:$0xff] %v15234_v2 }
 0x1c2   : > { %2148 = vst [vmem:[#allocation3 + $0x838] sm:$0xf] %v1984_v7 }
 0x1c3   : > { %8548 = vmatmul.bf16.gmra.mxu1 %v12156_v63  ;;  %v1974_v63 = vor.u32 %v1972_v30, %v1971_v42  ;;  %v2804_v42 = vrot.slane %v2802_v12, 4  ;;  %v15255_v44 = vpop.f32.mrf.mxu3  ;;  %2202 = vst [vmem:[#allocation3 + $0x77c] sm:$0xf] %v1984_v7 }
 0x1c4   : > { %v15246_v53 = vpop.f32.mrf.mxu2  ;;  %18496 = vst [vmem:[#allocation17_spill] sm:$0xff] %v15255_v44  ;;  %v2568_v44 = vld [vmem:[#allocation2 + $0xbc] sm:$0x1] }
 0x1c5   : > { %8795 = vmatmul.bf16.gmra.mxu0 %v11768_v6  ;;  %v2789_v6 = vshrl.u32 %v2563_v25, 16  ;;  %v1975_v5 = vsel %vm15009_vm3, %v11421_v61, %v1974_v63  ;;  %v2800_v25 = vrot.slane %v2798_v19, 5  ;;  %v2810_v61 = vrot.slane %v2808_v13, 5  ;;  %2256 = vst [vmem:[#allocation3 + $0x6bc] sm:$0xf] %v1984_v7 }
 0x1c6   : > { %2147 = vst [vmem:[#allocation3 + $0x7d4] sm:$0xf] %v1975_v5  ;;  %v11868_v19 = vor.u32 %v14127_v38, %v11867_v29  ;;  %v1721_v7 = vld [vmem:[#allocation2 + $0xd8] sm:$0xf]  ;;  %v14475_v29 = vld [vmem:[%s18470_s1 + $0x1f0] sm:$0xff] }
 0x1c7   : > { %v2791_v20 = vrot.slane %v2789_v6, 4  ;;  %2201 = vst [vmem:[#allocation3 + $0x718] sm:$0xf] %v1975_v5  ;;  %v2805_v46 = vor.u32 %v2804_v42, %v2800_v25  ;;  %v14455_v42 = vld [vmem:[%s18470_s1 + $0x150] sm:$0xff]  ;;  %9040 = vmatpush.bf16.msra.mxu3 %v14475_v29 }
 0x1c8   : > { %v15244_v52 = vpop.f32.mrf.mxu1  ;;  %2255 = vst [vmem:[#allocation3 + $0x658] sm:$0xf] %v1975_v5  ;;  %8866 = vmatpush.bf16.msra.mxu1 %v14455_v42 }
 0x1c9   : > { %18495 = vst [vmem:[#allocation16_spill] sm:$0xff] %v15244_v52  ;;  %8721 = vmatmul.bf16.gmra.mxu3 %v12064_v26  ;;  %v14466_v52 = vld [vmem:[%s18470_s1 + $0x1a8] sm:$0xff]  ;;  %v2795_v30 = vor.u32 %v2794_v33, %v2791_v20  ;;  %v2806_v10 = vrot.slane %v2805_v46, 4  ;;  %v14189_v20 = vld [vmem:[#allocation3 + $0x584] sm:$0xf] }
 0x1ca   : > { %v12253_v26 = vld [vmem:[#allocation3 + $0x6a4] sm:$0xf0]  ;;  %8952 = vmatpush.bf16.msrb.mxu2 %v14466_v52 }
 0x1cb   : > { %v12256_v63 = vor.u32 %v14213_v27, %v12253_v26  ;;  %v2796_v6 = vrot.slane %v2795_v30, 4  ;;  %v12161_v33 = vld [vmem:[#allocation3 + $0x5e4] sm:$0xf0]  ;;  %v2811_v13 = vsel %vm15069_vm6, %v2806_v10, %v2810_v61  ;;  %v1720_v27 = vld [vmem:[#allocation2 + $0xd4] sm:$0xf]  ;;  %v2000_v61 = vshrl.u32 %v1721_v7, 16  ;;  %v15277_v10 = vpop.f32.mrf.mxu3 }
 0x1cc   : > { %v15262_v2 = vpop.f32.mrf.mxu2  ;;  %3029 = vst [vmem:[#allocation3 + $0x6b0] sm:$0xf] %v2811_v13  ;;  %v2567_v26 = vld [vmem:[#allocation2 + $0xb8] sm:$0xf]  ;;  %v1991_v38 = vshrl.u32 %v1720_v27, 16  ;;  %v1994_v46 = vshll.u32 %v1720_v27, 16 }
 0x1cd   : > { %v2801_v52 = vsel %vm15069_vm6, %v2796_v6, %v2800_v25  ;;  %v12164_v25 = vor.u32 %v14189_v20, %v12161_v33  ;;  %3085 = vst [vmem:[#allocation3 + $0x5f0] sm:$0xf] %v2811_v13  ;;  %v2002_v20 = vrot.slane %v2000_v61, 7  ;;  %v2826_v45 = vshrl.u32 %v2567_v26, 16  ;;  %v12353_v61 = vld [vmem:[#allocation3 + $0x76c] sm:$0xf0] }
 0x1ce   : > { %3028 = vst [vmem:[#allocation3 + $0x64c] sm:$0xf] %v2801_v52  ;;  %8953 = vmatpush.bf16.msrb.mxu2 %v14465_v16  ;;  %v14263_v4 = vld [vmem:[#allocation3 + $0x7d4] sm:$0xf] }
 0x1cf   : > { %3084 = vst [vmem:[#allocation3 + $0x58c] sm:$0xf] %v2801_v52 }
 0x1d0   : > { %v8514_v1 = vpop.f32.mrf.mxu1  ;;  %3140 = vst [vmem:[#allocation3 + $0x4d0] sm:$0xf] %v2801_v52 }
 0x1d1   : > { %v8515_v11 = vadd.f32 %v8514_v1, %v15073_v62  ;;  %v2566_v62 = vld [vmem:[#allocation2 + $0xb4] sm:$0xf]  ;;  %3141 = vst [vmem:[#allocation3 + $0x534] sm:$0xf] %v2811_v13 }
 0x1d2   : > { %v15260_v12 = vpop.f32.mrf.mxu0  ;;  %v2813_v6 = vshrl.u32 %v2566_v62, 16  ;;  %18497 = vst [vmem:[#allocation18_spill] sm:$0xff] %v15277_v10  ;;  %v2816_v33 = vshll.u32 %v2566_v62, 16 }
 0x1d3   : > { %v15267_v5 = vadd.f32 %v15211_v32, %v8515_v11  ;;  %8553 = vmatmul.bf16.gmra.mxu1 %v12256_v63  ;;  %v1719_v32 = vld [vmem:[#allocation2 + $0xd0] sm:$0x8]  ;;  %v2003_v63 = vshll.u32 %v1721_v7, 16 }
 0x1d4   : > { %v1986_v30 = vshrl.u32 %v1719_v32, 16  ;;  %v2815_v52 = vrot.slane %v2813_v6, 4  ;;  %v2822_v32 = vshll.u32 %v2567_v26, 16  ;;  %v2818_v7 = vrot.slane %v2816_v33, 5  ;;  %v15284_v62 = vpop.f32.mrf.mxu2 }
 0x1d5   : > { %8800 = vmatmul.bf16.gmra.mxu0 %v11868_v19  ;;  %v1993_v19 = vrot.slane %v1991_v38, 7  ;;  %v2005_v29 = vor.u32 %v2003_v63, %v2002_v20  ;;  %v14238_v38 = vld [vmem:[#allocation3 + $0x70c] sm:$0xf]  ;;  %v2832_v6 = vshll.u32 %v2568_v44, 16  ;;  %v11967_v63 = vld [vmem:[#allocation3 + $0x3f8] sm:$0xf] }
 0x1d6   : > { %v11422_v11 = vrot.slane %v1986_v30, 11  ;;  %v2824_v10 = vrot.slane %v2822_v32, 5  ;;  %v2828_v30 = vrot.slane %v2826_v45, 4  ;;  %v14152_v20 = vld [vmem:[#allocation3 + $0x458] sm:$0xf0]  ;;  %v12356_v32 = vor.u32 %v14238_v38, %v12353_v61 }
 0x1d7   : > { %v1996_v13 = vor.u32 %v1994_v46, %v1993_v19  ;;  %v1998_v42 = vrot.slane %v1993_v19, 4  ;;  %v2819_v46 = vor.u32 %v2818_v7, %v2815_v52  ;;  %v2834_v45 = vrot.slane %v2832_v6, 5  ;;  %v12261_v7 = vld [vmem:[#allocation3 + $0x6ac] sm:$0xf0]  ;;  %v2569_v38 = vld [vmem:[#allocation2 + $0xc4] sm:$0xf] }
 0x1d8   : > { %v15275_v1 = vpop.f32.mrf.mxu1  ;;  %v2829_v19 = vor.u32 %v2828_v30, %v2824_v10  ;;  %v11968_v52 = vor.u32 %v14152_v20, %v11967_v63 }
 0x1d9   : > { %8726 = vmatmul.bf16.gmra.mxu3 %v12164_v25  ;;  %v1997_v25 = vsel %vm15009_vm3, %v11422_v11, %v1996_v13  ;;  %v2006_v26 = vsel %vm15009_vm3, %v1998_v42, %v2005_v29  ;;  %v2820_v33 = vrot.slane %v2819_v46, 4  ;;  %v15297_v42 = vpop.f32.mrf.mxu3  ;;  %v14214_v29 = vld [vmem:[#allocation3 + $0x64c] sm:$0xf]  ;;  %v2570_v46 = vld [vmem:[#allocation2 + $0xc8] sm:$0xf] }
 0x1da   : > { %v15279_v27 = vpop.f32.mrf.mxu0  ;;  %2149 = vst [vmem:[#allocation3 + $0x89c] sm:$0xf] %v1997_v25  ;;  %v2830_v3 = vrot.slane %v2829_v19, 4  ;;  %v12264_v61 = vor.u32 %v14214_v29, %v12261_v7  ;;  %v2837_v29 = vshrl.u32 %v2569_v38, 16 }
 0x1db   : > { %2150 = vst [vmem:[#allocation3 + $0x900] sm:$0xf] %v2006_v26  ;;  %v2825_v11 = vsel %vm15069_vm6, %v2820_v33, %v2824_v10  ;;  %v1723_v10 = vld [vmem:[#allocation2 + $0xe4] sm:$0xf]  ;;  %v2571_v33 = vld [vmem:[#allocation2 + $0xcc] sm:$0x1] }
 0x1dc   : > { %2203 = vst [vmem:[#allocation3 + $0x7e0] sm:$0xf] %v1997_v25  ;;  %v2835_v16 = vsel %vm15069_vm6, %v2830_v3, %v2834_v45  ;;  %v1724_v3 = vld [vmem:[#allocation2 + $0xe8] sm:$0xf]  ;;  %v2016_v63 = vshll.u32 %v1723_v10, 16 }
 0x1dd   : > { %2204 = vst [vmem:[#allocation3 + $0x844] sm:$0xf] %v2006_v26  ;;  %v2022_v19 = vshrl.u32 %v1724_v3, 16  ;;  %v2025_v20 = vshll.u32 %v1724_v3, 16  ;;  %v2839_v3 = vrot.slane %v2837_v29, 4  ;;  %v8517_v29 = vadd.f32 %v15275_v1, %v15094_v40 }
 0x1de   : > { %2257 = vst [vmem:[#allocation3 + $0x720] sm:$0xf] %v1997_v25  ;;  %v1722_v25 = vld [vmem:[#allocation2 + $0xe0] sm:$0x8] }
 0x1df   : > { %18498 = vst [vmem:[#allocation19_spill] sm:$0xff] %v15297_v42  ;;  %v2856_v42 = vshll.u32 %v2571_v33, 16 }
 0x1e0   : > { %v8519_v14 = vpop.f32.mrf.mxu1  ;;  %2258 = vst [vmem:[#allocation3 + $0x784] sm:$0xf] %v2006_v26  ;;  %v15305_v26 = vpop.f32.mrf.mxu2 }
 0x1e1   : > { %v8520_v13 = vadd.f32 %v8519_v14, %v15113_v22  ;;  %3030 = vst [vmem:[#allocation3 + $0x714] sm:$0xf] %v2825_v11  ;;  %v14464_v22 = vld [vmem:[%s18470_s1 + $0x198] sm:$0xff]  ;;  %v2013_v14 = vshrl.u32 %v1723_v10, 16 }
 0x1e2   : > { %v15295_v44 = vpop.f32.mrf.mxu0  ;;  %3031 = vst [vmem:[#allocation3 + $0x778] sm:$0xf] %v2835_v16  ;;  %8954 = vmatpush.bf16.msrb.mxu2 %v14464_v22  ;;  %v2024_v22 = vrot.slane %v2022_v19, 7 }
 0x1e3   : > { %v15300_v30 = vadd.f32 %v15246_v53, %v8520_v13  ;;  %8558 = vmatmul.bf16.gmra.mxu1 %v12356_v32  ;;  %3086 = vst [vmem:[#allocation3 + $0x654] sm:$0xf] %v2825_v11  ;;  %v2008_v53 = vshrl.u32 %v1722_v25, 16  ;;  %v2015_v6 = vrot.slane %v2013_v14, 7  ;;  %v14463_v32 = vld [vmem:[%s18470_s1 + $0x190] sm:$0xff]  ;;  %v2840_v25 = vshll.u32 %v2569_v38, 16 }
 0x1e4   : > { %3087 = vst [vmem:[#allocation3 + $0x6b8] sm:$0xf] %v2835_v16  ;;  %v2846_v14 = vshll.u32 %v2570_v46, 16 }
 0x1e5   : > { %8805 = vmatmul.bf16.gmra.mxu0 %v11968_v52  ;;  %3142 = vst [vmem:[#allocation3 + $0x598] sm:$0xf] %v2825_v11  ;;  %v11423_v13 = vrot.slane %v2008_v53, 11  ;;  %v2018_v52 = vor.u32 %v2016_v63, %v2015_v6  ;;  %v2020_v7 = vrot.slane %v2015_v6, 4  ;;  %v14462_v53 = vld [vmem:[%s18470_s1 + $0x188] sm:$0xff]  ;;  %v2027_v63 = vor.u32 %v2025_v20, %v2024_v22 }
 0x1e6   : > { %3143 = vst [vmem:[#allocation3 + $0x5fc] sm:$0xf] %v2835_v16  ;;  %8955 = vmatpush.bf16.msrb.mxu2 %v14463_v32  ;;  %v2850_v16 = vshrl.u32 %v2570_v46, 16  ;;  %v12453_v6 = vld [vmem:[#allocation3 + $0x834] sm:$0xf0]  ;;  %v2848_v19 = vrot.slane %v2846_v14, 5 }
 0x1e7   : > { %v2019_v11 = vsel %vm15009_vm3, %v11423_v13, %v2018_v52  ;;  %v12067_v32 = vld [vmem:[#allocation3 + $0x4c0] sm:$0xf]  ;;  %v2028_v46 = vsel %vm15009_vm3, %v2020_v7, %v2027_v63  ;;  %v14177_v13 = vld [vmem:[#allocation3 + $0x520] sm:$0xf0]  ;;  %v2858_v52 = vrot.slane %v2856_v42, 5  ;;  %v12456_v22 = vor.u32 %v14263_v4, %v12453_v6 }
 0x1e8   : > { %v15307_v45 = vpop.f32.mrf.mxu1  ;;  %2151 = vst [vmem:[#allocation3 + $0x964] sm:$0xf] %v2019_v11  ;;  %v2852_v17 = vrot.slane %v2850_v16, 4  ;;  %v15326_v16 = vpop.f32.mrf.mxu2  ;;  %v14239_v40 = vld [vmem:[#allocation3 + $0x714] sm:$0xf] }
 0x1e9   : > { %8731 = vmatmul.bf16.gmra.mxu3 %v12264_v61  ;;  %v2842_v61 = vrot.slane %v2840_v25, 5  ;;  %2205 = vst [vmem:[#allocation3 + $0x8a8] sm:$0xf] %v2019_v11  ;;  %v12361_v4 = vld [vmem:[#allocation3 + $0x774] sm:$0xf0] }
 0x1ea   : > { %v15312_v10 = vpop.f32.mrf.mxu0  ;;  %2259 = vst [vmem:[#allocation3 + $0x7e8] sm:$0xf] %v2019_v11  ;;  %8956 = vmatpush.bf16.msrb.mxu2 %v14462_v53  ;;  %v2853_v20 = vor.u32 %v2852_v17, %v2848_v19  ;;  %v8606_v53 = vadd.f32 %v15232_v57, %v8517_v29  ;;  %v14454_v57 = vld [vmem:[%s18470_s1 + $0x148] sm:$0xff] }
 0x1eb   : > { %v2843_v33 = vor.u32 %v2842_v61, %v2839_v3  ;;  %2152 = vst [vmem:[#allocation3 + $0x9c8] sm:$0xf] %v2028_v46  ;;  %v12068_v3 = vor.u32 %v14177_v13, %v12067_v32  ;;  %v2572_v61 = vld [vmem:[#allocation2 + $0xd4] sm:$0xf]  ;;  %v2573_v13 = vld [vmem:[#allocation2 + $0xd8] sm:$0xf]  ;;  %8867 = vmatpush.bf16.msra.mxu1 %v14454_v57 }
 0x1ec   : > { %v8692_v38 = vpop.f32.mrf.mxu3  ;;  %2206 = vst [vmem:[#allocation3 + $0x90c] sm:$0xf] %v2028_v46  ;;  %v2854_v7 = vrot.slane %v2853_v20, 4  ;;  %v1725_v20 = vld [vmem:[#allocation2 + $0xf0] sm:$0x8] }
 0x1ed   : > { %v15320_v9 = vadd.f32 %v8692_v38, %v15267_v5  ;;  %v2844_v25 = vrot.slane %v2843_v33, 4  ;;  %v14461_v5 = vld [vmem:[%s18470_s1 + $0x180] sm:$0xff]  ;;  %2260 = vst [vmem:[#allocation3 + $0x84c] sm:$0xf] %v2028_v46  ;;  %v14028_v38 = vld [vmem:[#allocation3 + $0x78] sm:$0xf0]  ;;  %v12364_v46 = vor.u32 %v14239_v40, %v12361_v4 }
 0x1ee   : > { %8957 = vmatpush.bf16.msrb.mxu2 %v14461_v5  ;;  %v2859_v1 = vsel %vm15069_vm6, %v2854_v7, %v2858_v52  ;;  %v1727_v52 = vld [vmem:[#allocation2 + $0xf8] sm:$0xf]  ;;  %v2030_v29 = vshrl.u32 %v1725_v20, 16  ;;  %v2870_v40 = vshll.u32 %v2573_v13, 16 }
 0x1ef   : > { %v2849_v17 = vsel %vm15069_vm6, %v2844_v25, %v2848_v19  ;;  %3033 = vst [vmem:[#allocation3 + $0x840] sm:$0xf] %v2859_v1  ;;  %v1726_v19 = vld [vmem:[#allocation2 + $0xf4] sm:$0xf]  ;;  %v2047_v7 = vshll.u32 %v1727_v52, 16 }
 0x1f0   : > { %v8524_v14 = vpop.f32.mrf.mxu1  ;;  %3032 = vst [vmem:[#allocation3 + $0x7dc] sm:$0xf] %v2849_v17  ;;  %v2038_v25 = vshll.u32 %v1726_v19, 16  ;;  %v11424_v4 = vrot.slane %v2030_v29, 11 }
 0x1f1   : > { %v8525_v11 = vadd.f32 %v8524_v14, %v15147_v39  ;;  %v11475_v39 = vld [vmem:[#allocation3 + $0x18] sm:$0xf]  ;;  %3088 = vst [vmem:[#allocation3 + $0x71c] sm:$0xf] %v2849_v17  ;;  %v2044_v14 = vshrl.u32 %v1727_v52, 16 }
 0x1f2   : > { %v15334_v42 = vpop.f32.mrf.mxu0  ;;  %3089 = vst [vmem:[#allocation3 + $0x780] sm:$0xf] %v2859_v1  ;;  %v11476_v33 = vor.u32 %v14028_v38, %v11475_v39  ;;  %v2574_v39 = vld [vmem:[#allocation2 + $0xdc] sm:$0x1]  ;;  %v12553_v52 = vld [vmem:[#allocation3 + $0x8fc] sm:$0xf0] }
 0x1f3   : > { %v15340_v63 = vadd.f32 %v15284_v62, %v8525_v11  ;;  %8563 = vmatmul.bf16.gmra.mxu1 %v12456_v22  ;;  %v14474_v62 = vld [vmem:[%s18470_s1 + $0x1e8] sm:$0xff]  ;;  %3144 = vst [vmem:[#allocation3 + $0x660] sm:$0xf] %v2849_v17  ;;  %v2035_v22 = vshrl.u32 %v1726_v19, 16  ;;  %v2861_v11 = vshrl.u32 %v2572_v61, 16  ;;  %v2046_v17 = vrot.slane %v2044_v14, 7 }
 0x1f4   : > { %v8694_v6 = vpop.f32.mrf.mxu3  ;;  %3145 = vst [vmem:[#allocation3 + $0x6c4] sm:$0xf] %v2859_v1  ;;  %8958 = vmatmul.bf16.vlgmr.msrb.gmra.mxu2 %v11476_v33  ;;  %9041 = vmatpush.bf16.msra.mxu3 %v14474_v62  ;;  %v15354_v1 = vpop.f32.mrf.mxu2  ;;  %v2872_v19 = vrot.slane %v2870_v40, 5  ;;  %v2874_v33 = vshrl.u32 %v2573_v13, 16  ;;  %v14288_v62 = vld [vmem:[#allocation3 + $0x89c] sm:$0xf] }
 0x1f5   : > { %8810 = vmatmul.bf16.gmra.mxu0 %v12068_v3  ;;  %v15342_v32 = vadd.f32 %v8694_v6, %v8606_v53  ;;  %v2864_v3 = vshll.u32 %v2572_v61, 16  ;;  %v2037_v53 = vrot.slane %v2035_v22, 7  ;;  %v2863_v38 = vrot.slane %v2861_v11, 4  ;;  %v12167_v22 = vld [vmem:[#allocation3 + $0x588] sm:$0xf] }
 0x1f6   : > { %v2049_v61 = vor.u32 %v2047_v7, %v2046_v17  ;;  %v2880_v29 = vshll.u32 %v2574_v39, 16  ;;  %v14202_v11 = vld [vmem:[#allocation3 + $0x5e8] sm:$0xf0]  ;;  %v8522_v7 = vadd.f32 %v15307_v45, %v15135_v60 }
 0x1f7   : > { %v2866_v57 = vrot.slane %v2864_v3, 5  ;;  %v2040_v20 = vor.u32 %v2038_v25, %v2037_v53  ;;  %v2042_v24 = vrot.slane %v2037_v53, 4  ;;  %v12556_v53 = vor.u32 %v14288_v62, %v12553_v52  ;;  %v1729_v52 = vld [vmem:[#allocation2 + $0x104] sm:$0xf] }
 0x1f8   : > { %v15350_v5 = vpop.f32.mrf.mxu1  ;;  %v2882_v40 = vrot.slane %v2880_v29, 5  ;;  %v12168_v39 = vor.u32 %v14202_v11, %v12167_v22  ;;  %v8611_v45 = vadd.f32 %v15262_v2, %v8522_v7  ;;  %v1728_v2 = vld [vmem:[#allocation2 + $0x100] sm:$0x8]  ;;  %v2575_v29 = vld [vmem:[#allocation2 + $0xe4] sm:$0xf]  ;;  %v2057_v22 = vshrl.u32 %v1729_v52, 16 }
 0x1f9   : > { %8736 = vmatmul.bf16.gmra.mxu3 %v12364_v46  ;;  %v2867_v35 = vor.u32 %v2866_v57, %v2863_v38  ;;  %v2876_v46 = vrot.slane %v2874_v33, 4  ;;  %v2041_v48 = vsel %vm15009_vm3, %v11424_v4, %v2040_v20  ;;  %v2050_v13 = vsel %vm15009_vm3, %v2042_v24, %v2049_v61  ;;  %v12461_v38 = vld [vmem:[#allocation3 + $0x83c] sm:$0xf0]  ;;  %v14053_v33 = vld [vmem:[#allocation3 + $0x140] sm:$0xf0] }
 0x1fa   : > { %v15352_v6 = vpop.f32.mrf.mxu0  ;;  %2153 = vst [vmem:[#allocation3 + $0xa2c] sm:$0xf] %v2041_v48  ;;  %v1730_v61 = vld [vmem:[#allocation2 + $0x108] sm:$0xf] }
 0x1fb   : > { %v2868_v25 = vrot.slane %v2867_v35, 4  ;;  %v2877_v3 = vor.u32 %v2876_v46, %v2872_v19  ;;  %2154 = vst [vmem:[#allocation3 + $0xa90] sm:$0xf] %v2050_v13  ;;  %v14264_v35 = vld [vmem:[#allocation3 + $0x7dc] sm:$0xf] }
 0x1fc   : > { %v8697_v34 = vpop.f32.mrf.mxu3  ;;  %2207 = vst [vmem:[#allocation3 + $0x970] sm:$0xf] %v2041_v48  ;;  %v15376_v62 = vpop.f32.mrf.mxu2  ;;  %v12464_v46 = vor.u32 %v14264_v35, %v12461_v38  ;;  %v2576_v11 = vld [vmem:[#allocation2 + $0xe8] sm:$0xf] }
 0x1fd   : > { %v15357_v14 = vadd.f32 %v8697_v34, %v15300_v30  ;;  %v2878_v34 = vrot.slane %v2877_v3, 4  ;;  %2208 = vst [vmem:[#allocation3 + $0x9d4] sm:$0xf] %v2050_v13  ;;  %v2873_v4 = vsel %vm15069_vm6, %v2868_v25, %v2872_v19  ;;  %v2066_v25 = vshrl.u32 %v1730_v61, 16 }
 0x1fe   : > { %2261 = vst [vmem:[#allocation3 + $0x8b0] sm:$0xf] %v2041_v48  ;;  %v2069_v3 = vshll.u32 %v1730_v61, 16 }
 0x1ff   : > { %v2883_v60 = vsel %vm15069_vm6, %v2878_v34, %v2882_v40  ;;  %2262 = vst [vmem:[#allocation3 + $0x914] sm:$0xf] %v2050_v13  ;;  %v2060_v13 = vshll.u32 %v1729_v52, 16  ;;  %v2068_v34 = vrot.slane %v2066_v25, 7  ;;  %v12267_v25 = vld [vmem:[#allocation3 + $0x650] sm:$0xf] }
 0x200   : > { %v8529_v17 = vpop.f32.mrf.mxu1  ;;  %3034 = vst [vmem:[#allocation3 + $0x8a4] sm:$0xf] %v2873_v4 }
 0x201   : > { %v8530_v30 = vadd.f32 %v8529_v17, %v15169_v58  ;;  %v11575_v58 = vld [vmem:[#allocation3 + $0xe0] sm:$0xf]  ;;  %3035 = vst [vmem:[#allocation3 + $0x908] sm:$0xf] %v2883_v60  ;;  %v2577_v17 = vld [vmem:[#allocation2 + $0xec] sm:$0x1] }
 0x202   : > { %v15368_v24 = vpop.f32.mrf.mxu0  ;;  %v11576_v19 = vor.u32 %v14053_v33, %v11575_v58  ;;  %3090 = vst [vmem:[#allocation3 + $0x7e4] sm:$0xf] %v2873_v4  ;;  %v2894_v58 = vshll.u32 %v2576_v11, 16  ;;  %v2898_v33 = vshrl.u32 %v2576_v11, 16 }
 0x203   : > { %v15374_v57 = vadd.f32 %v15326_v16, %v8530_v30  ;;  %8568 = vmatmul.bf16.gmra.mxu1 %v12556_v53  ;;  %v2052_v16 = vshrl.u32 %v1728_v2, 16  ;;  %3091 = vst [vmem:[#allocation3 + $0x848] sm:$0xf] %v2883_v60  ;;  %v2059_v53 = vrot.slane %v2057_v22, 7  ;;  %v2885_v30 = vshrl.u32 %v2575_v29, 16 }
 0x204   : > { %v8699_v20 = vpop.f32.mrf.mxu3  ;;  %8963 = vmatmul.bf16.gmra.mxu2 %v11576_v19  ;;  %3146 = vst [vmem:[#allocation3 + $0x728] sm:$0xf] %v2873_v4  ;;  %v2071_v19 = vor.u32 %v2069_v3, %v2068_v34  ;;  %v12653_v2 = vld [vmem:[#allocation3 + $0x9c4] sm:$0xf0]  ;;  %v2904_v22 = vshll.u32 %v2577_v17, 16 }
 0x205   : > { %8815 = vmatmul.bf16.gmra.mxu0 %v12168_v39  ;;  %v15378_v48 = vadd.f32 %v8699_v20, %v8611_v45  ;;  %v11425_v7 = vrot.slane %v2052_v16, 11  ;;  %3147 = vst [vmem:[#allocation3 + $0x78c] sm:$0xf] %v2883_v60  ;;  %v2888_v39 = vshll.u32 %v2575_v29, 16  ;;  %v2062_v38 = vor.u32 %v2060_v13, %v2059_v53  ;;  %v14313_v20 = vld [vmem:[#allocation3 + $0x964] sm:$0xf] }
 0x206   : > { %v2064_v45 = vrot.slane %v2059_v53, 4  ;;  %v2887_v52 = vrot.slane %v2885_v30, 4  ;;  %v2900_v60 = vrot.slane %v2898_v33, 4  ;;  %v14227_v3 = vld [vmem:[#allocation3 + $0x6b0] sm:$0xf0]  ;;  %v15391_v53 = vpop.f32.mrf.mxu2  ;;  %v2906_v30 = vrot.slane %v2904_v22, 5 }
 0x207   : > { %v2890_v61 = vrot.slane %v2888_v39, 5  ;;  %v2063_v16 = vsel %vm15009_vm3, %v11425_v7, %v2062_v38  ;;  %v8527_v7 = vadd.f32 %v15350_v5, %v15155_v18  ;;  %v12656_v39 = vor.u32 %v14313_v20, %v12653_v2  ;;  %v2578_v22 = vld [vmem:[#allocation2 + $0xf4] sm:$0xf] }
 0x208   : > { %v15380_v40 = vpop.f32.mrf.mxu1  ;;  %v2072_v13 = vsel %vm15009_vm3, %v2064_v45, %v2071_v19  ;;  %2155 = vst [vmem:[#allocation3 + $0xaf4] sm:$0xf] %v2063_v16  ;;  %v12268_v45 = vor.u32 %v14227_v3, %v12267_v25  ;;  %v1733_v3 = vld [vmem:[#allocation2 + $0x118] sm:$0xf] }
 0x209   : > { %8741 = vmatmul.bf16.gmra.mxu3 %v12464_v46  ;;  %v2896_v46 = vrot.slane %v2894_v58, 5  ;;  %v2891_v11 = vor.u32 %v2890_v61, %v2887_v52  ;;  %2156 = vst [vmem:[#allocation3 + $0xb58] sm:$0xf] %v2072_v13  ;;  %v14289_v52 = vld [vmem:[#allocation3 + $0x8a4] sm:$0xf]  ;;  %v8616_v5 = vadd.f32 %v15305_v26, %v8527_v7 }
 0x20a   : > { %v15382_v35 = vpop.f32.mrf.mxu0  ;;  %2209 = vst [vmem:[#allocation3 + $0xa38] sm:$0xf] %v2063_v16  ;;  %v12561_v61 = vld [vmem:[#allocation3 + $0x904] sm:$0xf0]  ;;  %v14473_v26 = vld [vmem:[%s18470_s1 + $0x1e0] sm:$0xff] }
 0x20b   : > { %v2901_v34 = vor.u32 %v2900_v60, %v2896_v46  ;;  %v2892_v17 = vrot.slane %v2891_v11, 4  ;;  %2210 = vst [vmem:[#allocation3 + $0xa9c] sm:$0xf] %v2072_v13  ;;  %v1732_v60 = vld [vmem:[#allocation2 + $0x114] sm:$0xf]  ;;  %9042 = vmatpush.bf16.msra.mxu3 %v14473_v26 }
 0x20c   : > { %v8702_v4 = vpop.f32.mrf.mxu3  ;;  %2263 = vst [vmem:[#allocation3 + $0x978] sm:$0xf] %v2063_v16  ;;  %v1731_v11 = vld [vmem:[#allocation2 + $0x110] sm:$0x8]  ;;  %v2082_v7 = vshll.u32 %v1732_v60, 16 }
 0x20d   : > { %v15387_v29 = vadd.f32 %v8702_v4, %v15340_v63  ;;  %v2902_v63 = vrot.slane %v2901_v34, 4  ;;  %v2897_v33 = vsel %vm15069_vm6, %v2892_v17, %v2896_v46  ;;  %2264 = vst [vmem:[#allocation3 + $0x9dc] sm:$0xf] %v2072_v13  ;;  %v14078_v4 = vld [vmem:[#allocation3 + $0x208] sm:$0xf0]  ;;  %v12564_v13 = vor.u32 %v14289_v52, %v12561_v61 }
 0x20e   : > { %3036 = vst [vmem:[#allocation3 + $0x96c] sm:$0xf] %v2897_v33  ;;  %v2074_v34 = vshrl.u32 %v1731_v11, 16  ;;  %v14338_v11 = vld [vmem:[#allocation3 + $0xa2c] sm:$0xf] }
 0x20f   : > { %v2907_v18 = vsel %vm15069_vm6, %v2902_v63, %v2906_v30  ;;  %3092 = vst [vmem:[#allocation3 + $0x8ac] sm:$0xf] %v2897_v33  ;;  %v2079_v30 = vshrl.u32 %v1732_v60, 16  ;;  %v2091_v63 = vshll.u32 %v1733_v3, 16 }
 0x210   : > { %v8534_v38 = vpop.f32.mrf.mxu1  ;;  %3037 = vst [vmem:[#allocation3 + $0x9d0] sm:$0xf] %v2907_v18 }
 0x211   : > { %v8535_v58 = vadd.f32 %v8534_v38, %v15195_v41  ;;  %v11675_v41 = vld [vmem:[#allocation3 + $0x1a8] sm:$0xf]  ;;  %3093 = vst [vmem:[#allocation3 + $0x910] sm:$0xf] %v2907_v18  ;;  %v8628_v38 = vpop.f32.mrf.mxu2 }
 0x212   : > { %v8781_v19 = vpop.f32.mrf.mxu0  ;;  %v11676_v46 = vor.u32 %v14078_v4, %v11675_v41  ;;  %3148 = vst [vmem:[#allocation3 + $0x7f0] sm:$0xf] %v2897_v33  ;;  %v2912_v41 = vshll.u32 %v2578_v22, 16 }
 0x213   : > { %v15402_v20 = vadd.f32 %v8781_v19, %v15320_v9  ;;  %v15405_v2 = vadd.f32 %v15376_v62, %v8535_v58  ;;  %8573 = vmatmul.bf16.gmra.mxu1 %v12656_v39  ;;  %v14453_v9 = vld [vmem:[%s18470_s1 + $0x140] sm:$0xff]  ;;  %v2579_v62 = vld [vmem:[#allocation2 + $0xf8] sm:$0xf]  ;;  %v2088_v39 = vshrl.u32 %v1733_v3, 16  ;;  %3149 = vst [vmem:[#allocation3 + $0x854] sm:$0xf] %v2907_v18 }
 0x214   : > { %v8704_v16 = vpop.f32.mrf.mxu3  ;;  %8868 = vmatpush.bf16.msra.mxu1 %v14453_v9  ;;  %8968 = vmatmul.bf16.gmra.mxu2 %v11676_v46  ;;  %v2909_v58 = vshrl.u32 %v2578_v22, 16  ;;  %v2081_v19 = vrot.slane %v2079_v30, 7  ;;  %v2918_v4 = vshll.u32 %v2579_v62, 16  ;;  %v12753_v18 = vld [vmem:[#allocation3 + $0xa8c] sm:$0xf0] }
 0x215   : > { %18499 = vst [vmem:[#allocation20_spill] sm:$0xff] %v15402_v20  ;;  %8820 = vmatmul.bf16.gmra.mxu0 %v12268_v45  ;;  %v15407_v25 = vadd.f32 %v8704_v16, %v8616_v5  ;;  %v11426_v45 = vrot.slane %v2074_v34, 11  ;;  %v2090_v52 = vrot.slane %v2088_v39, 7  ;;  %v2580_v5 = vld [vmem:[#allocation2 + $0xfc] sm:$0x1]  ;;  %v2922_v16 = vshrl.u32 %v2579_v62, 16 }
 0x216   : > { %v2911_v33 = vrot.slane %v2909_v58, 4  ;;  %v2084_v60 = vor.u32 %v2082_v7, %v2081_v19  ;;  %v2086_v9 = vrot.slane %v2081_v19, 4  ;;  %v2914_v20 = vrot.slane %v2912_v41, 5  ;;  %v12367_v62 = vld [vmem:[#allocation3 + $0x718] sm:$0xf] }
 0x217   : > { %v2093_v3 = vor.u32 %v2091_v63, %v2090_v52  ;;  %v2924_v22 = vrot.slane %v2922_v16, 4  ;;  %v2928_v39 = vshll.u32 %v2580_v5, 16  ;;  %v14252_v7 = vld [vmem:[#allocation3 + $0x778] sm:$0xf0]  ;;  %v12756_v19 = vor.u32 %v14338_v11, %v12753_v18 }
 0x218   : > { %v15415_v17 = vpop.f32.mrf.mxu1  ;;  %v2085_v30 = vsel %vm15009_vm3, %v11426_v45, %v2084_v60  ;;  %v2915_v63 = vor.u32 %v2914_v20, %v2911_v33  ;;  %v12368_v5 = vor.u32 %v14252_v7, %v12367_v62  ;;  %v12661_v20 = vld [vmem:[#allocation3 + $0x9cc] sm:$0xf0] }
 0x219   : > { %8746 = vmatmul.bf16.gmra.mxu3 %v12564_v13  ;;  %v2920_v13 = vrot.slane %v2918_v4, 5  ;;  %v2094_v58 = vsel %vm15009_vm3, %v2086_v9, %v2093_v3  ;;  %2157 = vst [vmem:[#allocation3 + $0xbbc] sm:$0xf] %v2085_v30  ;;  %v15431_v60 = vpop.f32.mrf.mxu2  ;;  %v14314_v9 = vld [vmem:[#allocation3 + $0x96c] sm:$0xf] }
 0x21a   : > { %v8783_v61 = vpop.f32.mrf.mxu0  ;;  %2158 = vst [vmem:[#allocation3 + $0xc20] sm:$0xf] %v2094_v58  ;;  %v2916_v41 = vrot.slane %v2915_v63, 4 }
 0x21b   : > { %v15418_v46 = vadd.f32 %v8783_v61, %v15342_v32  ;;  %v8532_v32 = vadd.f32 %v15380_v40, %v15182_v56  ;;  %v2925_v52 = vor.u32 %v2924_v22, %v2920_v13  ;;  %2211 = vst [vmem:[#allocation3 + $0xb00] sm:$0xf] %v2085_v30  ;;  %v2581_v56 = vld [vmem:[#allocation2 + $0x104] sm:$0xf] }
 0x21c   : > { %v8707_v26 = vpop.f32.mrf.mxu3  ;;  %2212 = vst [vmem:[#allocation3 + $0xb64] sm:$0xf] %v2094_v58  ;;  %v2921_v33 = vsel %vm15069_vm6, %v2916_v41, %v2920_v13 }
 0x21d   : > { %v15421_v34 = vadd.f32 %v8707_v26, %v15374_v57  ;;  %v2930_v57 = vrot.slane %v2928_v39, 5  ;;  %v2926_v4 = vrot.slane %v2925_v52, 4  ;;  %v8621_v40 = vadd.f32 %v15354_v1, %v8532_v32  ;;  %2265 = vst [vmem:[#allocation3 + $0xa40] sm:$0xf] %v2085_v30  ;;  %v11775_v1 = vld [vmem:[#allocation3 + $0x270] sm:$0xf] }
 0x21e   : > { %2266 = vst [vmem:[#allocation3 + $0xaa4] sm:$0xf] %v2094_v58  ;;  %v14103_v26 = vld [vmem:[#allocation3 + $0x2d0] sm:$0xf0]  ;;  %v2582_v39 = vld [vmem:[#allocation2 + $0x108] sm:$0xf] }
 0x21f   : > { %3038 = vst [vmem:[#allocation3 + $0xa34] sm:$0xf] %v2921_v33  ;;  %v11776_v22 = vor.u32 %v14103_v26, %v11775_v1  ;;  %v2933_v30 = vshrl.u32 %v2581_v56, 16  ;;  %v2936_v32 = vshll.u32 %v2581_v56, 16  ;;  %v2942_v58 = vshll.u32 %v2582_v39, 16  ;;  %v14500_v56 = vld [vmem:[%s18470_s1 + $0x2b8] sm:$0xff] }
 0x220   : > { %v8539_v61 = vpop.f32.mrf.mxu1  ;;  %3094 = vst [vmem:[#allocation3 + $0x974] sm:$0xf] %v2921_v33  ;;  %v2946_v63 = vshrl.u32 %v2582_v39, 16  ;;  %9306 = vmatpush.bf16.msra.mxu2 %v14500_v56  ;;  %v14277_v39 = vld [vmem:[#allocation3 + $0x840] sm:$0xf0] }
 0x221   : > { %v8540_v45 = vadd.f32 %v8539_v61, %v15230_v43  ;;  %v2931_v43 = vsel %vm15069_vm6, %v2926_v4, %v2930_v57  ;;  %v2935_v62 = vrot.slane %v2933_v30, 4  ;;  %v2938_v7 = vrot.slane %v2936_v32, 5  ;;  %3150 = vst [vmem:[#allocation3 + $0x8b8] sm:$0xf] %v2921_v33  ;;  %v14363_v33 = vld [vmem:[#allocation3 + $0xaf4] sm:$0xf] }
 0x222   : > { %v8786_v16 = vpop.f32.mrf.mxu0  ;;  %3039 = vst [vmem:[#allocation3 + $0xa98] sm:$0xf] %v2931_v43  ;;  %v2944_v61 = vrot.slane %v2942_v58, 5  ;;  %v2948_v41 = vrot.slane %v2946_v63, 4  ;;  %v8537_v30 = vadd.f32 %v15415_v17, %v15209_v28  ;;  %v2584_v63 = vld [vmem:[#allocation2 + $0x114] sm:$0xf] }
 0x223   : > { %v15436_v11 = vadd.f32 %v8786_v16, %v15357_v14  ;;  %v15438_v18 = vadd.f32 %v8628_v38, %v8540_v45  ;;  %8578 = vmatmul.bf16.gmra.mxu1 %v12756_v19  ;;  %v12664_v14 = vor.u32 %v14314_v9, %v12661_v20  ;;  %v2583_v38 = vld [vmem:[#allocation2 + $0x10c] sm:$0x1]  ;;  %3095 = vst [vmem:[#allocation3 + $0x9d8] sm:$0xf] %v2931_v43  ;;  %v8633_v20 = vpop.f32.mrf.mxu2  ;;  %v14128_v56 = vld [vmem:[#allocation3 + $0x398] sm:$0xf0] }
 0x224   : > { %v8709_v3 = vpop.f32.mrf.mxu3  ;;  %8973 = vmatmul.bf16.gmra.mxu2 %v11776_v22  ;;  %v2952_v19 = vshll.u32 %v2583_v38, 16  ;;  %v2939_v57 = vor.u32 %v2938_v7, %v2935_v62  ;;  %3151 = vst [vmem:[#allocation3 + $0x91c] sm:$0xf] %v2931_v43  ;;  %v2949_v16 = vor.u32 %v2948_v41, %v2944_v61  ;;  %v12853_v43 = vld [vmem:[#allocation3 + $0xb54] sm:$0xf0] }
 0x225   : > { %8825 = vmatmul.bf16.gmra.mxu0 %v12368_v5  ;;  %v15442_v13 = vadd.f32 %v8709_v3, %v8621_v40  ;;  %v14484_v40 = vld [vmem:[%s18470_s1 + $0x238] sm:$0xff]  ;;  %v12467_v22 = vld [vmem:[#allocation3 + $0x7e0] sm:$0xf]  ;;  %v12856_v32 = vor.u32 %v14363_v33, %v12853_v43 }
 0x226   : > { %v2940_v5 = vrot.slane %v2939_v57, 4  ;;  %v2954_v9 = vrot.slane %v2952_v19, 5  ;;  %9128 = vmatpush.bf16.msra.mxu0 %v14484_v40  ;;  %v2950_v3 = vrot.slane %v2949_v16, 4  ;;  %v14339_v62 = vld [vmem:[#allocation3 + $0xa34] sm:$0xf]  ;;  %v12468_v7 = vor.u32 %v14277_v39, %v12467_v22 }
 0x227   : > { %v2585_v57 = vld [vmem:[#allocation2 + $0x118] sm:$0xf]  ;;  %v2960_v40 = vshll.u32 %v2584_v63, 16 }
 0x228   : > { %v15444_v52 = vpop.f32.mrf.mxu1  ;;  %v2945_v26 = vsel %vm15069_vm6, %v2940_v5, %v2944_v61  ;;  %v8626_v61 = vadd.f32 %v15391_v53, %v8537_v30  ;;  %v11875_v41 = vld [vmem:[#allocation3 + $0x338] sm:$0xf]  ;;  %v2966_v33 = vshll.u32 %v2585_v57, 16  ;;  %v2970_v43 = vshrl.u32 %v2585_v57, 16  ;;  %v12953_v57 = vld [vmem:[#allocation3 + $0xc1c] sm:$0xf0] }
 0x229   : > { %8751 = vmatmul.bf16.gmra.mxu3 %v12664_v14  ;;  %3040 = vst [vmem:[#allocation3 + $0xafc] sm:$0xf] %v2945_v26  ;;  %v2955_v14 = vsel %vm15069_vm6, %v2950_v3, %v2954_v9  ;;  %v12761_v58 = vld [vmem:[#allocation3 + $0xa94] sm:$0xf0]  ;;  %v11876_v9 = vor.u32 %v14128_v56, %v11875_v41  ;;  %v2962_v3 = vrot.slane %v2960_v40, 5 }
 0x22a   : > { %v8788_v45 = vpop.f32.mrf.mxu0  ;;  %3096 = vst [vmem:[#allocation3 + $0xa3c] sm:$0xf] %v2945_v26  ;;  %v12764_v5 = vor.u32 %v14339_v62, %v12761_v58  ;;  %v14492_v53 = vld [vmem:[%s18470_s1 + $0x278] sm:$0xff]  ;;  %v2968_v39 = vrot.slane %v2966_v33, 5  ;;  %v2972_v30 = vrot.slane %v2970_v43, 4 }
 0x22b   : > { %v15447_v4 = vadd.f32 %v8788_v45, %v15378_v48  ;;  %3152 = vst [vmem:[#allocation3 + $0x980] sm:$0xf] %v2945_v26  ;;  %9217 = vmatpush.bf16.msrb.mxu1 %v14492_v53  ;;  %v12567_v56 = vld [vmem:[#allocation3 + $0x8a8] sm:$0xf] }
 0x22c   : > { %v8712_v1 = vpop.f32.mrf.mxu3  ;;  %3041 = vst [vmem:[#allocation3 + $0xb60] sm:$0xf] %v2955_v14 }
 0x22d   : > { %v15458_v48 = vadd.f32 %v8712_v1, %v15405_v2  ;;  %3097 = vst [vmem:[#allocation3 + $0xaa0] sm:$0xf] %v2955_v14  ;;  %v15479_v1 = vpop.f32.mrf.mxu2 }
 0x22e   : > { %3153 = vst [vmem:[#allocation3 + $0x9e4] sm:$0xf] %v2955_v14 }
 0x230   : > { %v8544_v38 = vpop.f32.mrf.mxu1  ;;  %v14364_v33 = vld [vmem:[#allocation3 + $0xafc] sm:$0xf] }
 0x231   : > { %v8545_v2 = vadd.f32 %v8544_v38, %v15260_v12  ;;  %v2957_v12 = vshrl.u32 %v2584_v63, 16  ;;  %v2973_v38 = vor.u32 %v2972_v30, %v2968_v39 }
 0x232   : > { %v8791_v19 = vpop.f32.mrf.mxu0 }
 0x233   : > { %v15467_v28 = vadd.f32 %v8791_v19, %v15387_v29  ;;  %v15469_v17 = vadd.f32 %v8633_v20, %v8545_v2  ;;  %8583 = vmatmul.bf16.gmra.mxu1 %v12856_v32  ;;  %v14472_v29 = vld [vmem:[%s18470_s1 + $0x1d8] sm:$0xff]  ;;  %v2959_v26 = vrot.slane %v2957_v12, 4  ;;  %v2974_v63 = vrot.slane %v2973_v38, 4  ;;  %v14302_v12 = vld [vmem:[#allocation3 + $0x908] sm:$0xf0] }
 0x234   : > { %v8714_v45 = vpop.f32.mrf.mxu3  ;;  %v2586_v20 = vld [vmem:[#allocation2 + $0x11c] sm:$0x1]  ;;  %8978 = vmatmul.bf16.gmra.mxu2 %v11876_v9  ;;  %9043 = vmatpush.bf16.msra.mxu3 %v14472_v29  ;;  %v12861_v43 = vld [vmem:[#allocation3 + $0xb5c] sm:$0xf0] }
 0x235   : > { %8830 = vmatmul.bf16.gmra.mxu0 %v12468_v7  ;;  %v15471_v16 = vadd.f32 %v8714_v45, %v8626_v61  ;;  %v2976_v22 = vshll.u32 %v2586_v20, 16  ;;  %v2963_v14 = vor.u32 %v2962_v3, %v2959_v26  ;;  %v14388_v19 = vld [vmem:[#allocation3 + $0xbbc] sm:$0xf]  ;;  %v8638_v53 = vpop.f32.mrf.mxu2  ;;  %v12568_v20 = vor.u32 %v14302_v12, %v12567_v56 }
 0x236   : > { %v12956_v40 = vor.u32 %v14388_v19, %v12953_v57  ;;  %v14015_v19 = vld [vmem:[#allocation3 + $0x14] sm:$0xf]  ;;  %v11469_v57 = vld [vmem:[#allocation3 + $0x74] sm:$0xf0] }
 0x237   : > { %v2978_v62 = vrot.slane %v2976_v22, 5  ;;  %v2964_v7 = vrot.slane %v2963_v14, 4  ;;  %v11472_v12 = vor.u32 %v14015_v19, %v11469_v57 }
 0x238   : > { %v15481_v32 = vpop.f32.mrf.mxu1 }
 0x239   : > { %8756 = vmatmul.bf16.gmra.mxu3 %v12764_v5  ;;  %v2969_v41 = vsel %vm15069_vm6, %v2964_v7, %v2968_v39  ;;  %v2979_v5 = vsel %vm15069_vm6, %v2974_v63, %v2978_v62  ;;  %v14153_v39 = vld [vmem:[#allocation3 + $0x460] sm:$0xf0]  ;;  %v14499_v7 = vld [vmem:[%s18470_s1 + $0x2b0] sm:$0xff]  ;;  %v8547_v56 = vadd.f32 %v15481_v32, %v15279_v27  ;;  %v14178_v27 = vld [vmem:[#allocation3 + $0x528] sm:$0xf0] }
 0x23a   : > { %v8793_v2 = vpop.f32.mrf.mxu0  ;;  %3042 = vst [vmem:[#allocation3 + $0xbc4] sm:$0xf] %v2969_v41  ;;  %v14483_v63 = vld [vmem:[%s18470_s1 + $0x230] sm:$0xff]  ;;  %9307 = vmatpush.bf16.msra.mxu2 %v14499_v7 }
 0x23b   : > { %v15484_v58 = vadd.f32 %v8793_v2, %v15407_v25  ;;  %3043 = vst [vmem:[#allocation3 + $0xc28] sm:$0xf] %v2979_v5  ;;  %v8542_v25 = vadd.f32 %v15444_v52, %v15242_v37  ;;  %v11975_v37 = vld [vmem:[#allocation3 + $0x400] sm:$0xf]  ;;  %v14470_v2 = vld [vmem:[%s18470_s1 + $0x1c8] sm:$0xff]  ;;  %9129 = vmatpush.bf16.msra.mxu0 %v14483_v63 }
 0x23c   : > { %v8717_v61 = vpop.f32.mrf.mxu3  ;;  %3098 = vst [vmem:[#allocation3 + $0xb04] sm:$0xf] %v2969_v41  ;;  %v11976_v14 = vor.u32 %v14153_v39, %v11975_v37  ;;  %v14491_v39 = vld [vmem:[%s18470_s1 + $0x270] sm:$0xff] }
 0x23d   : > { %v15489_v45 = vadd.f32 %v8717_v61, %v15438_v18  ;;  %3099 = vst [vmem:[#allocation3 + $0xb68] sm:$0xf] %v2979_v5  ;;  %v8631_v26 = vadd.f32 %v15431_v60, %v8542_v25  ;;  %v14471_v60 = vld [vmem:[%s18470_s1 + $0x1d0] sm:$0xff]  ;;  %9218 = vmatpush.bf16.msrb.mxu1 %v14491_v39  ;;  %v14481_v39 = vld [vmem:[%s18470_s1 + $0x220] sm:$0xff] }
 0x23e   : > { %3154 = vst [vmem:[#allocation3 + $0xa48] sm:$0xf] %v2969_v41  ;;  %9044 = vmatpush.bf16.msra.mxu3 %v14471_v60 }
 0x23f   : > { %3155 = vst [vmem:[#allocation3 + $0xaac] sm:$0xf] %v2979_v5  ;;  %v14327_v5 = vld [vmem:[#allocation3 + $0x9d0] sm:$0xf0] }
 0x240   : > { %v8549_v9 = vpop.f32.mrf.mxu1 }
 0x241   : > { %v8550_v29 = vadd.f32 %v8549_v9, %v15295_v44  ;;  %v12864_v44 = vor.u32 %v14364_v33, %v12861_v43  ;;  %v12075_v33 = vld [vmem:[#allocation3 + $0x4c8] sm:$0xf] }
 0x242   : > { %v8796_v18 = vpop.f32.mrf.mxu0  ;;  %9045 = vmatpush.bf16.msra.mxu3 %v14470_v2  ;;  %v12076_v43 = vor.u32 %v14178_v27, %v12075_v33  ;;  %v14352_v27 = vld [vmem:[#allocation3 + $0xa98] sm:$0xf0] }
 0x243   : > { %v15498_v3 = vadd.f32 %v8796_v18, %v15421_v34  ;;  %v15500_v22 = vadd.f32 %v8638_v53, %v8550_v29  ;;  %8588 = vmatmul.bf16.gmra.mxu1 %v12956_v40  ;;  %v14469_v40 = vld [vmem:[%s18470_s1 + $0x1c0] sm:$0xff] }
 0x244   : > { %v8719_v52 = vpop.f32.mrf.mxu3  ;;  %8983 = vmatmul.bf16.gmra.mxu2 %v11976_v14  ;;  %v14389_v29 = vld [vmem:[#allocation3 + $0xbc4] sm:$0xf]  ;;  %v1736_v14 = vld [vmem:[#allocation2 + $0x128] sm:$0xf] }
 0x245   : > { %8835 = vmatmul.bf16.gmra.mxu0 %v12568_v20  ;;  %v15502_v30 = vadd.f32 %v8719_v52, %v8631_v26  ;;  %v8636_v20 = vadd.f32 %v15479_v1, %v8547_v56  ;;  %v1735_v26 = vld [vmem:[#allocation2 + $0x124] sm:$0xf]  ;;  %v2177_v2 = vshll.u32 %v1736_v14, 16 }
 0x246   : > { %9046 = vmatpush.bf16.msra.mxu3 %v14469_v40  ;;  %v2165_v1 = vshrl.u32 %v1735_v26, 16  ;;  %v14482_v40 = vld [vmem:[%s18470_s1 + $0x228] sm:$0xff] }
 0x247   : > { %9130 = vmatpush.bf16.msra.mxu0 %v14482_v40 }
 0x248   : > { %v15504_v38 = vpop.f32.mrf.mxu1  ;;  %v2167_v7 = vrot.slane %v2165_v1, 7  ;;  %v11477_v1 = vld [vmem:[#allocation3 + $0x7c] sm:$0xf0] }
 0x249   : > { %8761 = vmatmul.bf16.gmra.mxu3 %v12864_v44  ;;  %v1734_v44 = vld [vmem:[#allocation2 + $0x120] sm:$0x8] }
 0x24a   : > { %v8798_v34 = vpop.f32.mrf.mxu0  ;;  %v2160_v60 = vshrl.u32 %v1734_v44, 16 }
 0x24b   : > { %v15510_v62 = vadd.f32 %v8798_v34, %v15442_v13  ;;  %v12667_v13 = vld [vmem:[#allocation3 + $0x970] sm:$0xf]  ;;  %v2174_v34 = vshrl.u32 %v1736_v14, 16  ;;  %9131 = vmatpush.bf16.msra.mxu0 %v14481_v39  ;;  %v14041_v39 = vld [vmem:[#allocation3 + $0xe4] sm:$0xf] }
 0x24c   : > { %v8722_v61 = vpop.f32.mrf.mxu3  ;;  %v12668_v9 = vor.u32 %v14327_v5, %v12667_v13  ;;  %v11427_v19 = vrot.slane %v2160_v60, 11  ;;  %v2172_v13 = vrot.slane %v2167_v7, 4  ;;  %v12175_v60 = vld [vmem:[#allocation3 + $0x590] sm:$0xf] }
 0x24d   : > { %v15522_v41 = vadd.f32 %v8722_v61, %v15469_v17  ;;  %v12961_v17 = vld [vmem:[#allocation3 + $0xc24] sm:$0xf0]  ;;  %v2176_v57 = vrot.slane %v2174_v34, 7 }
 0x24e   : > { %v12964_v52 = vor.u32 %v14389_v29, %v12961_v17  ;;  %v11569_v29 = vld [vmem:[#allocation3 + $0x13c] sm:$0xf0] }
 0x24f   : > { %v2179_v56 = vor.u32 %v2177_v2, %v2176_v57 }
 0x250   : > { %v15526_v25 = vpop.f32.mrf.mxu1 }
 0x252   : > { %v8801_v53 = vpop.f32.mrf.mxu0 }
 0x253   : > { %v15533_v18 = vadd.f32 %v8801_v53, %v15458_v48  ;;  %8869 = vmatmul.bf16.vlgmr.msra.gmra.mxu1 %v11472_v12  ;;  %v2168_v48 = vshll.u32 %v1735_v26, 16  ;;  %v14040_v53 = vld [vmem:[#allocation3 + $0xdc] sm:$0xf]  ;;  %v8640_v26 = vpop.f32.mrf.mxu2 }
 0x254   : > { %v8724_v32 = vpop.f32.mrf.mxu3  ;;  %8988 = vmatmul.bf16.gmra.mxu2 %v12076_v43  ;;  %v11572_v43 = vor.u32 %v14040_v53, %v11569_v29  ;;  %v11669_v53 = vld [vmem:[#allocation3 + $0x204] sm:$0xf0] }
 0x255   : > { %8840 = vmatmul.bf16.gmra.mxu0 %v12668_v9  ;;  %v15535_v37 = vadd.f32 %v8724_v32, %v8636_v20  ;;  %v2170_v61 = vor.u32 %v2168_v48, %v2167_v7  ;;  %v2180_v20 = vsel %vm15009_vm3, %v2172_v13, %v2179_v56  ;;  %v8552_v32 = vadd.f32 %v15504_v38, %v15312_v10  ;;  %v14203_v10 = vld [vmem:[#allocation3 + $0x5f0] sm:$0xf0]  ;;  %v14480_v7 = vld [vmem:[%s18470_s1 + $0x218] sm:$0xff] }
 0x256   : > { %2214 = vst [vmem:[#allocation3 + $0xc2c] sm:$0xf] %v2180_v20  ;;  %v12176_v2 = vor.u32 %v14203_v10, %v12175_v60  ;;  %9132 = vmatpush.bf16.msra.mxu0 %v14480_v7  ;;  %v14228_v60 = vld [vmem:[#allocation3 + $0x6b8] sm:$0xf0] }
 0x257   : > { %v2171_v9 = vsel %vm15009_vm3, %v11427_v19, %v2170_v61  ;;  %2268 = vst [vmem:[#allocation3 + $0xb6c] sm:$0xf] %v2180_v20  ;;  %v8641_v48 = vadd.f32 %v8640_v26, %v8552_v32  ;;  %v8555_v61 = vadd.f32 %v15526_v25, %v15334_v42  ;;  %v14498_v42 = vld [vmem:[%s18470_s1 + $0x2a8] sm:$0xff]  ;;  %v14065_v25 = vld [vmem:[#allocation3 + $0x1a4] sm:$0xf] }
 0x258   : > { %v15540_v63 = vpop.f32.mrf.mxu1  ;;  %2213 = vst [vmem:[#allocation3 + $0xbc8] sm:$0xf] %v2171_v9  ;;  %9308 = vmatpush.bf16.msra.mxu2 %v14498_v42  ;;  %v12867_v20 = vld [vmem:[#allocation3 + $0xb00] sm:$0xf] }
 0x259   : > { %8766 = vmatmul.bf16.gmra.mxu3 %v12964_v52  ;;  %2267 = vst [vmem:[#allocation3 + $0xb08] sm:$0xf] %v2171_v9  ;;  %v8644_v40 = vadd.f32 %v15059_v51, %v8555_v61  ;;  %v14478_v9 = vld [vmem:[%s18470_s1 + $0x208] sm:$0xff]  ;;  %v8557_v51 = vadd.f32 %v15540_v63, %v15352_v6  ;;  %v14477_v32 = vld [vmem:[%s18470_s1 + $0x200] sm:$0xff] }
 0x25a   : > { %v8803_v5 = vpop.f32.mrf.mxu0 }
 0x25b   : > { %v15543_v12 = vadd.f32 %v8803_v5, %v15471_v16  ;;  %v12767_v16 = vld [vmem:[#allocation3 + $0xa38] sm:$0xf] }
 0x25c   : > { %v8727_v17 = vpop.f32.mrf.mxu3  ;;  %v12768_v44 = vor.u32 %v14352_v27, %v12767_v16  ;;  %v14377_v16 = vld [vmem:[#allocation3 + $0xb60] sm:$0xf0] }
 0x25d   : > { %v15553_v33 = vadd.f32 %v8727_v17, %v15500_v22  ;;  %v14016_v22 = vld [vmem:[#allocation3 + $0x1c] sm:$0xf] }
 0x25e   : > { %v11480_v57 = vor.u32 %v14016_v22, %v11477_v1  ;;  %v8646_v1 = vadd.f32 %v15085_v21, %v8557_v51  ;;  %v11677_v51 = vld [vmem:[#allocation3 + $0x20c] sm:$0xf0] }
 0x25f   : > { %v12967_v42 = vld [vmem:[#allocation3 + $0xbc8] sm:$0xf] }
 0x260   : > { %v8559_v52 = vpop.f32.mrf.mxu1 }
 0x262   : > { %v8806_v14 = vpop.f32.mrf.mxu0 }
 0x263   : > { %v15561_v34 = vadd.f32 %v8806_v14, %v15489_v45  ;;  %8874 = vmatmul.bf16.gmra.mxu1 %v11572_v43  ;;  %v14479_v45 = vld [vmem:[%s18470_s1 + $0x210] sm:$0xff]  ;;  %v12868_v43 = vor.u32 %v14377_v16, %v12867_v20  ;;  %v12275_v14 = vld [vmem:[#allocation3 + $0x658] sm:$0xf]  ;;  %v14066_v16 = vld [vmem:[#allocation3 + $0x1ac] sm:$0xf] }
 0x264   : > { %v8729_v38 = vpop.f32.mrf.mxu3  ;;  %8993 = vmatmul.bf16.gmra.mxu2 %v12176_v2  ;;  %9133 = vmatpush.bf16.msra.mxu0 %v14479_v45  ;;  %v12276_v63 = vor.u32 %v14228_v60, %v12275_v14  ;;  %v8560_v2 = vadd.f32 %v8559_v52, %v15368_v24  ;;  %v14090_v45 = vld [vmem:[#allocation3 + $0x26c] sm:$0xf] }
 0x265   : > { %8845 = vmatmul.bf16.gmra.mxu0 %v12768_v44  ;;  %v15566_v19 = vadd.f32 %v8729_v38, %v8641_v48  ;;  %v11577_v44 = vld [vmem:[#allocation3 + $0x144] sm:$0xf0] }
 0x266   : > { %v11580_v10 = vor.u32 %v14041_v39, %v11577_v44  ;;  %v14490_v38 = vld [vmem:[%s18470_s1 + $0x268] sm:$0xff]  ;;  %v8649_v61 = vadd.f32 %v15103_v50, %v8560_v2 }
 0x267   : > { %9219 = vmatpush.bf16.msrb.mxu1 %v14490_v38 }
 0x268   : > { %v8561_v13 = vpop.f32.mrf.mxu1  ;;  %9134 = vmatpush.bf16.msra.mxu0 %v14478_v9 }
 0x269   : > { %9047 = vmatmul.bf16.vlgmr.msra.gmra.mxu3 %v11480_v57  ;;  %v8562_v24 = vadd.f32 %v8561_v13, %v15382_v35  ;;  %v11680_v13 = vor.u32 %v14066_v16, %v11677_v51  ;;  %v14489_v51 = vld [vmem:[%s18470_s1 + $0x260] sm:$0xff] }
 0x26a   : > { %v8808_v5 = vpop.f32.mrf.mxu0 }
 0x26b   : > { %v15574_v56 = vadd.f32 %v8808_v5, %v15502_v30  ;;  %v11672_v30 = vor.u32 %v14065_v25, %v11669_v53  ;;  %v11769_v5 = vld [vmem:[#allocation3 + $0x2cc] sm:$0xf0]  ;;  %v14402_v25 = vld [vmem:[#allocation3 + $0xc28] sm:$0xf0]  ;;  %9220 = vmatpush.bf16.msrb.mxu1 %v14489_v51  ;;  %v14165_v51 = vld [vmem:[#allocation3 + $0x4c4] sm:$0xf] }
 0x26c   : > { %v8732_v29 = vpop.f32.mrf.mxu3  ;;  %9135 = vmatpush.bf16.msra.mxu0 %v14477_v32  ;;  %v11772_v52 = vor.u32 %v14090_v45, %v11769_v5  ;;  %v8651_v32 = vadd.f32 %v15115_v23, %v8562_v24 }
 0x26d   : > { %v15583_v17 = vadd.f32 %v8732_v29, %v8644_v40  ;;  %v12968_v29 = vor.u32 %v14402_v25, %v12967_v42  ;;  %v12475_v25 = vld [vmem:[#allocation3 + $0x7e8] sm:$0xf] }
 0x270   : > { %v8564_v27 = vpop.f32.mrf.mxu1 }
 0x271   : > { %v8565_v44 = vadd.f32 %v8564_v27, %v15081_v15  ;;  %v11483_v15 = vld [vmem:[#allocation3 + $0x20] sm:$0xf]  ;;  %v14029_v27 = vld [vmem:[#allocation3 + $0x80] sm:$0xf0] }
 0x272   : > { %v8811_v26 = vpop.f32.mrf.mxu0 }
 0x273   : > { %v15591_v22 = vadd.f32 %v8811_v26, %v15522_v41  ;;  %8879 = vmatmul.bf16.gmra.mxu1 %v11672_v30  ;;  %v8654_v23 = vadd.f32 %v15133_v55, %v8565_v44  ;;  %v11777_v55 = vld [vmem:[#allocation3 + $0x2d4] sm:$0xf0] }
 0x274   : > { %v8734_v6 = vpop.f32.mrf.mxu3  ;;  %8998 = vmatmul.bf16.gmra.mxu2 %v12276_v63  ;;  %v14115_v63 = vld [vmem:[#allocation3 + $0x334] sm:$0xf] }
 0x275   : > { %8850 = vmatmul.bf16.gmra.mxu0 %v12868_v43  ;;  %v15594_v48 = vadd.f32 %v8734_v6, %v8646_v1  ;;  %v14253_v43 = vld [vmem:[#allocation3 + $0x780] sm:$0xf0] }
 0x276   : > { %v14497_v6 = vld [vmem:[%s18470_s1 + $0x2a0] sm:$0xff] }
 0x277   : > { %v15600_v57 = vpop.f32.mrf.mxu2  ;;  %9309 = vmatpush.bf16.msra.mxu2 %v14497_v6  ;;  %v14054_v6 = vld [vmem:[#allocation3 + $0x148] sm:$0xf0] }
 0x278   : > { %v8566_v41 = vpop.f32.mrf.mxu1 }
 0x279   : > { %9052 = vmatmul.bf16.gmra.mxu3 %v11580_v10  ;;  %v11869_v10 = vld [vmem:[#allocation3 + $0x394] sm:$0xf0] }
 0x27a   : > { %v8813_v7 = vpop.f32.mrf.mxu0 }
 0x27b   : > { %v15603_v21 = vadd.f32 %v8813_v7, %v15535_v37  ;;  %v12375_v37 = vld [vmem:[#allocation3 + $0x720] sm:$0xf]  ;;  %v8567_v7 = vadd.f32 %v8566_v41, %v15105_v54 }
 0x27c   : > { %v8737_v40 = vpop.f32.mrf.mxu3  ;;  %v12376_v39 = vor.u32 %v14253_v43, %v12375_v37 }
 0x27d   : > { %v15606_v9 = vadd.f32 %v8737_v40, %v8649_v61  ;;  %v11872_v61 = vor.u32 %v14115_v63, %v11869_v10  ;;  %v14091_v40 = vld [vmem:[#allocation3 + $0x274] sm:$0xf] }
 0x27e   : > { %v11780_v41 = vor.u32 %v14091_v40, %v11777_v55  ;;  %v18500_v55 = vld [vmem:[#allocation4_spill] sm:$0xff] }
 0x27f   : > { %v15609_v30 = vpop.f32.mrf.mxu2 }
 0x280   : > { %v8569_v53 = vpop.f32.mrf.mxu1 }
 0x281   : > { %v8570_v37 = vadd.f32 %v8569_v53, %v15124_v36 }
 0x282   : > { %v8816_v20 = vpop.f32.mrf.mxu0 }
 0x283   : > { %v15612_v50 = vadd.f32 %v8816_v20, %v15553_v33  ;;  %8884 = vmatmul.bf16.gmra.mxu1 %v11772_v52  ;;  %v8656_v52 = vadd.f32 %v15143_v31, %v8567_v7 }
 0x284   : > { %v8739_v26 = vpop.f32.mrf.mxu3  ;;  %9003 = vmatmul.bf16.gmra.mxu2 %v12376_v39  ;;  %v14140_v39 = vld [vmem:[#allocation3 + $0x3fc] sm:$0xf] }
 0x285   : > { %8855 = vmatmul.bf16.gmra.mxu0 %v12968_v29  ;;  %v15615_v35 = vadd.f32 %v8739_v26, %v8651_v32  ;;  %v14278_v29 = vld [vmem:[#allocation3 + $0x848] sm:$0xf0]  ;;  %v8659_v26 = vadd.f32 %v15153_v0, %v8570_v37  ;;  %v12069_v37 = vld [vmem:[#allocation3 + $0x524] sm:$0xf0] }
 0x286   : > { %v12476_v16 = vor.u32 %v14278_v29, %v12475_v25 }
 0x287   : > { %v15618_v60 = vpop.f32.mrf.mxu2 }
 0x288   : > { %v8571_v14 = vpop.f32.mrf.mxu1 }
 0x289   : > { %9057 = vmatmul.bf16.gmra.mxu3 %v11680_v13  ;;  %v11969_v13 = vld [vmem:[#allocation3 + $0x45c] sm:$0xf0]  ;;  %v8572_v36 = vadd.f32 %v8571_v14, %v15137_v8 }
 0x28a   : > { %v8818_v1 = vpop.f32.mrf.mxu0  ;;  %v11972_v53 = vor.u32 %v14140_v39, %v11969_v13  ;;  %v14079_v39 = vld [vmem:[#allocation3 + $0x210] sm:$0xf0]  ;;  %v18502_v13 = vld [vmem:[#allocation5_spill] sm:$0xff] }
 0x28b   : > { %v15621_v33 = vadd.f32 %v8818_v1, %v15566_v19  ;;  %v11484_v19 = vor.u32 %v14029_v27, %v11483_v15  ;;  %v14116_v15 = vld [vmem:[#allocation3 + $0x33c] sm:$0xf]  ;;  %v11877_v27 = vld [vmem:[#allocation3 + $0x39c] sm:$0xf0] }
 0x28c   : > { %v8742_v38 = vpop.f32.mrf.mxu3  ;;  %v11880_v14 = vor.u32 %v14116_v15, %v11877_v27  ;;  %v12675_v15 = vld [vmem:[#allocation3 + $0x978] sm:$0xf] }
 0x28d   : > { %v15627_v2 = vadd.f32 %v8742_v38, %v8654_v23  ;;  %v11583_v23 = vld [vmem:[#allocation3 + $0xe8] sm:$0xf] }
 0x28e   : > { %v11584_v10 = vor.u32 %v14054_v6, %v11583_v23  ;;  %v12072_v23 = vor.u32 %v14165_v51, %v12069_v37  ;;  %v18506_v37 = vld [vmem:[#allocation11_spill] sm:$0xff] }
 0x28f   : > { %v15630_v42 = vpop.f32.mrf.mxu2 }
 0x290   : > { %v8574_v45 = vpop.f32.mrf.mxu1 }
 0x291   : > { %v8575_v25 = vadd.f32 %v8574_v45, %v18500_v55  ;;  %v11683_v45 = vld [vmem:[#allocation3 + $0x1b0] sm:$0xf]  ;;  %v14488_v55 = vld [vmem:[%s18470_s1 + $0x258] sm:$0xff] }
 0x292   : > { %v8821_v5 = vpop.f32.mrf.mxu0  ;;  %9221 = vmatpush.bf16.msrb.mxu1 %v14488_v55 }
 0x293   : > { %v15633_v24 = vadd.f32 %v8821_v5, %v15583_v17  ;;  %8889 = vmatmul.bf16.gmra.mxu1 %v11872_v61  ;;  %v8661_v61 = vadd.f32 %v15163_v49, %v8572_v36 }
 0x294   : > { %v8744_v20 = vpop.f32.mrf.mxu3  ;;  %9008 = vmatmul.bf16.gmra.mxu2 %v12476_v16  ;;  %v18501_v16 = vld [vmem:[#allocation7_spill] sm:$0xff] }
 0x295   : > { %9136 = vmatmul.bf16.vlgmr.msra.gmra.mxu0 %v11484_v19  ;;  %v15636_v54 = vadd.f32 %v8744_v20, %v8656_v52  ;;  %v14303_v19 = vld [vmem:[#allocation3 + $0x910] sm:$0xf0]  ;;  %v8664_v49 = vadd.f32 %v18501_v16, %v8575_v25  ;;  %v14508_v25 = vld [vmem:[%s18470_s1 + $0x2f8] sm:$0xff] }
 0x296   : > { %9395 = vmatpush.bf16.msrb.mxu3 %v14508_v25  ;;  %v14353_v25 = vld [vmem:[#allocation3 + $0xaa0] sm:$0xf0] }
 0x297   : > { %v15642_v43 = vpop.f32.mrf.mxu2 }
 0x298   : > { %v8576_v17 = vpop.f32.mrf.mxu1 }
 0x299   : > { %9062 = vmatmul.bf16.gmra.mxu3 %v11780_v41  ;;  %v14496_v41 = vld [vmem:[%s18470_s1 + $0x298] sm:$0xff] }
 0x29a   : > { %v8823_v32 = vpop.f32.mrf.mxu0  ;;  %9310 = vmatpush.bf16.msra.mxu2 %v14496_v41 }
 0x29b   : > { %v15645_v31 = vadd.f32 %v8823_v32, %v15594_v48  ;;  %v12575_v48 = vld [vmem:[#allocation3 + $0x8b0] sm:$0xf] }
 0x29c   : > { %v8747_v44 = vpop.f32.mrf.mxu3  ;;  %v12576_v40 = vor.u32 %v14303_v19, %v12575_v48  ;;  %v18503_v48 = vld [vmem:[#allocation9_spill] sm:$0xff]  ;;  %v14328_v19 = vld [vmem:[#allocation3 + $0x9d8] sm:$0xf0] }
 0x29d   : > { %v15648_v1 = vadd.f32 %v8747_v44, %v8659_v26  ;;  %v8577_v44 = vadd.f32 %v8576_v17, %v18502_v13 }
 0x29f   : > { %v15651_v7 = vpop.f32.mrf.mxu2 }
 0x2a0   : > { %v8579_v63 = vpop.f32.mrf.mxu1 }
 0x2a2   : > { %v8826_v38 = vpop.f32.mrf.mxu0 }
 0x2a3   : > { %v15654_v0 = vadd.f32 %v8826_v38, %v15606_v9  ;;  %8894 = vmatmul.bf16.gmra.mxu1 %v11972_v53  ;;  %v14141_v53 = vld [vmem:[#allocation3 + $0x404] sm:$0xf] }
 0x2a4   : > { %v8749_v5 = vpop.f32.mrf.mxu3  ;;  %9013 = vmatmul.bf16.gmra.mxu2 %v12576_v40  ;;  %v12676_v40 = vor.u32 %v14328_v19, %v12675_v15  ;;  %v12077_v19 = vld [vmem:[#allocation3 + $0x52c] sm:$0xf0] }
 0x2a5   : > { %9141 = vmatmul.bf16.gmra.mxu0 %v11584_v10  ;;  %v15657_v8 = vadd.f32 %v8749_v5, %v8661_v61  ;;  %v11977_v10 = vld [vmem:[#allocation3 + $0x464] sm:$0xf0]  ;;  %v8666_v61 = vadd.f32 %v18503_v48, %v8577_v44 }
 0x2a7   : > { %v15660_v20 = vpop.f32.mrf.mxu2 }
 0x2a8   : > { %v8581_v52 = vpop.f32.mrf.mxu1 }
 0x2a9   : > { %9067 = vmatmul.bf16.gmra.mxu3 %v11880_v14  ;;  %v11980_v14 = vor.u32 %v14141_v53, %v11977_v10 }
 0x2aa   : > { %v8828_v29 = vpop.f32.mrf.mxu0 }
 0x2ab   : > { %v15663_v9 = vadd.f32 %v8828_v29, %v15615_v35  ;;  %v11684_v35 = vor.u32 %v14079_v39, %v11683_v45  ;;  %v14190_v45 = vld [vmem:[#allocation3 + $0x58c] sm:$0xf]  ;;  %v12169_v39 = vld [vmem:[#allocation3 + $0x5ec] sm:$0xf0] }
 0x2ac   : > { %v8752_v32 = vpop.f32.mrf.mxu3  ;;  %v12172_v53 = vor.u32 %v14190_v45, %v12169_v39 }
 0x2ad   : > { %v15669_v26 = vadd.f32 %v8752_v32, %v8664_v49 }
 0x2af   : > { %v15672_v38 = vpop.f32.mrf.mxu2 }
 0x2b0   : > { %v8584_v6 = vpop.f32.mrf.mxu1 }
 0x2b2   : > { %v8831_v36 = vpop.f32.mrf.mxu0 }
 0x2b3   : > { %v15675_v27 = vadd.f32 %v8831_v36, %v15627_v2  ;;  %8899 = vmatmul.bf16.gmra.mxu1 %v12072_v23  ;;  %v18504_v2 = vld [vmem:[#allocation6_spill] sm:$0xff]  ;;  %v11783_v23 = vld [vmem:[#allocation3 + $0x278] sm:$0xf] }
 0x2b4   : > { %v8754_v5 = vpop.f32.mrf.mxu3  ;;  %v8580_v29 = vadd.f32 %v8579_v63, %v18504_v2  ;;  %9018 = vmatmul.bf16.gmra.mxu2 %v12676_v40  ;;  %v14104_v63 = vld [vmem:[#allocation3 + $0x2d8] sm:$0xf0] }
 0x2b5   : > { %9146 = vmatmul.bf16.gmra.mxu0 %v11684_v35  ;;  %v15678_v17 = vadd.f32 %v8754_v5, %v8666_v61  ;;  %v18507_v35 = vld [vmem:[#allocation8_spill] sm:$0xff]  ;;  %v11784_v15 = vor.u32 %v14104_v63, %v11783_v23  ;;  %v14166_v61 = vld [vmem:[#allocation3 + $0x4cc] sm:$0xf]  ;;  %v18512_v23 = vld [vmem:[#allocation15_spill] sm:$0xff] }
 0x2b6   : > { %v8669_v32 = vadd.f32 %v18506_v37, %v8580_v29  ;;  %v8582_v36 = vadd.f32 %v8581_v52, %v18507_v35  ;;  %v18510_v37 = vld [vmem:[#allocation10_spill] sm:$0xff] }
 0x2b7   : > { %v15687_v41 = vpop.f32.mrf.mxu2  ;;  %v14495_v35 = vld [vmem:[%s18470_s1 + $0x290] sm:$0xff] }
 0x2b8   : > { %v8586_v16 = vpop.f32.mrf.mxu1  ;;  %9311 = vmatpush.bf16.msra.mxu2 %v14495_v35 }
 0x2b9   : > { %9072 = vmatmul.bf16.gmra.mxu3 %v11980_v14  ;;  %v18509_v14 = vld [vmem:[#allocation13_spill] sm:$0xff] }
 0x2ba   : > { %v8833_v49 = vpop.f32.mrf.mxu0  ;;  %v8671_v55 = vadd.f32 %v18509_v14, %v8582_v36  ;;  %v14215_v36 = vld [vmem:[#allocation3 + $0x654] sm:$0xf] }
 0x2bb   : > { %v15690_v51 = vadd.f32 %v8833_v49, %v15636_v54  ;;  %v12775_v54 = vld [vmem:[#allocation3 + $0xa40] sm:$0xf]  ;;  %v12080_v49 = vor.u32 %v14166_v61, %v12077_v19  ;;  %v14129_v61 = vld [vmem:[#allocation3 + $0x3a0] sm:$0xf0] }
 0x2bc   : > { %v8757_v13 = vpop.f32.mrf.mxu3  ;;  %v12776_v29 = vor.u32 %v14353_v25, %v12775_v54  ;;  %v18513_v19 = vld [vmem:[#allocation12_spill] sm:$0xff] }
 0x2bd   : > { %18505 = vst [vmem:[#allocation4_spill] sm:$0xff] %v15690_v51  ;;  %v15693_v44 = vadd.f32 %v8757_v13, %v8669_v32  ;;  %v8585_v32 = vadd.f32 %v8584_v6, %v18510_v37  ;;  %v8587_v54 = vadd.f32 %v8586_v16, %v18513_v19  ;;  %v12177_v37 = vld [vmem:[#allocation3 + $0x5f4] sm:$0xf0] }
 0x2bf   : > { %v15696_v5 = vpop.f32.mrf.mxu2  ;;  %v8674_v63 = vadd.f32 %v18512_v23, %v8585_v32 }
 0x2c0   : > { %v8589_v10 = vpop.f32.mrf.mxu1 }
 0x2c2   : > { %v8836_v48 = vpop.f32.mrf.mxu0 }
 0x2c3   : > { %v15699_v40 = vadd.f32 %v8836_v48, %v15648_v1  ;;  %8904 = vmatmul.bf16.gmra.mxu1 %v12172_v53  ;;  %v12269_v53 = vld [vmem:[#allocation3 + $0x6b4] sm:$0xf0]  ;;  %v11883_v48 = vld [vmem:[#allocation3 + $0x340] sm:$0xf] }
 0x2c4   : > { %v8759_v2 = vpop.f32.mrf.mxu3  ;;  %9023 = vmatmul.bf16.gmra.mxu2 %v12776_v29  ;;  %v12272_v14 = vor.u32 %v14215_v36, %v12269_v53  ;;  %v1738_v53 = vld [vmem:[#allocation2 + $0x134] sm:$0xf] }
 0x2c5   : > { %18508 = vst [vmem:[#allocation7_spill] sm:$0xff] %v15699_v40  ;;  %9151 = vmatmul.bf16.gmra.mxu0 %v11784_v15  ;;  %v15702_v52 = vadd.f32 %v8759_v2, %v8671_v55  ;;  %v11884_v2 = vor.u32 %v14129_v61, %v11883_v48  ;;  %v14487_v61 = vld [vmem:[%s18470_s1 + $0x250] sm:$0xff] }
 0x2c6   : > { %9222 = vmatpush.bf16.msrb.mxu1 %v14487_v61 }
 0x2c7   : > { %v15707_v13 = vpop.f32.mrf.mxu2 }
 0x2c8   : > { %v15705_v45 = vpop.f32.mrf.mxu1 }
 0x2c9   : > { %9077 = vmatmul.bf16.gmra.mxu3 %v12080_v49  ;;  %v14191_v49 = vld [vmem:[#allocation3 + $0x594] sm:$0xf] }
 0x2ca   : > { %v8838_v39 = vpop.f32.mrf.mxu0  ;;  %v12180_v48 = vor.u32 %v14191_v49, %v12177_v37 }
 0x2cb   : > { %v15710_v1 = vadd.f32 %v8838_v39, %v15657_v8  ;;  %v18514_v8 = vld [vmem:[#allocation20_spill] sm:$0xff]  ;;  %v12875_v39 = vld [vmem:[#allocation3 + $0xb08] sm:$0xf] }
 0x2cc   : > { %v8762_v15 = vpop.f32.mrf.mxu3 }
 0x2cd   : > { %18511 = vst [vmem:[#allocation5_spill] sm:$0xff] %v15710_v1  ;;  %v15716_v6 = vadd.f32 %v8762_v15, %v8674_v63  ;;  %v18516_v63 = vld [vmem:[#allocation17_spill] sm:$0xff] }
 0x2ce   : > { %v8676_v35 = vadd.f32 %v18516_v63, %v8587_v54  ;;  %v14378_v15 = vld [vmem:[#allocation3 + $0xb68] sm:$0xf0]  ;;  %v18517_v63 = vld [vmem:[#allocation14_spill] sm:$0xff] }
 0x2cf   : > { %v15722_v32 = vpop.f32.mrf.mxu2  ;;  %v12876_v36 = vor.u32 %v14378_v15, %v12875_v39  ;;  %v8590_v39 = vadd.f32 %v8589_v10, %v18517_v63  ;;  %v14154_v63 = vld [vmem:[#allocation3 + $0x468] sm:$0xf0] }
 0x2d0   : > { %v8870_v55 = vpop.f32.mrf.mxu1 }
 0x2d1   : > { %v15720_v25 = vadd.f32 %v8870_v55, %v18514_v8  ;;  %v1737_v55 = vld [vmem:[#allocation2 + $0x130] sm:$0x8]  ;;  %v1739_v8 = vld [vmem:[#allocation2 + $0x138] sm:$0xf] }
 0x2d2   : > { %v8841_v29 = vpop.f32.mrf.mxu0  ;;  %v2216_v54 = vshrl.u32 %v1737_v55, 16  ;;  %v2233_v49 = vshll.u32 %v1739_v8, 16 }
 0x2d3   : > { %v15725_v23 = vadd.f32 %v8841_v29, %v15669_v26  ;;  %8909 = vmatmul.bf16.gmra.mxu1 %v12272_v14  ;;  %v14507_v26 = vld [vmem:[%s18470_s1 + $0x2f0] sm:$0xff]  ;;  %v2221_v14 = vshrl.u32 %v1738_v53, 16  ;;  %v2224_v29 = vshll.u32 %v1738_v53, 16 }
 0x2d4   : > { %v8764_v16 = vpop.f32.mrf.mxu3  ;;  %9028 = vmatmul.bf16.gmra.mxu2 %v12876_v36  ;;  %9396 = vmatpush.bf16.msrb.mxu3 %v14507_v26  ;;  %v11428_v15 = vrot.slane %v2216_v54, 11  ;;  %v18518_v36 = vld [vmem:[#allocation18_spill] sm:$0xff] }
 0x2d5   : > { %18515 = vst [vmem:[#allocation9_spill] sm:$0xff] %v15725_v23  ;;  %9156 = vmatmul.bf16.gmra.mxu0 %v11884_v2  ;;  %v15728_v19 = vadd.f32 %v8764_v16, %v8676_v35  ;;  %v2223_v2 = vrot.slane %v2221_v14, 7  ;;  %v2230_v35 = vshrl.u32 %v1739_v8, 16  ;;  %v8679_v53 = vadd.f32 %v18518_v36, %v8590_v39  ;;  %v14240_v14 = vld [vmem:[#allocation3 + $0x71c] sm:$0xf] }
 0x2d6   : > { %v12369_v8 = vld [vmem:[#allocation3 + $0x77c] sm:$0xf0] }
 0x2d7   : > { %v2226_v23 = vor.u32 %v2224_v29, %v2223_v2  ;;  %v2228_v1 = vrot.slane %v2223_v2, 4  ;;  %v2232_v40 = vrot.slane %v2230_v35, 7  ;;  %v15740_v55 = vpop.f32.mrf.mxu2  ;;  %v11983_v29 = vld [vmem:[#allocation3 + $0x408] sm:$0xf]  ;;  %v12372_v39 = vor.u32 %v14240_v14, %v12369_v8 }
 0x2d8   : > { %v8872_v37 = vpop.f32.mrf.mxu1 }
 0x2d9   : > { %v15738_v16 = vadd.f32 %v8872_v37, %v15418_v46  ;;  %9082 = vmatmul.bf16.gmra.mxu3 %v12180_v48  ;;  %v2227_v61 = vsel %vm15009_vm3, %v11428_v15, %v2226_v23  ;;  %v2235_v26 = vor.u32 %v2233_v49, %v2232_v40  ;;  %v11984_v40 = vor.u32 %v14154_v63, %v11983_v29  ;;  %v14216_v49 = vld [vmem:[#allocation3 + $0x65c] sm:$0xf]  ;;  %v12277_v37 = vld [vmem:[#allocation3 + $0x6bc] sm:$0xf0]  ;;  %v2273_v29 = vld [vmem:[#allocation2 + $0x14] sm:$0xf] }
 0x2da   : > { %v8843_v51 = vpop.f32.mrf.mxu0  ;;  %2269 = vst [vmem:[#allocation3 + $0xbd0] sm:$0xf] %v2227_v61  ;;  %v2274_v63 = vld [vmem:[#allocation2 + $0x18] sm:$0xf] }
 0x2db   : > { %v15743_v10 = vadd.f32 %v8843_v51, %v15678_v17  ;;  %v2236_v54 = vsel %vm15009_vm3, %v2228_v1, %v2235_v26  ;;  %v18519_v17 = vld [vmem:[#allocation16_spill] sm:$0xff]  ;;  %v18520_v1 = vld [vmem:[#allocation19_spill] sm:$0xff]  ;;  %v12280_v26 = vor.u32 %v14216_v49, %v12277_v37  ;;  %2411 = vst [vmem:[#allocation3 + $0x28] sm:$0xf] %v2273_v29  ;;  %v12083_v49 = vld [vmem:[#allocation3 + $0x4d0] sm:$0xf] }
 0x2dc   : > { %v8767_v46 = vpop.f32.mrf.mxu3  ;;  %2270 = vst [vmem:[#allocation3 + $0xc34] sm:$0xf] %v2236_v54  ;;  %v8592_v51 = vadd.f32 %v15705_v45, %v18519_v17  ;;  %v14179_v37 = vld [vmem:[#allocation3 + $0x530] sm:$0xf0] }
 0x2dd   : > { %v15748_v48 = vadd.f32 %v8767_v46, %v8679_v53  ;;  %2412 = vst [vmem:[#allocation3 + $0x8c] sm:$0xf] %v2274_v63 }
 0x2de   : > { %v8681_v36 = vadd.f32 %v18520_v1, %v8592_v51  ;;  %v8960_v51 = vadd.f32 %v15600_v57, %v15720_v25  ;;  %2477 = vst [vmem:[#allocation3 + $0x110] sm:$0xf] %v2273_v29  ;;  %v14493_v57 = vld [vmem:[%s18470_s1 + $0x280] sm:$0xff] }
 0x2df   : > { %v15757_v15 = vpop.f32.mrf.mxu2  ;;  %2478 = vst [vmem:[#allocation3 + $0x174] sm:$0xf] %v2274_v63 }
 0x2e0   : > { %v8875_v2 = vpop.f32.mrf.mxu1 }
 0x2e1   : > { %v15755_v23 = vadd.f32 %v8875_v2, %v15436_v11  ;;  %v12975_v53 = vld [vmem:[#allocation3 + $0xbd0] sm:$0xf]  ;;  %v14265_v2 = vld [vmem:[#allocation3 + $0x7e4] sm:$0xf] }
 0x2e2   : > { %v8846_v35 = vpop.f32.mrf.mxu0  ;;  %v11491_v29 = vld [vmem:[#allocation3 + $0x28] sm:$0xf] }
 0x2e3   : > { %v15760_v47 = vadd.f32 %v8846_v35, %v15693_v44  ;;  %8914 = vmatmul.bf16.gmra.mxu1 %v12372_v39  ;;  %v14403_v11 = vld [vmem:[#allocation3 + $0xc30] sm:$0xf0]  ;;  %v14494_v39 = vld [vmem:[%s18470_s1 + $0x288] sm:$0xff] }
 0x2e4   : > { %v8769_v61 = vpop.f32.mrf.mxu3  ;;  %v12976_v14 = vor.u32 %v14403_v11, %v12975_v53  ;;  %9312 = vmatpush.bf16.msra.mxu2 %v14494_v39  ;;  %v14030_v63 = vld [vmem:[#allocation3 + $0x88] sm:$0xf0] }
 0x2e5   : > { %9161 = vmatmul.bf16.gmra.mxu0 %v11984_v40  ;;  %v15763_v45 = vadd.f32 %v8769_v61, %v8681_v36  ;;  %v12084_v36 = vor.u32 %v14179_v37, %v12083_v49  ;;  %v14241_v61 = vld [vmem:[#allocation3 + $0x724] sm:$0xf]  ;;  %v14486_v39 = vld [vmem:[%s18470_s1 + $0x248] sm:$0xff]  ;;  %v8965_v37 = vadd.f32 %v15618_v60, %v15755_v23 }
 0x2e6   : > { %9033 = vmatmul.bf16.gmra.mxu2 %v12976_v14  ;;  %9223 = vmatpush.bf16.msrb.mxu1 %v14486_v39 }
 0x2e7   : > { %v15768_v44 = vpop.f32.mrf.mxu2 }
 0x2e8   : > { %v8877_v8 = vpop.f32.mrf.mxu1  ;;  %9313 = vmatpush.bf16.msra.mxu2 %v14493_v57 }
 0x2e9   : > { %v15766_v46 = vadd.f32 %v8877_v8, %v15447_v4  ;;  %9087 = vmatmul.bf16.gmra.mxu3 %v12280_v26  ;;  %v12469_v4 = vld [vmem:[#allocation3 + $0x844] sm:$0xf0]  ;;  %v8962_v8 = vadd.f32 %v15609_v30, %v15738_v16 }
 0x2ea   : > { %v8848_v54 = vpop.f32.mrf.mxu0  ;;  %v12377_v26 = vld [vmem:[#allocation3 + $0x784] sm:$0xf0] }
 0x2eb   : > { %v15771_v17 = vadd.f32 %v8848_v54, %v15702_v52  ;;  %v12472_v52 = vor.u32 %v14265_v2, %v12469_v4  ;;  %v11492_v2 = vor.u32 %v14030_v63, %v11491_v29  ;;  %v14266_v63 = vld [vmem:[#allocation3 + $0x7ec] sm:$0xf]  ;;  %v8967_v23 = vadd.f32 %v15630_v42, %v15766_v46  ;;  %v14315_v46 = vld [vmem:[#allocation3 + $0x974] sm:$0xf] }
 0x2ec   : > { %v9048_v40 = vpop.f32.mrf.mxu3 }
 0x2ed   : > { %v15778_v35 = vadd.f32 %v9048_v40, %v8960_v51 }
 0x2ef   : > { %v15784_v11 = vpop.f32.mrf.mxu2 }
 0x2f0   : > { %v8880_v1 = vpop.f32.mrf.mxu1 }
 0x2f1   : > { %v8881_v25 = vadd.f32 %v8880_v1, %v15467_v28  ;;  %v12380_v28 = vor.u32 %v14241_v61, %v12377_v26  ;;  %v12569_v1 = vld [vmem:[#allocation3 + $0x90c] sm:$0xf0]  ;;  %v14204_v61 = vld [vmem:[#allocation3 + $0x5f8] sm:$0xf0] }
 0x2f2   : > { %v8851_v53 = vpop.f32.mrf.mxu0 }
 0x2f3   : > { %v15787_v14 = vadd.f32 %v8851_v53, %v15716_v6  ;;  %8919 = vmatmul.bf16.gmra.mxu1 %v12472_v52  ;;  %v14506_v6 = vld [vmem:[%s18470_s1 + $0x2e8] sm:$0xff]  ;;  %v12183_v53 = vld [vmem:[#allocation3 + $0x598] sm:$0xf]  ;;  %v8970_v42 = vadd.f32 %v15642_v43, %v8881_v25 }
 0x2f4   : > { %v9050_v54 = vpop.f32.mrf.mxu3  ;;  %9397 = vmatpush.bf16.msrb.mxu3 %v14506_v6  ;;  %v14290_v52 = vld [vmem:[#allocation3 + $0x8ac] sm:$0xf]  ;;  %v14055_v6 = vld [vmem:[#allocation3 + $0x150] sm:$0xf0]  ;;  %v2588_v43 = vld [vmem:[#allocation2 + $0x128] sm:$0xf] }
 0x2f5   : > { %9166 = vmatmul.bf16.gmra.mxu0 %v12084_v36  ;;  %v15791_v51 = vadd.f32 %v9050_v54, %v8962_v8  ;;  %v12572_v26 = vor.u32 %v14290_v52, %v12569_v1  ;;  %v12184_v54 = vor.u32 %v14204_v61, %v12183_v53  ;;  %v12669_v53 = vld [vmem:[#allocation3 + $0x9d4] sm:$0xf0] }
 0x2f6   : > { %9314 = vmatmul.bf16.vlgmr.msra.gmra.mxu2 %v11492_v2  ;;  %v11591_v2 = vld [vmem:[#allocation3 + $0xf0] sm:$0xf] }
 0x2f7   : > { %v15800_v40 = vpop.f32.mrf.mxu2 }
 0x2f8   : > { %v8882_v4 = vpop.f32.mrf.mxu1 }
 0x2f9   : > { %v8883_v30 = vadd.f32 %v8882_v4, %v15484_v58  ;;  %9092 = vmatmul.bf16.gmra.mxu3 %v12380_v28 }
 0x2fa   : > { %v8853_v16 = vpop.f32.mrf.mxu0 }
 0x2fb   : > { %v15803_v49 = vadd.f32 %v8853_v16, %v15728_v19  ;;  %v12477_v19 = vld [vmem:[#allocation3 + $0x84c] sm:$0xf0]  ;;  %v11592_v16 = vor.u32 %v14055_v6, %v11591_v2  ;;  %v2587_v2 = vld [vmem:[#allocation2 + $0x124] sm:$0xf] }
 0x2fc   : > { %v9053_v57 = vpop.f32.mrf.mxu3 }
 0x2fd   : > { %v15807_v36 = vadd.f32 %v9053_v57, %v8965_v37 }
 0x2ff   : > { %v15812_v28 = vpop.f32.mrf.mxu2 }
 0x300   : > { %v8885_v8 = vpop.f32.mrf.mxu1 }
 0x301   : > { %v15810_v58 = vadd.f32 %v8885_v8, %v15498_v3  ;;  %v12480_v3 = vor.u32 %v14266_v63, %v12477_v19  ;;  %v12283_v8 = vld [vmem:[#allocation3 + $0x660] sm:$0xf] }
 0x302   : > { %v8856_v29 = vpop.f32.mrf.mxu0 }
 0x303   : > { %v15815_v60 = vadd.f32 %v8856_v29, %v15748_v48  ;;  %8924 = vmatmul.bf16.gmra.mxu1 %v12572_v26  ;;  %v12672_v29 = vor.u32 %v14315_v46, %v12669_v53  ;;  %v3048_v46 = vshll.u32 %v2587_v2, 16 }
 0x304   : > { %v9055_v39 = vpop.f32.mrf.mxu3 }
 0x305   : > { %9171 = vmatmul.bf16.gmra.mxu0 %v12184_v54  ;;  %v15819_v4 = vadd.f32 %v9055_v39, %v8967_v23  ;;  %v14229_v54 = vld [vmem:[#allocation3 + $0x6c0] sm:$0xf0]  ;;  %v14291_v23 = vld [vmem:[#allocation3 + $0x8b4] sm:$0xf]  ;;  %v12577_v39 = vld [vmem:[#allocation3 + $0x914] sm:$0xf0] }
 0x306   : > { %9319 = vmatmul.bf16.gmra.mxu2 %v11592_v16  ;;  %v12284_v19 = vor.u32 %v14229_v54, %v12283_v8  ;;  %v2589_v54 = vld [vmem:[#allocation2 + $0x12c] sm:$0x1] }
 0x307   : > { %v15824_v1 = vpop.f32.mrf.mxu2 }
 0x308   : > { %v8887_v37 = vpop.f32.mrf.mxu1 }
 0x309   : > { %v15822_v52 = vadd.f32 %v8887_v37, %v15510_v62  ;;  %9097 = vmatmul.bf16.gmra.mxu3 %v12480_v3  ;;  %v8972_v3 = vadd.f32 %v15651_v7, %v8883_v30  ;;  %v12580_v37 = vor.u32 %v14291_v23, %v12577_v39  ;;  %v3054_v7 = vshll.u32 %v2588_v43, 16 }
 0x30a   : > { %v8858_v48 = vpop.f32.mrf.mxu0  ;;  %v3058_v30 = vshrl.u32 %v2588_v43, 16  ;;  %v3064_v23 = vshll.u32 %v2589_v54, 16 }
 0x30b   : > { %v15827_v57 = vadd.f32 %v8858_v48, %v15763_v45  ;;  %v11691_v48 = vld [vmem:[#allocation3 + $0x1b8] sm:$0xf] }
 0x30c   : > { %v9058_v61 = vpop.f32.mrf.mxu3  ;;  %v3060_v39 = vrot.slane %v3058_v30, 4  ;;  %v12383_v30 = vld [vmem:[#allocation3 + $0x728] sm:$0xf] }
 0x30d   : > { %v15830_v26 = vadd.f32 %v9058_v61, %v8970_v42  ;;  %v14080_v42 = vld [vmem:[#allocation3 + $0x218] sm:$0xf0]  ;;  %v14485_v61 = vld [vmem:[%s18470_s1 + $0x240] sm:$0xff] }
 0x30e   : > { %v11692_v8 = vor.u32 %v14080_v42, %v11691_v48  ;;  %9224 = vmatpush.bf16.msrb.mxu1 %v14485_v61  ;;  %v3066_v48 = vrot.slane %v3064_v23, 5 }
 0x30f   : > { %v15835_v6 = vpop.f32.mrf.mxu2 }
 0x310   : > { %v8890_v63 = vpop.f32.mrf.mxu1 }
 0x311   : > { %v15833_v62 = vadd.f32 %v8890_v63, %v15533_v18  ;;  %v3045_v18 = vshrl.u32 %v2587_v2, 16  ;;  %v3050_v63 = vrot.slane %v3048_v46, 5  ;;  %v8975_v46 = vadd.f32 %v15660_v20, %v15810_v58 }
 0x312   : > { %v9137_v45 = vpop.f32.mrf.mxu0 }
 0x313   : > { %v15838_v25 = vadd.f32 %v9137_v45, %v15778_v35  ;;  %8929 = vmatmul.bf16.gmra.mxu1 %v12672_v29  ;;  %v14505_v35 = vld [vmem:[%s18470_s1 + $0x2e0] sm:$0xff]  ;;  %v3047_v29 = vrot.slane %v3045_v18, 4 }
 0x314   : > { %v9060_v16 = vpop.f32.mrf.mxu3  ;;  %9398 = vmatpush.bf16.msrb.mxu3 %v14505_v35  ;;  %v14340_v35 = vld [vmem:[#allocation3 + $0xa3c] sm:$0xf] }
 0x315   : > { %18521 = vst [vmem:[#allocation6_spill] sm:$0xff] %v15838_v25  ;;  %9176 = vmatmul.bf16.gmra.mxu0 %v12284_v19  ;;  %v15841_v53 = vadd.f32 %v9060_v16, %v8972_v3  ;;  %v3056_v19 = vrot.slane %v3054_v7, 5  ;;  %v3051_v45 = vor.u32 %v3050_v63, %v3047_v29  ;;  %v14254_v29 = vld [vmem:[#allocation3 + $0x788] sm:$0xf0] }
 0x316   : > { %9324 = vmatmul.bf16.gmra.mxu2 %v11692_v8  ;;  %v12769_v8 = vld [vmem:[#allocation3 + $0xa9c] sm:$0xf0]  ;;  %v12384_v58 = vor.u32 %v14254_v29, %v12383_v30 }
 0x317   : > { %v3061_v16 = vor.u32 %v3060_v39, %v3056_v19  ;;  %v15852_v25 = vpop.f32.mrf.mxu2  ;;  %v3052_v43 = vrot.slane %v3051_v45, 4  ;;  %v14316_v39 = vld [vmem:[#allocation3 + $0x97c] sm:$0xf] }
 0x318   : > { %v8892_v2 = vpop.f32.mrf.mxu1 }
 0x319   : > { %v15850_v3 = vadd.f32 %v8892_v2, %v15543_v12  ;;  %9102 = vmatmul.bf16.gmra.mxu3 %v12580_v37  ;;  %v3062_v61 = vrot.slane %v3061_v16, 4  ;;  %v3057_v12 = vsel %vm15069_vm6, %v3052_v43, %v3056_v19  ;;  %v12677_v19 = vld [vmem:[#allocation3 + $0x9dc] sm:$0xf0]  ;;  %v8977_v16 = vadd.f32 %v15672_v38, %v15822_v52 }
 0x31a   : > { %v9139_v42 = vpop.f32.mrf.mxu0  ;;  %3100 = vst [vmem:[#allocation3 + $0xbcc] sm:$0xf] %v3057_v12 }
 0x31b   : > { %v15855_v18 = vadd.f32 %v9139_v42, %v15791_v51  ;;  %v3067_v7 = vsel %vm15069_vm6, %v3062_v61, %v3066_v48  ;;  %v12772_v51 = vor.u32 %v14340_v35, %v12769_v8  ;;  %3156 = vst [vmem:[#allocation3 + $0xb10] sm:$0xf] %v3057_v12  ;;  %v11791_v48 = vld [vmem:[#allocation3 + $0x280] sm:$0xf]  ;;  %v14105_v42 = vld [vmem:[#allocation3 + $0x2e0] sm:$0xf0]  ;;  %v12680_v61 = vor.u32 %v14316_v39, %v12677_v19 }
 0x31c   : > { %v9063_v54 = vpop.f32.mrf.mxu3  ;;  %3101 = vst [vmem:[#allocation3 + $0xc30] sm:$0xf] %v3067_v7  ;;  %v1288_v35 = vld [vmem:[#allocation2 + $0x14] sm:$0xf]  ;;  %v1289_v12 = vld [vmem:[#allocation2 + $0x18] sm:$0x7]  ;;  %v8980_v39 = vadd.f32 %v15687_v41, %v15833_v62 }
 0x31d   : > { %v15861_v37 = vadd.f32 %v9063_v54, %v8975_v46  ;;  %3157 = vst [vmem:[#allocation3 + $0xb74] sm:$0xf] %v3067_v7  ;;  %v11792_v46 = vor.u32 %v14105_v42, %v11791_v48  ;;  %v1400_v8 = vrot.slane %v1288_v35, 7  ;;  %v1287_v54 = vld [vmem:[#allocation2 + $0x10] sm:$0x8]  ;;  %v1403_v29 = vrot.slane %v1289_v12, 7 }
 0x31e   : > { %v14516_v19 = vld [vmem:[%s18470_s1 + $0x338] sm:$0xff]  ;;  %v14365_v48 = vld [vmem:[#allocation3 + $0xb04] sm:$0xf]  ;;  %v12869_v42 = vld [vmem:[#allocation3 + $0xb64] sm:$0xf0] }
 0x31f   : > { %v15868_v2 = vpop.f32.mrf.mxu2  ;;  %v1402_v30 = vrot.slane %v1400_v8, 4  ;;  %9484 = vmatpush.bf16.msrb.mxu0 %v14516_v19  ;;  %v12483_v41 = vld [vmem:[#allocation3 + $0x7f0] sm:$0xf]  ;;  %v14279_v62 = vld [vmem:[#allocation3 + $0x850] sm:$0xf0] }
 0x320   : > { %v8895_v63 = vpop.f32.mrf.mxu1  ;;  %v14341_v12 = vld [vmem:[#allocation3 + $0xa44] sm:$0xf] }
 0x321   : > { %v15866_v20 = vadd.f32 %v8895_v63, %v15561_v34 }
 0x322   : > { %v9142_v23 = vpop.f32.mrf.mxu0 }
 0x323   : > { %v15871_v45 = vadd.f32 %v9142_v23, %v15807_v36  ;;  %8934 = vmatmul.bf16.gmra.mxu1 %v12772_v51  ;;  %v11391_v36 = vrot.slane %v1287_v54, 11 }
 0x324   : > { %v9065_v43 = vpop.f32.mrf.mxu3 }
 0x325   : > { %9181 = vmatmul.bf16.gmra.mxu0 %v12384_v58  ;;  %v15875_v34 = vadd.f32 %v9065_v43, %v8977_v16  ;;  %v1401_v58 = vsel %vm15880_vm9, %v11391_v36, %v1400_v8  ;;  %v1404_v16 = vsel %vm15880_vm9, %v1402_v30, %v1403_v29  ;;  %v12484_v8 = vor.u32 %v14279_v62, %v12483_v41  ;;  %v1292_v41 = vld [vmem:[#allocation2 + $0x28] sm:$0x7] }
 0x326   : > { %9329 = vmatmul.bf16.gmra.mxu2 %v11792_v46  ;;  %1542 = vst [vmem:[#allocation3 + $0x24] sm:$0xf] %v1401_v58  ;;  %v12872_v46 = vor.u32 %v14365_v48, %v12869_v42  ;;  %v8982_v29 = vadd.f32 %v15696_v5, %v15850_v3  ;;  %v11891_v58 = vld [vmem:[#allocation3 + $0x348] sm:$0xf]  ;;  %v1291_v48 = vld [vmem:[#allocation2 + $0x24] sm:$0xf] }
 0x327   : > { %v15884_v63 = vpop.f32.mrf.mxu2  ;;  %1543 = vst [vmem:[#allocation3 + $0x88] sm:$0xf] %v1404_v16  ;;  %v14524_v16 = vld [vmem:[%s18470_s1 + $0x378] sm:$0xff]  ;;  %v1290_v5 = vld [vmem:[#allocation2 + $0x20] sm:$0x8]  ;;  %v1407_v42 = vrot.slane %v1291_v48, 7 }
 0x328   : > { %v8897_v7 = vpop.f32.mrf.mxu1  ;;  %9573 = vmatpush.bf16.msra.mxu1 %v14524_v16  ;;  %v14304_v16 = vld [vmem:[#allocation3 + $0x918] sm:$0xf0] }
 0x329   : > { %v15878_v38 = vadd.f32 %v8897_v7, %v15574_v56  ;;  %9107 = vmatmul.bf16.gmra.mxu3 %v12680_v61  ;;  %v14532_v56 = vld [vmem:[%s18470_s1 + $0x3b8] sm:$0xff]  ;;  %v12777_v7 = vld [vmem:[#allocation3 + $0xaa4] sm:$0xf0] }
 0x32a   : > { %v9144_v51 = vpop.f32.mrf.mxu0  ;;  %9662 = vmatpush.bf16.msrb.mxu2 %v14532_v56 }
 0x32b   : > { %v15889_v23 = vadd.f32 %v9144_v51, %v15819_v4 }
 0x32c   : > { %v9068_v43 = vpop.f32.mrf.mxu3 }
 0x32d   : > { %v15901_v4 = vadd.f32 %v9068_v43, %v8980_v39  ;;  %v14130_v39 = vld [vmem:[#allocation3 + $0x3a8] sm:$0xf0] }
 0x32e   : > { %v11892_v19 = vor.u32 %v14130_v39, %v11891_v58  ;;  %v1410_v39 = vrot.slane %v1292_v41, 7  ;;  %v14366_v41 = vld [vmem:[#allocation3 + $0xb0c] sm:$0xf] }
 0x32f   : > { %v15906_v36 = vpop.f32.mrf.mxu2 }
 0x330   : > { %v8900_v61 = vpop.f32.mrf.mxu1 }
 0x331   : > { %v15904_v35 = vadd.f32 %v8900_v61, %v15591_v22  ;;  %v12780_v22 = vor.u32 %v14341_v12, %v12777_v7  ;;  %v2309_v61 = vld [vmem:[#allocation2 + $0x134] sm:$0xf]  ;;  %v14390_v7 = vld [vmem:[#allocation3 + $0xbcc] sm:$0xf] }
 0x332   : > { %v9147_v54 = vpop.f32.mrf.mxu0  ;;  %2409 = vst [vmem:[#allocation3 + $0xbd4] sm:$0xf] %v2309_v61 }
 0x333   : > { %v15909_v30 = vadd.f32 %v9147_v54, %v15830_v26  ;;  %8939 = vmatmul.bf16.gmra.mxu1 %v12872_v46  ;;  %v14504_v26 = vld [vmem:[%s18470_s1 + $0x2d8] sm:$0xff]  ;;  %v11392_v54 = vrot.slane %v1290_v5, 11  ;;  %2471 = vst [vmem:[#allocation3 + $0xb2c] sm:$0xf] %v2309_v61 }
 0x334   : > { %v9070_v51 = vpop.f32.mrf.mxu3  ;;  %9399 = vmatpush.bf16.msrb.mxu3 %v14504_v26  ;;  %2533 = vst [vmem:[#allocation3 + $0xa84] sm:$0xf] %v2309_v61  ;;  %v11991_v61 = vld [vmem:[#allocation3 + $0x410] sm:$0xf] }
 0x335   : > { %9186 = vmatmul.bf16.gmra.mxu0 %v12484_v8  ;;  %v15913_v56 = vadd.f32 %v9070_v51, %v8982_v29  ;;  %v2310_v8 = vld [vmem:[#allocation2 + $0x138] sm:$0xf]  ;;  %v8985_v29 = vadd.f32 %v15707_v13, %v15866_v20  ;;  %v12969_v51 = vld [vmem:[#allocation3 + $0xc2c] sm:$0xf0] }
 0x336   : > { %9334 = vmatmul.bf16.gmra.mxu2 %v11892_v19  ;;  %2410 = vst [vmem:[#allocation3 + $0xc38] sm:$0xf] %v2310_v8  ;;  %v12583_v19 = vld [vmem:[#allocation3 + $0x8b8] sm:$0xf]  ;;  %v12972_v26 = vor.u32 %v14390_v7, %v12969_v51 }
 0x337   : > { %v15924_v46 = vpop.f32.mrf.mxu2  ;;  %2472 = vst [vmem:[#allocation3 + $0xb90] sm:$0xf] %v2310_v8  ;;  %v12584_v5 = vor.u32 %v14304_v16, %v12583_v19 }
 0x338   : > { %v8902_v3 = vpop.f32.mrf.mxu1  ;;  %2534 = vst [vmem:[#allocation3 + $0xae8] sm:$0xf] %v2310_v8 }
 0x339   : > { %v15922_v43 = vadd.f32 %v8902_v3, %v15603_v21  ;;  %9112 = vmatmul.bf16.gmra.mxu3 %v12780_v22  ;;  %v1409_v21 = vrot.slane %v1407_v42, 4 }
 0x33a   : > { %v9149_v62 = vpop.f32.mrf.mxu0 }
 0x33b   : > { %v15927_v12 = vadd.f32 %v9149_v62, %v15841_v53  ;;  %v1408_v53 = vsel %vm15880_vm9, %v11392_v54, %v1407_v42  ;;  %v1411_v13 = vsel %vm15880_vm9, %v1409_v21, %v1410_v39  ;;  %v12877_v62 = vld [vmem:[#allocation3 + $0xb6c] sm:$0xf0]  ;;  %v8987_v42 = vadd.f32 %v15722_v32, %v15878_v38  ;;  %v14155_v54 = vld [vmem:[#allocation3 + $0x470] sm:$0xf0]  ;;  %v3161_v39 = vld [vmem:[#allocation2 + $0x18] sm:$0xf] }
 0x33c   : > { %v9073_v58 = vpop.f32.mrf.mxu3  ;;  %1544 = vst [vmem:[#allocation3 + $0xec] sm:$0xf] %v1408_v53  ;;  %v12880_v7 = vor.u32 %v14366_v41, %v12877_v62  ;;  %v11992_v51 = vor.u32 %v14155_v54, %v11991_v61  ;;  %v1294_v21 = vld [vmem:[#allocation2 + $0x34] sm:$0xf]  ;;  %v3273_v16 = vrot.slane %v3161_v39, 5  ;;  %v8990_v39 = vadd.f32 %v15740_v55, %v15904_v35 }
 0x33d   : > { %v15931_v22 = vadd.f32 %v9073_v58, %v8985_v29  ;;  %1545 = vst [vmem:[#allocation3 + $0x150] sm:$0xf] %v1411_v13  ;;  %v1414_v19 = vrot.slane %v1294_v21, 7  ;;  %v1293_v53 = vld [vmem:[#allocation2 + $0x30] sm:$0x8] }
 0x33e   : > { %v14503_v32 = vld [vmem:[%s18470_s1 + $0x2d0] sm:$0xff]  ;;  %v11393_v38 = vrot.slane %v1293_v53, 11  ;;  %v3162_v41 = vld [vmem:[#allocation2 + $0x1c] sm:$0x1]  ;;  %v14502_v53 = vld [vmem:[%s18470_s1 + $0x2c8] sm:$0xff] }
 0x33f   : > { %v15940_v29 = vpop.f32.mrf.mxu2  ;;  %v1416_v13 = vrot.slane %v1414_v19, 4  ;;  %9400 = vmatpush.bf16.msrb.mxu3 %v14503_v32 }
 0x340   : > { %v8905_v48 = vpop.f32.mrf.mxu1 }
 0x341   : > { %v15938_v20 = vadd.f32 %v8905_v48, %v15612_v50  ;;  %v3160_v48 = vld [vmem:[#allocation2 + $0x14] sm:$0xe] }
 0x342   : > { %v9152_v3 = vpop.f32.mrf.mxu0  ;;  %v11429_v62 = vrot.slane %v3160_v48, 9  ;;  %v14017_v48 = vld [vmem:[#allocation3 + $0x24] sm:$0xf] }
 0x343   : > { %v15943_v58 = vadd.f32 %v9152_v3, %v15861_v37  ;;  %8944 = vmatmul.bf16.gmra.mxu1 %v12972_v26  ;;  %v1295_v37 = vld [vmem:[#allocation2 + $0x38] sm:$0x7]  ;;  %9401 = vmatpush.bf16.msrb.mxu3 %v14502_v53 }
 0x344   : > { %v9075_v8 = vpop.f32.mrf.mxu3  ;;  %v3274_v55 = vsel %vm15961_vm12, %v11429_v62, %v3273_v16 }
 0x345   : > { %18524 = vst [vmem:[#allocation11_spill] sm:$0xff] %v15943_v58  ;;  %9191 = vmatmul.bf16.gmra.mxu0 %v12584_v5  ;;  %v15947_v50 = vadd.f32 %v9075_v8, %v8987_v42  ;;  %v1417_v5 = vrot.slane %v1295_v37, 7  ;;  %v1415_v8 = vsel %vm15880_vm9, %v11393_v38, %v1414_v19  ;;  %v14531_v19 = vld [vmem:[%s18470_s1 + $0x3b0] sm:$0xff]  ;;  %v12683_v38 = vld [vmem:[#allocation3 + $0x980] sm:$0xf] }
 0x346   : > { %9339 = vmatmul.bf16.gmra.mxu2 %v11992_v51  ;;  %v14515_v37 = vld [vmem:[%s18470_s1 + $0x330] sm:$0xff]  ;;  %1546 = vst [vmem:[#allocation3 + $0x1b4] sm:$0xf] %v1415_v8 }
 0x347   : > { %v15955_v61 = vpop.f32.mrf.mxu2  ;;  %v1418_v54 = vsel %vm15880_vm9, %v1416_v13, %v1417_v5  ;;  %9663 = vmatpush.bf16.msrb.mxu2 %v14531_v19  ;;  %9485 = vmatpush.bf16.msrb.mxu0 %v14515_v37  ;;  %1598 = vst [vmem:[#allocation3 + $0x30] sm:$0xf] %v1415_v8  ;;  %v14329_v13 = vld [vmem:[#allocation3 + $0x9e0] sm:$0xf0]  ;;  %v2590_v8 = vld [vmem:[#allocation2 + $0x134] sm:$0xf]  ;;  %v8992_v37 = vadd.f32 %v15757_v15, %v15922_v43 }
 0x348   : > { %v8907_v26 = vpop.f32.mrf.mxu1  ;;  %1547 = vst [vmem:[#allocation3 + $0x218] sm:$0xf] %v1418_v54  ;;  %v12684_v62 = vor.u32 %v14329_v13, %v12683_v38  ;;  %v14391_v19 = vld [vmem:[#allocation3 + $0xbd4] sm:$0xf] }
 0x349   : > { %v15953_v3 = vadd.f32 %v8907_v26, %v15621_v33  ;;  %9117 = vmatmul.bf16.gmra.mxu3 %v12880_v7  ;;  %v3275_v33 = vrot.slane %v3273_v16, 4  ;;  %v3276_v7 = vrot.slane %v3162_v41, 5  ;;  %v11485_v26 = vld [vmem:[#allocation3 + $0x84] sm:$0xf0]  ;;  %1599 = vst [vmem:[#allocation3 + $0x94] sm:$0xf] %v1418_v54 }
 0x34a   : > { %v9154_v42 = vpop.f32.mrf.mxu0  ;;  %v11488_v5 = vor.u32 %v14017_v48, %v11485_v26  ;;  %3415 = vst [vmem:[#allocation3 + $0x2c] sm:$0xf] %v3274_v55  ;;  %v2591_v54 = vld [vmem:[#allocation2 + $0x138] sm:$0xf]  ;;  %v14180_v26 = vld [vmem:[#allocation3 + $0x538] sm:$0xf0] }
 0x34b   : > { %v15966_v21 = vadd.f32 %v9154_v42, %v15875_v34  ;;  %v3277_v32 = vsel %vm15961_vm12, %v3275_v33, %v3276_v7  ;;  %v14501_v42 = vld [vmem:[%s18470_s1 + $0x2c0] sm:$0xff]  ;;  %v12977_v33 = vld [vmem:[#allocation3 + $0xc34] sm:$0xf0]  ;;  %v3103_v55 = vshrl.u32 %v2590_v8, 16 }
 0x34c   : > { %v9078_v34 = vpop.f32.mrf.mxu3  ;;  %3416 = vst [vmem:[#allocation3 + $0x90] sm:$0xf] %v3277_v32  ;;  %9402 = vmatpush.bf16.msrb.mxu3 %v14501_v42  ;;  %v12091_v48 = vld [vmem:[#allocation3 + $0x4d8] sm:$0xf]  ;;  %v3106_v32 = vshll.u32 %v2590_v8, 16  ;;  %v12980_v13 = vor.u32 %v14391_v19, %v12977_v33  ;;  %v3112_v42 = vshll.u32 %v2591_v54, 16 }
 0x34d   : > { %18527 = vst [vmem:[#allocation8_spill] sm:$0xff] %v15966_v21  ;;  %v15981_v35 = vadd.f32 %v9078_v34, %v8990_v39  ;;  %v12092_v34 = vor.u32 %v14180_v26, %v12091_v48  ;;  %v1296_v48 = vld [vmem:[#allocation2 + $0x40] sm:$0x8]  ;;  %v1297_v8 = vld [vmem:[#allocation2 + $0x44] sm:$0xf] }
 0x34e   : > { %v3114_v43 = vrot.slane %v3112_v42, 5  ;;  %v11394_v19 = vrot.slane %v1296_v48, 11 }
 0x34f   : > { %v15991_v7 = vpop.f32.mrf.mxu2 }
 0x350   : > { %v8910_v41 = vpop.f32.mrf.mxu1 }
 0x351   : > { %v15989_v16 = vadd.f32 %v8910_v41, %v15633_v24  ;;  %v14523_v41 = vld [vmem:[%s18470_s1 + $0x370] sm:$0xff] }
 0x352   : > { %v9157_v39 = vpop.f32.mrf.mxu0  ;;  %9574 = vmatpush.bf16.msra.mxu1 %v14523_v41  ;;  %v8995_v41 = vadd.f32 %v15768_v44, %v15938_v20  ;;  %v11585_v44 = vld [vmem:[#allocation3 + $0x14c] sm:$0xf0] }
 0x353   : > { %v15994_v53 = vadd.f32 %v9157_v39, %v15901_v4  ;;  %9225 = vmatmul.bf16.vlgmr.msrb.gmra.mxu1 %v11488_v5  ;;  %v2592_v4 = vld [vmem:[#allocation2 + $0x13c] sm:$0x1]  ;;  %v3116_v5 = vshrl.u32 %v2591_v54, 16  ;;  %v3105_v39 = vrot.slane %v3103_v55, 4  ;;  %v1421_v54 = vrot.slane %v1297_v8, 7 }
 0x354   : > { %v9080_v24 = vpop.f32.mrf.mxu3  ;;  %v3122_v15 = vshll.u32 %v2592_v4, 16  ;;  %v3163_v55 = vld [vmem:[#allocation2 + $0x24] sm:$0xe] }
 0x355   : > { %18528 = vst [vmem:[#allocation13_spill] sm:$0xff] %v15994_v53  ;;  %9196 = vmatmul.bf16.gmra.mxu0 %v12684_v62  ;;  %v15998_v38 = vadd.f32 %v9080_v24, %v8992_v37  ;;  %v3108_v53 = vrot.slane %v3106_v32, 5  ;;  %v3118_v21 = vrot.slane %v3116_v5, 4  ;;  %v1298_v37 = vld [vmem:[#allocation2 + $0x48] sm:$0x7]  ;;  %v1423_v8 = vrot.slane %v1421_v54, 4 }
 0x356   : > { %9344 = vmatmul.bf16.gmra.mxu2 %v12092_v34  ;;  %v3124_v58 = vrot.slane %v3122_v15, 5  ;;  %v3164_v32 = vld [vmem:[#allocation2 + $0x28] sm:$0xf]  ;;  %v3165_v5 = vld [vmem:[#allocation2 + $0x2c] sm:$0x1]  ;;  %v1422_v15 = vsel %vm15880_vm9, %v11394_v19, %v1421_v54 }
 0x357   : > { %v3109_v62 = vor.u32 %v3108_v53, %v3105_v39  ;;  %v3119_v24 = vor.u32 %v3118_v21, %v3114_v43  ;;  %v16008_v42 = vpop.f32.mrf.mxu2  ;;  %v1424_v53 = vrot.slane %v1298_v37, 7  ;;  %v3280_v39 = vrot.slane %v3164_v32, 5  ;;  %v14514_v21 = vld [vmem:[%s18470_s1 + $0x328] sm:$0xff]  ;;  %1548 = vst [vmem:[#allocation3 + $0x27c] sm:$0xf] %v1422_v15 }
 0x358   : > { %v8912_v26 = vpop.f32.mrf.mxu1  ;;  %9486 = vmatpush.bf16.msrb.mxu0 %v14514_v21  ;;  %1600 = vst [vmem:[#allocation3 + $0xf8] sm:$0xf] %v1422_v15  ;;  %v8997_v15 = vadd.f32 %v15784_v11, %v15953_v3  ;;  %v14511_v11 = vld [vmem:[%s18470_s1 + $0x310] sm:$0xff] }
 0x359   : > { %v16004_v33 = vadd.f32 %v8912_v26, %v15645_v31  ;;  %9122 = vmatmul.bf16.gmra.mxu3 %v12980_v13  ;;  %v3110_v34 = vrot.slane %v3109_v62, 4  ;;  %v14042_v31 = vld [vmem:[#allocation3 + $0xec] sm:$0xf]  ;;  %v3120_v13 = vrot.slane %v3119_v24, 4  ;;  %v11430_v26 = vrot.slane %v3163_v55, 9 }
 0x35a   : > { %v9159_v4 = vpop.f32.mrf.mxu0  ;;  %v3282_v37 = vrot.slane %v3280_v39, 4  ;;  %v3283_v24 = vrot.slane %v3165_v5, 5  ;;  %v1425_v19 = vsel %vm15880_vm9, %v1423_v8, %v1424_v53  ;;  %v11588_v55 = vor.u32 %v14042_v31, %v11585_v44  ;;  %v14018_v5 = vld [vmem:[#allocation3 + $0x2c] sm:$0xf]  ;;  %v11493_v53 = vld [vmem:[#allocation3 + $0x8c] sm:$0xf0] }
 0x35b   : > { %v16011_v48 = vadd.f32 %v9159_v4, %v15913_v56  ;;  %v3115_v62 = vsel %vm15069_vm6, %v3110_v34, %v3114_v43  ;;  %v3125_v32 = vsel %vm15069_vm6, %v3120_v13, %v3124_v58  ;;  %v12783_v4 = vld [vmem:[#allocation3 + $0xa48] sm:$0xf]  ;;  %1549 = vst [vmem:[#allocation3 + $0x2e0] sm:$0xf] %v1425_v19  ;;  %v3281_v43 = vsel %vm15961_vm12, %v11430_v26, %v3280_v39  ;;  %v12191_v39 = vld [vmem:[#allocation3 + $0x5a0] sm:$0xf] }
 0x35c   : > { %v9083_v20 = vpop.f32.mrf.mxu3  ;;  %3158 = vst [vmem:[#allocation3 + $0xbd8] sm:$0xf] %v3115_v62  ;;  %v3284_v59 = vsel %vm15961_vm12, %v3282_v37, %v3283_v24  ;;  %v14205_v13 = vld [vmem:[#allocation3 + $0x600] sm:$0xf0]  ;;  %v14512_v44 = vld [vmem:[%s18470_s1 + $0x318] sm:$0xff]  ;;  %v11496_v62 = vor.u32 %v14018_v5, %v11493_v53 }
 0x35d   : > { %18529 = vst [vmem:[#allocation10_spill] sm:$0xff] %v16011_v48  ;;  %v16020_v56 = vadd.f32 %v9083_v20, %v8995_v41  ;;  %v14354_v48 = vld [vmem:[#allocation3 + $0xaa8] sm:$0xf0]  ;;  %v14513_v41 = vld [vmem:[%s18470_s1 + $0x320] sm:$0xff]  ;;  %v1300_v8 = vld [vmem:[#allocation2 + $0x54] sm:$0xf] }
 0x35e   : > { %3159 = vst [vmem:[#allocation3 + $0xc3c] sm:$0xf] %v3125_v32  ;;  %v12784_v34 = vor.u32 %v14354_v48, %v12783_v4  ;;  %9487 = vmatpush.bf16.msrb.mxu0 %v14513_v41  ;;  %v12192_v48 = vor.u32 %v14205_v13, %v12191_v39  ;;  %v3167_v37 = vld [vmem:[#allocation2 + $0x38] sm:$0xf]  ;;  %v1299_v32 = vld [vmem:[#allocation2 + $0x50] sm:$0x8] }
 0x35f   : > { %1601 = vst [vmem:[#allocation3 + $0x15c] sm:$0xf] %v1425_v19  ;;  %v16036_v21 = vpop.f32.mrf.mxu2  ;;  %v1301_v24 = vld [vmem:[#allocation2 + $0x58] sm:$0x7]  ;;  %v3166_v4 = vld [vmem:[#allocation2 + $0x34] sm:$0xe] }
 0x360   : > { %v8915_v54 = vpop.f32.mrf.mxu1  ;;  %3417 = vst [vmem:[#allocation3 + $0xf4] sm:$0xf] %v3281_v43  ;;  %v11395_v3 = vrot.slane %v1299_v32, 11  ;;  %v1431_v43 = vrot.slane %v1301_v24, 7  ;;  %v14067_v13 = vld [vmem:[#allocation3 + $0x1b4] sm:$0xf] }
 0x361   : > { %v16034_v58 = vadd.f32 %v8915_v54, %v15654_v0  ;;  %3418 = vst [vmem:[#allocation3 + $0x158] sm:$0xf] %v3284_v59  ;;  %v3287_v54 = vrot.slane %v3167_v37, 5  ;;  %v3168_v59 = vld [vmem:[#allocation2 + $0x3c] sm:$0x1] }
 0x362   : > { %v9162_v31 = vpop.f32.mrf.mxu0  ;;  %9488 = vmatpush.bf16.msrb.mxu0 %v14512_v44  ;;  %v11685_v44 = vld [vmem:[#allocation3 + $0x214] sm:$0xf0] }
 0x363   : > { %v16039_v26 = vadd.f32 %v9162_v31, %v15931_v22  ;;  %9230 = vmatmul.bf16.gmra.mxu1 %v11588_v55  ;;  %v1428_v22 = vrot.slane %v1300_v8, 7  ;;  %v11431_v31 = vrot.slane %v3166_v4, 9  ;;  %v3290_v8 = vrot.slane %v3168_v59, 5  ;;  %v14509_v4 = vld [vmem:[%s18470_s1 + $0x300] sm:$0xff] }
 0x364   : > { %v9085_v0 = vpop.f32.mrf.mxu3  ;;  %v11688_v32 = vor.u32 %v14067_v13, %v11685_v44 }
 0x365   : > { %9201 = vmatmul.bf16.gmra.mxu0 %v12784_v34  ;;  %v16046_v20 = vadd.f32 %v9085_v0, %v8997_v15  ;;  %v1430_v55 = vrot.slane %v1428_v22, 4  ;;  %v1429_v5 = vsel %vm15880_vm9, %v11395_v3, %v1428_v22  ;;  %v9000_v15 = vadd.f32 %v15800_v40, %v15989_v16  ;;  %v14510_v0 = vld [vmem:[%s18470_s1 + $0x308] sm:$0xff]  ;;  %v12883_v40 = vld [vmem:[#allocation3 + $0xb10] sm:$0xf]  ;;  %v14379_v16 = vld [vmem:[#allocation3 + $0xb70] sm:$0xf0] }
 0x366   : > { %9349 = vmatmul.bf16.gmra.mxu2 %v12192_v48  ;;  %9489 = vmatpush.bf16.msrb.mxu0 %v14511_v11  ;;  %v14530_v48 = vld [vmem:[%s18470_s1 + $0x3a8] sm:$0xff]  ;;  %1550 = vst [vmem:[#allocation3 + $0x344] sm:$0xf] %v1429_v5  ;;  %v3288_v22 = vsel %vm15961_vm12, %v11431_v31, %v3287_v54  ;;  %v12884_v3 = vor.u32 %v14379_v16, %v12883_v40 }
 0x367   : > { %v1432_v53 = vsel %vm15880_vm9, %v1430_v55, %v1431_v43  ;;  %9664 = vmatpush.bf16.msrb.mxu2 %v14530_v48  ;;  %1654 = vst [vmem:[#allocation3 + $0x38] sm:$0xf] %v1429_v5  ;;  %v14043_v55 = vld [vmem:[#allocation3 + $0xf4] sm:$0xf]  ;;  %v1303_v48 = vld [vmem:[#allocation2 + $0x64] sm:$0xf] }
 0x368   : > { %v8917_v19 = vpop.f32.mrf.mxu1  ;;  %1551 = vst [vmem:[#allocation3 + $0x3a8] sm:$0xf] %v1432_v53  ;;  %v11593_v59 = vld [vmem:[#allocation3 + $0x154] sm:$0xf0]  ;;  %v1435_v44 = vrot.slane %v1303_v48, 7 }
 0x369   : > { %v16052_v41 = vadd.f32 %v8917_v19, %v15663_v9  ;;  %9403 = vmatmul.bf16.vlgmr.msrb.gmra.mxu3 %v11496_v62  ;;  %v16063_v9 = vpop.f32.mrf.mxu2  ;;  %1655 = vst [vmem:[#allocation3 + $0x9c] sm:$0xf] %v1432_v53 }
 0x36a   : > { %v9164_v34 = vpop.f32.mrf.mxu0  ;;  %9490 = vmatpush.bf16.msrb.mxu0 %v14510_v0  ;;  %1602 = vst [vmem:[#allocation3 + $0x1c0] sm:$0xf] %v1429_v5  ;;  %v11596_v0 = vor.u32 %v14043_v55, %v11593_v59  ;;  %v1437_v16 = vrot.slane %v1435_v44, 4 }
 0x36b   : > { %v16059_v39 = vadd.f32 %v9164_v34, %v15947_v50  ;;  %v3289_v50 = vrot.slane %v3287_v54, 4  ;;  %1603 = vst [vmem:[#allocation3 + $0x224] sm:$0xf] %v1432_v53  ;;  %v12291_v54 = vld [vmem:[#allocation3 + $0x668] sm:$0xf]  ;;  %v9002_v53 = vadd.f32 %v15812_v28, %v16004_v33 }
 0x36c   : > { %v9088_v62 = vpop.f32.mrf.mxu3  ;;  %3419 = vst [vmem:[#allocation3 + $0x1bc] sm:$0xf] %v3288_v22  ;;  %v14230_v34 = vld [vmem:[#allocation3 + $0x6c8] sm:$0xf0]  ;;  %v1302_v28 = vld [vmem:[#allocation2 + $0x60] sm:$0x8] }
 0x36d   : > { %v16071_v37 = vadd.f32 %v9088_v62, %v9000_v15  ;;  %v3291_v19 = vsel %vm15961_vm12, %v3289_v50, %v3290_v8  ;;  %v12292_v13 = vor.u32 %v14230_v34, %v12291_v54  ;;  %3471 = vst [vmem:[#allocation3 + $0x34] sm:$0xf] %v3288_v22  ;;  %v3170_v62 = vld [vmem:[#allocation2 + $0x48] sm:$0xf]  ;;  %v3169_v50 = vld [vmem:[#allocation2 + $0x44] sm:$0xe] }
 0x36e   : > { %9491 = vmatpush.bf16.msrb.mxu0 %v14509_v4  ;;  %3420 = vst [vmem:[#allocation3 + $0x220] sm:$0xf] %v3291_v19  ;;  %v1304_v33 = vld [vmem:[#allocation2 + $0x68] sm:$0x7]  ;;  %v11396_v40 = vrot.slane %v1302_v28, 11  ;;  %v11432_v59 = vrot.slane %v3169_v50, 9 }
 0x36f   : > { %3472 = vst [vmem:[#allocation3 + $0x98] sm:$0xf] %v3291_v19  ;;  %v1438_v22 = vrot.slane %v1304_v33, 7  ;;  %v3171_v4 = vld [vmem:[#allocation2 + $0x4c] sm:$0x1]  ;;  %v3294_v19 = vrot.slane %v3170_v62, 5 }
 0x370   : > { %v8920_v24 = vpop.f32.mrf.mxu1  ;;  %v1436_v55 = vsel %vm15880_vm9, %v11396_v40, %v1435_v44  ;;  %v14092_v34 = vld [vmem:[#allocation3 + $0x27c] sm:$0xf]  ;;  %v3297_v48 = vrot.slane %v3171_v4, 5  ;;  %v12983_v62 = vld [vmem:[#allocation3 + $0xbd8] sm:$0xf] }
 0x371   : > { %v16081_v11 = vadd.f32 %v8920_v24, %v15675_v27  ;;  %v16088_v31 = vpop.f32.mrf.mxu2  ;;  %1552 = vst [vmem:[#allocation3 + $0x40c] sm:$0xf] %v1436_v55  ;;  %v14404_v28 = vld [vmem:[#allocation3 + $0xc38] sm:$0xf0]  ;;  %v12391_v4 = vld [vmem:[#allocation3 + $0x730] sm:$0xf] }
 0x372   : > { %v9167_v43 = vpop.f32.mrf.mxu0  ;;  %1604 = vst [vmem:[#allocation3 + $0x288] sm:$0xf] %v1436_v55  ;;  %v18531_v50 = vld [vmem:[#allocation7_spill] sm:$0xff]  ;;  %v12984_v40 = vor.u32 %v14404_v28, %v12983_v62  ;;  %v3172_v28 = vld [vmem:[#allocation2 + $0x54] sm:$0xe] }
 0x373   : > { %v16084_v5 = vadd.f32 %v9167_v43, %v15981_v35  ;;  %9235 = vmatmul.bf16.gmra.mxu1 %v11688_v32  ;;  %v14522_v35 = vld [vmem:[%s18470_s1 + $0x368] sm:$0xff]  ;;  %v18530_v32 = vld [vmem:[#allocation4_spill] sm:$0xff]  ;;  %v1439_v43 = vsel %vm15880_vm9, %v1437_v16, %v1438_v22  ;;  %1656 = vst [vmem:[#allocation3 + $0x100] sm:$0xf] %v1436_v55  ;;  %v14068_v16 = vld [vmem:[#allocation3 + $0x1bc] sm:$0xf] }
 0x374   : > { %v9090_v27 = vpop.f32.mrf.mxu3  ;;  %9575 = vmatpush.bf16.msra.mxu1 %v14522_v35  ;;  %1553 = vst [vmem:[#allocation3 + $0x470] sm:$0xf] %v1439_v43  ;;  %v3296_v35 = vrot.slane %v3294_v19, 4  ;;  %v1307_v62 = vld [vmem:[#allocation2 + $0x78] sm:$0x7] }
 0x375   : > { %9206 = vmatmul.bf16.gmra.mxu0 %v12884_v3  ;;  %v16090_v15 = vadd.f32 %v9090_v27, %v9002_v53  ;;  %v9005_v53 = vadd.f32 %v15824_v1, %v16034_v58  ;;  %1605 = vst [vmem:[#allocation3 + $0x2ec] sm:$0xf] %v1439_v43 }
 0x376   : > { %9354 = vmatmul.bf16.gmra.mxu2 %v12292_v13  ;;  %v11785_v13 = vld [vmem:[#allocation3 + $0x2dc] sm:$0xf0]  ;;  %1657 = vst [vmem:[#allocation3 + $0x164] sm:$0xf] %v1439_v43  ;;  %v3298_v58 = vsel %vm15961_vm12, %v3296_v35, %v3297_v48  ;;  %v3173_v35 = vld [vmem:[#allocation2 + $0x58] sm:$0xf] }
 0x377   : > { %v11788_v33 = vor.u32 %v14092_v34, %v11785_v13  ;;  %3422 = vst [vmem:[#allocation3 + $0x2e8] sm:$0xf] %v3298_v58 }
 0x378   : > { %v8922_v8 = vpop.f32.mrf.mxu1  ;;  %3474 = vst [vmem:[#allocation3 + $0x160] sm:$0xf] %v3298_v58 }
 0x379   : > { %v16096_v24 = vadd.f32 %v8922_v8, %v18530_v32  ;;  %9408 = vmatmul.bf16.gmra.mxu3 %v11596_v0  ;;  %v16107_v27 = vpop.f32.mrf.mxu2  ;;  %v11693_v32 = vld [vmem:[#allocation3 + $0x21c] sm:$0xf0] }
 0x37a   : > { %v9169_v3 = vpop.f32.mrf.mxu0  ;;  %v11696_v13 = vor.u32 %v14068_v16, %v11693_v32  ;;  %v11433_v32 = vrot.slane %v3172_v28, 9  ;;  %v14031_v28 = vld [vmem:[#allocation3 + $0x90] sm:$0xf0] }
 0x37b   : > { %v16103_v54 = vadd.f32 %v9169_v3, %v15998_v38  ;;  %v3295_v38 = vsel %vm15961_vm12, %v11432_v59, %v3294_v19  ;;  %v14255_v3 = vld [vmem:[#allocation3 + $0x790] sm:$0xf0]  ;;  %v9007_v19 = vadd.f32 %v15835_v6, %v16052_v41 }
 0x37c   : > { %v9093_v0 = vpop.f32.mrf.mxu3  ;;  %3421 = vst [vmem:[#allocation3 + $0x284] sm:$0xf] %v3295_v38  ;;  %v12392_v59 = vor.u32 %v14255_v3, %v12391_v4 }
 0x37d   : > { %v16109_v44 = vadd.f32 %v9093_v0, %v9005_v53  ;;  %3473 = vst [vmem:[#allocation3 + $0xfc] sm:$0xf] %v3295_v38  ;;  %v1306_v0 = vld [vmem:[#allocation2 + $0x74] sm:$0xf]  ;;  %v3174_v38 = vld [vmem:[#allocation2 + $0x5c] sm:$0x1] }
 0x37e   : > { %v1442_v48 = vrot.slane %v1306_v0, 7  ;;  %v11885_v0 = vld [vmem:[#allocation3 + $0x3a4] sm:$0xf0] }
 0x380   : > { %v8925_v1 = vpop.f32.mrf.mxu1  ;;  %v1444_v41 = vrot.slane %v1442_v48, 4 }
 0x381   : > { %v16116_v8 = vadd.f32 %v8925_v1, %v18531_v50  ;;  %v16123_v55 = vpop.f32.mrf.mxu2  ;;  %v1445_v1 = vrot.slane %v1307_v62, 7  ;;  %v3301_v50 = vrot.slane %v3173_v35, 5 }
 0x382   : > { %v9172_v22 = vpop.f32.mrf.mxu0 }
 0x383   : > { %v16119_v53 = vadd.f32 %v9172_v22, %v16020_v56  ;;  %9240 = vmatmul.bf16.gmra.mxu1 %v11788_v33  ;;  %v1305_v56 = vld [vmem:[#allocation2 + $0x70] sm:$0x8]  ;;  %v18532_v22 = vld [vmem:[#allocation5_spill] sm:$0xff]  ;;  %v1446_v16 = vsel %vm15880_vm9, %v1444_v41, %v1445_v1 }
 0x384   : > { %v9095_v43 = vpop.f32.mrf.mxu3  ;;  %v11397_v6 = vrot.slane %v1305_v56, 11  ;;  %1555 = vst [vmem:[#allocation3 + $0x538] sm:$0xf] %v1446_v16  ;;  %v3304_v56 = vrot.slane %v3174_v38, 5  ;;  %v18534_v41 = vld [vmem:[#allocation9_spill] sm:$0xff] }
 0x385   : > { %9211 = vmatmul.bf16.gmra.mxu0 %v12984_v40  ;;  %v16125_v34 = vadd.f32 %v9095_v43, %v9007_v19  ;;  %v14117_v19 = vld [vmem:[#allocation3 + $0x344] sm:$0xf]  ;;  %v9010_v43 = vadd.f32 %v15852_v25, %v16081_v11  ;;  %1607 = vst [vmem:[#allocation3 + $0x3b4] sm:$0xf] %v1446_v16  ;;  %v3302_v25 = vsel %vm15961_vm12, %v11433_v32, %v3301_v50 }
 0x386   : > { %9359 = vmatmul.bf16.gmra.mxu2 %v12392_v59  ;;  %v1443_v58 = vsel %vm15880_vm9, %v11397_v6, %v1442_v48  ;;  %v3303_v48 = vrot.slane %v3301_v50, 4  ;;  %v11888_v11 = vor.u32 %v14117_v19, %v11885_v0  ;;  %1659 = vst [vmem:[#allocation3 + $0x22c] sm:$0xf] %v1446_v16  ;;  %v14093_v38 = vld [vmem:[#allocation3 + $0x284] sm:$0xf]  ;;  %v9012_v50 = vadd.f32 %v15868_v2, %v16096_v24 }
 0x387   : > { %1554 = vst [vmem:[#allocation3 + $0x4d4] sm:$0xf] %v1443_v58  ;;  %v1308_v2 = vld [vmem:[#allocation2 + $0x80] sm:$0x8]  ;;  %v1310_v24 = vld [vmem:[#allocation2 + $0x88] sm:$0x7] }
 0x388   : > { %v8927_v33 = vpop.f32.mrf.mxu1  ;;  %1606 = vst [vmem:[#allocation3 + $0x350] sm:$0xf] %v1443_v58  ;;  %v3305_v6 = vsel %vm15961_vm12, %v3303_v48, %v3304_v56  ;;  %v1309_v48 = vld [vmem:[#allocation2 + $0x84] sm:$0xf] }
 0x389   : > { %v16128_v4 = vadd.f32 %v8927_v33, %v18532_v22  ;;  %9413 = vmatmul.bf16.gmra.mxu3 %v11696_v13  ;;  %v16139_v59 = vpop.f32.mrf.mxu2  ;;  %v14529_v13 = vld [vmem:[%s18470_s1 + $0x3a0] sm:$0xff]  ;;  %1658 = vst [vmem:[#allocation3 + $0x1c8] sm:$0xf] %v1443_v58  ;;  %v1449_v56 = vrot.slane %v1309_v48, 7 }
 0x38a   : > { %v9174_v40 = vpop.f32.mrf.mxu0  ;;  %9665 = vmatpush.bf16.msrb.mxu2 %v14529_v13  ;;  %3423 = vst [vmem:[#allocation3 + $0x34c] sm:$0xf] %v3302_v25  ;;  %v12491_v13 = vld [vmem:[#allocation3 + $0x7f8] sm:$0xf] }
 0x38b   : > { %v16135_v3 = vadd.f32 %v9174_v40, %v16046_v20  ;;  %v11499_v20 = vld [vmem:[#allocation3 + $0x30] sm:$0xf]  ;;  %3424 = vst [vmem:[#allocation3 + $0x3b0] sm:$0xf] %v3305_v6 }
 0x38c   : > { %v9098_v35 = vpop.f32.mrf.mxu3  ;;  %v11500_v22 = vor.u32 %v14031_v28, %v11499_v20  ;;  %3527 = vst [vmem:[#allocation3 + $0x40] sm:$0xf] %v3302_v25  ;;  %v3176_v20 = vld [vmem:[#allocation2 + $0x68] sm:$0xf] }
 0x38d   : > { %18533 = vst [vmem:[#allocation15_spill] sm:$0xff] %v16135_v3  ;;  %v16144_v62 = vadd.f32 %v9098_v35, %v9010_v43  ;;  %v11793_v43 = vld [vmem:[#allocation3 + $0x2e4] sm:$0xf0]  ;;  %v14280_v35 = vld [vmem:[#allocation3 + $0x858] sm:$0xf0] }
 0x38e   : > { %v12492_v32 = vor.u32 %v14280_v35, %v12491_v13  ;;  %v11796_v0 = vor.u32 %v14093_v38, %v11793_v43  ;;  %3528 = vst [vmem:[#allocation3 + $0xa4] sm:$0xf] %v3305_v6  ;;  %v3177_v43 = vld [vmem:[#allocation2 + $0x6c] sm:$0x1] }
 0x38f   : > { %3475 = vst [vmem:[#allocation3 + $0x1c4] sm:$0xf] %v3302_v25 }
 0x390   : > { %v8930_v33 = vpop.f32.mrf.mxu1  ;;  %3476 = vst [vmem:[#allocation3 + $0x228] sm:$0xf] %v3305_v6 }
 0x391   : > { %v16151_v1 = vadd.f32 %v8930_v33, %v18534_v41  ;;  %v16158_v58 = vpop.f32.mrf.mxu2  ;;  %v1451_v33 = vrot.slane %v1449_v56, 4  ;;  %v1452_v41 = vrot.slane %v1310_v24, 7  ;;  %v14056_v24 = vld [vmem:[#allocation3 + $0x158] sm:$0xf0] }
 0x392   : > { %v9177_v40 = vpop.f32.mrf.mxu0 }
 0x393   : > { %v16154_v3 = vadd.f32 %v9177_v40, %v16071_v37  ;;  %9245 = vmatmul.bf16.gmra.mxu1 %v11888_v11  ;;  %v14521_v37 = vld [vmem:[%s18470_s1 + $0x360] sm:$0xff]  ;;  %v11398_v11 = vrot.slane %v1308_v2, 11  ;;  %v1453_v6 = vsel %vm15880_vm9, %v1451_v33, %v1452_v41  ;;  %v11599_v2 = vld [vmem:[#allocation3 + $0xf8] sm:$0xf]  ;;  %v14118_v41 = vld [vmem:[#allocation3 + $0x34c] sm:$0xf] }
 0x394   : > { %v9100_v16 = vpop.f32.mrf.mxu3  ;;  %9576 = vmatpush.bf16.msra.mxu1 %v14521_v37  ;;  %v3175_v40 = vld [vmem:[#allocation2 + $0x64] sm:$0xe]  ;;  %1557 = vst [vmem:[#allocation3 + $0x600] sm:$0xf] %v1453_v6  ;;  %v11600_v33 = vor.u32 %v14056_v24, %v11599_v2  ;;  %v1313_v2 = vld [vmem:[#allocation2 + $0x98] sm:$0x7] }
 0x395   : > { %9492 = vmatmul.bf16.vlgmr.msrb.gmra.mxu0 %v11500_v22  ;;  %v16160_v19 = vadd.f32 %v9100_v16, %v9012_v50  ;;  %v3308_v22 = vrot.slane %v3176_v20, 5  ;;  %v1450_v25 = vsel %vm15880_vm9, %v11398_v11, %v1449_v56  ;;  %v11434_v35 = vrot.slane %v3175_v40, 9  ;;  %v14142_v16 = vld [vmem:[#allocation3 + $0x40c] sm:$0xf]  ;;  %1609 = vst [vmem:[#allocation3 + $0x47c] sm:$0xf] %v1453_v6 }
 0x396   : > { %9364 = vmatmul.bf16.gmra.mxu2 %v12492_v32  ;;  %v9015_v32 = vadd.f32 %v15884_v63, %v16116_v8  ;;  %1556 = vst [vmem:[#allocation3 + $0x59c] sm:$0xf] %v1450_v25  ;;  %v3311_v20 = vrot.slane %v3177_v43, 5  ;;  %v11893_v43 = vld [vmem:[#allocation3 + $0x3ac] sm:$0xf0] }
 0x397   : > { %v3310_v48 = vrot.slane %v3308_v22, 4  ;;  %1608 = vst [vmem:[#allocation3 + $0x418] sm:$0xf] %v1450_v25 }
 0x398   : > { %v8932_v28 = vpop.f32.mrf.mxu1  ;;  %1660 = vst [vmem:[#allocation3 + $0x290] sm:$0xf] %v1450_v25 }
 0x399   : > { %v16166_v38 = vadd.f32 %v8932_v28, %v15743_v10  ;;  %9418 = vmatmul.bf16.gmra.mxu3 %v11796_v0  ;;  %v16177_v10 = vpop.f32.mrf.mxu2  ;;  %v11985_v0 = vld [vmem:[#allocation3 + $0x46c] sm:$0xf0]  ;;  %1661 = vst [vmem:[#allocation3 + $0x2f4] sm:$0xf] %v1453_v6  ;;  %v3312_v8 = vsel %vm15961_vm12, %v3310_v48, %v3311_v20  ;;  %v3179_v48 = vld [vmem:[#allocation2 + $0x78] sm:$0xf] }
 0x39a   : > { %v9179_v13 = vpop.f32.mrf.mxu0  ;;  %v11988_v28 = vor.u32 %v14142_v16, %v11985_v0  ;;  %3426 = vst [vmem:[#allocation3 + $0x478] sm:$0xf] %v3312_v8  ;;  %v11896_v16 = vor.u32 %v14118_v41, %v11893_v43  ;;  %v1312_v0 = vld [vmem:[#allocation2 + $0x94] sm:$0xf]  ;;  %v1311_v20 = vld [vmem:[#allocation2 + $0x90] sm:$0x8] }
 0x39b   : > { %v16173_v50 = vadd.f32 %v9179_v13, %v16090_v15  ;;  %v3309_v15 = vsel %vm15961_vm12, %v11434_v35, %v3308_v22  ;;  %v12591_v13 = vld [vmem:[#allocation3 + $0x8c0] sm:$0xf]  ;;  %v9017_v22 = vadd.f32 %v15906_v36, %v16128_v4  ;;  %3478 = vst [vmem:[#allocation3 + $0x2f0] sm:$0xf] %v3312_v8  ;;  %v11399_v36 = vrot.slane %v1311_v20, 11 }
 0x39c   : > { %v9103_v37 = vpop.f32.mrf.mxu3  ;;  %3425 = vst [vmem:[#allocation3 + $0x414] sm:$0xf] %v3309_v15  ;;  %v3180_v41 = vld [vmem:[#allocation2 + $0x7c] sm:$0x1] }
 0x39d   : > { %v16179_v56 = vadd.f32 %v9103_v37, %v9015_v32  ;;  %v14305_v32 = vld [vmem:[#allocation3 + $0x920] sm:$0xf0]  ;;  %3477 = vst [vmem:[#allocation3 + $0x28c] sm:$0xf] %v3309_v15 }
 0x39e   : > { %3529 = vst [vmem:[#allocation3 + $0x108] sm:$0xf] %v3309_v15 }
 0x39f   : > { %3530 = vst [vmem:[#allocation3 + $0x16c] sm:$0xf] %v3312_v8 }
 0x3a0   : > { %v8935_v63 = vpop.f32.mrf.mxu1 }
 0x3a1   : > { %v16186_v11 = vadd.f32 %v8935_v63, %v15760_v47  ;;  %v16193_v25 = vpop.f32.mrf.mxu2  ;;  %v12592_v47 = vor.u32 %v14305_v32, %v12591_v13  ;;  %v3315_v63 = vrot.slane %v3179_v48, 5 }
 0x3a2   : > { %v9182_v40 = vpop.f32.mrf.mxu0 }
 0x3a3   : > { %v16189_v37 = vadd.f32 %v9182_v40, %v16109_v44  ;;  %9250 = vmatmul.bf16.gmra.mxu1 %v11988_v28  ;;  %v1456_v44 = vrot.slane %v1312_v0, 7  ;;  %v1459_v28 = vrot.slane %v1313_v2, 7  ;;  %v3317_v48 = vrot.slane %v3315_v63, 4  ;;  %v14081_v2 = vld [vmem:[#allocation3 + $0x220] sm:$0xf0] }
 0x3a4   : > { %v9105_v6 = vpop.f32.mrf.mxu3 }
 0x3a5   : > { %9497 = vmatmul.bf16.gmra.mxu0 %v11600_v33  ;;  %v16195_v35 = vadd.f32 %v9105_v6, %v9017_v22  ;;  %v1458_v4 = vrot.slane %v1456_v44, 4  ;;  %v3178_v33 = vld [vmem:[#allocation2 + $0x74] sm:$0xe]  ;;  %v1457_v15 = vsel %vm15880_vm9, %v11399_v36, %v1456_v44  ;;  %v9020_v6 = vadd.f32 %v15924_v46, %v16151_v1 }
 0x3a6   : > { %9369 = vmatmul.bf16.gmra.mxu2 %v12592_v47  ;;  %v11435_v13 = vrot.slane %v3178_v33, 9  ;;  %v14167_v22 = vld [vmem:[#allocation3 + $0x4d4] sm:$0xf]  ;;  %v14528_v47 = vld [vmem:[%s18470_s1 + $0x398] sm:$0xff]  ;;  %1558 = vst [vmem:[#allocation3 + $0x664] sm:$0xf] %v1457_v15 }
 0x3a7   : > { %v1460_v8 = vsel %vm15880_vm9, %v1458_v4, %v1459_v28  ;;  %v3318_v44 = vrot.slane %v3180_v41, 5  ;;  %9666 = vmatpush.bf16.msrb.mxu2 %v14528_v47  ;;  %1610 = vst [vmem:[#allocation3 + $0x4e0] sm:$0xf] %v1457_v15  ;;  %v14143_v33 = vld [vmem:[#allocation3 + $0x414] sm:$0xf] }
 0x3a8   : > { %v8937_v24 = vpop.f32.mrf.mxu1  ;;  %1559 = vst [vmem:[#allocation3 + $0x6c8] sm:$0xf] %v1460_v8  ;;  %v3316_v46 = vsel %vm15961_vm12, %v11435_v13, %v3315_v63  ;;  %v14330_v47 = vld [vmem:[#allocation3 + $0x9e8] sm:$0xf0]  ;;  %v9022_v63 = vadd.f32 %v15940_v29, %v16166_v38  ;;  %v1315_v29 = vld [vmem:[#allocation2 + $0xa4] sm:$0xf] }
 0x3a9   : > { %v16198_v40 = vadd.f32 %v8937_v24, %v15771_v17  ;;  %9423 = vmatmul.bf16.gmra.mxu3 %v11896_v16  ;;  %v16209_v17 = vpop.f32.mrf.mxu2  ;;  %v12085_v16 = vld [vmem:[#allocation3 + $0x534] sm:$0xf0]  ;;  %1611 = vst [vmem:[#allocation3 + $0x544] sm:$0xf] %v1460_v8  ;;  %v3319_v36 = vsel %vm15961_vm12, %v3317_v48, %v3318_v44  ;;  %v1463_v38 = vrot.slane %v1315_v29, 7 }
 0x3aa   : > { %v9184_v43 = vpop.f32.mrf.mxu0  ;;  %v12088_v1 = vor.u32 %v14167_v22, %v12085_v16  ;;  %1662 = vst [vmem:[#allocation3 + $0x358] sm:$0xf] %v1457_v15  ;;  %v14540_v16 = vld [vmem:[%s18470_s1 + $0x3f8] sm:$0xff]  ;;  %v3182_v48 = vld [vmem:[#allocation2 + $0x88] sm:$0xf] }
 0x3ab   : > { %v16205_v32 = vadd.f32 %v9184_v43, %v16125_v34  ;;  %v11699_v34 = vld [vmem:[#allocation3 + $0x1c0] sm:$0xf]  ;;  %1663 = vst [vmem:[#allocation3 + $0x3bc] sm:$0xf] %v1460_v8  ;;  %v11993_v43 = vld [vmem:[#allocation3 + $0x474] sm:$0xf0]  ;;  %9751 = vmatpush.bf16.msra.mxu3 %v14540_v16 }
 0x3ac   : > { %v9108_v0 = vpop.f32.mrf.mxu3  ;;  %v11700_v28 = vor.u32 %v14081_v2, %v11699_v34  ;;  %3427 = vst [vmem:[#allocation3 + $0x4dc] sm:$0xf] %v3316_v46  ;;  %v11996_v22 = vor.u32 %v14143_v33, %v11993_v43  ;;  %v1314_v44 = vld [vmem:[#allocation2 + $0xa0] sm:$0x8]  ;;  %v1316_v34 = vld [vmem:[#allocation2 + $0xa8] sm:$0x7] }
 0x3ad   : > { %v16214_v20 = vadd.f32 %v9108_v0, %v9020_v6  ;;  %v12691_v6 = vld [vmem:[#allocation3 + $0x988] sm:$0xf]  ;;  %3428 = vst [vmem:[#allocation3 + $0x540] sm:$0xf] %v3319_v36  ;;  %v3322_v33 = vrot.slane %v3182_v48, 5 }
 0x3ae   : > { %3479 = vst [vmem:[#allocation3 + $0x354] sm:$0xf] %v3316_v46  ;;  %v3181_v43 = vld [vmem:[#allocation2 + $0x84] sm:$0xe] }
 0x3af   : > { %3480 = vst [vmem:[#allocation3 + $0x3b8] sm:$0xf] %v3319_v36  ;;  %v3324_v29 = vrot.slane %v3322_v33, 4 }
 0x3b0   : > { %v8940_v24 = vpop.f32.mrf.mxu1  ;;  %3531 = vst [vmem:[#allocation3 + $0x1d0] sm:$0xf] %v3316_v46 }
 0x3b1   : > { %v16221_v4 = vadd.f32 %v8940_v24, %v15787_v14  ;;  %v16228_v15 = vpop.f32.mrf.mxu2  ;;  %v12692_v14 = vor.u32 %v14330_v47, %v12691_v6  ;;  %3532 = vst [vmem:[#allocation3 + $0x234] sm:$0xf] %v3319_v36  ;;  %v1465_v24 = vrot.slane %v1463_v38, 4  ;;  %v3183_v6 = vld [vmem:[#allocation2 + $0x8c] sm:$0x1] }
 0x3b2   : > { %v9187_v41 = vpop.f32.mrf.mxu0  ;;  %v3325_v48 = vrot.slane %v3183_v6, 5 }
 0x3b3   : > { %v16224_v0 = vadd.f32 %v9187_v41, %v16144_v62  ;;  %9255 = vmatmul.bf16.gmra.mxu1 %v12088_v1  ;;  %v14520_v62 = vld [vmem:[%s18470_s1 + $0x358] sm:$0xff]  ;;  %v11400_v1 = vrot.slane %v1314_v44, 11  ;;  %v11799_v44 = vld [vmem:[#allocation3 + $0x288] sm:$0xf] }
 0x3b4   : > { %v9110_v8 = vpop.f32.mrf.mxu3  ;;  %9577 = vmatpush.bf16.msra.mxu1 %v14520_v62  ;;  %v9025_v62 = vadd.f32 %v15955_v61, %v16186_v11  ;;  %v3326_v11 = vsel %vm15961_vm12, %v3324_v29, %v3325_v48  ;;  %v12093_v6 = vld [vmem:[#allocation3 + $0x53c] sm:$0xf0]  ;;  %v3185_v29 = vld [vmem:[#allocation2 + $0x98] sm:$0xf]  ;;  %v1317_v48 = vld [vmem:[#allocation2 + $0xb0] sm:$0x8] }
 0x3b5   : > { %9502 = vmatmul.bf16.gmra.mxu0 %v11700_v28  ;;  %v16230_v13 = vadd.f32 %v9110_v8, %v9022_v63  ;;  %v1466_v28 = vrot.slane %v1316_v34, 7  ;;  %v1464_v36 = vsel %vm15880_vm9, %v11400_v1, %v1463_v38  ;;  %v11436_v63 = vrot.slane %v3181_v43, 9  ;;  %v14106_v34 = vld [vmem:[#allocation3 + $0x2e8] sm:$0xf0]  ;;  %3430 = vst [vmem:[#allocation3 + $0x608] sm:$0xf] %v3326_v11 }
 0x3b6   : > { %9374 = vmatmul.bf16.gmra.mxu2 %v12692_v14  ;;  %v14192_v14 = vld [vmem:[#allocation3 + $0x59c] sm:$0xf]  ;;  %1560 = vst [vmem:[#allocation3 + $0x72c] sm:$0xf] %v1464_v36 }
 0x3b7   : > { %v1467_v47 = vsel %vm15880_vm9, %v1465_v24, %v1466_v28  ;;  %1612 = vst [vmem:[#allocation3 + $0x5a8] sm:$0xf] %v1464_v36  ;;  %v11800_v24 = vor.u32 %v14106_v34, %v11799_v44  ;;  %v14168_v28 = vld [vmem:[#allocation3 + $0x4dc] sm:$0xf]  ;;  %v1319_v44 = vld [vmem:[#allocation2 + $0xb8] sm:$0x7] }
 0x3b8   : > { %v8942_v2 = vpop.f32.mrf.mxu1  ;;  %1561 = vst [vmem:[#allocation3 + $0x790] sm:$0xf] %v1467_v47 }
 0x3b9   : > { %v16239_v41 = vadd.f32 %v8942_v2, %v15803_v49  ;;  %9428 = vmatmul.bf16.gmra.mxu3 %v11996_v22  ;;  %v16250_v49 = vpop.f32.mrf.mxu2  ;;  %v12185_v22 = vld [vmem:[#allocation3 + $0x5fc] sm:$0xf0]  ;;  %1613 = vst [vmem:[#allocation3 + $0x60c] sm:$0xf] %v1467_v47 }
 0x3ba   : > { %v9189_v46 = vpop.f32.mrf.mxu0  ;;  %v12188_v2 = vor.u32 %v14192_v14, %v12185_v22  ;;  %1664 = vst [vmem:[#allocation3 + $0x420] sm:$0xf] %v1464_v36  ;;  %v12096_v14 = vor.u32 %v14168_v28, %v12093_v6  ;;  %v1318_v22 = vld [vmem:[#allocation2 + $0xb4] sm:$0xf]  ;;  %v3186_v28 = vld [vmem:[#allocation2 + $0x9c] sm:$0x1] }
 0x3bb   : > { %v16246_v8 = vadd.f32 %v9189_v46, %v16160_v19  ;;  %v3323_v19 = vsel %vm15961_vm12, %v11436_v63, %v3322_v33  ;;  %1665 = vst [vmem:[#allocation3 + $0x484] sm:$0xf] %v1467_v47  ;;  %v12791_v46 = vld [vmem:[#allocation3 + $0xa50] sm:$0xf]  ;;  %v9027_v33 = vadd.f32 %v15991_v7, %v16198_v40  ;;  %v11401_v7 = vrot.slane %v1317_v48, 11 }
 0x3bc   : > { %v9113_v16 = vpop.f32.mrf.mxu3  ;;  %3429 = vst [vmem:[#allocation3 + $0x5a4] sm:$0xf] %v3323_v19 }
 0x3bd   : > { %v16252_v38 = vadd.f32 %v9113_v16, %v9025_v62  ;;  %v14355_v62 = vld [vmem:[#allocation3 + $0xab0] sm:$0xf0]  ;;  %3481 = vst [vmem:[#allocation3 + $0x41c] sm:$0xf] %v3323_v19 }
 0x3be   : > { %3482 = vst [vmem:[#allocation3 + $0x480] sm:$0xf] %v3326_v11 }
 0x3bf   : > { %3533 = vst [vmem:[#allocation3 + $0x298] sm:$0xf] %v3323_v19 }
 0x3c0   : > { %v8945_v61 = vpop.f32.mrf.mxu1  ;;  %3534 = vst [vmem:[#allocation3 + $0x2fc] sm:$0xf] %v3326_v11 }
 0x3c1   : > { %v16259_v1 = vadd.f32 %v8945_v61, %v15815_v60  ;;  %v16266_v36 = vpop.f32.mrf.mxu2  ;;  %v12792_v60 = vor.u32 %v14355_v62, %v12791_v46  ;;  %v3329_v61 = vrot.slane %v3185_v29, 5 }
 0x3c2   : > { %v9192_v43 = vpop.f32.mrf.mxu0 }
 0x3c3   : > { %v16262_v16 = vadd.f32 %v9192_v43, %v16179_v56  ;;  %9260 = vmatmul.bf16.gmra.mxu1 %v12188_v2  ;;  %v1470_v56 = vrot.slane %v1318_v22, 7  ;;  %v1473_v2 = vrot.slane %v1319_v44, 7  ;;  %v3331_v29 = vrot.slane %v3329_v61, 4  ;;  %v14131_v44 = vld [vmem:[#allocation3 + $0x3b0] sm:$0xf0] }
 0x3c4   : > { %v9115_v47 = vpop.f32.mrf.mxu3 }
 0x3c5   : > { %9507 = vmatmul.bf16.gmra.mxu0 %v11800_v24  ;;  %v16268_v63 = vadd.f32 %v9115_v47, %v9027_v33  ;;  %v1472_v40 = vrot.slane %v1470_v56, 4  ;;  %v3184_v24 = vld [vmem:[#allocation2 + $0x94] sm:$0xe]  ;;  %v1471_v19 = vsel %vm15880_vm9, %v11401_v7, %v1470_v56  ;;  %v14217_v33 = vld [vmem:[#allocation3 + $0x664] sm:$0xf]  ;;  %v9030_v47 = vadd.f32 %v16008_v42, %v16221_v4 }
 0x3c6   : > { %9379 = vmatmul.bf16.gmra.mxu2 %v12792_v60  ;;  %v11437_v46 = vrot.slane %v3184_v24, 9  ;;  %v14527_v60 = vld [vmem:[%s18470_s1 + $0x390] sm:$0xff]  ;;  %1562 = vst [vmem:[#allocation3 + $0x7f4] sm:$0xf] %v1471_v19  ;;  %v3332_v56 = vrot.slane %v3186_v28, 5 }
 0x3c7   : > { %v1474_v11 = vsel %vm15880_vm9, %v1472_v40, %v1473_v2  ;;  %9667 = vmatpush.bf16.msrb.mxu2 %v14527_v60  ;;  %1614 = vst [vmem:[#allocation3 + $0x670] sm:$0xf] %v1471_v19  ;;  %v18536_v40 = vld [vmem:[#allocation6_spill] sm:$0xff]  ;;  %v14193_v28 = vld [vmem:[#allocation3 + $0x5a4] sm:$0xf] }
 0x3c8   : > { %v8947_v34 = vpop.f32.mrf.mxu1  ;;  %1563 = vst [vmem:[#allocation3 + $0x858] sm:$0xf] %v1474_v11  ;;  %v3330_v42 = vsel %vm15961_vm12, %v11437_v46, %v3329_v61  ;;  %v3333_v7 = vsel %vm15961_vm12, %v3331_v29, %v3332_v56  ;;  %v12891_v60 = vld [vmem:[#allocation3 + $0xb18] sm:$0xf]  ;;  %v9032_v61 = vadd.f32 %v16036_v21, %v16239_v41  ;;  %v14539_v29 = vld [vmem:[%s18470_s1 + $0x3f0] sm:$0xff] }
 0x3c9   : > { %v16271_v43 = vadd.f32 %v8947_v34, %v15827_v57  ;;  %9433 = vmatmul.bf16.gmra.mxu3 %v12096_v14  ;;  %v16282_v57 = vpop.f32.mrf.mxu2  ;;  %v12285_v14 = vld [vmem:[#allocation3 + $0x6c4] sm:$0xf0]  ;;  %1615 = vst [vmem:[#allocation3 + $0x6d4] sm:$0xf] %v1474_v11  ;;  %v1321_v21 = vld [vmem:[#allocation2 + $0xc4] sm:$0xf] }
 0x3ca   : > { %v9194_v6 = vpop.f32.mrf.mxu0  ;;  %v12288_v4 = vor.u32 %v14217_v33, %v12285_v14  ;;  %1666 = vst [vmem:[#allocation3 + $0x4e8] sm:$0xf] %v1471_v19  ;;  %v1477_v41 = vrot.slane %v1321_v21, 7  ;;  %v3188_v56 = vld [vmem:[#allocation2 + $0xa8] sm:$0xf]  ;;  %9752 = vmatpush.bf16.msra.mxu3 %v14539_v29 }
 0x3cb   : > { %v16278_v62 = vadd.f32 %v9194_v6, %v16195_v35  ;;  %v11899_v35 = vld [vmem:[#allocation3 + $0x350] sm:$0xf]  ;;  %1667 = vst [vmem:[#allocation3 + $0x54c] sm:$0xf] %v1474_v11 }
 0x3cc   : > { %v9118_v22 = vpop.f32.mrf.mxu3  ;;  %v11900_v24 = vor.u32 %v14131_v44, %v11899_v35  ;;  %3431 = vst [vmem:[#allocation3 + $0x66c] sm:$0xf] %v3330_v42  ;;  %v1320_v35 = vld [vmem:[#allocation2 + $0xc0] sm:$0x8]  ;;  %v1322_v44 = vld [vmem:[#allocation2 + $0xc8] sm:$0x7] }
 0x3cd   : > { %18535 = vst [vmem:[#allocation12_spill] sm:$0xff] %v16278_v62  ;;  %v16287_v48 = vadd.f32 %v9118_v22, %v9030_v47  ;;  %v12193_v47 = vld [vmem:[#allocation3 + $0x604] sm:$0xf0]  ;;  %v14380_v22 = vld [vmem:[#allocation3 + $0xb78] sm:$0xf0] }
 0x3ce   : > { %3432 = vst [vmem:[#allocation3 + $0x6d0] sm:$0xf] %v3333_v7  ;;  %v12892_v46 = vor.u32 %v14380_v22, %v12891_v60  ;;  %v12196_v14 = vor.u32 %v14193_v28, %v12193_v47  ;;  %v3336_v28 = vrot.slane %v3188_v56, 5  ;;  %v3187_v47 = vld [vmem:[#allocation2 + $0xa4] sm:$0xe] }
 0x3cf   : > { %3483 = vst [vmem:[#allocation3 + $0x4e4] sm:$0xf] %v3330_v42  ;;  %v3189_v60 = vld [vmem:[#allocation2 + $0xac] sm:$0x1] }
 0x3d0   : > { %v9226_v34 = vpop.f32.mrf.mxu1  ;;  %3484 = vst [vmem:[#allocation3 + $0x548] sm:$0xf] %v3333_v7  ;;  %v3338_v21 = vrot.slane %v3336_v28, 4  ;;  %v3339_v56 = vrot.slane %v3189_v60, 5 }
 0x3d1   : > { %v16294_v2 = vadd.f32 %v9226_v34, %v18536_v40  ;;  %v16301_v19 = vpop.f32.mrf.mxu2  ;;  %3535 = vst [vmem:[#allocation3 + $0x360] sm:$0xf] %v3330_v42  ;;  %v11402_v34 = vrot.slane %v1320_v35, 11  ;;  %v1479_v40 = vrot.slane %v1477_v41, 4  ;;  %v11999_v35 = vld [vmem:[#allocation3 + $0x418] sm:$0xf] }
 0x3d2   : > { %v9197_v6 = vpop.f32.mrf.mxu0  ;;  %3536 = vst [vmem:[#allocation3 + $0x3c4] sm:$0xf] %v3333_v7 }
 0x3d3   : > { %v16297_v62 = vadd.f32 %v9197_v6, %v16214_v20  ;;  %9265 = vmatmul.bf16.gmra.mxu1 %v12288_v4  ;;  %v14519_v20 = vld [vmem:[%s18470_s1 + $0x350] sm:$0xff]  ;;  %v1478_v7 = vsel %vm15880_vm9, %v11402_v34, %v1477_v41 }
 0x3d4   : > { %v9120_v11 = vpop.f32.mrf.mxu3  ;;  %9578 = vmatpush.bf16.msra.mxu1 %v14519_v20  ;;  %v9035_v20 = vadd.f32 %v16063_v9, %v16259_v1  ;;  %1564 = vst [vmem:[#allocation3 + $0x8bc] sm:$0xf] %v1478_v7  ;;  %v3340_v1 = vsel %vm15961_vm12, %v3338_v21, %v3339_v56  ;;  %v3191_v21 = vld [vmem:[#allocation2 + $0xb8] sm:$0xf] }
 0x3d5   : > { %9512 = vmatmul.bf16.gmra.mxu0 %v11900_v24  ;;  %v16303_v33 = vadd.f32 %v9120_v11, %v9032_v61  ;;  %v1480_v24 = vrot.slane %v1322_v44, 7  ;;  %v11438_v61 = vrot.slane %v3187_v47, 9  ;;  %1616 = vst [vmem:[#allocation3 + $0x738] sm:$0xf] %v1478_v7  ;;  %v14156_v44 = vld [vmem:[#allocation3 + $0x478] sm:$0xf0] }
 0x3d6   : > { %9384 = vmatmul.bf16.gmra.mxu2 %v12892_v46  ;;  %v14242_v46 = vld [vmem:[#allocation3 + $0x72c] sm:$0xf]  ;;  %1668 = vst [vmem:[#allocation3 + $0x5b0] sm:$0xf] %v1478_v7  ;;  %v12293_v60 = vld [vmem:[#allocation3 + $0x6cc] sm:$0xf0] }
 0x3d7   : > { %v1481_v22 = vsel %vm15880_vm9, %v1479_v40, %v1480_v24  ;;  %v12000_v40 = vor.u32 %v14156_v44, %v11999_v35  ;;  %v14218_v24 = vld [vmem:[#allocation3 + $0x66c] sm:$0xf]  ;;  %3434 = vst [vmem:[#allocation3 + $0x798] sm:$0xf] %v3340_v1  ;;  %v3343_v56 = vrot.slane %v3191_v21, 5 }
 0x3d8   : > { %v9228_v4 = vpop.f32.mrf.mxu1  ;;  %1565 = vst [vmem:[#allocation3 + $0x920] sm:$0xf] %v1481_v22  ;;  %v1323_v35 = vld [vmem:[#allocation2 + $0xd0] sm:$0x8]  ;;  %v1325_v44 = vld [vmem:[#allocation2 + $0xd8] sm:$0x7] }
 0x3d9   : > { %v16312_v6 = vadd.f32 %v9228_v4, %v15855_v18  ;;  %9438 = vmatmul.bf16.gmra.mxu3 %v12196_v14  ;;  %v16323_v18 = vpop.f32.mrf.mxu2  ;;  %v12385_v14 = vld [vmem:[#allocation3 + $0x78c] sm:$0xf0]  ;;  %1617 = vst [vmem:[#allocation3 + $0x79c] sm:$0xf] %v1481_v22  ;;  %v12485_v21 = vld [vmem:[#allocation3 + $0x854] sm:$0xf0] }
 0x3da   : > { %v9199_v42 = vpop.f32.mrf.mxu0  ;;  %v12388_v4 = vor.u32 %v14242_v46, %v12385_v14  ;;  %1669 = vst [vmem:[#allocation3 + $0x614] sm:$0xf] %v1481_v22  ;;  %v12296_v46 = vor.u32 %v14218_v24, %v12293_v60  ;;  %v1324_v14 = vld [vmem:[#allocation2 + $0xd4] sm:$0xf]  ;;  %v3192_v24 = vld [vmem:[#allocation2 + $0xbc] sm:$0x1] }
 0x3db   : > { %v16319_v11 = vadd.f32 %v9199_v42, %v16230_v13  ;;  %v3337_v13 = vsel %vm15961_vm12, %v11438_v61, %v3336_v28  ;;  %v12991_v42 = vld [vmem:[#allocation3 + $0xbe0] sm:$0xf]  ;;  %v9037_v28 = vadd.f32 %v16088_v31, %v16271_v43  ;;  %3486 = vst [vmem:[#allocation3 + $0x610] sm:$0xf] %v3340_v1  ;;  %v11403_v43 = vrot.slane %v1323_v35, 11 }
 0x3dc   : > { %v9123_v29 = vpop.f32.mrf.mxu3  ;;  %3433 = vst [vmem:[#allocation3 + $0x734] sm:$0xf] %v3337_v13 }
 0x3dd   : > { %v16325_v41 = vadd.f32 %v9123_v29, %v9035_v20  ;;  %v14405_v20 = vld [vmem:[#allocation3 + $0xc40] sm:$0xf0]  ;;  %3485 = vst [vmem:[#allocation3 + $0x5ac] sm:$0xf] %v3337_v13 }
 0x3de   : > { %3537 = vst [vmem:[#allocation3 + $0x428] sm:$0xf] %v3337_v13 }
 0x3df   : > { %3538 = vst [vmem:[#allocation3 + $0x48c] sm:$0xf] %v3340_v1 }
 0x3e0   : > { %v9231_v9 = vpop.f32.mrf.mxu1 }
 0x3e1   : > { %v16332_v34 = vadd.f32 %v9231_v9, %v15871_v45  ;;  %v16339_v7 = vpop.f32.mrf.mxu2  ;;  %v12992_v45 = vor.u32 %v14405_v20, %v12991_v42  ;;  %v1487_v9 = vrot.slane %v1325_v44, 7  ;;  %v14181_v44 = vld [vmem:[#allocation3 + $0x540] sm:$0xf0] }
 0x3e2   : > { %v9202_v47 = vpop.f32.mrf.mxu0 }
 0x3e3   : > { %v16335_v29 = vadd.f32 %v9202_v47, %v16252_v38  ;;  %9270 = vmatmul.bf16.gmra.mxu1 %v12388_v4  ;;  %v1484_v38 = vrot.slane %v1324_v14, 7  ;;  %v14267_v14 = vld [vmem:[#allocation3 + $0x7f4] sm:$0xf] }
 0x3e4   : > { %v9125_v22 = vpop.f32.mrf.mxu3 }
 0x3e5   : > { %9517 = vmatmul.bf16.gmra.mxu0 %v12000_v40  ;;  %v16341_v61 = vadd.f32 %v9125_v22, %v9037_v28  ;;  %v1486_v4 = vrot.slane %v1484_v38, 4  ;;  %v3190_v40 = vld [vmem:[#allocation2 + $0xb4] sm:$0xe]  ;;  %v1485_v13 = vsel %vm15880_vm9, %v11403_v43, %v1484_v38  ;;  %v9316_v28 = vadd.f32 %v16107_v27, %v16294_v2 }
 0x3e6   : > { %9389 = vmatmul.bf16.gmra.mxu2 %v12992_v45  ;;  %v11439_v42 = vrot.slane %v3190_v40, 9  ;;  %1566 = vst [vmem:[#allocation3 + $0x984] sm:$0xf] %v1485_v13  ;;  %v3345_v45 = vrot.slane %v3343_v56, 4  ;;  %v12488_v2 = vor.u32 %v14267_v14, %v12485_v21 }
 0x3e7   : > { %v1488_v1 = vsel %vm15880_vm9, %v1486_v4, %v1487_v9  ;;  %1618 = vst [vmem:[#allocation3 + $0x800] sm:$0xf] %v1485_v13  ;;  %v14525_v4 = vld [vmem:[%s18470_s1 + $0x380] sm:$0xff] }
 0x3e8   : > { %v9233_v31 = vpop.f32.mrf.mxu1  ;;  %1567 = vst [vmem:[#allocation3 + $0x9e8] sm:$0xf] %v1488_v1  ;;  %v3344_v27 = vsel %vm15961_vm12, %v11439_v42, %v3343_v56 }
 0x3e9   : > { %v16344_v47 = vadd.f32 %v9233_v31, %v15889_v23  ;;  %9443 = vmatmul.bf16.gmra.mxu3 %v12296_v46  ;;  %v16355_v22 = vpop.f32.mrf.mxu2  ;;  %v14526_v23 = vld [vmem:[%s18470_s1 + $0x388] sm:$0xff]  ;;  %v3346_v46 = vrot.slane %v3192_v24, 5  ;;  %1619 = vst [vmem:[#allocation3 + $0x864] sm:$0xf] %v1488_v1 }
 0x3ea   : > { %v9204_v60 = vpop.f32.mrf.mxu0  ;;  %9668 = vmatpush.bf16.msrb.mxu2 %v14526_v23  ;;  %1670 = vst [vmem:[#allocation3 + $0x678] sm:$0xf] %v1485_v13  ;;  %v9318_v13 = vadd.f32 %v16123_v55, %v16312_v6  ;;  %v14032_v23 = vld [vmem:[#allocation3 + $0x98] sm:$0xf0]  ;;  %v14538_v55 = vld [vmem:[%s18470_s1 + $0x3e8] sm:$0xff] }
 0x3eb   : > { %v16351_v20 = vadd.f32 %v9204_v60, %v16268_v63  ;;  %v12099_v63 = vld [vmem:[#allocation3 + $0x4e0] sm:$0xf]  ;;  %v3347_v31 = vsel %vm15961_vm12, %v3345_v45, %v3346_v46  ;;  %1671 = vst [vmem:[#allocation3 + $0x6dc] sm:$0xf] %v1488_v1  ;;  %v14243_v60 = vld [vmem:[#allocation3 + $0x734] sm:$0xf]  ;;  %9753 = vmatpush.bf16.msra.mxu3 %v14538_v55 }
 0x3ec   : > { %v9404_v38 = vpop.f32.mrf.mxu3  ;;  %v12100_v40 = vor.u32 %v14181_v44, %v12099_v63  ;;  %3435 = vst [vmem:[#allocation3 + $0x7fc] sm:$0xf] %v3344_v27  ;;  %v1327_v6 = vld [vmem:[#allocation2 + $0xe4] sm:$0xf]  ;;  %v1326_v63 = vld [vmem:[#allocation2 + $0xe0] sm:$0x8] }
 0x3ed   : > { %v16360_v35 = vadd.f32 %v9404_v38, %v9316_v28  ;;  %v12393_v28 = vld [vmem:[#allocation3 + $0x794] sm:$0xf0]  ;;  %3436 = vst [vmem:[#allocation3 + $0x860] sm:$0xf] %v3347_v31  ;;  %v1491_v21 = vrot.slane %v1327_v6, 7 }
 0x3ee   : > { %9669 = vmatpush.bf16.msrb.mxu2 %v14525_v4  ;;  %3487 = vst [vmem:[#allocation3 + $0x674] sm:$0xf] %v3344_v27  ;;  %v12396_v46 = vor.u32 %v14243_v60, %v12393_v28  ;;  %v3194_v38 = vld [vmem:[#allocation2 + $0xc8] sm:$0xf]  ;;  %v3195_v60 = vld [vmem:[#allocation2 + $0xcc] sm:$0x1] }
 0x3ef   : > { %3488 = vst [vmem:[#allocation3 + $0x6d8] sm:$0xf] %v3347_v31  ;;  %v1328_v44 = vld [vmem:[#allocation2 + $0xe8] sm:$0x7]  ;;  %v1493_v4 = vrot.slane %v1491_v21, 4  ;;  %v3350_v28 = vrot.slane %v3194_v38, 5 }
 0x3f0   : > { %v9236_v43 = vpop.f32.mrf.mxu1  ;;  %3539 = vst [vmem:[#allocation3 + $0x4f0] sm:$0xf] %v3344_v27  ;;  %v11404_v27 = vrot.slane %v1326_v63, 11  ;;  %v14292_v55 = vld [vmem:[#allocation3 + $0x8bc] sm:$0xf] }
 0x3f1   : > { %v16370_v9 = vadd.f32 %v9236_v43, %v15909_v30  ;;  %v16377_v42 = vpop.f32.mrf.mxu2  ;;  %v11507_v30 = vld [vmem:[#allocation3 + $0x38] sm:$0xf]  ;;  %3540 = vst [vmem:[#allocation3 + $0x554] sm:$0xf] %v3347_v31  ;;  %v12585_v6 = vld [vmem:[#allocation3 + $0x91c] sm:$0xf0] }
 0x3f2   : > { %v9207_v24 = vpop.f32.mrf.mxu0  ;;  %v11508_v14 = vor.u32 %v14032_v23, %v11507_v30  ;;  %v1492_v31 = vsel %vm15880_vm9, %v11404_v27, %v1491_v21  ;;  %v12199_v63 = vld [vmem:[#allocation3 + $0x5a8] sm:$0xf] }
 0x3f3   : > { %v16373_v56 = vadd.f32 %v9207_v24, %v16287_v48  ;;  %9275 = vmatmul.bf16.gmra.mxu1 %v12488_v2  ;;  %v14518_v48 = vld [vmem:[%s18470_s1 + $0x348] sm:$0xff]  ;;  %v3193_v2 = vld [vmem:[#allocation2 + $0xc4] sm:$0xe]  ;;  %1568 = vst [vmem:[#allocation3 + $0xa4c] sm:$0xf] %v1492_v31 }
 0x3f4   : > { %v9406_v1 = vpop.f32.mrf.mxu3  ;;  %9579 = vmatpush.bf16.msra.mxu1 %v14518_v48  ;;  %v11440_v30 = vrot.slane %v3193_v2, 9  ;;  %v9321_v48 = vadd.f32 %v16139_v59, %v16332_v34  ;;  %1620 = vst [vmem:[#allocation3 + $0x8c8] sm:$0xf] %v1492_v31  ;;  %v12588_v2 = vor.u32 %v14292_v55, %v12585_v6 }
 0x3f5   : > { %9522 = vmatmul.bf16.gmra.mxu0 %v12100_v40  ;;  %v16379_v45 = vadd.f32 %v9406_v1, %v9318_v13  ;;  %v1494_v40 = vrot.slane %v1328_v44, 7  ;;  %v14206_v44 = vld [vmem:[#allocation3 + $0x608] sm:$0xf0]  ;;  %1672 = vst [vmem:[#allocation3 + $0x740] sm:$0xf] %v1492_v31 }
 0x3f6   : > { %9670 = vmatmul.bf16.vlgmr.msrb.gmra.mxu2 %v11508_v14 }
 0x3f7   : > { %v1495_v1 = vsel %vm15880_vm9, %v1493_v4, %v1494_v40  ;;  %v12200_v4 = vor.u32 %v14206_v44, %v12199_v63 }
 0x3f8   : > { %v9238_v43 = vpop.f32.mrf.mxu1  ;;  %1569 = vst [vmem:[#allocation3 + $0xab0] sm:$0xf] %v1495_v1 }
 0x3f9   : > { %v16388_v24 = vadd.f32 %v9238_v43, %v15927_v12  ;;  %9448 = vmatmul.bf16.gmra.mxu3 %v12396_v46  ;;  %v16399_v14 = vpop.f32.mrf.mxu2  ;;  %v3352_v12 = vrot.slane %v3350_v28, 4  ;;  %v3353_v46 = vrot.slane %v3195_v60, 5  ;;  %1621 = vst [vmem:[#allocation3 + $0x92c] sm:$0xf] %v1495_v1  ;;  %v18538_v43 = vld [vmem:[#allocation11_spill] sm:$0xff] }
 0x3fa   : > { %v9209_v13 = vpop.f32.mrf.mxu0  ;;  %1673 = vst [vmem:[#allocation3 + $0x7a4] sm:$0xf] %v1495_v1  ;;  %v14268_v60 = vld [vmem:[#allocation3 + $0x7fc] sm:$0xf] }
 0x3fb   : > { %v16395_v23 = vadd.f32 %v9209_v13, %v16303_v33  ;;  %v3351_v33 = vsel %vm15961_vm12, %v11440_v30, %v3350_v28  ;;  %v3354_v59 = vsel %vm15961_vm12, %v3352_v12, %v3353_v46  ;;  %v12493_v13 = vld [vmem:[#allocation3 + $0x85c] sm:$0xf0]  ;;  %v9323_v28 = vadd.f32 %v16158_v58, %v16344_v47  ;;  %v14057_v12 = vld [vmem:[#allocation3 + $0x160] sm:$0xf0]  ;;  %v1331_v58 = vld [vmem:[#allocation2 + $0xf8] sm:$0x7] }
 0x3fc   : > { %v9409_v38 = vpop.f32.mrf.mxu3  ;;  %3437 = vst [vmem:[#allocation3 + $0x8c4] sm:$0xf] %v3351_v33  ;;  %v11607_v30 = vld [vmem:[#allocation3 + $0x100] sm:$0xf]  ;;  %v12496_v55 = vor.u32 %v14268_v60, %v12493_v13  ;;  %v3196_v47 = vld [vmem:[#allocation2 + $0xd4] sm:$0xe] }
 0x3fd   : > { %18537 = vst [vmem:[#allocation20_spill] sm:$0xff] %v16395_v23  ;;  %v16401_v21 = vadd.f32 %v9409_v38, %v9321_v48  ;;  %v11608_v6 = vor.u32 %v14057_v12, %v11607_v30  ;;  %v1330_v38 = vld [vmem:[#allocation2 + $0xf4] sm:$0xf]  ;;  %v18540_v23 = vld [vmem:[#allocation8_spill] sm:$0xff]  ;;  %v3198_v60 = vld [vmem:[#allocation2 + $0xdc] sm:$0x1]  ;;  %v9326_v30 = vadd.f32 %v16177_v10, %v16370_v9 }
 0x3fe   : > { %3438 = vst [vmem:[#allocation3 + $0x928] sm:$0xf] %v3354_v59  ;;  %v1498_v63 = vrot.slane %v1330_v38, 7  ;;  %v12685_v38 = vld [vmem:[#allocation3 + $0x9e4] sm:$0xf0] }
 0x3ff   : > { %3489 = vst [vmem:[#allocation3 + $0x73c] sm:$0xf] %v3351_v33 }
 0x400   : > { %v9241_v34 = vpop.f32.mrf.mxu1  ;;  %3490 = vst [vmem:[#allocation3 + $0x7a0] sm:$0xf] %v3354_v59 }
 0x401   : > { %v16408_v27 = vadd.f32 %v9241_v34, %v18538_v43  ;;  %v16415_v31 = vpop.f32.mrf.mxu2  ;;  %3541 = vst [vmem:[#allocation3 + $0x5b8] sm:$0xf] %v3351_v33 }
 0x402   : > { %v9212_v40 = vpop.f32.mrf.mxu0  ;;  %3542 = vst [vmem:[#allocation3 + $0x61c] sm:$0xf] %v3354_v59 }
 0x403   : > { %v16411_v48 = vadd.f32 %v9212_v40, %v16325_v41  ;;  %9280 = vmatmul.bf16.gmra.mxu1 %v12588_v2  ;;  %v3197_v41 = vld [vmem:[#allocation2 + $0xd8] sm:$0xf]  ;;  %v1329_v2 = vld [vmem:[#allocation2 + $0xf0] sm:$0x8]  ;;  %v1500_v40 = vrot.slane %v1498_v63, 4 }
 0x404   : > { %v9411_v1 = vpop.f32.mrf.mxu3  ;;  %v3357_v44 = vrot.slane %v3197_v41, 5  ;;  %v11405_v43 = vrot.slane %v1329_v2, 11  ;;  %v14231_v2 = vld [vmem:[#allocation3 + $0x6d0] sm:$0xf0] }
 0x405   : > { %18539 = vst [vmem:[#allocation17_spill] sm:$0xff] %v16411_v48  ;;  %9527 = vmatmul.bf16.gmra.mxu0 %v12200_v4  ;;  %v16417_v46 = vadd.f32 %v9411_v1, %v9323_v28  ;;  %v1501_v48 = vrot.slane %v1331_v58, 7  ;;  %v11441_v28 = vrot.slane %v3196_v47, 9  ;;  %v18541_v47 = vld [vmem:[#allocation13_spill] sm:$0xff] }
 0x406   : > { %9675 = vmatmul.bf16.gmra.mxu2 %v11608_v6  ;;  %v1499_v13 = vsel %vm15880_vm9, %v11405_v43, %v1498_v63  ;;  %v14317_v6 = vld [vmem:[#allocation3 + $0x984] sm:$0xf] }
 0x407   : > { %v1502_v59 = vsel %vm15880_vm9, %v1500_v40, %v1501_v48  ;;  %1570 = vst [vmem:[#allocation3 + $0xb14] sm:$0xf] %v1499_v13  ;;  %v12299_v48 = vld [vmem:[#allocation3 + $0x670] sm:$0xf]  ;;  %v12688_v58 = vor.u32 %v14317_v6, %v12685_v38 }
 0x408   : > { %v9243_v34 = vpop.f32.mrf.mxu1  ;;  %1571 = vst [vmem:[#allocation3 + $0xb78] sm:$0xf] %v1502_v59  ;;  %v12300_v43 = vor.u32 %v14231_v2, %v12299_v48  ;;  %v3200_v48 = vld [vmem:[#allocation2 + $0xe8] sm:$0xf]  ;;  %v1332_v2 = vld [vmem:[#allocation2 + $0x100] sm:$0x8] }
 0x409   : > { %v16420_v4 = vadd.f32 %v9243_v34, %v18540_v23  ;;  %9453 = vmatmul.bf16.gmra.mxu3 %v12496_v55  ;;  %v16431_v12 = vpop.f32.mrf.mxu2  ;;  %v3359_v23 = vrot.slane %v3357_v44, 4  ;;  %v3360_v55 = vrot.slane %v3198_v60, 5  ;;  %1622 = vst [vmem:[#allocation3 + $0x990] sm:$0xf] %v1499_v13  ;;  %v14293_v60 = vld [vmem:[#allocation3 + $0x8c4] sm:$0xf] }
 0x40a   : > { %v9214_v33 = vpop.f32.mrf.mxu0  ;;  %1623 = vst [vmem:[#allocation3 + $0x9f4] sm:$0xf] %v1502_v59 }
 0x40b   : > { %v16427_v1 = vadd.f32 %v9214_v33, %v16341_v61  ;;  %v3358_v61 = vsel %vm15961_vm12, %v11441_v28, %v3357_v44  ;;  %1674 = vst [vmem:[#allocation3 + $0x808] sm:$0xf] %v1499_v13  ;;  %v3361_v10 = vsel %vm15961_vm12, %v3359_v23, %v3360_v55  ;;  %v12593_v33 = vld [vmem:[#allocation3 + $0x924] sm:$0xf0]  ;;  %v9328_v44 = vadd.f32 %v16193_v25, %v16388_v24  ;;  %v14082_v23 = vld [vmem:[#allocation3 + $0x228] sm:$0xf0] }
 0x40c   : > { %v9414_v41 = vpop.f32.mrf.mxu3  ;;  %1675 = vst [vmem:[#allocation3 + $0x86c] sm:$0xf] %v1502_v59  ;;  %v11707_v28 = vld [vmem:[#allocation3 + $0x1c8] sm:$0xf]  ;;  %v12596_v6 = vor.u32 %v14293_v60, %v12593_v33  ;;  %v14537_v25 = vld [vmem:[%s18470_s1 + $0x3e0] sm:$0xff]  ;;  %v18542_v60 = vld [vmem:[#allocation10_spill] sm:$0xff] }
 0x40d   : > { %v16433_v63 = vadd.f32 %v9414_v41, %v9326_v30  ;;  %3439 = vst [vmem:[#allocation3 + $0x98c] sm:$0xf] %v3358_v61  ;;  %v11708_v38 = vor.u32 %v14082_v23, %v11707_v28  ;;  %v1333_v24 = vld [vmem:[#allocation2 + $0x104] sm:$0xf]  ;;  %9754 = vmatpush.bf16.msra.mxu3 %v14537_v25 }
 0x40e   : > { %3440 = vst [vmem:[#allocation3 + $0x9f0] sm:$0xf] %v3361_v10  ;;  %v1505_v41 = vrot.slane %v1333_v24, 7 }
 0x40f   : > { %3491 = vst [vmem:[#allocation3 + $0x804] sm:$0xf] %v3358_v61 }
 0x410   : > { %v9246_v9 = vpop.f32.mrf.mxu1  ;;  %3492 = vst [vmem:[#allocation3 + $0x868] sm:$0xf] %v3361_v10 }
 0x411   : > { %v16440_v34 = vadd.f32 %v9246_v9, %v18541_v47  ;;  %v16447_v13 = vpop.f32.mrf.mxu2  ;;  %3543 = vst [vmem:[#allocation3 + $0x680] sm:$0xf] %v3358_v61  ;;  %v3199_v9 = vld [vmem:[#allocation2 + $0xe4] sm:$0xe]  ;;  %v11406_v61 = vrot.slane %v1332_v2, 11 }
 0x412   : > { %v9493_v40 = vpop.f32.mrf.mxu0  ;;  %3544 = vst [vmem:[#allocation3 + $0x6e4] sm:$0xf] %v3361_v10 }
 0x413   : > { %v16443_v30 = vadd.f32 %v9493_v40, %v16360_v35  ;;  %9285 = vmatmul.bf16.gmra.mxu1 %v12688_v58  ;;  %v14517_v35 = vld [vmem:[%s18470_s1 + $0x340] sm:$0xff]  ;;  %v1334_v58 = vld [vmem:[#allocation2 + $0x108] sm:$0x7]  ;;  %v1506_v10 = vsel %vm15880_vm9, %v11406_v61, %v1505_v41  ;;  %v12399_v61 = vld [vmem:[#allocation3 + $0x738] sm:$0xf] }
 0x414   : > { %v9416_v59 = vpop.f32.mrf.mxu3  ;;  %9580 = vmatpush.bf16.msra.mxu1 %v14517_v35  ;;  %v1508_v40 = vrot.slane %v1334_v58, 7  ;;  %v11442_v35 = vrot.slane %v3199_v9, 9  ;;  %1572 = vst [vmem:[#allocation3 + $0xbdc] sm:$0xf] %v1506_v10  ;;  %v12785_v58 = vld [vmem:[#allocation3 + $0xaac] sm:$0xf0] }
 0x415   : > { %9532 = vmatmul.bf16.gmra.mxu0 %v12300_v43  ;;  %v16449_v55 = vadd.f32 %v9416_v59, %v9328_v44  ;;  %v1507_v43 = vrot.slane %v1505_v41, 4  ;;  %v3201_v44 = vld [vmem:[#allocation2 + $0xec] sm:$0x1]  ;;  %v3364_v59 = vrot.slane %v3200_v48, 5  ;;  %1624 = vst [vmem:[#allocation3 + $0xa58] sm:$0xf] %v1506_v10 }
 0x416   : > { %9680 = vmatmul.bf16.gmra.mxu2 %v11708_v38  ;;  %v9331_v38 = vadd.f32 %v16209_v17, %v16408_v27  ;;  %v3367_v2 = vrot.slane %v3201_v44, 5  ;;  %v14342_v48 = vld [vmem:[#allocation3 + $0xa4c] sm:$0xf]  ;;  %v14256_v9 = vld [vmem:[#allocation3 + $0x798] sm:$0xf0] }
 0x417   : > { %v1509_v23 = vsel %vm15880_vm9, %v1507_v43, %v1508_v40  ;;  %v12788_v43 = vor.u32 %v14342_v48, %v12785_v58  ;;  %1676 = vst [vmem:[#allocation3 + $0x8d0] sm:$0xf] %v1506_v10  ;;  %v3203_v58 = vld [vmem:[#allocation2 + $0xf8] sm:$0xf] }
 0x418   : > { %v9248_v47 = vpop.f32.mrf.mxu1  ;;  %1573 = vst [vmem:[#allocation3 + $0xc40] sm:$0xf] %v1509_v23 }
 0x419   : > { %v16458_v33 = vadd.f32 %v9248_v47, %v18542_v60  ;;  %9458 = vmatmul.bf16.gmra.mxu3 %v12596_v6  ;;  %v16469_v24 = vpop.f32.mrf.mxu2  ;;  %v3366_v6 = vrot.slane %v3364_v59, 4  ;;  %1625 = vst [vmem:[#allocation3 + $0xabc] sm:$0xf] %v1509_v23  ;;  %v12400_v60 = vor.u32 %v14256_v9, %v12399_v61  ;;  %v3202_v61 = vld [vmem:[#allocation2 + $0xf4] sm:$0xe] }
 0x41a   : > { %v9495_v28 = vpop.f32.mrf.mxu0  ;;  %1677 = vst [vmem:[#allocation3 + $0x934] sm:$0xf] %v1509_v23  ;;  %v3204_v9 = vld [vmem:[#allocation2 + $0xfc] sm:$0x1] }
 0x41b   : > { %v16465_v25 = vadd.f32 %v9495_v28, %v16379_v45  ;;  %v3365_v45 = vsel %vm15961_vm12, %v11442_v35, %v3364_v59  ;;  %v3368_v17 = vsel %vm15961_vm12, %v3366_v6, %v3367_v2  ;;  %v14318_v28 = vld [vmem:[#allocation3 + $0x98c] sm:$0xf]  ;;  %v9333_v59 = vadd.f32 %v16228_v15, %v16420_v4  ;;  %v14107_v35 = vld [vmem:[#allocation3 + $0x2f0] sm:$0xf0] }
 0x41c   : > { %v9419_v47 = vpop.f32.mrf.mxu3  ;;  %3441 = vst [vmem:[#allocation3 + $0xa54] sm:$0xf] %v3365_v45  ;;  %v11443_v15 = vrot.slane %v3202_v61, 9 }
 0x41d   : > { %v16471_v41 = vadd.f32 %v9419_v47, %v9331_v38  ;;  %v12693_v38 = vld [vmem:[#allocation3 + $0x9ec] sm:$0xf0]  ;;  %3442 = vst [vmem:[#allocation3 + $0xab8] sm:$0xf] %v3368_v17 }
 0x41e   : > { %3493 = vst [vmem:[#allocation3 + $0x8cc] sm:$0xf] %v3365_v45  ;;  %v12696_v2 = vor.u32 %v14318_v28, %v12693_v38  ;;  %v9336_v38 = vadd.f32 %v16250_v49, %v16440_v34  ;;  %v12499_v49 = vld [vmem:[#allocation3 + $0x800] sm:$0xf]  ;;  %v14281_v34 = vld [vmem:[#allocation3 + $0x860] sm:$0xf0] }
 0x41f   : > { %3494 = vst [vmem:[#allocation3 + $0x930] sm:$0xf] %v3368_v17  ;;  %v12500_v61 = vor.u32 %v14281_v34, %v12499_v49 }
 0x420   : > { %v9251_v27 = vpop.f32.mrf.mxu1  ;;  %3545 = vst [vmem:[#allocation3 + $0x748] sm:$0xf] %v3365_v45 }
 0x421   : > { %v16478_v40 = vadd.f32 %v9251_v27, %v16039_v26  ;;  %v16485_v10 = vpop.f32.mrf.mxu2  ;;  %v11807_v26 = vld [vmem:[#allocation3 + $0x290] sm:$0xf]  ;;  %3546 = vst [vmem:[#allocation3 + $0x7ac] sm:$0xf] %v3368_v17  ;;  %v3374_v27 = vrot.slane %v3204_v9, 5 }
 0x422   : > { %v9498_v44 = vpop.f32.mrf.mxu0  ;;  %v11808_v48 = vor.u32 %v14107_v35, %v11807_v26  ;;  %v14367_v26 = vld [vmem:[#allocation3 + $0xb14] sm:$0xf]  ;;  %v12885_v35 = vld [vmem:[#allocation3 + $0xb74] sm:$0xf0] }
 0x423   : > { %v16481_v47 = vadd.f32 %v9498_v44, %v16401_v21  ;;  %9290 = vmatmul.bf16.gmra.mxu1 %v12788_v43  ;;  %v3371_v21 = vrot.slane %v3203_v58, 5 }
 0x424   : > { %v9421_v23 = vpop.f32.mrf.mxu3 }
 0x425   : > { %9537 = vmatmul.bf16.gmra.mxu0 %v12400_v60  ;;  %v16487_v6 = vadd.f32 %v9421_v23, %v9333_v59  ;;  %v3373_v4 = vrot.slane %v3371_v21, 4  ;;  %v3372_v28 = vsel %vm15961_vm12, %v11443_v15, %v3371_v21  ;;  %v14548_v23 = vld [vmem:[%s18470_s1 + $0x438] sm:$0xff] }
 0x426   : > { %9685 = vmatmul.bf16.gmra.mxu2 %v11808_v48  ;;  %3443 = vst [vmem:[#allocation3 + $0xb1c] sm:$0xf] %v3372_v28  ;;  %9840 = vmatpush.bf16.msra.mxu0 %v14548_v23  ;;  %v12888_v48 = vor.u32 %v14367_v26, %v12885_v35  ;;  %v12793_v15 = vld [vmem:[#allocation3 + $0xab4] sm:$0xf0]  ;;  %v3206_v35 = vld [vmem:[#allocation2 + $0x108] sm:$0xf] }
 0x427   : > { %v3375_v45 = vsel %vm15961_vm12, %v3373_v4, %v3374_v27  ;;  %3495 = vst [vmem:[#allocation3 + $0x994] sm:$0xf] %v3372_v28  ;;  %v9338_v27 = vadd.f32 %v16266_v36, %v16458_v33  ;;  %v14556_v26 = vld [vmem:[%s18470_s1 + $0x478] sm:$0xff]  ;;  %v3378_v36 = vrot.slane %v3206_v35, 5  ;;  %v3205_v33 = vld [vmem:[#allocation2 + $0x104] sm:$0xe] }
 0x428   : > { %v9253_v43 = vpop.f32.mrf.mxu1  ;;  %3444 = vst [vmem:[#allocation3 + $0xb80] sm:$0xf] %v3375_v45  ;;  %9929 = vmatpush.bf16.msrb.mxu1 %v14556_v26  ;;  %v11444_v34 = vrot.slane %v3205_v33, 9  ;;  %v12599_v26 = vld [vmem:[#allocation3 + $0x8c8] sm:$0xf] }
 0x429   : > { %v16490_v44 = vadd.f32 %v9253_v43, %v16059_v39  ;;  %9463 = vmatmul.bf16.gmra.mxu3 %v12696_v2  ;;  %v16501_v59 = vpop.f32.mrf.mxu2  ;;  %v14564_v39 = vld [vmem:[%s18470_s1 + $0x4b8] sm:$0xff]  ;;  %3496 = vst [vmem:[#allocation3 + $0x9f8] sm:$0xf] %v3375_v45  ;;  %v14343_v43 = vld [vmem:[#allocation3 + $0xa54] sm:$0xf] }
 0x42a   : > { %v9500_v60 = vpop.f32.mrf.mxu0  ;;  %10018 = vmatpush.bf16.msra.mxu2 %v14564_v39  ;;  %3547 = vst [vmem:[#allocation3 + $0x810] sm:$0xf] %v3372_v28  ;;  %v11907_v28 = vld [vmem:[#allocation3 + $0x358] sm:$0xf]  ;;  %v14132_v39 = vld [vmem:[#allocation3 + $0x3b8] sm:$0xf0] }
 0x42b   : > { %v16497_v17 = vadd.f32 %v9500_v60, %v16417_v46  ;;  %3548 = vst [vmem:[#allocation3 + $0x874] sm:$0xf] %v3375_v45  ;;  %v11908_v23 = vor.u32 %v14132_v39, %v11907_v28  ;;  %v14392_v39 = vld [vmem:[#allocation3 + $0xbdc] sm:$0xf] }
 0x42c   : > { %v9424_v2 = vpop.f32.mrf.mxu3 }
 0x42d   : > { %v16509_v46 = vadd.f32 %v9424_v2, %v9336_v38  ;;  %v3207_v2 = vld [vmem:[#allocation2 + $0x10c] sm:$0x1]  ;;  %v14368_v33 = vld [vmem:[#allocation3 + $0xb1c] sm:$0xf] }
 0x430   : > { %v9256_v58 = vpop.f32.mrf.mxu1 }
 0x431   : > { %v16512_v21 = vadd.f32 %v9256_v58, %v16084_v5  ;;  %v16519_v60 = vpop.f32.mrf.mxu2  ;;  %v12796_v5 = vor.u32 %v14343_v43, %v12793_v15  ;;  %v3381_v58 = vrot.slane %v3207_v2, 5  ;;  %v3379_v43 = vsel %vm15961_vm12, %v11444_v34, %v3378_v36  ;;  %v12893_v2 = vld [vmem:[#allocation3 + $0xb7c] sm:$0xf0] }
 0x432   : > { %v9503_v9 = vpop.f32.mrf.mxu0  ;;  %3445 = vst [vmem:[#allocation3 + $0xbe4] sm:$0xf] %v3379_v43  ;;  %v9343_v34 = vadd.f32 %v16301_v19, %v16490_v44  ;;  %v14535_v19 = vld [vmem:[%s18470_s1 + $0x3d0] sm:$0xff] }
 0x433   : > { %v16515_v4 = vadd.f32 %v9503_v9, %v16433_v63  ;;  %9295 = vmatmul.bf16.gmra.mxu1 %v12888_v48  ;;  %v14536_v63 = vld [vmem:[%s18470_s1 + $0x3d8] sm:$0xff]  ;;  %v3380_v48 = vrot.slane %v3378_v36, 4  ;;  %3497 = vst [vmem:[#allocation3 + $0xa5c] sm:$0xf] %v3379_v43 }
 0x434   : > { %v9426_v38 = vpop.f32.mrf.mxu3  ;;  %9755 = vmatpush.bf16.msra.mxu3 %v14536_v63  ;;  %v14306_v63 = vld [vmem:[#allocation3 + $0x928] sm:$0xf0]  ;;  %3549 = vst [vmem:[#allocation3 + $0x8d8] sm:$0xf] %v3379_v43  ;;  %v14157_v43 = vld [vmem:[#allocation3 + $0x480] sm:$0xf0] }
 0x435   : > { %9542 = vmatmul.bf16.gmra.mxu0 %v12500_v61  ;;  %v16521_v45 = vadd.f32 %v9426_v38, %v9338_v27  ;;  %v3382_v15 = vsel %vm15961_vm12, %v3380_v48, %v3381_v58  ;;  %v9341_v38 = vadd.f32 %v16282_v57, %v16478_v40  ;;  %v12600_v57 = vor.u32 %v14306_v63, %v12599_v26  ;;  %v1337_v26 = vld [vmem:[#allocation2 + $0x118] sm:$0x7] }
 0x436   : > { %9690 = vmatmul.bf16.gmra.mxu2 %v11908_v23  ;;  %3446 = vst [vmem:[#allocation3 + $0xc48] sm:$0xf] %v3382_v15 }
 0x437   : > { %3498 = vst [vmem:[#allocation3 + $0xac0] sm:$0xf] %v3382_v15 }
 0x438   : > { %v9258_v49 = vpop.f32.mrf.mxu1  ;;  %3550 = vst [vmem:[#allocation3 + $0x93c] sm:$0xf] %v3382_v15  ;;  %9756 = vmatpush.bf16.msra.mxu3 %v14535_v19  ;;  %v14533_v19 = vld [vmem:[%s18470_s1 + $0x3c0] sm:$0xff] }
 0x439   : > { %v16530_v61 = vadd.f32 %v9258_v49, %v16103_v54  ;;  %9468 = vmatmul.bf16.gmra.mxu3 %v12796_v5  ;;  %v16541_v28 = vpop.f32.mrf.mxu2  ;;  %v12985_v54 = vld [vmem:[#allocation3 + $0xc3c] sm:$0xf0] }
 0x43a   : > { %v9505_v9 = vpop.f32.mrf.mxu0  ;;  %v12988_v35 = vor.u32 %v14392_v39, %v12985_v54  ;;  %v1336_v39 = vld [vmem:[#allocation2 + $0x114] sm:$0xf] }
 0x43b   : > { %v16537_v27 = vadd.f32 %v9505_v9, %v16449_v55  ;;  %v12007_v9 = vld [vmem:[#allocation3 + $0x420] sm:$0xf]  ;;  %v1582_v54 = vrot.slane %v1336_v39, 7  ;;  %v11501_v39 = vld [vmem:[#allocation3 + $0x94] sm:$0xf0] }
 0x43c   : > { %v9429_v23 = vpop.f32.mrf.mxu3 }
 0x43d   : > { %v16543_v5 = vadd.f32 %v9429_v23, %v9341_v38  ;;  %v12008_v38 = vor.u32 %v14157_v43, %v12007_v9  ;;  %v1335_v23 = vld [vmem:[#allocation2 + $0x110] sm:$0x8]  ;;  %v1584_v63 = vrot.slane %v1582_v54, 4  ;;  %v14534_v43 = vld [vmem:[%s18470_s1 + $0x3c8] sm:$0xff] }
 0x43e   : > { %v11407_v44 = vrot.slane %v1335_v23, 11  ;;  %v14331_v23 = vld [vmem:[#allocation3 + $0x9f0] sm:$0xf0]  ;;  %9757 = vmatpush.bf16.msra.mxu3 %v14534_v43  ;;  %v12107_v43 = vld [vmem:[#allocation3 + $0x4e8] sm:$0xf] }
 0x440   : > { %v9261_v55 = vpop.f32.mrf.mxu1 }
 0x441   : > { %v16546_v36 = vadd.f32 %v9261_v55, %v16119_v53  ;;  %v16553_v48 = vpop.f32.mrf.mxu2  ;;  %v12896_v53 = vor.u32 %v14368_v33, %v12893_v2  ;;  %v18543_v55 = vld [vmem:[#allocation15_spill] sm:$0xff]  ;;  %v1583_v33 = vsel %vm15880_vm9, %v11407_v44, %v1582_v54 }
 0x442   : > { %v9508_v40 = vpop.f32.mrf.mxu0  ;;  %1626 = vst [vmem:[#allocation3 + $0xb20] sm:$0xf] %v1583_v33  ;;  %9758 = vmatpush.bf16.msra.mxu3 %v14533_v19 }
 0x443   : > { %v16549_v49 = vadd.f32 %v9508_v40, %v16471_v41  ;;  %9300 = vmatmul.bf16.gmra.mxu1 %v12988_v35  ;;  %v1585_v35 = vrot.slane %v1337_v26, 7  ;;  %1678 = vst [vmem:[#allocation3 + $0x998] sm:$0xf] %v1583_v33 }
 0x444   : > { %v9431_v58 = vpop.f32.mrf.mxu3 }
 0x445   : > { %9547 = vmatmul.bf16.gmra.mxu0 %v12600_v57  ;;  %v16555_v15 = vadd.f32 %v9431_v58, %v9343_v34  ;;  %v1586_v2 = vsel %vm15880_vm9, %v1584_v63, %v1585_v35  ;;  %v9346_v58 = vadd.f32 %v16323_v18, %v16512_v21  ;;  %v12699_v21 = vld [vmem:[#allocation3 + $0x990] sm:$0xf] }
 0x446   : > { %9695 = vmatmul.bf16.gmra.mxu2 %v12008_v38  ;;  %v14547_v38 = vld [vmem:[%s18470_s1 + $0x430] sm:$0xff]  ;;  %1627 = vst [vmem:[#allocation3 + $0xb84] sm:$0xf] %v1586_v2  ;;  %v12700_v63 = vor.u32 %v14331_v23, %v12699_v21  ;;  %v1338_v23 = vld [vmem:[#allocation2 + $0x120] sm:$0x8] }
 0x447   : > { %9841 = vmatpush.bf16.msra.mxu0 %v14547_v38  ;;  %1679 = vst [vmem:[#allocation3 + $0x9fc] sm:$0xf] %v1586_v2  ;;  %v9348_v2 = vadd.f32 %v16339_v7, %v16530_v61  ;;  %v11408_v61 = vrot.slane %v1338_v23, 11 }
 0x448   : > { %v9263_v41 = vpop.f32.mrf.mxu1 }
 0x449   : > { %v16561_v40 = vadd.f32 %v9263_v41, %v18543_v55  ;;  %9473 = vmatmul.bf16.gmra.mxu3 %v12896_v53  ;;  %v16572_v9 = vpop.f32.mrf.mxu2  ;;  %v14563_v53 = vld [vmem:[%s18470_s1 + $0x4b0] sm:$0xff]  ;;  %v14393_v55 = vld [vmem:[#allocation3 + $0xbe4] sm:$0xf] }
 0x44a   : > { %v9510_v57 = vpop.f32.mrf.mxu0  ;;  %10019 = vmatpush.bf16.msra.mxu2 %v14563_v53  ;;  %v14182_v53 = vld [vmem:[#allocation3 + $0x548] sm:$0xf0] }
 0x44b   : > { %v16568_v34 = vadd.f32 %v9510_v57, %v16487_v6  ;;  %v14019_v6 = vld [vmem:[#allocation3 + $0x34] sm:$0xf]  ;;  %v12993_v57 = vld [vmem:[#allocation3 + $0xc44] sm:$0xf0] }
 0x44c   : > { %v9434_v54 = vpop.f32.mrf.mxu3  ;;  %v11504_v26 = vor.u32 %v14019_v6, %v11501_v39  ;;  %v12108_v6 = vor.u32 %v14182_v53, %v12107_v43  ;;  %v12996_v39 = vor.u32 %v14393_v55, %v12993_v57  ;;  %v9351_v43 = vadd.f32 %v16355_v22, %v16546_v36  ;;  %v14545_v36 = vld [vmem:[%s18470_s1 + $0x420] sm:$0xff] }
 0x44d   : > { %v16583_v18 = vadd.f32 %v9434_v54, %v9346_v58  ;;  %v14555_v54 = vld [vmem:[%s18470_s1 + $0x470] sm:$0xff] }
 0x44e   : > { %9930 = vmatpush.bf16.msrb.mxu1 %v14555_v54 }
 0x450   : > { %v9266_v41 = vpop.f32.mrf.mxu1 }
 0x451   : > { %v16589_v44 = vadd.f32 %v9266_v41, %v16154_v3  ;;  %v16596_v58 = vpop.f32.mrf.mxu2 }
 0x452   : > { %v9513_v35 = vpop.f32.mrf.mxu0 }
 0x453   : > { %v16592_v33 = vadd.f32 %v9513_v35, %v16509_v46  ;;  %9581 = vmatmul.bf16.vlgmr.msra.gmra.mxu1 %v11504_v26  ;;  %v1339_v46 = vld [vmem:[#allocation2 + $0x124] sm:$0xf]  ;;  %v1340_v26 = vld [vmem:[#allocation2 + $0x128] sm:$0x7] }
 0x454   : > { %v9436_v38 = vpop.f32.mrf.mxu3  ;;  %v1589_v21 = vrot.slane %v1339_v46, 7  ;;  %v1592_v19 = vrot.slane %v1340_v26, 7  ;;  %v14356_v46 = vld [vmem:[#allocation3 + $0xab8] sm:$0xf0] }
 0x455   : > { %9552 = vmatmul.bf16.gmra.mxu0 %v12700_v63  ;;  %v16598_v3 = vadd.f32 %v9436_v38, %v9348_v2  ;;  %v14044_v38 = vld [vmem:[#allocation3 + $0xfc] sm:$0xf] }
 0x456   : > { %9700 = vmatmul.bf16.gmra.mxu2 %v12108_v6  ;;  %v1591_v41 = vrot.slane %v1589_v21, 4  ;;  %v1590_v55 = vsel %vm15880_vm9, %v11408_v61, %v1589_v21  ;;  %v11601_v6 = vld [vmem:[#allocation3 + $0x15c] sm:$0xf0]  ;;  %v14020_v61 = vld [vmem:[#allocation3 + $0x3c] sm:$0xf] }
 0x457   : > { %1628 = vst [vmem:[#allocation3 + $0xbe8] sm:$0xf] %v1590_v55  ;;  %v11604_v21 = vor.u32 %v14044_v38, %v11601_v6 }
 0x458   : > { %v9268_v7 = vpop.f32.mrf.mxu1  ;;  %v1593_v57 = vsel %vm15880_vm9, %v1591_v41, %v1592_v19  ;;  %1680 = vst [vmem:[#allocation3 + $0xa60] sm:$0xf] %v1590_v55  ;;  %v11509_v41 = vld [vmem:[#allocation3 + $0x9c] sm:$0xf0] }
 0x459   : > { %v16604_v35 = vadd.f32 %v9268_v7, %v16173_v50  ;;  %9478 = vmatmul.bf16.gmra.mxu3 %v12996_v39  ;;  %v16615_v53 = vpop.f32.mrf.mxu2  ;;  %v14546_v50 = vld [vmem:[%s18470_s1 + $0x428] sm:$0xff]  ;;  %1629 = vst [vmem:[#allocation3 + $0xc4c] sm:$0xf] %v1593_v57 }
 0x45a   : > { %v9515_v63 = vpop.f32.mrf.mxu0  ;;  %9842 = vmatpush.bf16.msra.mxu0 %v14546_v50  ;;  %1681 = vst [vmem:[#allocation3 + $0xac4] sm:$0xf] %v1593_v57  ;;  %v12207_v57 = vld [vmem:[#allocation3 + $0x5b0] sm:$0xf] }
 0x45b   : > { %v16611_v2 = vadd.f32 %v9515_v63, %v16521_v45  ;;  %v12799_v45 = vld [vmem:[#allocation3 + $0xa58] sm:$0xf]  ;;  %v9353_v63 = vadd.f32 %v16377_v42, %v16561_v40  ;;  %v14543_v42 = vld [vmem:[%s18470_s1 + $0x410] sm:$0xff] }
 0x45c   : > { %v9439_v39 = vpop.f32.mrf.mxu3  ;;  %v12800_v26 = vor.u32 %v14356_v46, %v12799_v45 }
 0x45d   : > { %v16620_v54 = vadd.f32 %v9439_v39, %v9351_v43  ;;  %v14207_v43 = vld [vmem:[#allocation3 + $0x610] sm:$0xf0]  ;;  %v11512_v39 = vor.u32 %v14020_v61, %v11509_v41 }
 0x45e   : > { %9843 = vmatpush.bf16.msra.mxu0 %v14545_v36  ;;  %v12208_v38 = vor.u32 %v14207_v43, %v12207_v57  ;;  %v14542_v36 = vld [vmem:[%s18470_s1 + $0x408] sm:$0xff]  ;;  %v14541_v57 = vld [vmem:[%s18470_s1 + $0x400] sm:$0xff] }
 0x460   : > { %v9271_v22 = vpop.f32.mrf.mxu1 }
 0x461   : > { %v16626_v23 = vadd.f32 %v9271_v22, %v16189_v37  ;;  %v16633_v55 = vpop.f32.mrf.mxu2  ;;  %v14544_v37 = vld [vmem:[%s18470_s1 + $0x418] sm:$0xff] }
 0x462   : > { %v9518_v7 = vpop.f32.mrf.mxu0  ;;  %9844 = vmatpush.bf16.msra.mxu0 %v14544_v37  ;;  %v14045_v37 = vld [vmem:[#allocation3 + $0x104] sm:$0xf] }
 0x463   : > { %v16629_v19 = vadd.f32 %v9518_v7, %v16543_v5  ;;  %9586 = vmatmul.bf16.gmra.mxu1 %v11604_v21  ;;  %v9356_v21 = vadd.f32 %v16399_v14, %v16589_v44  ;;  %v11701_v7 = vld [vmem:[#allocation3 + $0x224] sm:$0xf0] }
 0x464   : > { %v9441_v50 = vpop.f32.mrf.mxu3 }
 0x465   : > { %9557 = vmatmul.bf16.gmra.mxu0 %v12800_v26  ;;  %v16638_v6 = vadd.f32 %v9441_v50, %v9353_v63  ;;  %v14069_v26 = vld [vmem:[#allocation3 + $0x1c4] sm:$0xf] }
 0x466   : > { %9705 = vmatmul.bf16.gmra.mxu2 %v12208_v38  ;;  %9845 = vmatpush.bf16.msra.mxu0 %v14543_v42  ;;  %v14381_v63 = vld [vmem:[#allocation3 + $0xb80] sm:$0xf0]  ;;  %v11704_v14 = vor.u32 %v14069_v26, %v11701_v7 }
 0x468   : > { %v9273_v5 = vpop.f32.mrf.mxu1 }
 0x469   : > { %v16644_v40 = vadd.f32 %v9273_v5, %v16205_v32  ;;  %9759 = vmatmul.bf16.vlgmr.msra.gmra.mxu3 %v11512_v39  ;;  %v16651_v22 = vpop.f32.mrf.mxu2  ;;  %v14562_v32 = vld [vmem:[%s18470_s1 + $0x4a8] sm:$0xff]  ;;  %v12307_v5 = vld [vmem:[#allocation3 + $0x678] sm:$0xf] }
 0x46a   : > { %v9520_v45 = vpop.f32.mrf.mxu0  ;;  %10020 = vmatpush.bf16.msra.mxu2 %v14562_v32  ;;  %9846 = vmatpush.bf16.msra.mxu0 %v14542_v36  ;;  %v11609_v39 = vld [vmem:[#allocation3 + $0x164] sm:$0xf0]  ;;  %v14232_v36 = vld [vmem:[#allocation3 + $0x6d8] sm:$0xf0] }
 0x46b   : > { %v16647_v46 = vadd.f32 %v9520_v45, %v16555_v15  ;;  %v12899_v15 = vld [vmem:[#allocation3 + $0xb20] sm:$0xf]  ;;  %v9358_v45 = vadd.f32 %v16415_v31, %v16604_v35  ;;  %v12308_v26 = vor.u32 %v14232_v36, %v12307_v5  ;;  %v11612_v7 = vor.u32 %v14045_v37, %v11609_v39  ;;  %v12999_v37 = vld [vmem:[#allocation3 + $0xbe8] sm:$0xf]  ;;  %v14406_v39 = vld [vmem:[#allocation3 + $0xc48] sm:$0xf0] }
 0x46c   : > { %v9444_v61 = vpop.f32.mrf.mxu3  ;;  %v12900_v50 = vor.u32 %v14381_v63, %v12899_v15  ;;  %v9361_v63 = vadd.f32 %v16431_v12, %v16626_v23  ;;  %v13000_v36 = vor.u32 %v14406_v39, %v12999_v37  ;;  %v9363_v23 = vadd.f32 %v16447_v13, %v16644_v40 }
 0x46d   : > { %v16659_v41 = vadd.f32 %v9444_v61, %v9356_v21  ;;  %v14554_v61 = vld [vmem:[%s18470_s1 + $0x468] sm:$0xff] }
 0x46e   : > { %9847 = vmatpush.bf16.msra.mxu0 %v14541_v57  ;;  %9931 = vmatpush.bf16.msrb.mxu1 %v14554_v61  ;;  %v11801_v57 = vld [vmem:[#allocation3 + $0x2ec] sm:$0xf0] }
 0x470   : > { %v9276_v44 = vpop.f32.mrf.mxu1 }
 0x471   : > { %v9277_v43 = vadd.f32 %v9276_v44, %v16224_v0  ;;  %v16670_v21 = vpop.f32.mrf.mxu2  ;;  %v14094_v44 = vld [vmem:[#allocation3 + $0x28c] sm:$0xf] }
 0x472   : > { %v9523_v38 = vpop.f32.mrf.mxu0  ;;  %v11804_v5 = vor.u32 %v14094_v44, %v11801_v57 }
 0x473   : > { %v16666_v42 = vadd.f32 %v9523_v38, %v16583_v18  ;;  %9591 = vmatmul.bf16.gmra.mxu1 %v11704_v14  ;;  %v9366_v13 = vadd.f32 %v16469_v24, %v9277_v43  ;;  %v14095_v43 = vld [vmem:[#allocation3 + $0x294] sm:$0xf] }
 0x474   : > { %v9446_v32 = vpop.f32.mrf.mxu3 }
 0x475   : > { %9562 = vmatmul.bf16.gmra.mxu0 %v12900_v50  ;;  %v16672_v0 = vadd.f32 %v9446_v32, %v9358_v45 }
 0x476   : > { %9710 = vmatmul.bf16.gmra.mxu2 %v12308_v26  ;;  %v11709_v26 = vld [vmem:[#allocation3 + $0x22c] sm:$0xf0] }
 0x478   : > { %v9278_v18 = vpop.f32.mrf.mxu1 }
 0x479   : > { %v9279_v15 = vadd.f32 %v9278_v18, %v16246_v8  ;;  %9764 = vmatmul.bf16.gmra.mxu3 %v11612_v7  ;;  %v16683_v14 = vpop.f32.mrf.mxu2  ;;  %v12407_v7 = vld [vmem:[#allocation3 + $0x740] sm:$0xf]  ;;  %v14257_v18 = vld [vmem:[#allocation3 + $0x7a0] sm:$0xf0] }
 0x47a   : > { %v9525_v31 = vpop.f32.mrf.mxu0 }
 0x47b   : > { %v16679_v35 = vadd.f32 %v9525_v31, %v16598_v3  ;;  %v14070_v3 = vld [vmem:[#allocation3 + $0x1cc] sm:$0xf] }
 0x47c   : > { %v9449_v50 = vpop.f32.mrf.mxu3 }
 0x47d   : > { %v16685_v38 = vadd.f32 %v9449_v50, %v9361_v63  ;;  %v12408_v63 = vor.u32 %v14257_v18, %v12407_v7  ;;  %v18544_v50 = vld [vmem:[#allocation12_spill] sm:$0xff] }
 0x47e   : > { %v14033_v7 = vld [vmem:[#allocation3 + $0xa0] sm:$0xf0] }
 0x480   : > { %v9281_v45 = vpop.f32.mrf.mxu1 }
 0x481   : > { %v9282_v8 = vadd.f32 %v9281_v45, %v16262_v16  ;;  %v16693_v61 = vpop.f32.mrf.mxu2  ;;  %v11712_v16 = vor.u32 %v14070_v3, %v11709_v26  ;;  %v14119_v45 = vld [vmem:[#allocation3 + $0x354] sm:$0xf]  ;;  %v11515_v26 = vld [vmem:[#allocation3 + $0x40] sm:$0xf] }
 0x482   : > { %v9528_v32 = vpop.f32.mrf.mxu0 }
 0x483   : > { %v16689_v12 = vadd.f32 %v9528_v32, %v16620_v54  ;;  %9596 = vmatmul.bf16.gmra.mxu1 %v11804_v5  ;;  %v14561_v5 = vld [vmem:[%s18470_s1 + $0x4a0] sm:$0xff] }
 0x484   : > { %v9451_v31 = vpop.f32.mrf.mxu3  ;;  %10021 = vmatpush.bf16.msra.mxu2 %v14561_v5 }
 0x485   : > { %9567 = vmatmul.bf16.gmra.mxu0 %v13000_v36  ;;  %v16695_v44 = vadd.f32 %v9451_v31, %v9363_v23  ;;  %v11901_v36 = vld [vmem:[#allocation3 + $0x3b4] sm:$0xf0]  ;;  %v11516_v31 = vor.u32 %v14033_v7, %v11515_v26  ;;  %v9371_v7 = vadd.f32 %v16501_v59, %v9282_v8 }
 0x486   : > { %9715 = vmatmul.bf16.gmra.mxu2 %v12408_v63  ;;  %v11904_v23 = vor.u32 %v14119_v45, %v11901_v36  ;;  %v11809_v63 = vld [vmem:[#allocation3 + $0x2f4] sm:$0xf0]  ;;  %v14553_v36 = vld [vmem:[%s18470_s1 + $0x460] sm:$0xff] }
 0x487   : > { %9932 = vmatpush.bf16.msrb.mxu1 %v14553_v36  ;;  %v12607_v36 = vld [vmem:[#allocation3 + $0x8d0] sm:$0xf] }
 0x488   : > { %v9283_v57 = vpop.f32.mrf.mxu1 }
 0x489   : > { %v9284_v37 = vadd.f32 %v9283_v57, %v18544_v50  ;;  %9769 = vmatmul.bf16.gmra.mxu3 %v11712_v16  ;;  %v16702_v40 = vpop.f32.mrf.mxu2  ;;  %v12507_v16 = vld [vmem:[#allocation3 + $0x808] sm:$0xf]  ;;  %v9368_v50 = vadd.f32 %v16485_v10, %v9279_v15 }
 0x48a   : > { %v9530_v54 = vpop.f32.mrf.mxu0 }
 0x48b   : > { %v16699_v39 = vadd.f32 %v9530_v54, %v16638_v6  ;;  %v9373_v8 = vadd.f32 %v16519_v60, %v9284_v37 }
 0x48c   : > { %v9454_v32 = vpop.f32.mrf.mxu3 }
 0x48d   : > { %v16707_v3 = vadd.f32 %v9454_v32, %v9366_v13  ;;  %v14282_v13 = vld [vmem:[#allocation3 + $0x868] sm:$0xf0] }
 0x48e   : > { %v12508_v32 = vor.u32 %v14282_v13, %v12507_v16  ;;  %v14058_v16 = vld [vmem:[#allocation3 + $0x168] sm:$0xf0] }
 0x490   : > { %v9286_v18 = vpop.f32.mrf.mxu1 }
 0x491   : > { %v9287_v6 = vadd.f32 %v9286_v18, %v16297_v62  ;;  %v16714_v54 = vpop.f32.mrf.mxu2  ;;  %v11812_v62 = vor.u32 %v14095_v43, %v11809_v63  ;;  %v14144_v18 = vld [vmem:[#allocation3 + $0x41c] sm:$0xf]  ;;  %v11615_v63 = vld [vmem:[#allocation3 + $0x108] sm:$0xf] }
 0x492   : > { %v9533_v24 = vpop.f32.mrf.mxu0 }
 0x493   : > { %v16711_v57 = vadd.f32 %v9533_v24, %v16659_v41  ;;  %9601 = vmatmul.bf16.gmra.mxu1 %v11904_v23  ;;  %v9376_v60 = vadd.f32 %v16541_v28, %v9287_v6 }
 0x494   : > { %v9456_v5 = vpop.f32.mrf.mxu3 }
 0x495   : > { %9848 = vmatmul.bf16.vlgmr.msra.gmra.mxu0 %v11516_v31  ;;  %v16716_v45 = vadd.f32 %v9456_v5, %v9368_v50  ;;  %v12001_v31 = vld [vmem:[#allocation3 + $0x47c] sm:$0xf0]  ;;  %v11616_v5 = vor.u32 %v14058_v16, %v11615_v63 }
 0x496   : > { %9720 = vmatmul.bf16.gmra.mxu2 %v12508_v32  ;;  %v12004_v50 = vor.u32 %v14144_v18, %v12001_v31 }
 0x498   : > { %v9288_v26 = vpop.f32.mrf.mxu1 }
 0x499   : > { %v9289_v41 = vadd.f32 %v9288_v26, %v16319_v11  ;;  %9774 = vmatmul.bf16.gmra.mxu3 %v11812_v62  ;;  %v16726_v23 = vpop.f32.mrf.mxu2  ;;  %v14120_v62 = vld [vmem:[#allocation3 + $0x35c] sm:$0xf] }
 0x49a   : > { %v9535_v10 = vpop.f32.mrf.mxu0 }
 0x49b   : > { %v16723_v15 = vadd.f32 %v9535_v10, %v16672_v0  ;;  %v11909_v0 = vld [vmem:[#allocation3 + $0x3bc] sm:$0xf0]  ;;  %v14307_v10 = vld [vmem:[#allocation3 + $0x930] sm:$0xf0] }
 0x49c   : > { %v9459_v24 = vpop.f32.mrf.mxu3 }
 0x49d   : > { %v16728_v43 = vadd.f32 %v9459_v24, %v9371_v7  ;;  %v12608_v24 = vor.u32 %v14307_v10, %v12607_v36  ;;  %v14145_v10 = vld [vmem:[#allocation3 + $0x424] sm:$0xf] }
 0x4a0   : > { %v9291_v13 = vpop.f32.mrf.mxu1 }
 0x4a1   : > { %v9292_v11 = vadd.f32 %v9291_v13, %v16335_v29  ;;  %v16735_v26 = vpop.f32.mrf.mxu2  ;;  %v11912_v29 = vor.u32 %v14120_v62, %v11909_v0  ;;  %v14169_v13 = vld [vmem:[#allocation3 + $0x4e4] sm:$0xf]  ;;  %v14083_v0 = vld [vmem:[#allocation3 + $0x230] sm:$0xf0] }
 0x4a2   : > { %v9538_v32 = vpop.f32.mrf.mxu0 }
 0x4a3   : > { %v16732_v59 = vadd.f32 %v9538_v32, %v16685_v38  ;;  %9606 = vmatmul.bf16.gmra.mxu1 %v12004_v50  ;;  %v14560_v50 = vld [vmem:[%s18470_s1 + $0x498] sm:$0xff] }
 0x4a4   : > { %v9461_v7 = vpop.f32.mrf.mxu3  ;;  %10022 = vmatpush.bf16.msra.mxu2 %v14560_v50 }
 0x4a5   : > { %9853 = vmatmul.bf16.gmra.mxu0 %v11616_v5  ;;  %v16737_v18 = vadd.f32 %v9461_v7, %v9373_v8  ;;  %v12101_v5 = vld [vmem:[#allocation3 + $0x544] sm:$0xf0] }
 0x4a6   : > { %9725 = vmatmul.bf16.gmra.mxu2 %v12608_v24  ;;  %v12104_v36 = vor.u32 %v14169_v13, %v12101_v5  ;;  %v12009_v7 = vld [vmem:[#allocation3 + $0x484] sm:$0xf0]  ;;  %v12707_v24 = vld [vmem:[#allocation3 + $0x998] sm:$0xf] }
 0x4a8   : > { %v9293_v31 = vpop.f32.mrf.mxu1 }
 0x4a9   : > { %v9294_v63 = vadd.f32 %v9293_v31, %v16351_v20  ;;  %9779 = vmatmul.bf16.gmra.mxu3 %v11912_v29  ;;  %v16744_v37 = vpop.f32.mrf.mxu2  ;;  %v11715_v20 = vld [vmem:[#allocation3 + $0x1d0] sm:$0xf]  ;;  %v9378_v31 = vadd.f32 %v16553_v48, %v9289_v41  ;;  %v18547_v41 = vld [vmem:[#allocation20_spill] sm:$0xff] }
 0x4aa   : > { %v9540_v16 = vpop.f32.mrf.mxu0  ;;  %v11716_v28 = vor.u32 %v14083_v0, %v11715_v20 }
 0x4ab   : > { %v16741_v38 = vadd.f32 %v9540_v16, %v16695_v44 }
 0x4ac   : > { %v9464_v32 = vpop.f32.mrf.mxu3 }
 0x4ad   : > { %18545 = vst [vmem:[#allocation14_spill] sm:$0xff] %v16741_v38  ;;  %v16749_v62 = vadd.f32 %v9464_v32, %v9376_v60  ;;  %v14332_v60 = vld [vmem:[#allocation3 + $0x9f8] sm:$0xf0] }
 0x4ae   : > { %v12708_v13 = vor.u32 %v14332_v60, %v12707_v24  ;;  %v14552_v32 = vld [vmem:[%s18470_s1 + $0x458] sm:$0xff] }
 0x4af   : > { %9933 = vmatpush.bf16.msrb.mxu1 %v14552_v32  ;;  %v14108_v60 = vld [vmem:[#allocation3 + $0x2f8] sm:$0xf0]  ;;  %v18549_v32 = vld [vmem:[#allocation17_spill] sm:$0xff] }
 0x4b0   : > { %v9296_v8 = vpop.f32.mrf.mxu1 }
 0x4b1   : > { %v16752_v44 = vadd.f32 %v9296_v8, %v16373_v56  ;;  %v16758_v16 = vpop.f32.mrf.mxu2  ;;  %v12012_v56 = vor.u32 %v14145_v10, %v12009_v7  ;;  %v9381_v8 = vadd.f32 %v16572_v9, %v9292_v11  ;;  %v12201_v10 = vld [vmem:[#allocation3 + $0x60c] sm:$0xf0]  ;;  %v9383_v11 = vadd.f32 %v16596_v58, %v9294_v63 }
 0x4b2   : > { %v9543_v6 = vpop.f32.mrf.mxu0 }
 0x4b3   : > { %v16755_v29 = vadd.f32 %v9543_v6, %v16707_v3  ;;  %9611 = vmatmul.bf16.gmra.mxu1 %v12104_v36  ;;  %v14572_v3 = vld [vmem:[%s18470_s1 + $0x4f8] sm:$0xff]  ;;  %v14194_v6 = vld [vmem:[#allocation3 + $0x5ac] sm:$0xf] }
 0x4b4   : > { %v9466_v50 = vpop.f32.mrf.mxu3  ;;  %10107 = vmatpush.bf16.msrb.mxu3 %v14572_v3 }
 0x4b5   : > { %18546 = vst [vmem:[#allocation18_spill] sm:$0xff] %v16755_v29  ;;  %9858 = vmatmul.bf16.gmra.mxu0 %v11716_v28  ;;  %v16760_v5 = vadd.f32 %v9466_v50, %v9378_v31  ;;  %v11815_v31 = vld [vmem:[#allocation3 + $0x298] sm:$0xf]  ;;  %v12204_v50 = vor.u32 %v14194_v6, %v12201_v10 }
 0x4b6   : > { %9730 = vmatmul.bf16.gmra.mxu2 %v12708_v13  ;;  %v1343_v29 = vld [vmem:[#allocation2 + $0x138] sm:$0x7] }
 0x4b8   : > { %v9298_v48 = vpop.f32.mrf.mxu1 }
 0x4b9   : > { %v16769_v20 = vadd.f32 %v9298_v48, %v18547_v41  ;;  %9784 = vmatmul.bf16.gmra.mxu3 %v12012_v56  ;;  %v16775_v28 = vpop.f32.mrf.mxu2  ;;  %v11816_v56 = vor.u32 %v14108_v60, %v11815_v31  ;;  %v12109_v41 = vld [vmem:[#allocation3 + $0x54c] sm:$0xf0]  ;;  %v1342_v31 = vld [vmem:[#allocation2 + $0x134] sm:$0xf] }
 0x4ba   : > { %v9545_v0 = vpop.f32.mrf.mxu0  ;;  %v1638_v60 = vrot.slane %v1342_v31, 7 }
 0x4bb   : > { %v16772_v36 = vadd.f32 %v9545_v0, %v16716_v45  ;;  %v14170_v45 = vld [vmem:[#allocation3 + $0x4ec] sm:$0xf]  ;;  %v12807_v0 = vld [vmem:[#allocation3 + $0xa60] sm:$0xf] }
 0x4bc   : > { %v9469_v7 = vpop.f32.mrf.mxu3 }
 0x4bd   : > { %18548 = vst [vmem:[#allocation16_spill] sm:$0xff] %v16772_v36  ;;  %v16777_v24 = vadd.f32 %v9469_v7, %v9381_v8  ;;  %v14357_v7 = vld [vmem:[#allocation3 + $0xac0] sm:$0xf0] }
 0x4be   : > { %v12808_v6 = vor.u32 %v14357_v7, %v12807_v0 }
 0x4c0   : > { %v9301_v13 = vpop.f32.mrf.mxu1 }
 0x4c1   : > { %v16780_v3 = vadd.f32 %v9301_v13, %v18549_v32  ;;  %v16786_v8 = vpop.f32.mrf.mxu2  ;;  %v12112_v13 = vor.u32 %v14170_v45, %v12109_v41  ;;  %v1341_v32 = vld [vmem:[#allocation2 + $0x130] sm:$0x8]  ;;  %v9386_v41 = vadd.f32 %v16615_v53, %v16752_v44 }
 0x4c2   : > { %v9548_v48 = vpop.f32.mrf.mxu0 }
 0x4c3   : > { %v16783_v9 = vadd.f32 %v9548_v48, %v16728_v43  ;;  %9616 = vmatmul.bf16.gmra.mxu1 %v12204_v50  ;;  %v11409_v43 = vrot.slane %v1341_v32, 11  ;;  %v1640_v48 = vrot.slane %v1638_v60, 4  ;;  %v1641_v50 = vrot.slane %v1343_v29, 7  ;;  %v12301_v29 = vld [vmem:[#allocation3 + $0x6d4] sm:$0xf0] }
 0x4c4   : > { %v9471_v36 = vpop.f32.mrf.mxu3  ;;  %v14195_v32 = vld [vmem:[#allocation3 + $0x5b4] sm:$0xf] }
 0x4c5   : > { %9863 = vmatmul.bf16.gmra.mxu0 %v11816_v56  ;;  %v16788_v10 = vadd.f32 %v9471_v36, %v9383_v11  ;;  %v1639_v56 = vsel %vm15880_vm9, %v11409_v43, %v1638_v60  ;;  %v1642_v36 = vsel %vm15880_vm9, %v1640_v48, %v1641_v50  ;;  %v12209_v43 = vld [vmem:[#allocation3 + $0x614] sm:$0xf0] }
 0x4c6   : > { %9735 = vmatmul.bf16.gmra.mxu2 %v12808_v6  ;;  %1682 = vst [vmem:[#allocation3 + $0xb28] sm:$0xf] %v1639_v56  ;;  %v11915_v6 = vld [vmem:[#allocation3 + $0x360] sm:$0xf] }
 0x4c7   : > { %1683 = vst [vmem:[#allocation3 + $0xb8c] sm:$0xf] %v1642_v36 }
 0x4c8   : > { %v9303_v38 = vpop.f32.mrf.mxu1 }
 0x4c9   : > { %v16791_v58 = vadd.f32 %v9303_v38, %v16427_v1  ;;  %9789 = vmatmul.bf16.gmra.mxu3 %v12112_v13  ;;  %v16802_v0 = vpop.f32.mrf.mxu2  ;;  %v14559_v1 = vld [vmem:[%s18470_s1 + $0x490] sm:$0xff] }
 0x4ca   : > { %v9550_v63 = vpop.f32.mrf.mxu0  ;;  %v14219_v38 = vld [vmem:[#allocation3 + $0x674] sm:$0xf]  ;;  %10023 = vmatpush.bf16.msra.mxu2 %v14559_v1 }
 0x4cb   : > { %v16798_v45 = vadd.f32 %v9550_v63, %v16737_v18  ;;  %v14133_v18 = vld [vmem:[#allocation3 + $0x3c0] sm:$0xf0]  ;;  %v12304_v13 = vor.u32 %v14219_v38, %v12301_v29  ;;  %v9388_v63 = vadd.f32 %v16633_v55, %v16769_v20  ;;  %v12212_v38 = vor.u32 %v14195_v32, %v12209_v43  ;;  %v14551_v29 = vld [vmem:[%s18470_s1 + $0x450] sm:$0xff]  ;;  %v1344_v55 = vld [vmem:[#allocation2 + $0x140] sm:$0x8] }
 0x4cc   : > { %v9474_v11 = vpop.f32.mrf.mxu3  ;;  %v11916_v44 = vor.u32 %v14133_v18, %v11915_v6  ;;  %9934 = vmatpush.bf16.msrb.mxu1 %v14551_v29  ;;  %v1346_v20 = vld [vmem:[#allocation2 + $0x148] sm:$0x7] }
 0x4cd   : > { %v16807_v7 = vadd.f32 %v9474_v11, %v9386_v41  ;;  %v12907_v48 = vld [vmem:[#allocation3 + $0xb28] sm:$0xf]  ;;  %v1345_v11 = vld [vmem:[#allocation2 + $0x144] sm:$0xf] }
 0x4ce   : > { %v14382_v36 = vld [vmem:[#allocation3 + $0xb88] sm:$0xf0]  ;;  %v1645_v6 = vrot.slane %v1345_v11, 7 }
 0x4cf   : > { %v12908_v1 = vor.u32 %v14382_v36, %v12907_v48  ;;  %v9391_v36 = vadd.f32 %v16651_v22, %v16780_v3  ;;  %v14158_v11 = vld [vmem:[#allocation3 + $0x488] sm:$0xf0]  ;;  %v12309_v22 = vld [vmem:[#allocation3 + $0x6dc] sm:$0xf0] }
 0x4d0   : > { %v9582_v31 = vpop.f32.mrf.mxu1 }
 0x4d1   : > { %v16810_v53 = vadd.f32 %v9582_v31, %v16443_v30  ;;  %v16817_v56 = vpop.f32.mrf.mxu2  ;;  %v1647_v31 = vrot.slane %v1645_v6, 4 }
 0x4d2   : > { %v9553_v60 = vpop.f32.mrf.mxu0 }
 0x4d3   : > { %v16813_v50 = vadd.f32 %v9553_v60, %v16749_v62  ;;  %9621 = vmatmul.bf16.gmra.mxu1 %v12304_v13  ;;  %v14571_v62 = vld [vmem:[%s18470_s1 + $0x4f0] sm:$0xff]  ;;  %v11410_v13 = vrot.slane %v1344_v55, 11 }
 0x4d4   : > { %v9476_v41 = vpop.f32.mrf.mxu3  ;;  %10108 = vmatpush.bf16.msrb.mxu3 %v14571_v62  ;;  %v12015_v62 = vld [vmem:[#allocation3 + $0x428] sm:$0xf] }
 0x4d5   : > { %9868 = vmatmul.bf16.gmra.mxu0 %v11916_v44  ;;  %v16819_v30 = vadd.f32 %v9476_v41, %v9388_v63  ;;  %v1648_v44 = vrot.slane %v1346_v20, 7  ;;  %v1646_v43 = vsel %vm15880_vm9, %v11410_v13, %v1645_v6 }
 0x4d6   : > { %9740 = vmatmul.bf16.gmra.mxu2 %v12908_v1  ;;  %1684 = vst [vmem:[#allocation3 + $0xbf0] sm:$0xf] %v1646_v43  ;;  %v14244_v1 = vld [vmem:[#allocation3 + $0x73c] sm:$0xf] }
 0x4d7   : > { %v1649_v48 = vsel %vm15880_vm9, %v1647_v31, %v1648_v44  ;;  %v9393_v31 = vadd.f32 %v16670_v21, %v16791_v58  ;;  %v9672_v58 = vadd.f32 %v16683_v14, %v16810_v53  ;;  %v14557_v14 = vld [vmem:[%s18470_s1 + $0x480] sm:$0xff] }
 0x4d8   : > { %v9584_v18 = vpop.f32.mrf.mxu1  ;;  %1685 = vst [vmem:[#allocation3 + $0xc54] sm:$0xf] %v1649_v48 }
 0x4d9   : > { %v16828_v60 = vadd.f32 %v9584_v18, %v16465_v25  ;;  %9794 = vmatmul.bf16.gmra.mxu3 %v12212_v38  ;;  %v16839_v41 = vpop.f32.mrf.mxu2  ;;  %v12401_v25 = vld [vmem:[#allocation3 + $0x79c] sm:$0xf0]  ;;  %v14220_v18 = vld [vmem:[#allocation3 + $0x67c] sm:$0xf] }
 0x4da   : > { %v9555_v32 = vpop.f32.mrf.mxu0  ;;  %v12404_v6 = vor.u32 %v14244_v1, %v12401_v25 }
 0x4db   : > { %v16835_v63 = vadd.f32 %v9555_v32, %v16760_v5  ;;  %v12016_v5 = vor.u32 %v14158_v11, %v12015_v62  ;;  %v2272_v62 = vld [vmem:[#allocation2 + $0x8] sm:$0xf] }
 0x4dc   : > { %v9479_v29 = vpop.f32.mrf.mxu3  ;;  %2476 = vst [vmem:[#allocation3 + $0xac] sm:$0xf] %v2272_v62 }
 0x4dd   : > { %v16841_v38 = vadd.f32 %v9479_v29, %v9391_v36  ;;  %v13007_v3 = vld [vmem:[#allocation3 + $0xbf0] sm:$0xf]  ;;  %v12312_v36 = vor.u32 %v14220_v18, %v12309_v22  ;;  %v2271_v29 = vld [vmem:[#allocation2 + $0x4] sm:$0xf] }
 0x4de   : > { %2475 = vst [vmem:[#allocation3 + $0x48] sm:$0xf] %v2271_v29  ;;  %v12115_v18 = vld [vmem:[#allocation3 + $0x4f0] sm:$0xf] }
 0x4df   : > { %v14407_v32 = vld [vmem:[#allocation3 + $0xc50] sm:$0xf0] }
 0x4e0   : > { %v9587_v52 = vpop.f32.mrf.mxu1  ;;  %v13008_v48 = vor.u32 %v14407_v32, %v13007_v3 }
 0x4e1   : > { %v16844_v55 = vadd.f32 %v9587_v52, %v16481_v47  ;;  %v16851_v44 = vpop.f32.mrf.mxu2  ;;  %v14269_v52 = vld [vmem:[#allocation3 + $0x804] sm:$0xf] }
 0x4e2   : > { %v9558_v20 = vpop.f32.mrf.mxu0 }
 0x4e3   : > { %v16847_v13 = vadd.f32 %v9558_v20, %v16777_v24  ;;  %9626 = vmatmul.bf16.gmra.mxu1 %v12404_v6  ;;  %v14558_v6 = vld [vmem:[%s18470_s1 + $0x488] sm:$0xff] }
 0x4e4   : > { %v9481_v43 = vpop.f32.mrf.mxu3  ;;  %10024 = vmatpush.bf16.msra.mxu2 %v14558_v6 }
 0x4e5   : > { %9873 = vmatmul.bf16.gmra.mxu0 %v12016_v5  ;;  %v16853_v47 = vadd.f32 %v9481_v43, %v9393_v31  ;;  %v14245_v43 = vld [vmem:[#allocation3 + $0x744] sm:$0xf]  ;;  %v11523_v62 = vld [vmem:[#allocation3 + $0x48] sm:$0xf] }
 0x4e6   : > { %9745 = vmatmul.bf16.gmra.mxu2 %v13008_v48  ;;  %v12409_v48 = vld [vmem:[#allocation3 + $0x7a4] sm:$0xf0] }
 0x4e7   : > { %v12412_v6 = vor.u32 %v14245_v43, %v12409_v48  ;;  %v12215_v43 = vld [vmem:[#allocation3 + $0x5b8] sm:$0xf]  ;;  %v14208_v48 = vld [vmem:[#allocation3 + $0x618] sm:$0xf0] }
 0x4e8   : > { %v9589_v1 = vpop.f32.mrf.mxu1  ;;  %10025 = vmatpush.bf16.msra.mxu2 %v14557_v14  ;;  %v12601_v14 = vld [vmem:[#allocation3 + $0x92c] sm:$0xf0] }
 0x4e9   : > { %v16856_v25 = vadd.f32 %v9589_v1, %v16497_v17  ;;  %9799 = vmatmul.bf16.gmra.mxu3 %v12312_v36  ;;  %v16863_v11 = vpop.f32.mrf.mxu2  ;;  %v12501_v17 = vld [vmem:[#allocation3 + $0x864] sm:$0xf0]  ;;  %v9674_v1 = vadd.f32 %v16693_v61, %v16828_v60 }
 0x4ea   : > { %v9560_v24 = vpop.f32.mrf.mxu0  ;;  %v12504_v22 = vor.u32 %v14269_v52, %v12501_v17  ;;  %v14550_v52 = vld [vmem:[%s18470_s1 + $0x448] sm:$0xff] }
 0x4eb   : > { %v16859_v21 = vadd.f32 %v9560_v24, %v16788_v10  ;;  %v14183_v10 = vld [vmem:[#allocation3 + $0x550] sm:$0xf0]  ;;  %9935 = vmatpush.bf16.msrb.mxu1 %v14550_v52 }
 0x4ec   : > { %v9760_v5 = vpop.f32.mrf.mxu3  ;;  %v12116_v31 = vor.u32 %v14183_v10, %v12115_v18  ;;  %v9677_v10 = vadd.f32 %v16702_v40, %v16844_v55  ;;  %v9679_v55 = vadd.f32 %v16714_v54, %v16856_v25 }
 0x4ed   : > { %v16868_v20 = vadd.f32 %v9760_v5, %v9672_v58  ;;  %v14034_v58 = vld [vmem:[#allocation3 + $0xa8] sm:$0xf0] }
 0x4ee   : > { %v11524_v17 = vor.u32 %v14034_v58, %v11523_v62  ;;  %v12216_v62 = vor.u32 %v14208_v48, %v12215_v43  ;;  %v14270_v58 = vld [vmem:[#allocation3 + $0x80c] sm:$0xf]  ;;  %v3210_v43 = vld [vmem:[#allocation2 + $0x11c] sm:$0x1] }
 0x4f0   : > { %v9592_v3 = vpop.f32.mrf.mxu1 }
 0x4f1   : > { %v16874_v53 = vadd.f32 %v9592_v3, %v16515_v4  ;;  %v16881_v24 = vpop.f32.mrf.mxu2  ;;  %v14294_v3 = vld [vmem:[#allocation3 + $0x8cc] sm:$0xf] }
 0x4f2   : > { %v9563_v32 = vpop.f32.mrf.mxu0 }
 0x4f3   : > { %v16877_v36 = vadd.f32 %v9563_v32, %v16807_v7  ;;  %9631 = vmatmul.bf16.gmra.mxu1 %v12504_v22  ;;  %v14570_v7 = vld [vmem:[%s18470_s1 + $0x4e8] sm:$0xff] }
 0x4f4   : > { %v9762_v29 = vpop.f32.mrf.mxu3  ;;  %10109 = vmatpush.bf16.msrb.mxu3 %v14570_v7  ;;  %v11623_v7 = vld [vmem:[#allocation3 + $0x110] sm:$0xf] }
 0x4f5   : > { %9878 = vmatmul.bf16.gmra.mxu0 %v12116_v31  ;;  %v16883_v4 = vadd.f32 %v9762_v29, %v9674_v1  ;;  %v12604_v1 = vor.u32 %v14294_v3, %v12601_v14  ;;  %v3209_v3 = vld [vmem:[#allocation2 + $0x118] sm:$0xf] }
 0x4f6   : > { %10026 = vmatmul.bf16.vlgmr.msra.gmra.mxu2 %v11524_v17  ;;  %v3455_v14 = vrot.slane %v3209_v3, 5 }
 0x4f8   : > { %v9594_v61 = vpop.f32.mrf.mxu1 }
 0x4f9   : > { %v16892_v60 = vadd.f32 %v9594_v61, %v16537_v27  ;;  %9804 = vmatmul.bf16.gmra.mxu3 %v12412_v6  ;;  %v16899_v22 = vpop.f32.mrf.mxu2  ;;  %v12509_v6 = vld [vmem:[#allocation3 + $0x86c] sm:$0xf0]  ;;  %v14059_v61 = vld [vmem:[#allocation3 + $0x170] sm:$0xf0] }
 0x4fa   : > { %v9565_v5 = vpop.f32.mrf.mxu0 }
 0x4fb   : > { %v16895_v18 = vadd.f32 %v9565_v5, %v16819_v30 }
 0x4fc   : > { %v9765_v31 = vpop.f32.mrf.mxu3 }
 0x4fd   : > { %v16901_v32 = vadd.f32 %v9765_v31, %v9677_v10  ;;  %v11624_v10 = vor.u32 %v14059_v61, %v11623_v7  ;;  %v3208_v31 = vld [vmem:[#allocation2 + $0x114] sm:$0xe] }
 0x4fe   : > { %v11445_v48 = vrot.slane %v3208_v31, 9 }
 0x500   : > { %v9597_v27 = vpop.f32.mrf.mxu1 }
 0x501   : > { %v16904_v29 = vadd.f32 %v9597_v27, %v16549_v49  ;;  %v16911_v52 = vpop.f32.mrf.mxu2  ;;  %v12512_v49 = vor.u32 %v14270_v58, %v12509_v6  ;;  %v3458_v27 = vrot.slane %v3210_v43, 5  ;;  %v9682_v6 = vadd.f32 %v16726_v23, %v16874_v53  ;;  %v14295_v53 = vld [vmem:[#allocation3 + $0x8d4] sm:$0xf]  ;;  %v12609_v43 = vld [vmem:[#allocation3 + $0x934] sm:$0xf0] }
 0x502   : > { %v9568_v30 = vpop.f32.mrf.mxu0 }
 0x503   : > { %v16907_v40 = vadd.f32 %v9568_v30, %v16841_v38  ;;  %9636 = vmatmul.bf16.gmra.mxu1 %v12604_v1  ;;  %v3457_v1 = vrot.slane %v3455_v14, 4 }
 0x504   : > { %v9767_v17 = vpop.f32.mrf.mxu3 }
 0x505   : > { %9883 = vmatmul.bf16.gmra.mxu0 %v12216_v62  ;;  %v16913_v5 = vadd.f32 %v9767_v17, %v9679_v55  ;;  %v3456_v62 = vsel %vm15961_vm12, %v11445_v48, %v3455_v14  ;;  %v3459_v30 = vsel %vm15961_vm12, %v3457_v1, %v3458_v27  ;;  %v14319_v17 = vld [vmem:[#allocation3 + $0x994] sm:$0xf]  ;;  %v9684_v48 = vadd.f32 %v16735_v26, %v16892_v60  ;;  %v3211_v60 = vld [vmem:[#allocation2 + $0x124] sm:$0xe] }
 0x506   : > { %10031 = vmatmul.bf16.gmra.mxu2 %v11624_v10  ;;  %3499 = vst [vmem:[#allocation3 + $0xb24] sm:$0xf] %v3456_v62  ;;  %v14233_v10 = vld [vmem:[#allocation3 + $0x6e0] sm:$0xf0] }
 0x507   : > { %3500 = vst [vmem:[#allocation3 + $0xb88] sm:$0xf] %v3459_v30 }
 0x508   : > { %v9599_v38 = vpop.f32.mrf.mxu1  ;;  %3551 = vst [vmem:[#allocation3 + $0x9a0] sm:$0xf] %v3456_v62  ;;  %v14084_v62 = vld [vmem:[#allocation3 + $0x238] sm:$0xf0] }
 0x509   : > { %v16916_v54 = vadd.f32 %v9599_v38, %v16568_v34  ;;  %9809 = vmatmul.bf16.gmra.mxu3 %v12512_v49  ;;  %v16927_v55 = vpop.f32.mrf.mxu2  ;;  %v12701_v34 = vld [vmem:[#allocation3 + $0x9f4] sm:$0xf0]  ;;  %v12315_v49 = vld [vmem:[#allocation3 + $0x680] sm:$0xf]  ;;  %3552 = vst [vmem:[#allocation3 + $0xa04] sm:$0xf] %v3459_v30 }
 0x50a   : > { %v9570_v25 = vpop.f32.mrf.mxu0  ;;  %v12704_v3 = vor.u32 %v14319_v17, %v12701_v34  ;;  %v12316_v31 = vor.u32 %v14233_v10, %v12315_v49  ;;  %v3212_v34 = vld [vmem:[#allocation2 + $0x128] sm:$0xf]  ;;  %v11446_v10 = vrot.slane %v3211_v60, 9 }
 0x50b   : > { %v16923_v58 = vadd.f32 %v9570_v25, %v16853_v47  ;;  %v11723_v25 = vld [vmem:[#allocation3 + $0x1d8] sm:$0xf]  ;;  %v3462_v26 = vrot.slane %v3212_v34, 5 }
 0x50c   : > { %v9770_v7 = vpop.f32.mrf.mxu3  ;;  %v11724_v17 = vor.u32 %v14084_v62, %v11723_v25  ;;  %v14344_v62 = vld [vmem:[#allocation3 + $0xa5c] sm:$0xf] }
 0x50d   : > { %18550 = vst [vmem:[#allocation19_spill] sm:$0xff] %v16923_v58  ;;  %v16929_v61 = vadd.f32 %v9770_v7, %v9682_v6  ;;  %v14549_v6 = vld [vmem:[%s18470_s1 + $0x440] sm:$0xff]  ;;  %v3213_v7 = vld [vmem:[#allocation2 + $0x12c] sm:$0x1] }
 0x50e   : > { %9936 = vmatpush.bf16.msrb.mxu1 %v14549_v6 }
 0x510   : > { %v9602_v14 = vpop.f32.mrf.mxu1 }
 0x511   : > { %v16932_v47 = vadd.f32 %v9602_v14, %v16592_v33  ;;  %v16939_v1 = vpop.f32.mrf.mxu2  ;;  %v12612_v33 = vor.u32 %v14295_v53, %v12609_v43  ;;  %v3465_v14 = vrot.slane %v3213_v7, 5  ;;  %v3463_v53 = vsel %vm15961_vm12, %v11446_v10, %v3462_v26 }
 0x512   : > { %v9849_v23 = vpop.f32.mrf.mxu0  ;;  %3501 = vst [vmem:[#allocation3 + $0xbec] sm:$0xf] %v3463_v53 }
 0x513   : > { %v16935_v38 = vadd.f32 %v9849_v23, %v16868_v20  ;;  %9641 = vmatmul.bf16.gmra.mxu1 %v12704_v3  ;;  %v14569_v20 = vld [vmem:[%s18470_s1 + $0x4e0] sm:$0xff]  ;;  %v3464_v3 = vrot.slane %v3462_v26, 4  ;;  %3553 = vst [vmem:[#allocation3 + $0xa68] sm:$0xf] %v3463_v53 }
 0x514   : > { %v9772_v27 = vpop.f32.mrf.mxu3  ;;  %10110 = vmatpush.bf16.msrb.mxu3 %v14569_v20  ;;  %v14258_v20 = vld [vmem:[#allocation3 + $0x7a8] sm:$0xf0] }
 0x515   : > { %18551 = vst [vmem:[#allocation4_spill] sm:$0xff] %v16935_v38  ;;  %9888 = vmatmul.bf16.gmra.mxu0 %v12316_v31  ;;  %v16941_v30 = vadd.f32 %v9772_v27, %v9684_v48  ;;  %v3466_v43 = vsel %vm15961_vm12, %v3464_v3, %v3465_v14  ;;  %v9687_v27 = vadd.f32 %v16744_v37, %v16904_v29  ;;  %v14320_v37 = vld [vmem:[#allocation3 + $0x99c] sm:$0xf]  ;;  %v12709_v29 = vld [vmem:[#allocation3 + $0x9fc] sm:$0xf0] }
 0x516   : > { %10036 = vmatmul.bf16.gmra.mxu2 %v11724_v17  ;;  %3502 = vst [vmem:[#allocation3 + $0xc50] sm:$0xf] %v3466_v43  ;;  %v12415_v17 = vld [vmem:[#allocation3 + $0x748] sm:$0xf]  ;;  %v9689_v3 = vadd.f32 %v16758_v16, %v16916_v54 }
 0x517   : > { %3554 = vst [vmem:[#allocation3 + $0xacc] sm:$0xf] %v3466_v43  ;;  %v12416_v60 = vor.u32 %v14258_v20, %v12415_v17  ;;  %v12712_v43 = vor.u32 %v14320_v37, %v12709_v29 }
 0x518   : > { %v9604_v49 = vpop.f32.mrf.mxu1 }
 0x519   : > { %v16950_v31 = vadd.f32 %v9604_v49, %v16611_v2  ;;  %9814 = vmatmul.bf16.gmra.mxu3 %v12612_v33  ;;  %v16961_v25 = vpop.f32.mrf.mxu2  ;;  %v12801_v2 = vld [vmem:[#allocation3 + $0xabc] sm:$0xf0] }
 0x51a   : > { %v9851_v23 = vpop.f32.mrf.mxu0  ;;  %v12804_v34 = vor.u32 %v14344_v62, %v12801_v2  ;;  %v462_v49 = vld [vmem:[#allocation2] sm:$0xc]  ;;  %v464_v62 = vld [vmem:[#allocation2 + $0x8] sm:$0x7] }
 0x51b   : > { %v16957_v48 = vadd.f32 %v9851_v23, %v16883_v4  ;;  %v463_v23 = vld [vmem:[#allocation2 + $0x4] sm:$0xf]  ;;  %v532_v17 = vshrl.u32 %v462_v49, 16  ;;  %v535_v20 = vshll.u32 %v462_v49, 16 }
 0x51c   : > { %v9775_v6 = vpop.f32.mrf.mxu3 }
 0x51d   : > { %18552 = vst [vmem:[#allocation7_spill] sm:$0xff] %v16957_v48  ;;  %v16963_v33 = vadd.f32 %v9775_v6, %v9687_v27  ;;  %v11823_v27 = vld [vmem:[#allocation3 + $0x2a0] sm:$0xf]  ;;  %v537_v16 = vrot.slane %v535_v20, 7  ;;  %v14369_v20 = vld [vmem:[#allocation3 + $0xb24] sm:$0xf] }
 0x520   : > { %v9607_v26 = vpop.f32.mrf.mxu1 }
 0x521   : > { %v16966_v4 = vadd.f32 %v9607_v26, %v16629_v19  ;;  %v16973_v14 = vpop.f32.mrf.mxu2  ;;  %v14109_v19 = vld [vmem:[#allocation3 + $0x300] sm:$0xf0]  ;;  %v544_v26 = vshll.u32 %v463_v23, 16 }
 0x522   : > { %v9854_v7 = vpop.f32.mrf.mxu0  ;;  %v11824_v6 = vor.u32 %v14109_v19, %v11823_v27 }
 0x523   : > { %v16969_v10 = vadd.f32 %v9854_v7, %v16901_v32  ;;  %9646 = vmatmul.bf16.gmra.mxu1 %v12804_v34  ;;  %v541_v32 = vshrl.u32 %v463_v23, 16  ;;  %v551_v34 = vshrl.u32 %v464_v62, 16  ;;  %v554_v7 = vshll.u32 %v464_v62, 16 }
 0x524   : > { %v9777_v53 = vpop.f32.mrf.mxu3  ;;  %v546_v29 = vrot.slane %v544_v26, 7  ;;  %v9692_v62 = vadd.f32 %v16775_v28, %v16932_v47  ;;  %v12515_v47 = vld [vmem:[#allocation3 + $0x810] sm:$0xf] }
 0x525   : > { %18553 = vst [vmem:[#allocation5_spill] sm:$0xff] %v16969_v10  ;;  %9893 = vmatmul.bf16.gmra.mxu0 %v12416_v60  ;;  %v16975_v2 = vadd.f32 %v9777_v53, %v9689_v3  ;;  %v534_v10 = vrot.slane %v532_v17, 6  ;;  %v543_v37 = vrot.slane %v541_v32, 6  ;;  %v553_v3 = vrot.slane %v551_v34, 6  ;;  %v12901_v32 = vld [vmem:[#allocation3 + $0xb84] sm:$0xf0] }
 0x526   : > { %10041 = vmatmul.bf16.gmra.mxu2 %v11824_v6  ;;  %v556_v53 = vrot.slane %v554_v7, 7  ;;  %v14283_v7 = vld [vmem:[#allocation3 + $0x870] sm:$0xf0] }
 0x527   : > { %v538_v60 = vor.u32 %v537_v16, %v534_v10  ;;  %v547_v27 = vor.u32 %v546_v29, %v543_v37  ;;  %v14580_v10 = vld [vmem:[%s18470_s1 + $0x538] sm:$0xff] }
 0x528   : > { %v9609_v54 = vpop.f32.mrf.mxu1  ;;  %v557_v17 = vor.u32 %v556_v53, %v553_v3  ;;  %10196 = vmatpush.bf16.msrb.mxu0 %v14580_v10  ;;  %v465_v3 = vld [vmem:[#allocation2 + $0x10] sm:$0xc]  ;;  %v9694_v10 = vadd.f32 %v16786_v8, %v16950_v31  ;;  %v14568_v8 = vld [vmem:[%s18470_s1 + $0x4d8] sm:$0xff] }
 0x529   : > { %v16978_v48 = vadd.f32 %v9609_v54, %v16647_v46  ;;  %9819 = vmatmul.bf16.gmra.mxu3 %v12712_v43  ;;  %v16989_v6 = vpop.f32.mrf.mxu2  ;;  %v14596_v46 = vld [vmem:[%s18470_s1 + $0x5b8] sm:$0xff]  ;;  %v539_v43 = vrot.slane %v538_v60, 4  ;;  %v12904_v54 = vor.u32 %v14369_v20, %v12901_v32  ;;  %v12516_v60 = vor.u32 %v14283_v7, %v12515_v47  ;;  %v14134_v20 = vld [vmem:[#allocation3 + $0x3c8] sm:$0xf0] }
 0x52a   : > { %v9856_v49 = vpop.f32.mrf.mxu0  ;;  %10374 = vmatpush.bf16.msrb.mxu2 %v14596_v46  ;;  %v466_v46 = vld [vmem:[#allocation2 + $0x14] sm:$0xf]  ;;  %10111 = vmatpush.bf16.msrb.mxu3 %v14568_v8 }
 0x52b   : > { %v16985_v19 = vadd.f32 %v9856_v49, %v16913_v5  ;;  %v549_v5 = vrot.slane %v547_v27, 4  ;;  %v548_v28 = vsel %vm16980_vm15, %v539_v43, %v547_v27  ;;  %v14345_v49 = vld [vmem:[#allocation3 + $0xa64] sm:$0xf]  ;;  %v569_v31 = vshrl.u32 %v466_v46, 16 }
 0x52c   : > { %v9780_v26 = vpop.f32.mrf.mxu3  ;;  %1011 = vst [vmem:[#allocation3 + $0x44] sm:$0xf] %v548_v28  ;;  %v563_v28 = vshll.u32 %v465_v3, 16 }
 0x52d   : > { %18556 = vst [vmem:[#allocation9_spill] sm:$0xff] %v16985_v19  ;;  %v16997_v34 = vadd.f32 %v9780_v26, %v9692_v62  ;;  %v558_v16 = vsel %vm16980_vm15, %v549_v5, %v557_v17  ;;  %v12809_v62 = vld [vmem:[#allocation3 + $0xac4] sm:$0xf0]  ;;  %v467_v26 = vld [vmem:[#allocation2 + $0x18] sm:$0x7]  ;;  %v560_v5 = vshrl.u32 %v465_v3, 16 }
 0x52e   : > { %1012 = vst [vmem:[#allocation3 + $0xa8] sm:$0xf] %v558_v16  ;;  %v11923_v17 = vld [vmem:[#allocation3 + $0x368] sm:$0xf]  ;;  %v12812_v7 = vor.u32 %v14345_v49, %v12809_v62  ;;  %v572_v16 = vshll.u32 %v466_v46, 16 }
 0x52f   : > { %v2311_v46 = vld [vmem:[#allocation2 + $0x144] sm:$0xf] }
 0x530   : > { %v9612_v37 = vpop.f32.mrf.mxu1  ;;  %v574_v3 = vrot.slane %v572_v16, 7  ;;  %2473 = vst [vmem:[#allocation3 + $0xbf4] sm:$0xf] %v2311_v46 }
 0x531   : > { %v17004_v29 = vadd.f32 %v9612_v37, %v16666_v42  ;;  %v17011_v43 = vpop.f32.mrf.mxu2  ;;  %v11924_v42 = vor.u32 %v14134_v20, %v11923_v17  ;;  %v565_v37 = vrot.slane %v563_v28, 7  ;;  %v582_v17 = vshll.u32 %v467_v26, 16  ;;  %2535 = vst [vmem:[#allocation3 + $0xb4c] sm:$0xf] %v2311_v46  ;;  %v12023_v46 = vld [vmem:[#allocation3 + $0x430] sm:$0xf] }
 0x532   : > { %v9859_v53 = vpop.f32.mrf.mxu0 }
 0x533   : > { %v17007_v27 = vadd.f32 %v9859_v53, %v16929_v61  ;;  %9651 = vmatmul.bf16.gmra.mxu1 %v12904_v54  ;;  %v14588_v61 = vld [vmem:[%s18470_s1 + $0x578] sm:$0xff]  ;;  %v562_v54 = vrot.slane %v560_v5, 6  ;;  %v579_v53 = vshrl.u32 %v467_v26, 16  ;;  %v584_v20 = vrot.slane %v582_v17, 7  ;;  %v2312_v5 = vld [vmem:[#allocation2 + $0x148] sm:$0xf] }
 0x534   : > { %v9782_v32 = vpop.f32.mrf.mxu3  ;;  %10285 = vmatpush.bf16.msra.mxu1 %v14588_v61  ;;  %v9697_v61 = vadd.f32 %v16802_v0, %v16966_v4  ;;  %2474 = vst [vmem:[#allocation3 + $0xc58] sm:$0xf] %v2312_v5 }
 0x535   : > { %18557 = vst [vmem:[#allocation6_spill] sm:$0xff] %v17007_v27  ;;  %9898 = vmatmul.bf16.gmra.mxu0 %v12516_v60  ;;  %v17013_v47 = vadd.f32 %v9782_v32, %v9694_v10  ;;  %v571_v60 = vrot.slane %v569_v31, 6  ;;  %v566_v49 = vor.u32 %v565_v37, %v562_v54  ;;  %v581_v62 = vrot.slane %v579_v53, 6  ;;  %v14394_v31 = vld [vmem:[#allocation3 + $0xbec] sm:$0xf] }
 0x536   : > { %10046 = vmatmul.bf16.gmra.mxu2 %v11924_v42  ;;  %v14308_v37 = vld [vmem:[#allocation3 + $0x938] sm:$0xf0]  ;;  %2536 = vst [vmem:[#allocation3 + $0xbb0] sm:$0xf] %v2312_v5  ;;  %v14159_v5 = vld [vmem:[#allocation3 + $0x490] sm:$0xf0] }
 0x537   : > { %v575_v27 = vor.u32 %v574_v3, %v571_v60  ;;  %v567_v28 = vrot.slane %v566_v49, 4  ;;  %v585_v38 = vor.u32 %v584_v20, %v581_v62  ;;  %v14370_v60 = vld [vmem:[#allocation3 + $0xb2c] sm:$0xf]  ;;  %v12909_v3 = vld [vmem:[#allocation3 + $0xb8c] sm:$0xf0] }
 0x538   : > { %v9614_v10 = vpop.f32.mrf.mxu1  ;;  %v469_v49 = vld [vmem:[#allocation2 + $0x24] sm:$0xf] }
 0x539   : > { %v17022_v32 = vadd.f32 %v9614_v10, %v16679_v35  ;;  %9824 = vmatmul.bf16.gmra.mxu3 %v12812_v7  ;;  %v17029_v42 = vpop.f32.mrf.mxu2  ;;  %v577_v8 = vrot.slane %v575_v27, 4  ;;  %v13001_v35 = vld [vmem:[#allocation3 + $0xc4c] sm:$0xf0]  ;;  %v576_v7 = vsel %vm16980_vm15, %v567_v28, %v575_v27  ;;  %v468_v27 = vld [vmem:[#allocation2 + $0x20] sm:$0xc] }
 0x53a   : > { %v9861_v19 = vpop.f32.mrf.mxu0  ;;  %v13004_v0 = vor.u32 %v14394_v31, %v13001_v35  ;;  %1013 = vst [vmem:[#allocation3 + $0x10c] sm:$0xf] %v576_v7  ;;  %v588_v31 = vshrl.u32 %v468_v27, 16  ;;  %v591_v35 = vshll.u32 %v468_v27, 16  ;;  %v3215_v7 = vld [vmem:[#allocation2 + $0x138] sm:$0xf] }
 0x53b   : > { %v17025_v26 = vadd.f32 %v9861_v19, %v16941_v30  ;;  %v586_v30 = vsel %vm16980_vm15, %v577_v8, %v585_v38  ;;  %v12615_v19 = vld [vmem:[#allocation3 + $0x8d8] sm:$0xf]  ;;  %v9699_v38 = vadd.f32 %v16817_v56, %v16978_v48  ;;  %v470_v8 = vld [vmem:[#allocation2 + $0x28] sm:$0x7] }
 0x53c   : > { %v9785_v16 = vpop.f32.mrf.mxu3  ;;  %1014 = vst [vmem:[#allocation3 + $0x170] sm:$0xf] %v586_v30  ;;  %v12616_v17 = vor.u32 %v14308_v37, %v12615_v19  ;;  %v600_v30 = vshll.u32 %v469_v49, 16  ;;  %v607_v19 = vshrl.u32 %v470_v8, 16  ;;  %v3511_v37 = vrot.slane %v3215_v7, 5 }
 0x53d   : > { %18558 = vst [vmem:[#allocation11_spill] sm:$0xff] %v17025_v26  ;;  %v17033_v54 = vadd.f32 %v9785_v16, %v9697_v61  ;;  %v12024_v61 = vor.u32 %v14159_v5, %v12023_v46  ;;  %v593_v56 = vrot.slane %v591_v35, 7  ;;  %v610_v48 = vshll.u32 %v470_v8, 16  ;;  %v17049_v26 = vld [vmem:[#allocation3 + $0x44] sm:$0xf] }
 0x53e   : > { %v3559_v8 = vld [vmem:[#allocation2 + $0x4] sm:$0xe]  ;;  %v609_v7 = vrot.slane %v607_v19, 6  ;;  %v14579_v19 = vld [vmem:[%s18470_s1 + $0x530] sm:$0xff] }
 0x53f   : > { %10197 = vmatpush.bf16.msrb.mxu0 %v14579_v19  ;;  %v14395_v19 = vld [vmem:[#allocation3 + $0xbf4] sm:$0xf] }
 0x540   : > { %v9617_v4 = vpop.f32.mrf.mxu1 }
 0x541   : > { %v17038_v53 = vadd.f32 %v9617_v4, %v16689_v12  ;;  %v17045_v20 = vpop.f32.mrf.mxu2  ;;  %v12912_v12 = vor.u32 %v14370_v60, %v12909_v3  ;;  %v3214_v4 = vld [vmem:[#allocation2 + $0x134] sm:$0xe]  ;;  %v3513_v3 = vrot.slane %v3511_v37, 4 }
 0x542   : > { %v9864_v10 = vpop.f32.mrf.mxu0  ;;  %v11447_v60 = vrot.slane %v3214_v4, 9  ;;  %v612_v4 = vrot.slane %v610_v48, 7  ;;  %v12715_v48 = vld [vmem:[#allocation3 + $0x9a0] sm:$0xf] }
 0x543   : > { %v17041_v62 = vadd.f32 %v9864_v10, %v16963_v33  ;;  %9656 = vmatmul.bf16.gmra.mxu1 %v13004_v0  ;;  %v597_v33 = vshrl.u32 %v469_v49, 16  ;;  %v590_v0 = vrot.slane %v588_v31, 6  ;;  %v3216_v10 = vld [vmem:[#allocation2 + $0x13c] sm:$0x1] }
 0x544   : > { %v9787_v28 = vpop.f32.mrf.mxu3  ;;  %v3514_v27 = vrot.slane %v3216_v10, 5  ;;  %v3560_v10 = vld [vmem:[#allocation2 + $0x8] sm:$0xf] }
 0x545   : > { %18559 = vst [vmem:[#allocation8_spill] sm:$0xff] %v17041_v62  ;;  %9903 = vmatmul.bf16.gmra.mxu0 %v12616_v17  ;;  %v17047_v16 = vadd.f32 %v9787_v28, %v9699_v38  ;;  %v14567_v17 = vld [vmem:[%s18470_s1 + $0x4d0] sm:$0xff]  ;;  %v17057_v38 = vld [vmem:[#allocation3 + $0xa4] sm:$0xf0]  ;;  %v594_v46 = vor.u32 %v593_v56, %v590_v0  ;;  %v599_v5 = vrot.slane %v597_v33, 6  ;;  %v602_v28 = vrot.slane %v600_v30, 7 }
 0x546   : > { %10051 = vmatmul.bf16.gmra.mxu2 %v12024_v61  ;;  %10112 = vmatpush.bf16.msrb.mxu3 %v14567_v17  ;;  %v3512_v61 = vsel %vm15961_vm12, %v11447_v60, %v3511_v37  ;;  %v3515_v35 = vsel %vm15961_vm12, %v3513_v3, %v3514_v27  ;;  %v14566_v30 = vld [vmem:[%s18470_s1 + $0x4c8] sm:$0xff]  ;;  %v14595_v37 = vld [vmem:[%s18470_s1 + $0x5b0] sm:$0xff]  ;;  %v613_v56 = vor.u32 %v612_v4, %v609_v7  ;;  %v14333_v17 = vld [vmem:[#allocation3 + $0xa00] sm:$0xf0] }
 0x547   : > { %3555 = vst [vmem:[#allocation3 + $0xb30] sm:$0xf] %v3512_v61  ;;  %v603_v0 = vor.u32 %v602_v28, %v599_v5  ;;  %10375 = vmatpush.bf16.msrb.mxu2 %v14595_v37  ;;  %v3638_v5 = vshrl.u32 %v3560_v10, 16  ;;  %v14565_v4 = vld [vmem:[%s18470_s1 + $0x4c0] sm:$0xff] }
 0x548   : > { %v9619_v62 = vpop.f32.mrf.mxu1  ;;  %3556 = vst [vmem:[#allocation3 + $0xb94] sm:$0xf] %v3515_v35 }
 0x549   : > { %v17055_v49 = vadd.f32 %v9619_v62, %v16699_v39  ;;  %9829 = vmatmul.bf16.gmra.mxu3 %v12912_v12  ;;  %v3561_v39 = vld [vmem:[#allocation2 + $0xc] sm:$0x3]  ;;  %v9702_v12 = vadd.f32 %v16839_v41, %v17004_v29  ;;  %v17068_v33 = vpop.f32.mrf.mxu2  ;;  %v11520_v41 = vor.u32 %v17049_v26, %v17057_v38  ;;  %v605_v27 = vrot.slane %v603_v0, 4 }
 0x54a   : > { %v9866_v31 = vpop.f32.mrf.mxu0  ;;  %10113 = vmatpush.bf16.msrb.mxu3 %v14566_v30  ;;  %v3641_v26 = vshll.u32 %v3560_v10, 16  ;;  %v3648_v38 = vshrl.u32 %v3561_v39, 16  ;;  %v3651_v35 = vshll.u32 %v3561_v39, 16  ;;  %v3640_v37 = vrot.slane %v3638_v5, 5  ;;  %v12123_v39 = vld [vmem:[#allocation3 + $0x4f8] sm:$0xf] }
 0x54b   : > { %v17064_v62 = vadd.f32 %v9866_v31, %v16975_v2  ;;  %v595_v2 = vrot.slane %v594_v46, 4  ;;  %v3629_v31 = vshrl.u32 %v3559_v8, 16  ;;  %v3632_v46 = vshll.u32 %v3559_v8, 16 }
 0x54c   : > { %v9790_v29 = vpop.f32.mrf.mxu3  ;;  %v614_v28 = vsel %vm16980_vm15, %v605_v27, %v613_v56  ;;  %v3643_v30 = vrot.slane %v3641_v26, 6  ;;  %v12716_v10 = vor.u32 %v14333_v17, %v12715_v48  ;;  %v14184_v27 = vld [vmem:[#allocation3 + $0x558] sm:$0xf0]  ;;  %v17106_v26 = vld [vmem:[#allocation3 + $0xa68] sm:$0xf] }
 0x54d   : > { %18560 = vst [vmem:[#allocation13_spill] sm:$0xff] %v17064_v62  ;;  %v17081_v60 = vadd.f32 %v9790_v29, %v9702_v12  ;;  %v604_v3 = vsel %vm16980_vm15, %v595_v2, %v603_v0  ;;  %v3631_v61 = vrot.slane %v3629_v31, 5  ;;  %v3634_v12 = vrot.slane %v3632_v46, 6  ;;  %v471_v29 = vld [vmem:[#allocation2 + $0x30] sm:$0xc] }
 0x54e   : > { %1015 = vst [vmem:[#allocation3 + $0x1d4] sm:$0xf] %v604_v3  ;;  %v3650_v2 = vrot.slane %v3648_v38, 5  ;;  %v3653_v0 = vrot.slane %v3651_v35, 6  ;;  %v13009_v3 = vld [vmem:[#allocation3 + $0xc54] sm:$0xf0]  ;;  %10114 = vmatpush.bf16.msrb.mxu3 %v14565_v4  ;;  %v3644_v62 = vor.u32 %v3643_v30, %v3640_v37  ;;  %v12124_v38 = vor.u32 %v14184_v27, %v12123_v39 }
 0x54f   : > { %1016 = vst [vmem:[#allocation3 + $0x238] sm:$0xf] %v614_v28  ;;  %v3635_v31 = vor.u32 %v3634_v12, %v3631_v61  ;;  %v616_v35 = vshrl.u32 %v471_v29, 16  ;;  %v3218_v4 = vld [vmem:[#allocation2 + $0x148] sm:$0xf]  ;;  %v619_v12 = vshll.u32 %v471_v29, 16 }
 0x550   : > { %v9622_v7 = vpop.f32.mrf.mxu1  ;;  %v3654_v17 = vor.u32 %v3653_v0, %v3650_v2  ;;  %v3518_v2 = vrot.slane %v3218_v4, 5  ;;  %v472_v0 = vld [vmem:[#allocation2 + $0x34] sm:$0xf]  ;;  %v3219_v29 = vld [vmem:[#allocation2 + $0x14c] sm:$0x1] }
 0x551   : > { %v17091_v8 = vadd.f32 %v9622_v7, %v16711_v57  ;;  %v9704_v57 = vadd.f32 %v16851_v44, %v17022_v32  ;;  %v17098_v46 = vpop.f32.mrf.mxu2  ;;  %v3636_v61 = vrot.slane %v3635_v31, 4  ;;  %v13012_v44 = vor.u32 %v14395_v19, %v13009_v3  ;;  %v17110_v32 = vld [vmem:[#allocation3 + $0xac8] sm:$0xf0]  ;;  %v14587_v7 = vld [vmem:[%s18470_s1 + $0x570] sm:$0xff]  ;;  %v3217_v19 = vld [vmem:[#allocation2 + $0x144] sm:$0xe] }
 0x552   : > { %v9869_v56 = vpop.f32.mrf.mxu0  ;;  %18562 = vst [vmem:[#allocation15_spill] sm:$0xff] %v17098_v46  ;;  %10286 = vmatpush.bf16.msra.mxu1 %v14587_v7  ;;  %v11448_v27 = vrot.slane %v3217_v19, 9  ;;  %v3520_v31 = vrot.slane %v3518_v2, 4  ;;  %v14046_v7 = vld [vmem:[#allocation3 + $0x10c] sm:$0xf] }
 0x553   : > { %v17094_v28 = vadd.f32 %v9869_v56, %v16997_v34  ;;  %9937 = vmatmul.bf16.vlgmr.msrb.gmra.mxu1 %v11520_v41  ;;  %v3646_v34 = vrot.slane %v3644_v62, 4  ;;  %v3645_v37 = vsel %vm17102_vm2, %v3636_v61, %v3644_v62  ;;  %v618_v56 = vrot.slane %v616_v35, 6  ;;  %v3562_v61 = vld [vmem:[#allocation2 + $0x14] sm:$0xe]  ;;  %v11617_v35 = vld [vmem:[#allocation3 + $0x16c] sm:$0xf0] }
 0x554   : > { %v9792_v5 = vpop.f32.mrf.mxu3  ;;  %4108 = vst [vmem:[#allocation3 + $0x4c] sm:$0xf] %v3645_v37  ;;  %v3519_v4 = vsel %vm15961_vm12, %v11448_v27, %v3518_v2  ;;  %v628_v37 = vshll.u32 %v472_v0, 16  ;;  %v3563_v39 = vld [vmem:[#allocation2 + $0x18] sm:$0xf] }
 0x555   : > { %18561 = vst [vmem:[#allocation10_spill] sm:$0xff] %v17094_v28  ;;  %9908 = vmatmul.bf16.gmra.mxu0 %v12716_v10  ;;  %v17108_v41 = vadd.f32 %v9792_v5, %v9704_v57  ;;  %v3655_v30 = vsel %vm17102_vm2, %v3646_v34, %v3654_v17  ;;  %v473_v10 = vld [vmem:[#allocation2 + $0x38] sm:$0x7]  ;;  %v3521_v57 = vrot.slane %v3219_v29, 5  ;;  %v621_v17 = vrot.slane %v619_v12, 7  ;;  %v14578_v12 = vld [vmem:[%s18470_s1 + $0x528] sm:$0xff] }
 0x556   : > { %10056 = vmatmul.bf16.gmra.mxu2 %v12124_v38  ;;  %4109 = vst [vmem:[#allocation3 + $0xb0] sm:$0xf] %v3655_v30  ;;  %v625_v5 = vshrl.u32 %v472_v0, 16  ;;  %v635_v38 = vshrl.u32 %v473_v10, 16  ;;  %v638_v30 = vshll.u32 %v473_v10, 16  ;;  %10198 = vmatpush.bf16.msrb.mxu0 %v14578_v12  ;;  %v3660_v28 = vshll.u32 %v3562_v61, 16 }
 0x557   : > { %3557 = vst [vmem:[#allocation3 + $0xbf8] sm:$0xf] %v3519_v4  ;;  %v622_v2 = vor.u32 %v621_v17, %v618_v56  ;;  %v3564_v0 = vld [vmem:[#allocation2 + $0x1c] sm:$0x3]  ;;  %v3666_v46 = vshrl.u32 %v3563_v39, 16  ;;  %v3669_v51 = vshll.u32 %v3563_v39, 16 }
 0x558   : > { %v9624_v3 = vpop.f32.mrf.mxu1  ;;  %v627_v29 = vrot.slane %v625_v5, 6  ;;  %v637_v27 = vrot.slane %v635_v38, 6  ;;  %v3662_v56 = vrot.slane %v3660_v28, 6  ;;  %v3676_v17 = vshrl.u32 %v3564_v0, 16  ;;  %v14577_v5 = vld [vmem:[%s18470_s1 + $0x520] sm:$0xff] }
 0x559   : > { %v17122_v62 = vadd.f32 %v9624_v3, %v16723_v15  ;;  %9834 = vmatmul.bf16.gmra.mxu3 %v13012_v44  ;;  %v9707_v15 = vadd.f32 %v16863_v11, %v17038_v53  ;;  %v17131_v44 = vpop.f32.mrf.mxu2  ;;  %v3522_v3 = vsel %vm15961_vm12, %v3520_v31, %v3521_v57  ;;  %v623_v11 = vrot.slane %v622_v2, 4 }
 0x55a   : > { %v9871_v34 = vpop.f32.mrf.mxu0  ;;  %18566 = vst [vmem:[#allocation20_spill] sm:$0xff] %v17131_v44  ;;  %v3657_v53 = vshrl.u32 %v3562_v61, 16  ;;  %v11620_v31 = vor.u32 %v14046_v7, %v11617_v35  ;;  %v3679_v61 = vshll.u32 %v3564_v0, 16  ;;  %v3671_v28 = vrot.slane %v3669_v51, 6  ;;  %10199 = vmatpush.bf16.msrb.mxu0 %v14577_v5  ;;  %v14209_v0 = vld [vmem:[#allocation3 + $0x620] sm:$0xf0] }
 0x55b   : > { %v17127_v19 = vadd.f32 %v9871_v34, %v17013_v47  ;;  %3558 = vst [vmem:[#allocation3 + $0xc5c] sm:$0xf] %v3522_v3  ;;  %v630_v47 = vrot.slane %v628_v37, 7  ;;  %v640_v34 = vrot.slane %v638_v30, 7  ;;  %v14022_v3 = vld [vmem:[#allocation3 + $0x4c] sm:$0xf] }
 0x55c   : > { %v9795_v10 = vpop.f32.mrf.mxu3  ;;  %v3659_v57 = vrot.slane %v3657_v53, 5  ;;  %v3668_v30 = vrot.slane %v3666_v46, 5  ;;  %v3678_v35 = vrot.slane %v3676_v17, 5  ;;  %v14576_v53 = vld [vmem:[%s18470_s1 + $0x518] sm:$0xff] }
 0x55d   : > { %18565 = vst [vmem:[#allocation12_spill] sm:$0xff] %v17127_v19  ;;  %v17138_v19 = vadd.f32 %v9795_v10, %v9707_v15  ;;  %v631_v44 = vor.u32 %v630_v47, %v627_v29  ;;  %v641_v58 = vor.u32 %v640_v34, %v637_v27  ;;  %v11525_v39 = vld [vmem:[#allocation3 + $0xac] sm:$0xf0]  ;;  %v12223_v10 = vld [vmem:[#allocation3 + $0x5c0] sm:$0xf] }
 0x55e   : > { %v3663_v7 = vor.u32 %v3662_v56, %v3659_v57  ;;  %v474_v29 = vld [vmem:[#allocation2 + $0x40] sm:$0xc]  ;;  %v3672_v47 = vor.u32 %v3671_v28, %v3668_v30  ;;  %v12224_v34 = vor.u32 %v14209_v0, %v12223_v10  ;;  %v476_v57 = vld [vmem:[#allocation2 + $0x48] sm:$0x7]  ;;  %10200 = vmatpush.bf16.msrb.mxu0 %v14576_v53  ;;  %v18568_v10 = vld [vmem:[#allocation14_spill] sm:$0xff] }
 0x55f   : > { %v632_v37 = vsel %vm16980_vm15, %v623_v11, %v631_v44  ;;  %v633_v38 = vrot.slane %v631_v44, 4  ;;  %v644_v56 = vshrl.u32 %v474_v29, 16  ;;  %v647_v5 = vshll.u32 %v474_v29, 16 }
 0x560   : > { %v9627_v4 = vpop.f32.mrf.mxu1  ;;  %1017 = vst [vmem:[#allocation3 + $0x29c] sm:$0xf] %v632_v37  ;;  %v3664_v11 = vrot.slane %v3663_v7, 4 }
 0x561   : > { %v17146_v15 = vadd.f32 %v9627_v4, %v16732_v59  ;;  %v642_v2 = vsel %vm16980_vm15, %v633_v38, %v641_v58  ;;  %1133 = vst [vmem:[#allocation3 + $0x50] sm:$0xf] %v632_v37  ;;  %v9709_v59 = vadd.f32 %v16881_v24, %v17055_v49  ;;  %v17155_v46 = vpop.f32.mrf.mxu2  ;;  %v3681_v58 = vrot.slane %v3679_v61, 6  ;;  %v3565_v38 = vld [vmem:[#allocation2 + $0x24] sm:$0xe] }
 0x562   : > { %v9874_v12 = vpop.f32.mrf.mxu0  ;;  %1018 = vst [vmem:[#allocation3 + $0x300] sm:$0xf] %v642_v2  ;;  %v11528_v24 = vor.u32 %v14022_v3, %v11525_v39  ;;  %v3674_v49 = vrot.slane %v3672_v47, 4  ;;  %v3673_v17 = vsel %vm17102_vm2, %v3664_v11, %v3672_v47  ;;  %v646_v30 = vrot.slane %v644_v56, 6  ;;  %v14575_v39 = vld [vmem:[%s18470_s1 + $0x510] sm:$0xff]  ;;  %v14594_v56 = vld [vmem:[%s18470_s1 + $0x5a8] sm:$0xff] }
 0x563   : > { %v17151_v44 = vadd.f32 %v9874_v12, %v17033_v54  ;;  %9942 = vmatmul.bf16.gmra.mxu1 %v11620_v31  ;;  %1134 = vst [vmem:[#allocation3 + $0xb4] sm:$0xf] %v642_v2  ;;  %v18567_v54 = vor.u32 %v17110_v32, %v17106_v26  ;;  %v475_v31 = vld [vmem:[#allocation2 + $0x44] sm:$0xf]  ;;  %v3682_v4 = vor.u32 %v3681_v58, %v3678_v35  ;;  %v663_v26 = vshrl.u32 %v476_v57, 16 }
 0x564   : > { %v9797_v27 = vpop.f32.mrf.mxu3  ;;  %v653_v37 = vshrl.u32 %v475_v31, 16  ;;  %4110 = vst [vmem:[#allocation3 + $0x114] sm:$0xf] %v3673_v17  ;;  %v656_v61 = vshll.u32 %v475_v31, 16  ;;  %v666_v32 = vshll.u32 %v476_v57, 16  ;;  %v649_v28 = vrot.slane %v647_v5, 7  ;;  %10201 = vmatpush.bf16.msrb.mxu0 %v14575_v39  ;;  %10376 = vmatpush.bf16.msrb.mxu2 %v14594_v56 }
 0x565   : > { %9913 = vmatmul.bf16.gmra.mxu0 %v18567_v54  ;;  %v17163_v51 = vadd.f32 %v9797_v27, %v9709_v59  ;;  %v3683_v3 = vsel %vm17102_vm2, %v3674_v49, %v3682_v4  ;;  %v3566_v12 = vld [vmem:[#allocation2 + $0x28] sm:$0xf]  ;;  %v3685_v2 = vshrl.u32 %v3565_v38, 16  ;;  %v665_v0 = vrot.slane %v663_v26, 6  ;;  %v3567_v11 = vld [vmem:[#allocation2 + $0x2c] sm:$0x3] }
 0x566   : > { %10061 = vmatmul.bf16.gmra.mxu2 %v12224_v34  ;;  %v655_v35 = vrot.slane %v653_v37, 6  ;;  %4111 = vst [vmem:[#allocation3 + $0x178] sm:$0xf] %v3683_v3  ;;  %v658_v59 = vrot.slane %v656_v61, 7  ;;  %v668_v47 = vrot.slane %v666_v32, 7  ;;  %v650_v34 = vor.u32 %v649_v28, %v646_v30 }
 0x567   : > { %v3687_v58 = vrot.slane %v3685_v2, 5  ;;  %v3688_v53 = vshll.u32 %v3565_v38, 16  ;;  %v14071_v49 = vld [vmem:[#allocation3 + $0x1d4] sm:$0xf]  ;;  %v9712_v31 = vadd.f32 %v16899_v22, %v17091_v8  ;;  %v11717_v4 = vld [vmem:[#allocation3 + $0x234] sm:$0xf0] }
 0x568   : > { %v9629_v7 = vpop.f32.mrf.mxu1  ;;  %v659_v17 = vor.u32 %v658_v59, %v655_v35  ;;  %v651_v37 = vrot.slane %v650_v34, 4  ;;  %v3694_v30 = vshrl.u32 %v3566_v12, 16  ;;  %v3697_v8 = vshll.u32 %v3566_v12, 16  ;;  %v12915_v32 = vld [vmem:[#allocation3 + $0xb30] sm:$0xf]  ;;  %v14573_v34 = vld [vmem:[%s18470_s1 + $0x500] sm:$0xff] }
 0x569   : > { %v17173_v29 = vadd.f32 %v9629_v7, %v18568_v10  ;;  %10115 = vmatmul.bf16.vlgmr.msrb.gmra.mxu3 %v11528_v24  ;;  %v17180_v57 = vpop.f32.mrf.mxu2  ;;  %v14574_v24 = vld [vmem:[%s18470_s1 + $0x508] sm:$0xff]  ;;  %v3690_v38 = vrot.slane %v3688_v53, 6  ;;  %v3704_v26 = vshrl.u32 %v3567_v11, 16  ;;  %v14383_v7 = vld [vmem:[#allocation3 + $0xb90] sm:$0xf0]  ;;  %v3707_v35 = vshll.u32 %v3567_v11, 16 }
 0x56a   : > { %v9876_v27 = vpop.f32.mrf.mxu0  ;;  %v661_v22 = vrot.slane %v659_v17, 4  ;;  %10202 = vmatpush.bf16.msrb.mxu0 %v14574_v24  ;;  %v660_v3 = vsel %vm16980_vm15, %v651_v37, %v659_v17  ;;  %v3696_v28 = vrot.slane %v3694_v30, 5  ;;  %v11720_v2 = vor.u32 %v14071_v49, %v11717_v4  ;;  %v477_v56 = vld [vmem:[#allocation2 + $0x50] sm:$0xc]  ;;  %v12323_v4 = vld [vmem:[#allocation3 + $0x688] sm:$0xf] }
 0x56b   : > { %v17176_v54 = vadd.f32 %v9876_v27, %v17047_v16  ;;  %v669_v16 = vor.u32 %v668_v47, %v665_v0  ;;  %v3691_v39 = vor.u32 %v3690_v38, %v3687_v58  ;;  %v14047_v10 = vld [vmem:[#allocation3 + $0x114] sm:$0xf]  ;;  %1019 = vst [vmem:[#allocation3 + $0x364] sm:$0xf] %v660_v3  ;;  %v3699_v0 = vrot.slane %v3697_v8, 6 }
 0x56c   : > { %v9800_v5 = vpop.f32.mrf.mxu3  ;;  %v3706_v47 = vrot.slane %v3704_v26, 5  ;;  %v12916_v11 = vor.u32 %v14383_v7, %v12915_v32  ;;  %1135 = vst [vmem:[#allocation3 + $0x118] sm:$0xf] %v660_v3  ;;  %v3709_v24 = vrot.slane %v3707_v35, 6  ;;  %v478_v3 = vld [vmem:[#allocation2 + $0x54] sm:$0xf] }
 0x56d   : > { %v17188_v61 = vadd.f32 %v9800_v5, %v9712_v31  ;;  %v670_v59 = vsel %vm16980_vm15, %v661_v22, %v669_v16  ;;  %v11625_v12 = vld [vmem:[#allocation3 + $0x174] sm:$0xf0]  ;;  %v3692_v53 = vrot.slane %v3691_v39, 4  ;;  %v18569_v31 = vld [vmem:[#allocation18_spill] sm:$0xff]  ;;  %v3700_v49 = vor.u32 %v3699_v0, %v3696_v28  ;;  %v14234_v5 = vld [vmem:[#allocation3 + $0x6e8] sm:$0xf0] }
 0x56e   : > { %1020 = vst [vmem:[#allocation3 + $0x3c8] sm:$0xf] %v670_v59  ;;  %10203 = vmatpush.bf16.msrb.mxu0 %v14573_v34  ;;  %v9714_v16 = vadd.f32 %v16911_v52, %v17122_v62  ;;  %v11628_v26 = vor.u32 %v14047_v10, %v11625_v12  ;;  %v12324_v32 = vor.u32 %v14234_v5, %v12323_v4  ;;  %v479_v39 = vld [vmem:[#allocation2 + $0x58] sm:$0x7]  ;;  %v14586_v52 = vld [vmem:[%s18470_s1 + $0x568] sm:$0xff]  ;;  %v672_v62 = vshrl.u32 %v477_v56, 16 }
 0x56f   : > { %1136 = vst [vmem:[#allocation3 + $0x17c] sm:$0xf] %v670_v59  ;;  %v3701_v30 = vsel %vm17102_vm2, %v3692_v53, %v3700_v49  ;;  %v3702_v22 = vrot.slane %v3700_v49, 4  ;;  %v3710_v7 = vor.u32 %v3709_v24, %v3706_v47  ;;  %v675_v28 = vshll.u32 %v477_v56, 16  ;;  %v3568_v47 = vld [vmem:[#allocation2 + $0x34] sm:$0xe]  ;;  %10287 = vmatpush.bf16.msra.mxu1 %v14586_v52 }
 0x570   : > { %v9632_v27 = vpop.f32.mrf.mxu1  ;;  %4112 = vst [vmem:[#allocation3 + $0x1dc] sm:$0xf] %v3701_v30  ;;  %v681_v35 = vshrl.u32 %v478_v3, 16  ;;  %v684_v59 = vshll.u32 %v478_v3, 16  ;;  %v691_v10 = vshrl.u32 %v479_v39, 16  ;;  %v694_v0 = vshll.u32 %v479_v39, 16 }
 0x571   : > { %v17198_v58 = vadd.f32 %v9632_v27, %v18569_v31  ;;  %v17205_v38 = vpop.f32.mrf.mxu2  ;;  %v674_v27 = vrot.slane %v672_v62, 6  ;;  %v677_v12 = vrot.slane %v675_v28, 7  ;;  %v3569_v49 = vld [vmem:[#allocation2 + $0x38] sm:$0xf]  ;;  %v18570_v24 = vld [vmem:[#allocation16_spill] sm:$0xff]  ;;  %v3713_v5 = vshrl.u32 %v3568_v47, 16 }
 0x572   : > { %v9879_v17 = vpop.f32.mrf.mxu0  ;;  %v683_v53 = vrot.slane %v681_v35, 6  ;;  %v686_v31 = vrot.slane %v684_v59, 7  ;;  %v696_v4 = vrot.slane %v694_v0, 7  ;;  %v3725_v3 = vshll.u32 %v3569_v49, 16  ;;  %v11817_v35 = vld [vmem:[#allocation3 + $0x2fc] sm:$0xf0] }
 0x573   : > { %v17201_v37 = vadd.f32 %v9879_v17, %v17081_v60  ;;  %9947 = vmatmul.bf16.gmra.mxu1 %v11720_v2  ;;  %v3711_v2 = vsel %vm17102_vm2, %v3702_v22, %v3710_v7  ;;  %v678_v17 = vor.u32 %v677_v12, %v674_v27  ;;  %v3570_v22 = vld [vmem:[#allocation2 + $0x3c] sm:$0x3]  ;;  %v3722_v7 = vshrl.u32 %v3569_v49, 16 }
 0x574   : > { %v9802_v8 = vpop.f32.mrf.mxu3  ;;  %4113 = vst [vmem:[#allocation3 + $0x240] sm:$0xf] %v3711_v2  ;;  %v687_v30 = vor.u32 %v686_v31, %v683_v53  ;;  %v9717_v52 = vadd.f32 %v16927_v55, %v17146_v15  ;;  %v3732_v53 = vshrl.u32 %v3570_v22, 16  ;;  %v14408_v31 = vld [vmem:[#allocation3 + $0xc58] sm:$0xf0] }
 0x575   : > { %9918 = vmatmul.bf16.gmra.mxu0 %v12916_v11  ;;  %v17209_v60 = vadd.f32 %v9802_v8, %v9714_v16  ;;  %v693_v11 = vrot.slane %v691_v10, 6  ;;  %v3716_v8 = vshll.u32 %v3568_v47, 16  ;;  %v679_v28 = vrot.slane %v678_v17, 4  ;;  %v13015_v47 = vld [vmem:[#allocation3 + $0xbf8] sm:$0xf] }
 0x576   : > { %10066 = vmatmul.bf16.gmra.mxu2 %v12324_v32  ;;  %v14096_v32 = vld [vmem:[#allocation3 + $0x29c] sm:$0xf]  ;;  %v689_v59 = vrot.slane %v687_v30, 4  ;;  %v3715_v10 = vrot.slane %v3713_v5, 5  ;;  %v3724_v27 = vrot.slane %v3722_v7, 5  ;;  %v3734_v17 = vrot.slane %v3732_v53, 5 }
 0x577   : > { %v3718_v0 = vrot.slane %v3716_v8, 6  ;;  %v11820_v49 = vor.u32 %v14096_v32, %v11817_v35  ;;  %v14072_v5 = vld [vmem:[#allocation3 + $0x1dc] sm:$0xf]  ;;  %v13016_v7 = vor.u32 %v14408_v31, %v13015_v47 }
 0x578   : > { %v9634_v34 = vpop.f32.mrf.mxu1 }
 0x579   : > { %v17217_v56 = vadd.f32 %v9634_v34, %v18570_v24  ;;  %10120 = vmatmul.bf16.gmra.mxu3 %v11628_v26  ;;  %v17224_v62 = vpop.f32.mrf.mxu2  ;;  %v697_v26 = vor.u32 %v696_v4, %v693_v11  ;;  %v3727_v34 = vrot.slane %v3725_v3, 6  ;;  %v3719_v15 = vor.u32 %v3718_v0, %v3715_v10  ;;  %v481_v0 = vld [vmem:[#allocation2 + $0x64] sm:$0xf] }
 0x57a   : > { %v9881_v16 = vpop.f32.mrf.mxu0  ;;  %v3735_v11 = vshll.u32 %v3570_v22, 16  ;;  %v14259_v22 = vld [vmem:[#allocation3 + $0x7b0] sm:$0xf0] }
 0x57b   : > { %v17220_v39 = vadd.f32 %v9881_v16, %v17108_v41  ;;  %v688_v41 = vsel %vm16980_vm15, %v679_v28, %v687_v30  ;;  %v698_v55 = vsel %vm16980_vm15, %v689_v59, %v697_v26  ;;  %v3728_v24 = vor.u32 %v3727_v34, %v3724_v27  ;;  %v11725_v26 = vld [vmem:[#allocation3 + $0x23c] sm:$0xf0]  ;;  %v482_v34 = vld [vmem:[#allocation2 + $0x68] sm:$0x7] }
 0x57c   : > { %v9805_v2 = vpop.f32.mrf.mxu3  ;;  %1021 = vst [vmem:[#allocation3 + $0x42c] sm:$0xf] %v688_v41  ;;  %v3720_v16 = vrot.slane %v3719_v15, 4  ;;  %v3737_v8 = vrot.slane %v3735_v11, 6  ;;  %v709_v15 = vshrl.u32 %v481_v0, 16 }
 0x57d   : > { %v17226_v12 = vadd.f32 %v9805_v2, %v9717_v52  ;;  %1022 = vst [vmem:[#allocation3 + $0x490] sm:$0xf] %v698_v55  ;;  %v3730_v3 = vrot.slane %v3728_v24, 4  ;;  %v480_v52 = vld [vmem:[#allocation2 + $0x60] sm:$0xc] }
 0x57e   : > { %1137 = vst [vmem:[#allocation3 + $0x1e0] sm:$0xf] %v688_v41  ;;  %v12423_v2 = vld [vmem:[#allocation3 + $0x750] sm:$0xf]  ;;  %v3729_v32 = vsel %vm17102_vm2, %v3720_v16, %v3728_v24  ;;  %v3738_v35 = vor.u32 %v3737_v8, %v3734_v17  ;;  %v700_v53 = vshrl.u32 %v480_v52, 16  ;;  %v703_v31 = vshll.u32 %v480_v52, 16 }
 0x57f   : > { %1138 = vst [vmem:[#allocation3 + $0x244] sm:$0xf] %v698_v55  ;;  %v12424_v47 = vor.u32 %v14259_v22, %v12423_v2  ;;  %v11728_v55 = vor.u32 %v14072_v5, %v11725_v26  ;;  %v719_v17 = vshrl.u32 %v482_v34, 16 }
 0x580   : > { %v9637_v4 = vpop.f32.mrf.mxu1  ;;  %4114 = vst [vmem:[#allocation3 + $0x2a4] sm:$0xf] %v3729_v32  ;;  %v3739_v41 = vsel %vm17102_vm2, %v3730_v3, %v3738_v35  ;;  %v705_v11 = vrot.slane %v703_v31, 7  ;;  %v722_v3 = vshll.u32 %v482_v34, 16 }
 0x581   : > { %v17233_v30 = vadd.f32 %v9637_v4, %v16783_v9  ;;  %v9719_v9 = vadd.f32 %v16939_v1, %v17173_v29  ;;  %v17242_v10 = vpop.f32.mrf.mxu2  ;;  %4230 = vst [vmem:[#allocation3 + $0x54] sm:$0xf] %v3729_v32  ;;  %v712_v1 = vshll.u32 %v481_v0, 16  ;;  %v702_v29 = vrot.slane %v700_v53, 6  ;;  %v3571_v4 = vld [vmem:[#allocation2 + $0x44] sm:$0xe] }
 0x582   : > { %v9884_v28 = vpop.f32.mrf.mxu0  ;;  %4115 = vst [vmem:[#allocation3 + $0x308] sm:$0xf] %v3739_v41  ;;  %v3741_v52 = vshrl.u32 %v3571_v4, 16  ;;  %v721_v26 = vrot.slane %v719_v17, 6  ;;  %v3744_v2 = vshll.u32 %v3571_v4, 16  ;;  %v724_v35 = vrot.slane %v722_v3, 7 }
 0x583   : > { %v17238_v59 = vadd.f32 %v9884_v28, %v17138_v19  ;;  %9952 = vmatmul.bf16.gmra.mxu1 %v11820_v49  ;;  %4231 = vst [vmem:[#allocation3 + $0xb8] sm:$0xf] %v3739_v41  ;;  %v711_v49 = vrot.slane %v709_v15, 6  ;;  %v714_v24 = vrot.slane %v712_v1, 7  ;;  %v706_v8 = vor.u32 %v705_v11, %v702_v29  ;;  %v3572_v28 = vld [vmem:[#allocation2 + $0x48] sm:$0xf] }
 0x584   : > { %v9807_v27 = vpop.f32.mrf.mxu3  ;;  %v3743_v0 = vrot.slane %v3741_v52, 5  ;;  %v3746_v31 = vrot.slane %v3744_v2, 6  ;;  %v11917_v15 = vld [vmem:[#allocation3 + $0x3c4] sm:$0xf0]  ;;  %v725_v11 = vor.u32 %v724_v35, %v721_v26  ;;  %v14035_v4 = vld [vmem:[#allocation3 + $0xb0] sm:$0xf0] }
 0x585   : > { %9923 = vmatmul.bf16.gmra.mxu0 %v13016_v7  ;;  %v17246_v19 = vadd.f32 %v9807_v27, %v9719_v9  ;;  %v715_v5 = vor.u32 %v714_v24, %v711_v49  ;;  %v707_v32 = vrot.slane %v706_v8, 4  ;;  %v3573_v9 = vld [vmem:[#allocation2 + $0x4c] sm:$0x3]  ;;  %v3750_v27 = vshrl.u32 %v3572_v28, 16  ;;  %v11531_v24 = vld [vmem:[#allocation3 + $0x50] sm:$0xf] }
 0x586   : > { %10071 = vmatmul.bf16.gmra.mxu2 %v12424_v47  ;;  %v9722_v47 = vadd.f32 %v16961_v25, %v17198_v58  ;;  %v3753_v49 = vshll.u32 %v3572_v28, 16  ;;  %v3747_v25 = vor.u32 %v3746_v31, %v3743_v0  ;;  %v3760_v58 = vshrl.u32 %v3573_v9, 16 }
 0x587   : > { %v717_v53 = vrot.slane %v715_v5, 4  ;;  %v716_v29 = vsel %vm16980_vm15, %v707_v32, %v715_v5  ;;  %v3763_v3 = vshll.u32 %v3573_v9, 16  ;;  %v14097_v28 = vld [vmem:[#allocation3 + $0x2a4] sm:$0xf]  ;;  %v11532_v0 = vor.u32 %v14035_v4, %v11531_v24  ;;  %v14284_v9 = vld [vmem:[#allocation3 + $0x878] sm:$0xf0] }
 0x588   : > { %v9639_v16 = vpop.f32.mrf.mxu1  ;;  %1023 = vst [vmem:[#allocation3 + $0x4f4] sm:$0xf] %v716_v29  ;;  %v3755_v8 = vrot.slane %v3753_v49, 6  ;;  %v3748_v5 = vrot.slane %v3747_v25, 4  ;;  %v3762_v26 = vrot.slane %v3760_v58, 5  ;;  %v14585_v58 = vld [vmem:[%s18470_s1 + $0x560] sm:$0xff] }
 0x589   : > { %v17249_v7 = vadd.f32 %v9639_v16, %v16798_v45  ;;  %10125 = vmatmul.bf16.gmra.mxu3 %v11728_v55  ;;  %v17256_v34 = vpop.f32.mrf.mxu2  ;;  %v14593_v45 = vld [vmem:[%s18470_s1 + $0x5a0] sm:$0xff]  ;;  %v726_v16 = vsel %vm16980_vm15, %v717_v53, %v725_v11  ;;  %1255 = vst [vmem:[#allocation3 + $0x58] sm:$0xf] %v716_v29  ;;  %v3765_v32 = vrot.slane %v3763_v3, 6  ;;  %v12523_v53 = vld [vmem:[#allocation3 + $0x818] sm:$0xf]  ;;  %10288 = vmatpush.bf16.msra.mxu1 %v14585_v58 }
 0x58a   : > { %v9886_v22 = vpop.f32.mrf.mxu0  ;;  %v14121_v55 = vld [vmem:[#allocation3 + $0x364] sm:$0xf]  ;;  %10377 = vmatpush.bf16.msrb.mxu2 %v14593_v45  ;;  %1024 = vst [vmem:[#allocation3 + $0x558] sm:$0xf] %v726_v16  ;;  %v12524_v49 = vor.u32 %v14284_v9, %v12523_v53  ;;  %v3574_v4 = vld [vmem:[#allocation2 + $0x54] sm:$0xe] }
 0x58b   : > { %v17252_v41 = vadd.f32 %v9886_v22, %v17163_v51  ;;  %v3752_v51 = vrot.slane %v3750_v27, 5  ;;  %v11920_v52 = vor.u32 %v14121_v55, %v11917_v15  ;;  %1256 = vst [vmem:[#allocation3 + $0xbc] sm:$0xf] %v726_v16  ;;  %v11825_v27 = vld [vmem:[#allocation3 + $0x304] sm:$0xf0]  ;;  %v3766_v55 = vor.u32 %v3765_v32, %v3762_v26 }
 0x58c   : > { %v9810_v1 = vpop.f32.mrf.mxu3  ;;  %1139 = vst [vmem:[#allocation3 + $0x2a8] sm:$0xf] %v716_v29  ;;  %v484_v29 = vld [vmem:[#allocation2 + $0x74] sm:$0xf]  ;;  %v11828_v25 = vor.u32 %v14097_v28, %v11825_v27  ;;  %v3575_v32 = vld [vmem:[#allocation2 + $0x58] sm:$0xf] }
 0x58d   : > { %v17263_v17 = vadd.f32 %v9810_v1, %v9722_v47  ;;  %v3756_v22 = vor.u32 %v3755_v8, %v3752_v51  ;;  %v483_v47 = vld [vmem:[#allocation2 + $0x70] sm:$0xc]  ;;  %1140 = vst [vmem:[#allocation3 + $0x30c] sm:$0xf] %v726_v16  ;;  %v737_v8 = vshrl.u32 %v484_v29, 16 }
 0x58e   : > { %v731_v16 = vshll.u32 %v483_v47, 16 }
 0x58f   : > { %v3757_v31 = vsel %vm17102_vm2, %v3748_v5, %v3756_v22  ;;  %v3758_v11 = vrot.slane %v3756_v22, 4  ;;  %v739_v28 = vrot.slane %v737_v8, 6 }
 0x590   : > { %v9642_v2 = vpop.f32.mrf.mxu1  ;;  %4116 = vst [vmem:[#allocation3 + $0x36c] sm:$0xf] %v3757_v31 }
 0x591   : > { %v17268_v35 = vadd.f32 %v9642_v2, %v16813_v50  ;;  %v9724_v50 = vadd.f32 %v16973_v14, %v17217_v56  ;;  %v17277_v1 = vpop.f32.mrf.mxu2  ;;  %4232 = vst [vmem:[#allocation3 + $0x11c] sm:$0xf] %v3757_v31  ;;  %v485_v14 = vld [vmem:[#allocation2 + $0x78] sm:$0x7]  ;;  %v728_v56 = vshrl.u32 %v483_v47, 16  ;;  %v733_v2 = vrot.slane %v731_v16, 7 }
 0x592   : > { %v9889_v45 = vpop.f32.mrf.mxu0  ;;  %v747_v5 = vshrl.u32 %v485_v14, 16  ;;  %v750_v22 = vshll.u32 %v485_v14, 16  ;;  %v3772_v47 = vshll.u32 %v3574_v4, 16  ;;  %v12017_v14 = vld [vmem:[#allocation3 + $0x48c] sm:$0xf0] }
 0x593   : > { %v17273_v15 = vadd.f32 %v9889_v45, %v17188_v61  ;;  %9957 = vmatmul.bf16.gmra.mxu1 %v11920_v52  ;;  %v3767_v61 = vsel %vm17102_vm2, %v3758_v11, %v3766_v55  ;;  %v730_v3 = vrot.slane %v728_v56, 6  ;;  %v740_v52 = vshll.u32 %v484_v29, 16 }
 0x594   : > { %v9812_v51 = vpop.f32.mrf.mxu3  ;;  %4117 = vst [vmem:[#allocation3 + $0x3d0] sm:$0xf] %v3767_v61  ;;  %v749_v53 = vrot.slane %v747_v5, 6  ;;  %v752_v55 = vrot.slane %v750_v22, 7  ;;  %v3778_v29 = vshrl.u32 %v3575_v32, 16 }
 0x595   : > { %10204 = vmatmul.bf16.vlgmr.msrb.gmra.mxu0 %v11532_v0  ;;  %v17279_v24 = vadd.f32 %v9812_v51, %v9724_v50  ;;  %4233 = vst [vmem:[#allocation3 + $0x180] sm:$0xf] %v3767_v61  ;;  %v3769_v0 = vshrl.u32 %v3574_v4, 16  ;;  %v742_v45 = vrot.slane %v740_v52, 7  ;;  %v734_v31 = vor.u32 %v733_v2, %v730_v3  ;;  %v3576_v50 = vld [vmem:[#allocation2 + $0x5c] sm:$0x3] }
 0x596   : > { %10076 = vmatmul.bf16.gmra.mxu2 %v12524_v49  ;;  %v14146_v49 = vld [vmem:[#allocation3 + $0x42c] sm:$0xf]  ;;  %v9727_v61 = vadd.f32 %v16989_v6, %v17233_v30  ;;  %v753_v16 = vor.u32 %v752_v55, %v749_v53  ;;  %v3780_v8 = vrot.slane %v3778_v29, 5  ;;  %v3781_v3 = vshll.u32 %v3575_v32, 16  ;;  %v11631_v2 = vld [vmem:[#allocation3 + $0x118] sm:$0xf] }
 0x597   : > { %v3771_v11 = vrot.slane %v3769_v0, 5  ;;  %v735_v4 = vrot.slane %v734_v31, 4  ;;  %v14060_v22 = vld [vmem:[#allocation3 + $0x178] sm:$0xf0]  ;;  %v3791_v0 = vshll.u32 %v3576_v50, 16 }
 0x598   : > { %v9644_v26 = vpop.f32.mrf.mxu1  ;;  %v3783_v30 = vrot.slane %v3781_v3, 6  ;;  %v11632_v29 = vor.u32 %v14060_v22, %v11631_v2  ;;  %v487_v3 = vld [vmem:[#allocation2 + $0x84] sm:$0xf]  ;;  %v488_v22 = vld [vmem:[#allocation2 + $0x88] sm:$0x7] }
 0x599   : > { %v17287_v27 = vadd.f32 %v9644_v26, %v16835_v63  ;;  %10130 = vmatmul.bf16.gmra.mxu3 %v11828_v25  ;;  %v17294_v58 = vpop.f32.mrf.mxu2  ;;  %v743_v63 = vor.u32 %v742_v45, %v739_v28  ;;  %v3774_v25 = vrot.slane %v3772_v47, 6  ;;  %v12020_v28 = vor.u32 %v14146_v49, %v12017_v14  ;;  %v12623_v49 = vld [vmem:[#allocation3 + $0x8e0] sm:$0xf] }
 0x59a   : > { %v9891_v9 = vpop.f32.mrf.mxu0  ;;  %v3784_v31 = vor.u32 %v3783_v30, %v3780_v8  ;;  %v3793_v55 = vrot.slane %v3791_v0, 6  ;;  %v768_v0 = vshll.u32 %v487_v3, 16 }
 0x59b   : > { %v17290_v51 = vadd.f32 %v9891_v9, %v17209_v60  ;;  %v745_v5 = vrot.slane %v743_v63, 4  ;;  %v3775_v26 = vor.u32 %v3774_v25, %v3771_v11  ;;  %v3788_v60 = vshrl.u32 %v3576_v50, 16  ;;  %v14122_v9 = vld [vmem:[#allocation3 + $0x36c] sm:$0xf]  ;;  %v14309_v25 = vld [vmem:[#allocation3 + $0x940] sm:$0xf0] }
 0x59c   : > { %v9815_v56 = vpop.f32.mrf.mxu3  ;;  %v744_v6 = vsel %vm16980_vm15, %v735_v4, %v743_v63  ;;  %v486_v63 = vld [vmem:[#allocation2 + $0x80] sm:$0xc]  ;;  %v3786_v8 = vrot.slane %v3784_v31, 4 }
 0x59d   : > { %v17296_v52 = vadd.f32 %v9815_v56, %v9727_v61  ;;  %v754_v45 = vsel %vm16980_vm15, %v745_v5, %v753_v16  ;;  %1025 = vst [vmem:[#allocation3 + $0x5bc] sm:$0xf] %v744_v6  ;;  %v3776_v53 = vrot.slane %v3775_v26, 4  ;;  %v3790_v47 = vrot.slane %v3788_v60, 5  ;;  %v11925_v61 = vld [vmem:[#allocation3 + $0x3cc] sm:$0xf0] }
 0x59e   : > { %1026 = vst [vmem:[#allocation3 + $0x620] sm:$0xf] %v754_v45  ;;  %v12624_v26 = vor.u32 %v14309_v25, %v12623_v49  ;;  %v11928_v2 = vor.u32 %v14122_v9, %v11925_v61  ;;  %v756_v30 = vshrl.u32 %v486_v63, 16 }
 0x59f   : > { %1141 = vst [vmem:[#allocation3 + $0x370] sm:$0xf] %v744_v6  ;;  %v3785_v14 = vsel %vm17102_vm2, %v3776_v53, %v3784_v31  ;;  %v3794_v56 = vor.u32 %v3793_v55, %v3790_v47  ;;  %v770_v31 = vrot.slane %v768_v0, 7  ;;  %v778_v55 = vshll.u32 %v488_v22, 16 }
 0x5a0   : > { %v9647_v32 = vpop.f32.mrf.mxu1  ;;  %1142 = vst [vmem:[#allocation3 + $0x3d4] sm:$0xf] %v754_v45 }
 0x5a1   : > { %v17303_v11 = vadd.f32 %v9647_v32, %v16847_v13  ;;  %v9729_v13 = vadd.f32 %v17011_v43, %v17249_v7  ;;  %v17312_v16 = vpop.f32.mrf.mxu2  ;;  %1257 = vst [vmem:[#allocation3 + $0x120] sm:$0xf] %v744_v6  ;;  %v759_v43 = vshll.u32 %v486_v63, 16  ;;  %v765_v7 = vshrl.u32 %v487_v3, 16 }
 0x5a2   : > { %v9894_v50 = vpop.f32.mrf.mxu0  ;;  %1258 = vst [vmem:[#allocation3 + $0x184] sm:$0xf] %v754_v45  ;;  %v758_v6 = vrot.slane %v756_v30, 6  ;;  %v775_v32 = vshrl.u32 %v488_v22, 16  ;;  %v3579_v22 = vld [vmem:[#allocation2 + $0x6c] sm:$0x3] }
 0x5a3   : > { %v17308_v4 = vadd.f32 %v9894_v50, %v17226_v12  ;;  %9962 = vmatmul.bf16.gmra.mxu1 %v12020_v28  ;;  %v3795_v12 = vsel %vm17102_vm2, %v3786_v8, %v3794_v56  ;;  %4118 = vst [vmem:[#allocation3 + $0x434] sm:$0xf] %v3785_v14  ;;  %v3577_v28 = vld [vmem:[#allocation2 + $0x64] sm:$0xe]  ;;  %v761_v45 = vrot.slane %v759_v43, 7  ;;  %v767_v47 = vrot.slane %v765_v7, 6 }
 0x5a4   : > { %v9817_v5 = vpop.f32.mrf.mxu3  ;;  %4119 = vst [vmem:[#allocation3 + $0x498] sm:$0xf] %v3795_v12  ;;  %v777_v50 = vrot.slane %v775_v32, 6  ;;  %v3797_v49 = vshrl.u32 %v3577_v28, 16  ;;  %v3800_v25 = vshll.u32 %v3577_v28, 16  ;;  %v9732_v8 = vadd.f32 %v17029_v42, %v17268_v35 }
 0x5a5   : > { %10209 = vmatmul.bf16.gmra.mxu0 %v11632_v29  ;;  %v17314_v60 = vadd.f32 %v9817_v5, %v9729_v13  ;;  %4234 = vst [vmem:[#allocation3 + $0x1e4] sm:$0xf] %v3785_v14  ;;  %v3578_v29 = vld [vmem:[#allocation2 + $0x68] sm:$0xf]  ;;  %v762_v63 = vor.u32 %v761_v45, %v758_v6  ;;  %v14171_v56 = vld [vmem:[#allocation3 + $0x4f4] sm:$0xf]  ;;  %v771_v5 = vor.u32 %v770_v31, %v767_v47 }
 0x5a6   : > { %10081 = vmatmul.bf16.gmra.mxu2 %v12624_v26  ;;  %4235 = vst [vmem:[#allocation3 + $0x248] sm:$0xf] %v3795_v12  ;;  %v12117_v13 = vld [vmem:[#allocation3 + $0x554] sm:$0xf0]  ;;  %v780_v26 = vrot.slane %v778_v55, 7  ;;  %v3799_v30 = vrot.slane %v3797_v49, 5 }
 0x5a7   : > { %v763_v12 = vrot.slane %v762_v63, 4  ;;  %v3802_v43 = vrot.slane %v3800_v25, 6  ;;  %v11731_v7 = vld [vmem:[#allocation3 + $0x1e0] sm:$0xf]  ;;  %v14085_v6 = vld [vmem:[#allocation3 + $0x240] sm:$0xf0] }
 0x5a8   : > { %v9649_v53 = vpop.f32.mrf.mxu1  ;;  %v773_v42 = vrot.slane %v771_v5, 4  ;;  %v781_v35 = vor.u32 %v780_v26, %v777_v50  ;;  %v3809_v28 = vshll.u32 %v3578_v29, 16  ;;  %v3819_v63 = vshll.u32 %v3579_v22, 16 }
 0x5a9   : > { %v17319_v9 = vadd.f32 %v9649_v53, %v16859_v21  ;;  %10135 = vmatmul.bf16.gmra.mxu3 %v11928_v2  ;;  %v17326_v3 = vpop.f32.mrf.mxu2  ;;  %v14592_v21 = vld [vmem:[%s18470_s1 + $0x598] sm:$0xff]  ;;  %v12120_v53 = vor.u32 %v14171_v56, %v12117_v13  ;;  %v772_v45 = vsel %vm16980_vm15, %v763_v12, %v771_v5  ;;  %v3803_v47 = vor.u32 %v3802_v43, %v3799_v30  ;;  %v14334_v12 = vld [vmem:[#allocation3 + $0xa08] sm:$0xf0] }
 0x5aa   : > { %v9896_v61 = vpop.f32.mrf.mxu0  ;;  %10378 = vmatpush.bf16.msrb.mxu2 %v14592_v21  ;;  %v782_v31 = vsel %vm16980_vm15, %v773_v42, %v781_v35  ;;  %1027 = vst [vmem:[#allocation3 + $0x684] sm:$0xf] %v772_v45  ;;  %v3811_v55 = vrot.slane %v3809_v28, 6  ;;  %v11732_v25 = vor.u32 %v14085_v6, %v11731_v7  ;;  %v3821_v5 = vrot.slane %v3819_v63, 6  ;;  %v489_v7 = vld [vmem:[#allocation2 + $0x90] sm:$0xc] }
 0x5ab   : > { %v17322_v14 = vadd.f32 %v9896_v61, %v17246_v19  ;;  %v3806_v19 = vshrl.u32 %v3578_v29, 16  ;;  %v3816_v61 = vshrl.u32 %v3579_v22, 16  ;;  %1028 = vst [vmem:[#allocation3 + $0x6e8] sm:$0xf] %v782_v31  ;;  %v3804_v21 = vrot.slane %v3803_v47, 4 }
 0x5ac   : > { %v9820_v2 = vpop.f32.mrf.mxu3  ;;  %v12025_v50 = vld [vmem:[#allocation3 + $0x494] sm:$0xf0]  ;;  %1143 = vst [vmem:[#allocation3 + $0x438] sm:$0xf] %v772_v45  ;;  %v9734_v22 = vadd.f32 %v17045_v20, %v17287_v27  ;;  %v490_v28 = vld [vmem:[#allocation2 + $0x94] sm:$0xf] }
 0x5ad   : > { %v17331_v0 = vadd.f32 %v9820_v2, %v9732_v8  ;;  %v3808_v32 = vrot.slane %v3806_v19, 5  ;;  %v14147_v8 = vld [vmem:[#allocation3 + $0x434] sm:$0xf]  ;;  %v3818_v13 = vrot.slane %v3816_v61, 5  ;;  %1144 = vst [vmem:[#allocation3 + $0x49c] sm:$0xf] %v782_v31 }
 0x5ae   : > { %v12723_v2 = vld [vmem:[#allocation3 + $0x9a8] sm:$0xf]  ;;  %1259 = vst [vmem:[#allocation3 + $0x1e8] sm:$0xf] %v772_v45  ;;  %v14584_v20 = vld [vmem:[%s18470_s1 + $0x558] sm:$0xff]  ;;  %v796_v61 = vshll.u32 %v490_v28, 16 }
 0x5af   : > { %v3812_v56 = vor.u32 %v3811_v55, %v3808_v32  ;;  %1260 = vst [vmem:[#allocation3 + $0x24c] sm:$0xf] %v782_v31  ;;  %v12724_v42 = vor.u32 %v14334_v12, %v12723_v2  ;;  %v3822_v35 = vor.u32 %v3821_v5, %v3818_v13  ;;  %v14604_v27 = vld [vmem:[%s18470_s1 + $0x5f8] sm:$0xff]  ;;  %v784_v32 = vshrl.u32 %v489_v7, 16  ;;  %10289 = vmatpush.bf16.msra.mxu1 %v14584_v20 }
 0x5b0   : > { %v9652_v49 = vpop.f32.mrf.mxu1  ;;  %v491_v45 = vld [vmem:[#allocation2 + $0x98] sm:$0x7]  ;;  %v787_v31 = vshll.u32 %v489_v7, 16  ;;  %10463 = vmatpush.bf16.msra.mxu3 %v14604_v27  ;;  %v793_v55 = vshrl.u32 %v490_v28, 16  ;;  %v12217_v7 = vld [vmem:[#allocation3 + $0x61c] sm:$0xf0] }
 0x5b1   : > { %v17338_v29 = vadd.f32 %v9652_v49, %v16877_v36  ;;  %v17345_v43 = vpop.f32.mrf.mxu2  ;;  %v3813_v36 = vsel %vm17102_vm2, %v3804_v21, %v3812_v56  ;;  %v3814_v19 = vrot.slane %v3812_v56, 4  ;;  %v786_v49 = vrot.slane %v784_v32, 6  ;;  %v3582_v20 = vld [vmem:[#allocation2 + $0x7c] sm:$0x3]  ;;  %v11831_v32 = vld [vmem:[#allocation3 + $0x2a8] sm:$0xf] }
 0x5b2   : > { %v9899_v26 = vpop.f32.mrf.mxu0  ;;  %4120 = vst [vmem:[#allocation3 + $0x4fc] sm:$0xf] %v3813_v36  ;;  %v798_v56 = vrot.slane %v796_v61, 7  ;;  %v806_v13 = vshll.u32 %v491_v45, 16 }
 0x5b3   : > { %v17341_v30 = vadd.f32 %v9899_v26, %v17263_v17  ;;  %9967 = vmatmul.bf16.gmra.mxu1 %v12120_v53  ;;  %v12028_v53 = vor.u32 %v14147_v8, %v12025_v50  ;;  %v3823_v47 = vsel %vm17102_vm2, %v3814_v19, %v3822_v35  ;;  %4352 = vst [vmem:[#allocation3 + $0x60] sm:$0xf] %v3813_v36  ;;  %v803_v8 = vshrl.u32 %v491_v45, 16  ;;  %v14196_v26 = vld [vmem:[#allocation3 + $0x5bc] sm:$0xf] }
 0x5b4   : > { %v9822_v6 = vpop.f32.mrf.mxu3  ;;  %4121 = vst [vmem:[#allocation3 + $0x560] sm:$0xf] %v3823_v47  ;;  %v795_v50 = vrot.slane %v793_v55, 6  ;;  %v3581_v35 = vld [vmem:[#allocation2 + $0x78] sm:$0xf] }
 0x5b5   : > { %18571 = vst [vmem:[#allocation17_spill] sm:$0xff] %v17341_v30  ;;  %10214 = vmatmul.bf16.gmra.mxu0 %v11732_v25  ;;  %v17349_v17 = vadd.f32 %v9822_v6, %v9734_v22  ;;  %v789_v25 = vrot.slane %v787_v31, 7  ;;  %v805_v12 = vrot.slane %v803_v8, 6  ;;  %v3580_v22 = vld [vmem:[#allocation2 + $0x74] sm:$0xe]  ;;  %v9737_v6 = vadd.f32 %v17068_v33, %v17303_v11 }
 0x5b6   : > { %10086 = vmatmul.bf16.gmra.mxu2 %v12724_v42  ;;  %4353 = vst [vmem:[#allocation3 + $0xc4] sm:$0xf] %v3823_v47  ;;  %v799_v42 = vor.u32 %v798_v56, %v795_v50  ;;  %v3825_v27 = vshrl.u32 %v3580_v22, 16  ;;  %v3828_v45 = vshll.u32 %v3580_v22, 16  ;;  %v3837_v61 = vshll.u32 %v3581_v35, 16 }
 0x5b7   : > { %4236 = vst [vmem:[#allocation3 + $0x2ac] sm:$0xf] %v3813_v36  ;;  %v790_v2 = vor.u32 %v789_v25, %v786_v49  ;;  %v808_v36 = vrot.slane %v806_v13, 7  ;;  %v12220_v8 = vor.u32 %v14196_v26, %v12217_v7  ;;  %v3844_v13 = vshrl.u32 %v3582_v20, 16  ;;  %v492_v26 = vld [vmem:[#allocation2 + $0xa0] sm:$0xc] }
 0x5b8   : > { %v9654_v63 = vpop.f32.mrf.mxu1  ;;  %4237 = vst [vmem:[#allocation3 + $0x310] sm:$0xf] %v3823_v47  ;;  %v3834_v47 = vshrl.u32 %v3581_v35, 16  ;;  %v3827_v11 = vrot.slane %v3825_v27, 5  ;;  %v3830_v49 = vrot.slane %v3828_v45, 6  ;;  %v3839_v56 = vrot.slane %v3837_v61, 6 }
 0x5b9   : > { %v17360_v21 = vadd.f32 %v9654_v63, %v16895_v18  ;;  %10140 = vmatmul.bf16.gmra.mxu3 %v12028_v53  ;;  %v17367_v18 = vpop.f32.mrf.mxu2  ;;  %v791_v53 = vrot.slane %v790_v2, 4  ;;  %v809_v55 = vor.u32 %v808_v36, %v805_v12  ;;  %v14110_v63 = vld [vmem:[#allocation3 + $0x308] sm:$0xf0]  ;;  %v14172_v2 = vld [vmem:[#allocation3 + $0x4fc] sm:$0xf] }
 0x5ba   : > { %v9901_v5 = vpop.f32.mrf.mxu0  ;;  %v3836_v25 = vrot.slane %v3834_v47, 5  ;;  %v3831_v12 = vor.u32 %v3830_v49, %v3827_v11  ;;  %v14359_v27 = vld [vmem:[#allocation3 + $0xad0] sm:$0xf0]  ;;  %v18574_v47 = vld [vmem:[#allocation15_spill] sm:$0xff]  ;;  %v812_v11 = vshrl.u32 %v492_v26, 16 }
 0x5bb   : > { %v17363_v19 = vadd.f32 %v9901_v5, %v17279_v24  ;;  %v801_v24 = vrot.slane %v799_v42, 4  ;;  %v800_v33 = vsel %vm16980_vm15, %v791_v53, %v799_v42  ;;  %v12125_v22 = vld [vmem:[#allocation3 + $0x55c] sm:$0xf0]  ;;  %v11832_v42 = vor.u32 %v14110_v63, %v11831_v32  ;;  %v12823_v53 = vld [vmem:[#allocation3 + $0xa70] sm:$0xf] }
 0x5bc   : > { %v9825_v28 = vpop.f32.mrf.mxu3  ;;  %1029 = vst [vmem:[#allocation3 + $0x74c] sm:$0xf] %v800_v33  ;;  %v3840_v35 = vor.u32 %v3839_v56, %v3836_v25  ;;  %v12128_v25 = vor.u32 %v14172_v2, %v12125_v22  ;;  %v494_v56 = vld [vmem:[#allocation2 + $0xa8] sm:$0x7] }
 0x5bd   : > { %18572 = vst [vmem:[#allocation14_spill] sm:$0xff] %v17363_v19  ;;  %v17369_v31 = vadd.f32 %v9825_v28, %v9737_v6  ;;  %v810_v50 = vsel %vm16980_vm15, %v801_v24, %v809_v55  ;;  %v3847_v6 = vshll.u32 %v3582_v20, 16  ;;  %v3846_v28 = vrot.slane %v3844_v13, 5 }
 0x5be   : > { %1030 = vst [vmem:[#allocation3 + $0x7b0] sm:$0xf] %v810_v50  ;;  %v9739_v24 = vadd.f32 %v18574_v47, %v17319_v9  ;;  %v12824_v55 = vor.u32 %v14359_v27, %v12823_v53  ;;  %v3842_v61 = vrot.slane %v3840_v35, 4  ;;  %v815_v9 = vshll.u32 %v492_v26, 16  ;;  %v3584_v47 = vld [vmem:[#allocation2 + $0x88] sm:$0xf] }
 0x5bf   : > { %1145 = vst [vmem:[#allocation3 + $0x500] sm:$0xf] %v800_v33  ;;  %v3849_v63 = vrot.slane %v3847_v6, 6  ;;  %v831_v22 = vshrl.u32 %v494_v56, 16  ;;  %v834_v27 = vshll.u32 %v494_v56, 16 }
 0x5c0   : > { %v9657_v5 = vpop.f32.mrf.mxu1  ;;  %1146 = vst [vmem:[#allocation3 + $0x564] sm:$0xf] %v810_v50 }
 0x5c1   : > { %v17376_v36 = vadd.f32 %v9657_v5, %v16907_v40  ;;  %v17383_v20 = vpop.f32.mrf.mxu2  ;;  %1261 = vst [vmem:[#allocation3 + $0x2b0] sm:$0xf] %v800_v33  ;;  %v3832_v40 = vrot.slane %v3831_v12, 4  ;;  %v3850_v13 = vor.u32 %v3849_v63, %v3846_v28  ;;  %v814_v33 = vrot.slane %v812_v11, 6  ;;  %v18577_v63 = vld [vmem:[#allocation20_spill] sm:$0xff] }
 0x5c2   : > { %v9904_v7 = vpop.f32.mrf.mxu0  ;;  %1262 = vst [vmem:[#allocation3 + $0x314] sm:$0xf] %v810_v50  ;;  %v817_v50 = vrot.slane %v815_v9, 7  ;;  %v9742_v11 = vadd.f32 %v18577_v63, %v17338_v29  ;;  %v3585_v9 = vld [vmem:[#allocation2 + $0x8c] sm:$0x3] }
 0x5c3   : > { %v17379_v45 = vadd.f32 %v9904_v7, %v17296_v52  ;;  %9972 = vmatmul.bf16.gmra.mxu1 %v12220_v8  ;;  %v3841_v52 = vsel %vm17102_vm2, %v3832_v40, %v3840_v35  ;;  %v493_v8 = vld [vmem:[#allocation2 + $0xa4] sm:$0xf]  ;;  %v3851_v6 = vsel %vm17102_vm2, %v3842_v61, %v3850_v13  ;;  %v18575_v35 = vld [vmem:[#allocation19_spill] sm:$0xff]  ;;  %v12317_v13 = vld [vmem:[#allocation3 + $0x6e4] sm:$0xf0] }
 0x5c4   : > { %v9827_v32 = vpop.f32.mrf.mxu3  ;;  %4122 = vst [vmem:[#allocation3 + $0x5c4] sm:$0xf] %v3841_v52  ;;  %v821_v5 = vshrl.u32 %v493_v8, 16  ;;  %v824_v12 = vshll.u32 %v493_v8, 16  ;;  %v818_v28 = vor.u32 %v817_v50, %v814_v33  ;;  %v14221_v40 = vld [vmem:[#allocation3 + $0x684] sm:$0xf] }
 0x5c5   : > { %18573 = vst [vmem:[#allocation18_spill] sm:$0xff] %v17379_v45  ;;  %10219 = vmatmul.bf16.gmra.mxu0 %v11832_v42  ;;  %v17385_v49 = vadd.f32 %v9827_v32, %v9739_v24  ;;  %v3583_v42 = vld [vmem:[#allocation2 + $0x84] sm:$0xe]  ;;  %v833_v32 = vrot.slane %v831_v22, 6  ;;  %v14135_v22 = vld [vmem:[#allocation3 + $0x3d0] sm:$0xf0] }
 0x5c6   : > { %4238 = vst [vmem:[#allocation3 + $0x374] sm:$0xf] %v3841_v52  ;;  %10091 = vmatmul.bf16.gmra.mxu2 %v12824_v55  ;;  %v823_v2 = vrot.slane %v821_v5, 6  ;;  %v826_v26 = vrot.slane %v824_v12, 7  ;;  %v3853_v55 = vshrl.u32 %v3583_v42, 16  ;;  %v819_v8 = vrot.slane %v818_v28, 4 }
 0x5c7   : > { %4354 = vst [vmem:[#allocation3 + $0x128] sm:$0xf] %v3841_v52  ;;  %v836_v5 = vrot.slane %v834_v27, 7  ;;  %v3856_v12 = vshll.u32 %v3583_v42, 16  ;;  %v3875_v42 = vshll.u32 %v3585_v9, 16 }
 0x5c8   : > { %v9659_v7 = vpop.f32.mrf.mxu1  ;;  %4123 = vst [vmem:[#allocation3 + $0x628] sm:$0xf] %v3851_v6  ;;  %v827_v56 = vor.u32 %v826_v26, %v823_v2  ;;  %v3855_v50 = vrot.slane %v3853_v55, 5  ;;  %v3872_v26 = vshrl.u32 %v3585_v9, 16  ;;  %v12923_v9 = vld [vmem:[#allocation3 + $0xb38] sm:$0xf] }
 0x5c9   : > { %v17392_v53 = vadd.f32 %v9659_v7, %v18575_v35  ;;  %10145 = vmatmul.bf16.gmra.mxu3 %v12128_v25  ;;  %4239 = vst [vmem:[#allocation3 + $0x3d8] sm:$0xf] %v3851_v6  ;;  %v17399_v52 = vpop.f32.mrf.mxu2  ;;  %v14591_v25 = vld [vmem:[%s18470_s1 + $0x590] sm:$0xff]  ;;  %v837_v63 = vor.u32 %v836_v5, %v833_v32  ;;  %v3858_v2 = vrot.slane %v3856_v12, 6  ;;  %v3877_v5 = vrot.slane %v3875_v42, 6 }
 0x5ca   : > { %v9906_v24 = vpop.f32.mrf.mxu0  ;;  %4355 = vst [vmem:[#allocation3 + $0x18c] sm:$0xf] %v3851_v6  ;;  %v11931_v7 = vld [vmem:[#allocation3 + $0x370] sm:$0xf]  ;;  %10379 = vmatpush.bf16.msrb.mxu2 %v14591_v25  ;;  %v828_v29 = vsel %vm16980_vm15, %v819_v8, %v827_v56  ;;  %v829_v6 = vrot.slane %v827_v56, 4  ;;  %v3874_v8 = vrot.slane %v3872_v26, 5 }
 0x5cb   : > { %v17395_v61 = vadd.f32 %v9906_v24, %v17314_v60  ;;  %v3862_v60 = vshrl.u32 %v3584_v47, 16  ;;  %v3865_v24 = vshll.u32 %v3584_v47, 16  ;;  %1031 = vst [vmem:[#allocation3 + $0x814] sm:$0xf] %v828_v29  ;;  %v14197_v45 = vld [vmem:[#allocation3 + $0x5c4] sm:$0xf]  ;;  %v3859_v25 = vor.u32 %v3858_v2, %v3855_v50 }
 0x5cc   : > { %v9830_v33 = vpop.f32.mrf.mxu3  ;;  %1147 = vst [vmem:[#allocation3 + $0x5c8] sm:$0xf] %v828_v29  ;;  %v18578_v56 = vld [vmem:[#allocation4_spill] sm:$0xff]  ;;  %v11932_v32 = vor.u32 %v14135_v22, %v11931_v7  ;;  %v14384_v12 = vld [vmem:[#allocation3 + $0xb98] sm:$0xf0]  ;;  %v9744_v50 = vadd.f32 %v17155_v46, %v17360_v21  ;;  %v14583_v46 = vld [vmem:[%s18470_s1 + $0x550] sm:$0xff] }
 0x5cd   : > { %18576 = vst [vmem:[#allocation16_spill] sm:$0xff] %v17395_v61  ;;  %v17404_v35 = vadd.f32 %v9830_v33, %v9742_v11  ;;  %v3864_v28 = vrot.slane %v3862_v60, 5  ;;  %v12320_v61 = vor.u32 %v14221_v40, %v12317_v13  ;;  %v3867_v27 = vrot.slane %v3865_v24, 6  ;;  %v495_v40 = vld [vmem:[#allocation2 + $0xb0] sm:$0xc]  ;;  %10290 = vmatpush.bf16.msra.mxu1 %v14583_v46 }
 0x5ce   : > { %v838_v11 = vsel %vm16980_vm15, %v829_v6, %v837_v63  ;;  %1263 = vst [vmem:[#allocation3 + $0x378] sm:$0xf] %v828_v29  ;;  %v3860_v6 = vrot.slane %v3859_v25, 4  ;;  %v12924_v24 = vor.u32 %v14384_v12, %v12923_v9  ;;  %v3878_v63 = vor.u32 %v3877_v5, %v3874_v8  ;;  %v496_v2 = vld [vmem:[#allocation2 + $0xb4] sm:$0xf]  ;;  %v18580_v5 = vld [vmem:[#allocation7_spill] sm:$0xff] }
 0x5cf   : > { %v12225_v19 = vld [vmem:[#allocation3 + $0x624] sm:$0xf0]  ;;  %1032 = vst [vmem:[#allocation3 + $0x878] sm:$0xf] %v838_v11  ;;  %v3868_v33 = vor.u32 %v3867_v27, %v3864_v28  ;;  %v497_v28 = vld [vmem:[#allocation2 + $0xb8] sm:$0x7] }
 0x5d0   : > { %v9938_v55 = vpop.f32.mrf.mxu1  ;;  %1148 = vst [vmem:[#allocation3 + $0x62c] sm:$0xf] %v838_v11  ;;  %v12228_v27 = vor.u32 %v14197_v45, %v12225_v19  ;;  %v14603_v21 = vld [vmem:[%s18470_s1 + $0x5f0] sm:$0xff]  ;;  %v852_v25 = vshll.u32 %v496_v2, 16  ;;  %v859_v45 = vshrl.u32 %v497_v28, 16  ;;  %v862_v8 = vshll.u32 %v497_v28, 16 }
 0x5d1   : > { %v17411_v47 = vadd.f32 %v9938_v55, %v18578_v56  ;;  %v17418_v29 = vpop.f32.mrf.mxu2  ;;  %1264 = vst [vmem:[#allocation3 + $0x3dc] sm:$0xf] %v838_v11  ;;  %v3870_v7 = vrot.slane %v3868_v33, 4  ;;  %v843_v55 = vshll.u32 %v495_v40, 16  ;;  %v849_v11 = vshrl.u32 %v496_v2, 16  ;;  %10464 = vmatpush.bf16.msra.mxu3 %v14603_v21 }
 0x5d2   : > { %v9909_v13 = vpop.f32.mrf.mxu0  ;;  %v854_v9 = vrot.slane %v852_v25, 7  ;;  %v3586_v12 = vld [vmem:[#allocation2 + $0x94] sm:$0xe]  ;;  %v9747_v28 = vadd.f32 %v17180_v57, %v17376_v36  ;;  %v3588_v21 = vld [vmem:[#allocation2 + $0x9c] sm:$0x3] }
 0x5d3   : > { %v17414_v60 = vadd.f32 %v9909_v13, %v17331_v0  ;;  %9977 = vmatmul.bf16.gmra.mxu1 %v12320_v61  ;;  %v3869_v0 = vsel %vm17102_vm2, %v3860_v6, %v3868_v33  ;;  %v840_v61 = vshrl.u32 %v495_v40, 16  ;;  %v3879_v42 = vsel %vm17102_vm2, %v3870_v7, %v3878_v63  ;;  %v14246_v6 = vld [vmem:[#allocation3 + $0x74c] sm:$0xf]  ;;  %v3587_v63 = vld [vmem:[#allocation2 + $0x98] sm:$0xf] }
 0x5d4   : > { %v9832_v22 = vpop.f32.mrf.mxu3  ;;  %4124 = vst [vmem:[#allocation3 + $0x68c] sm:$0xf] %v3869_v0  ;;  %v851_v33 = vrot.slane %v849_v11, 6  ;;  %v861_v40 = vrot.slane %v859_v45, 6  ;;  %v3881_v2 = vshrl.u32 %v3586_v12, 16  ;;  %v3890_v45 = vshrl.u32 %v3587_v63, 16 }
 0x5d5   : > { %18579 = vst [vmem:[#allocation15_spill] sm:$0xff] %v17414_v60  ;;  %10224 = vmatmul.bf16.gmra.mxu0 %v11932_v32  ;;  %v17420_v26 = vadd.f32 %v9832_v22, %v9744_v50  ;;  %v842_v19 = vrot.slane %v840_v61, 6  ;;  %v845_v32 = vrot.slane %v843_v55, 7  ;;  %v864_v22 = vrot.slane %v862_v8, 7  ;;  %v12417_v55 = vld [vmem:[#allocation3 + $0x7ac] sm:$0xf0] }
 0x5d6   : > { %4125 = vst [vmem:[#allocation3 + $0x6f0] sm:$0xf] %v3879_v42  ;;  %10096 = vmatmul.bf16.gmra.mxu2 %v12924_v24  ;;  %v3884_v61 = vshll.u32 %v3586_v12, 16  ;;  %v12031_v8 = vld [vmem:[#allocation3 + $0x438] sm:$0xf]  ;;  %v3892_v36 = vrot.slane %v3890_v45, 5 }
 0x5d7   : > { %4240 = vst [vmem:[#allocation3 + $0x43c] sm:$0xf] %v3869_v0  ;;  %v846_v7 = vor.u32 %v845_v32, %v842_v19  ;;  %v3883_v19 = vrot.slane %v3881_v2, 5  ;;  %v14409_v45 = vld [vmem:[#allocation3 + $0xc60] sm:$0xf0] }
 0x5d8   : > { %v9940_v56 = vpop.f32.mrf.mxu1  ;;  %4241 = vst [vmem:[#allocation3 + $0x4a0] sm:$0xf] %v3879_v42  ;;  %v3886_v32 = vrot.slane %v3884_v61, 6 }
 0x5d9   : > { %v17433_v13 = vadd.f32 %v9940_v56, %v18580_v5  ;;  %10150 = vmatmul.bf16.gmra.mxu3 %v12228_v27  ;;  %4356 = vst [vmem:[#allocation3 + $0x1f0] sm:$0xf] %v3869_v0  ;;  %v17440_v46 = vpop.f32.mrf.mxu2  ;;  %v855_v27 = vor.u32 %v854_v9, %v851_v33  ;;  %v847_v25 = vrot.slane %v846_v7, 4  ;;  %v865_v0 = vor.u32 %v864_v22, %v861_v40 }
 0x5da   : > { %v9911_v50 = vpop.f32.mrf.mxu0  ;;  %4357 = vst [vmem:[#allocation3 + $0x254] sm:$0xf] %v3879_v42  ;;  %v3893_v5 = vshll.u32 %v3587_v63, 16  ;;  %v3900_v42 = vshrl.u32 %v3588_v21, 16  ;;  %v3903_v33 = vshll.u32 %v3588_v21, 16  ;;  %v12420_v9 = vor.u32 %v14246_v6, %v12417_v55 }
 0x5db   : > { %v17436_v24 = vadd.f32 %v9911_v50, %v17349_v17  ;;  %v857_v17 = vrot.slane %v855_v27, 4  ;;  %v14160_v50 = vld [vmem:[#allocation3 + $0x498] sm:$0xf0]  ;;  %v856_v57 = vsel %vm16980_vm15, %v847_v25, %v855_v27  ;;  %v3887_v40 = vor.u32 %v3886_v32, %v3883_v19  ;;  %v14222_v2 = vld [vmem:[#allocation3 + $0x68c] sm:$0xf] }
 0x5dc   : > { %v9835_v11 = vpop.f32.mrf.mxu3  ;;  %1033 = vst [vmem:[#allocation3 + $0x8dc] sm:$0xf] %v856_v57  ;;  %v3895_v7 = vrot.slane %v3893_v5, 6  ;;  %v3902_v61 = vrot.slane %v3900_v42, 5  ;;  %v3905_v63 = vrot.slane %v3903_v33, 6  ;;  %v12032_v27 = vor.u32 %v14160_v50, %v12031_v8 }
 0x5dd   : > { %18581 = vst [vmem:[#allocation19_spill] sm:$0xff] %v17436_v24  ;;  %v17442_v56 = vadd.f32 %v9835_v11, %v9747_v28  ;;  %v866_v12 = vsel %vm16980_vm15, %v857_v17, %v865_v0  ;;  %v12325_v28 = vld [vmem:[#allocation3 + $0x6ec] sm:$0xf0]  ;;  %v18582_v11 = vld [vmem:[#allocation5_spill] sm:$0xff]  ;;  %v3888_v25 = vrot.slane %v3887_v40, 4  ;;  %v9749_v32 = vadd.f32 %v17205_v38, %v17392_v53 }
 0x5de   : > { %1034 = vst [vmem:[#allocation3 + $0x940] sm:$0xf] %v866_v12  ;;  %v3896_v21 = vor.u32 %v3895_v7, %v3892_v36  ;;  %v498_v6 = vld [vmem:[#allocation2 + $0xc0] sm:$0xc]  ;;  %v3906_v19 = vor.u32 %v3905_v63, %v3902_v61  ;;  %v499_v33 = vld [vmem:[#allocation2 + $0xc4] sm:$0xf] }
 0x5df   : > { %1149 = vst [vmem:[#allocation3 + $0x690] sm:$0xf] %v856_v57  ;;  %v13023_v0 = vld [vmem:[#allocation3 + $0xc00] sm:$0xf]  ;;  %v500_v38 = vld [vmem:[#allocation2 + $0xc8] sm:$0x7] }
 0x5e0   : > { %v9943_v22 = vpop.f32.mrf.mxu1  ;;  %1150 = vst [vmem:[#allocation3 + $0x6f4] sm:$0xf] %v866_v12  ;;  %v3897_v8 = vsel %vm17102_vm2, %v3888_v25, %v3896_v21  ;;  %v3898_v50 = vrot.slane %v3896_v21, 4  ;;  %v13024_v42 = vor.u32 %v14409_v45, %v13023_v0  ;;  %v868_v53 = vshrl.u32 %v498_v6, 16  ;;  %v18584_v25 = vld [vmem:[#allocation9_spill] sm:$0xff] }
 0x5e1   : > { %v17449_v24 = vadd.f32 %v9943_v22, %v18582_v11  ;;  %v17456_v5 = vpop.f32.mrf.mxu2  ;;  %1265 = vst [vmem:[#allocation3 + $0x440] sm:$0xf] %v856_v57  ;;  %v871_v57 = vshll.u32 %v498_v6, 16  ;;  %v877_v7 = vshrl.u32 %v499_v33, 16  ;;  %v880_v61 = vshll.u32 %v499_v33, 16 }
 0x5e2   : > { %v9914_v55 = vpop.f32.mrf.mxu0  ;;  %1266 = vst [vmem:[#allocation3 + $0x4a4] sm:$0xf] %v866_v12  ;;  %v870_v22 = vrot.slane %v868_v53, 6  ;;  %v890_v21 = vshll.u32 %v500_v38, 16  ;;  %v10028_v33 = vadd.f32 %v17224_v62, %v17411_v47 }
 0x5e3   : > { %v17452_v17 = vadd.f32 %v9914_v55, %v17369_v31  ;;  %9982 = vmatmul.bf16.gmra.mxu1 %v12420_v9  ;;  %v12328_v31 = vor.u32 %v14222_v2, %v12325_v28  ;;  %v3907_v9 = vsel %vm17102_vm2, %v3898_v50, %v3906_v19  ;;  %4126 = vst [vmem:[#allocation3 + $0x754] sm:$0xf] %v3897_v8  ;;  %v873_v12 = vrot.slane %v871_v57, 7  ;;  %v3589_v55 = vld [vmem:[#allocation2 + $0xa4] sm:$0xe] }
 0x5e4   : > { %v9837_v36 = vpop.f32.mrf.mxu3  ;;  %4127 = vst [vmem:[#allocation3 + $0x7b8] sm:$0xf] %v3907_v9  ;;  %v879_v11 = vrot.slane %v877_v7, 6  ;;  %v882_v28 = vrot.slane %v880_v61, 7  ;;  %v3590_v19 = vld [vmem:[#allocation2 + $0xa8] sm:$0xf] }
 0x5e5   : > { %18583 = vst [vmem:[#allocation20_spill] sm:$0xff] %v17452_v17  ;;  %10229 = vmatmul.bf16.gmra.mxu0 %v12032_v27  ;;  %v17460_v40 = vadd.f32 %v9837_v36, %v9749_v32  ;;  %v887_v27 = vshrl.u32 %v500_v38, 16  ;;  %v874_v6 = vor.u32 %v873_v12, %v870_v22  ;;  %v3909_v32 = vshrl.u32 %v3589_v55, 16  ;;  %v14271_v36 = vld [vmem:[#allocation3 + $0x814] sm:$0xf] }
 0x5e6   : > { %4242 = vst [vmem:[#allocation3 + $0x504] sm:$0xf] %v3897_v8  ;;  %10101 = vmatmul.bf16.gmra.mxu2 %v13024_v42  ;;  %v12517_v42 = vld [vmem:[#allocation3 + $0x874] sm:$0xf0]  ;;  %v3591_v7 = vld [vmem:[#allocation2 + $0xac] sm:$0x3] }
 0x5e7   : > { %4243 = vst [vmem:[#allocation3 + $0x568] sm:$0xf] %v3907_v9  ;;  %v889_v45 = vrot.slane %v887_v27, 6  ;;  %v875_v57 = vrot.slane %v874_v6, 4  ;;  %v3911_v22 = vrot.slane %v3909_v32, 5  ;;  %v3912_v61 = vshll.u32 %v3589_v55, 16 }
 0x5e8   : > { %v9945_v63 = vpop.f32.mrf.mxu1  ;;  %4358 = vst [vmem:[#allocation3 + $0x2b8] sm:$0xf] %v3897_v8  ;;  %v14590_v8 = vld [vmem:[%s18470_s1 + $0x588] sm:$0xff]  ;;  %v14185_v12 = vld [vmem:[#allocation3 + $0x560] sm:$0xf0]  ;;  %v3928_v32 = vshrl.u32 %v3591_v7, 16 }
 0x5e9   : > { %v17465_v2 = vadd.f32 %v9945_v63, %v18584_v25  ;;  %10155 = vmatmul.bf16.gmra.mxu3 %v12328_v31  ;;  %4359 = vst [vmem:[#allocation3 + $0x31c] sm:$0xf] %v3907_v9  ;;  %v17472_v53 = vpop.f32.mrf.mxu2  ;;  %v883_v31 = vor.u32 %v882_v28, %v879_v11  ;;  %v892_v9 = vrot.slane %v890_v21, 7  ;;  %v12131_v63 = vld [vmem:[#allocation3 + $0x500] sm:$0xf]  ;;  %10380 = vmatpush.bf16.msrb.mxu2 %v14590_v8  ;;  %v3921_v25 = vshll.u32 %v3590_v19, 16 }
 0x5ea   : > { %v9916_v0 = vpop.f32.mrf.mxu0  ;;  %v3914_v11 = vrot.slane %v3912_v61, 6  ;;  %v14247_v21 = vld [vmem:[#allocation3 + $0x754] sm:$0xf]  ;;  %v3931_v17 = vshll.u32 %v3591_v7, 16  ;;  %v501_v61 = vld [vmem:[#allocation2 + $0xd0] sm:$0xc]  ;;  %v10030_v7 = vadd.f32 %v17242_v10, %v17433_v13 }
 0x5eb   : > { %v17468_v50 = vadd.f32 %v9916_v0, %v17385_v49  ;;  %v3918_v49 = vshrl.u32 %v3590_v19, 16  ;;  %v885_v62 = vrot.slane %v883_v31, 4  ;;  %v893_v47 = vor.u32 %v892_v9, %v889_v45  ;;  %v12425_v8 = vld [vmem:[#allocation3 + $0x7b4] sm:$0xf0]  ;;  %v14589_v45 = vld [vmem:[%s18470_s1 + $0x580] sm:$0xff] }
 0x5ec   : > { %v10116_v38 = vpop.f32.mrf.mxu3  ;;  %v12520_v0 = vor.u32 %v14271_v36, %v12517_v42  ;;  %v3923_v55 = vrot.slane %v3921_v25, 6  ;;  %v3915_v19 = vor.u32 %v3914_v11, %v3911_v22  ;;  %v18586_v36 = vld [vmem:[#allocation6_spill] sm:$0xff]  ;;  %v3930_v9 = vrot.slane %v3928_v32, 5  ;;  %v11539_v10 = vld [vmem:[#allocation3 + $0x58] sm:$0xf] }
 0x5ed   : > { %18585 = vst [vmem:[#allocation4_spill] sm:$0xff] %v17468_v50  ;;  %v17477_v27 = vadd.f32 %v10116_v38, %v10028_v33  ;;  %v884_v50 = vsel %vm16980_vm15, %v875_v57, %v883_v31  ;;  %v3920_v28 = vrot.slane %v3918_v49, 5  ;;  %v894_v6 = vsel %vm16980_vm15, %v885_v62, %v893_v47  ;;  %10381 = vmatpush.bf16.msrb.mxu2 %v14589_v45  ;;  %v14036_v13 = vld [vmem:[#allocation3 + $0xb8] sm:$0xf0]  ;;  %v503_v32 = vld [vmem:[#allocation2 + $0xd8] sm:$0x7] }
 0x5ee   : > { %1035 = vst [vmem:[#allocation3 + $0x9a4] sm:$0xf] %v884_v50  ;;  %v12132_v38 = vor.u32 %v14185_v12, %v12131_v63  ;;  %v3933_v57 = vrot.slane %v3931_v17, 6  ;;  %v3916_v63 = vrot.slane %v3915_v19, 4  ;;  %v896_v25 = vshrl.u32 %v501_v61, 16 }
 0x5ef   : > { %1036 = vst [vmem:[#allocation3 + $0xa08] sm:$0xf] %v894_v6  ;;  %v3924_v31 = vor.u32 %v3923_v55, %v3920_v28  ;;  %v12428_v17 = vor.u32 %v14247_v21, %v12425_v8  ;;  %v14602_v21 = vld [vmem:[%s18470_s1 + $0x5e8] sm:$0xff] }
 0x5f0   : > { %v9948_v33 = vpop.f32.mrf.mxu1  ;;  %1151 = vst [vmem:[#allocation3 + $0x758] sm:$0xf] %v884_v50  ;;  %v3934_v47 = vor.u32 %v3933_v57, %v3930_v9  ;;  %10465 = vmatpush.bf16.msra.mxu3 %v14602_v21  ;;  %v14296_v57 = vld [vmem:[#allocation3 + $0x8dc] sm:$0xf]  ;;  %v3593_v21 = vld [vmem:[#allocation2 + $0xb8] sm:$0xf] }
 0x5f1   : > { %v17487_v42 = vadd.f32 %v9948_v33, %v18586_v36  ;;  %1152 = vst [vmem:[#allocation3 + $0x7bc] sm:$0xf] %v894_v6  ;;  %v17494_v22 = vpop.f32.mrf.mxu2  ;;  %v3926_v62 = vrot.slane %v3924_v31, 4  ;;  %v3925_v28 = vsel %vm17102_vm2, %v3916_v63, %v3924_v31  ;;  %v898_v33 = vrot.slane %v896_v25, 6  ;;  %v18588_v31 = vld [vmem:[#allocation11_spill] sm:$0xff] }
 0x5f2   : > { %v9919_v49 = vpop.f32.mrf.mxu0  ;;  %1267 = vst [vmem:[#allocation3 + $0x508] sm:$0xf] %v884_v50  ;;  %v14582_v50 = vld [vmem:[%s18470_s1 + $0x548] sm:$0xff]  ;;  %v915_v36 = vshrl.u32 %v503_v32, 16  ;;  %v3592_v63 = vld [vmem:[#allocation2 + $0xb4] sm:$0xe] }
 0x5f3   : > { %v17492_v12 = vadd.f32 %v9919_v49, %v17404_v35  ;;  %9987 = vmatmul.bf16.gmra.mxu1 %v12520_v0  ;;  %1268 = vst [vmem:[#allocation3 + $0x56c] sm:$0xf] %v894_v6  ;;  %v3935_v35 = vsel %vm17102_vm2, %v3926_v62, %v3934_v47  ;;  %v11540_v0 = vor.u32 %v14036_v13, %v11539_v10  ;;  %v502_v6 = vld [vmem:[#allocation2 + $0xd4] sm:$0xf]  ;;  %v12617_v13 = vld [vmem:[#allocation3 + $0x93c] sm:$0xf0] }
 0x5f4   : > { %v10118_v11 = vpop.f32.mrf.mxu3  ;;  %4128 = vst [vmem:[#allocation3 + $0x81c] sm:$0xf] %v3925_v28  ;;  %10291 = vmatpush.bf16.msra.mxu1 %v14582_v50  ;;  %v905_v45 = vshrl.u32 %v502_v6, 16  ;;  %v908_v19 = vshll.u32 %v502_v6, 16  ;;  %v10033_v50 = vadd.f32 %v17256_v34, %v17449_v24 }
 0x5f5   : > { %18587 = vst [vmem:[#allocation7_spill] sm:$0xff] %v17492_v12  ;;  %10234 = vmatmul.bf16.gmra.mxu0 %v12132_v38  ;;  %v17498_v55 = vadd.f32 %v10118_v11, %v10030_v7  ;;  %v899_v38 = vshll.u32 %v501_v61, 16  ;;  %v918_v7 = vshll.u32 %v503_v32, 16  ;;  %v917_v61 = vrot.slane %v915_v36, 6  ;;  %v14210_v36 = vld [vmem:[#allocation3 + $0x628] sm:$0xf0] }
 0x5f6   : > { %4129 = vst [vmem:[#allocation3 + $0x880] sm:$0xf] %v3935_v35  ;;  %10382 = vmatmul.bf16.vlgmr.msrb.gmra.mxu2 %v11540_v0  ;;  %v907_v47 = vrot.slane %v905_v45, 6  ;;  %v910_v25 = vrot.slane %v908_v19, 7  ;;  %v3937_v11 = vshrl.u32 %v3592_v63, 16  ;;  %v3946_v45 = vshrl.u32 %v3593_v21, 16 }
 0x5f7   : > { %4244 = vst [vmem:[#allocation3 + $0x5cc] sm:$0xf] %v3925_v28  ;;  %v901_v49 = vrot.slane %v899_v38, 7  ;;  %v3594_v38 = vld [vmem:[#allocation2 + $0xbc] sm:$0x3]  ;;  %v12620_v12 = vor.u32 %v14296_v57, %v12617_v13 }
 0x5f8   : > { %v9950_v8 = vpop.f32.mrf.mxu1  ;;  %4245 = vst [vmem:[#allocation3 + $0x630] sm:$0xf] %v3935_v35  ;;  %v911_v32 = vor.u32 %v910_v25, %v907_v47  ;;  %v12231_v19 = vld [vmem:[#allocation3 + $0x5c8] sm:$0xf]  ;;  %v3948_v60 = vrot.slane %v3946_v45, 5  ;;  %v3959_v47 = vshll.u32 %v3594_v38, 16  ;;  %v10035_v45 = vadd.f32 %v17277_v1, %v17465_v2 }
 0x5f9   : > { %v17509_v9 = vadd.f32 %v9950_v8, %v18588_v31  ;;  %10160 = vmatmul.bf16.gmra.mxu3 %v12428_v17  ;;  %4360 = vst [vmem:[#allocation3 + $0x380] sm:$0xf] %v3925_v28  ;;  %v17516_v0 = vpop.f32.mrf.mxu2  ;;  %v902_v17 = vor.u32 %v901_v49, %v898_v33  ;;  %v920_v28 = vrot.slane %v918_v7, 7  ;;  %v3940_v8 = vshll.u32 %v3592_v63, 16 }
 0x5fa   : > { %v9921_v62 = vpop.f32.mrf.mxu0  ;;  %4361 = vst [vmem:[#allocation3 + $0x3e4] sm:$0xf] %v3935_v35  ;;  %v3939_v35 = vrot.slane %v3937_v11, 5  ;;  %v913_v34 = vrot.slane %v911_v32, 4  ;;  %v3956_v7 = vshrl.u32 %v3594_v38, 16  ;;  %v12232_v63 = vor.u32 %v14210_v36, %v12231_v19 }
 0x5fb   : > { %v17512_v10 = vadd.f32 %v9921_v62, %v17420_v26  ;;  %v903_v26 = vrot.slane %v902_v17, 4  ;;  %v921_v62 = vor.u32 %v920_v28, %v917_v61  ;;  %v3942_v24 = vrot.slane %v3940_v8, 6  ;;  %v14272_v11 = vld [vmem:[#allocation3 + $0x81c] sm:$0xf]  ;;  %v18590_v17 = vld [vmem:[#allocation8_spill] sm:$0xff] }
 0x5fc   : > { %v10121_v6 = vpop.f32.mrf.mxu3  ;;  %v3958_v28 = vrot.slane %v3956_v7, 5 }
 0x5fd   : > { %18589 = vst [vmem:[#allocation5_spill] sm:$0xff] %v17512_v10  ;;  %v17518_v31 = vadd.f32 %v10121_v6, %v10033_v50  ;;  %v3949_v10 = vshll.u32 %v3593_v21, 16  ;;  %v912_v33 = vsel %vm16980_vm15, %v903_v26, %v911_v32  ;;  %v12525_v30 = vld [vmem:[#allocation3 + $0x87c] sm:$0xf0]  ;;  %v922_v50 = vsel %vm16980_vm15, %v913_v34, %v921_v62 }
 0x5fe   : > { %1037 = vst [vmem:[#allocation3 + $0xa6c] sm:$0xf] %v912_v33  ;;  %v3943_v61 = vor.u32 %v3942_v24, %v3939_v35  ;;  %v3961_v21 = vrot.slane %v3959_v47, 6  ;;  %v504_v6 = vld [vmem:[#allocation2 + $0xe0] sm:$0xc]  ;;  %v12528_v26 = vor.u32 %v14272_v11, %v12525_v30 }
 0x5ff   : > { %v3951_v49 = vrot.slane %v3949_v10, 6  ;;  %1038 = vst [vmem:[#allocation3 + $0xad0] sm:$0xf] %v922_v50  ;;  %v924_v38 = vshrl.u32 %v504_v6, 16  ;;  %v11639_v34 = vld [vmem:[#allocation3 + $0x120] sm:$0xf] }
 0x600   : > { %v9953_v25 = vpop.f32.mrf.mxu1  ;;  %1153 = vst [vmem:[#allocation3 + $0x820] sm:$0xf] %v912_v33  ;;  %v3944_v32 = vrot.slane %v3943_v61, 4  ;;  %v3962_v36 = vor.u32 %v3961_v21, %v3958_v28  ;;  %v14061_v24 = vld [vmem:[#allocation3 + $0x180] sm:$0xf0]  ;;  %v927_v47 = vshll.u32 %v504_v6, 16 }
 0x601   : > { %v17525_v57 = vadd.f32 %v9953_v25, %v18590_v17  ;;  %v3952_v13 = vor.u32 %v3951_v49, %v3948_v60  ;;  %v17532_v35 = vpop.f32.mrf.mxu2  ;;  %1154 = vst [vmem:[#allocation3 + $0x884] sm:$0xf] %v922_v50  ;;  %v11640_v2 = vor.u32 %v14061_v24, %v11639_v34  ;;  %v506_v49 = vld [vmem:[#allocation2 + $0xe8] sm:$0x7]  ;;  %v926_v7 = vrot.slane %v924_v38, 6 }
 0x602   : > { %v9924_v10 = vpop.f32.mrf.mxu0  ;;  %1269 = vst [vmem:[#allocation3 + $0x5d0] sm:$0xf] %v912_v33  ;;  %v943_v25 = vshrl.u32 %v506_v49, 16  ;;  %v946_v11 = vshll.u32 %v506_v49, 16  ;;  %v14321_v6 = vld [vmem:[#allocation3 + $0x9a4] sm:$0xf]  ;;  %v10038_v34 = vadd.f32 %v17294_v58, %v17487_v42 }
 0x603   : > { %v17528_v8 = vadd.f32 %v9924_v10, %v17442_v56  ;;  %9992 = vmatmul.bf16.gmra.mxu1 %v12620_v12  ;;  %v3954_v19 = vrot.slane %v3952_v13, 4  ;;  %v3953_v62 = vsel %vm17102_vm2, %v3944_v32, %v3952_v13  ;;  %1270 = vst [vmem:[#allocation3 + $0x634] sm:$0xf] %v922_v50  ;;  %v505_v12 = vld [vmem:[#allocation2 + $0xe4] sm:$0xf]  ;;  %v18591_v50 = vld [vmem:[#allocation13_spill] sm:$0xff] }
 0x604   : > { %v10123_v60 = vpop.f32.mrf.mxu3  ;;  %4130 = vst [vmem:[#allocation3 + $0x8e4] sm:$0xf] %v3953_v62  ;;  %v933_v30 = vshrl.u32 %v505_v12, 16  ;;  %v936_v33 = vshll.u32 %v505_v12, 16  ;;  %v945_v21 = vrot.slane %v943_v25, 6 }
 0x605   : > { %10239 = vmatmul.bf16.gmra.mxu0 %v12232_v63  ;;  %v17536_v56 = vadd.f32 %v10123_v60, %v10035_v45  ;;  %v3963_v1 = vsel %vm17102_vm2, %v3954_v19, %v3962_v36  ;;  %4246 = vst [vmem:[#allocation3 + $0x694] sm:$0xf] %v3953_v62  ;;  %v929_v63 = vrot.slane %v927_v47, 7  ;;  %v3595_v10 = vld [vmem:[#allocation2 + $0xc4] sm:$0xe]  ;;  %v948_v45 = vrot.slane %v946_v11, 7 }
 0x606   : > { %4131 = vst [vmem:[#allocation3 + $0x948] sm:$0xf] %v3963_v1  ;;  %10387 = vmatmul.bf16.gmra.mxu2 %v11640_v2  ;;  %v935_v17 = vrot.slane %v933_v30, 6  ;;  %v938_v28 = vrot.slane %v936_v33, 7  ;;  %v3596_v19 = vld [vmem:[#allocation2 + $0xc8] sm:$0xf] }
 0x607   : > { %4247 = vst [vmem:[#allocation3 + $0x6f8] sm:$0xf] %v3963_v1  ;;  %v930_v38 = vor.u32 %v929_v63, %v926_v7  ;;  %v3965_v36 = vshrl.u32 %v3595_v10, 16  ;;  %v3597_v2 = vld [vmem:[#allocation2 + $0xcc] sm:$0x3]  ;;  %v3968_v12 = vshll.u32 %v3595_v10, 16 }
 0x608   : > { %v9955_v61 = vpop.f32.mrf.mxu1  ;;  %4362 = vst [vmem:[#allocation3 + $0x448] sm:$0xf] %v3953_v62  ;;  %v12717_v49 = vld [vmem:[#allocation3 + $0xa04] sm:$0xf0]  ;;  %v949_v62 = vor.u32 %v948_v45, %v945_v21  ;;  %v3974_v33 = vshrl.u32 %v3596_v19, 16  ;;  %v3977_v63 = vshll.u32 %v3596_v19, 16 }
 0x609   : > { %v17541_v13 = vadd.f32 %v9955_v61, %v18591_v50  ;;  %10165 = vmatmul.bf16.gmra.mxu3 %v12528_v26  ;;  %4363 = vst [vmem:[#allocation3 + $0x4ac] sm:$0xf] %v3963_v1  ;;  %v17548_v24 = vpop.f32.mrf.mxu2  ;;  %v939_v26 = vor.u32 %v938_v28, %v935_v17  ;;  %v931_v30 = vrot.slane %v930_v38, 4  ;;  %v3967_v7 = vrot.slane %v3965_v36, 5  ;;  %v12331_v25 = vld [vmem:[#allocation3 + $0x690] sm:$0xf] }
 0x60a   : > { %v9926_v32 = vpop.f32.mrf.mxu0  ;;  %v3970_v61 = vrot.slane %v3968_v12, 6  ;;  %v14235_v50 = vld [vmem:[#allocation3 + $0x6f0] sm:$0xf0]  ;;  %v3976_v42 = vrot.slane %v3974_v33, 5  ;;  %v3984_v1 = vshrl.u32 %v3597_v2, 16  ;;  %v3987_v17 = vshll.u32 %v3597_v2, 16 }
 0x60b   : > { %v17544_v60 = vadd.f32 %v9926_v32, %v17460_v40  ;;  %v941_v40 = vrot.slane %v939_v26, 4  ;;  %v940_v58 = vsel %vm16980_vm15, %v931_v30, %v939_v26  ;;  %v12720_v28 = vor.u32 %v14321_v6, %v12717_v49  ;;  %v14297_v45 = vld [vmem:[#allocation3 + $0x8e4] sm:$0xf]  ;;  %v18592_v19 = vld [vmem:[#allocation10_spill] sm:$0xff] }
 0x60c   : > { %v10126_v47 = vpop.f32.mrf.mxu3  ;;  %1039 = vst [vmem:[#allocation3 + $0xb34] sm:$0xf] %v940_v58  ;;  %v3971_v21 = vor.u32 %v3970_v61, %v3967_v7  ;;  %v3979_v32 = vrot.slane %v3977_v63, 6  ;;  %v3986_v36 = vrot.slane %v3984_v1, 5  ;;  %v10040_v33 = vadd.f32 %v17312_v16, %v17509_v9  ;;  %v11739_v63 = vld [vmem:[#allocation3 + $0x1e8] sm:$0xf] }
 0x60d   : > { %v17550_v11 = vadd.f32 %v10126_v47, %v10038_v34  ;;  %v950_v10 = vsel %vm16980_vm15, %v941_v40, %v949_v62  ;;  %v3989_v34 = vrot.slane %v3987_v17, 6  ;;  %v12332_v47 = vor.u32 %v14235_v50, %v12331_v25  ;;  %v12625_v26 = vld [vmem:[#allocation3 + $0x944] sm:$0xf0]  ;;  %1155 = vst [vmem:[#allocation3 + $0x8e8] sm:$0xf] %v940_v58  ;;  %v14581_v16 = vld [vmem:[%s18470_s1 + $0x540] sm:$0xff] }
 0x60e   : > { %1040 = vst [vmem:[#allocation3 + $0xb98] sm:$0xf] %v950_v10  ;;  %v3972_v30 = vrot.slane %v3971_v21, 4  ;;  %v3980_v2 = vor.u32 %v3979_v32, %v3976_v42  ;;  %v507_v62 = vld [vmem:[#allocation2 + $0xf0] sm:$0xc]  ;;  %v12628_v42 = vor.u32 %v14297_v45, %v12625_v26  ;;  %10292 = vmatpush.bf16.msra.mxu1 %v14581_v16  ;;  %v18593_v26 = vld [vmem:[#allocation12_spill] sm:$0xff]  ;;  %v10043_v16 = vadd.f32 %v17326_v3, %v17525_v57 }
 0x60f   : > { %1156 = vst [vmem:[#allocation3 + $0x94c] sm:$0xf] %v950_v10  ;;  %v3990_v49 = vor.u32 %v3989_v34, %v3986_v36  ;;  %v14086_v1 = vld [vmem:[#allocation3 + $0x248] sm:$0xf0]  ;;  %v508_v17 = vld [vmem:[#allocation2 + $0xf4] sm:$0xf] }
 0x610   : > { %v9958_v38 = vpop.f32.mrf.mxu1  ;;  %1271 = vst [vmem:[#allocation3 + $0x698] sm:$0xf] %v940_v58  ;;  %v3981_v25 = vsel %vm17102_vm2, %v3972_v30, %v3980_v2  ;;  %v3982_v61 = vrot.slane %v3980_v2, 4  ;;  %v11740_v9 = vor.u32 %v14086_v1, %v11739_v63  ;;  %v14601_v58 = vld [vmem:[%s18470_s1 + $0x5e0] sm:$0xff]  ;;  %v509_v21 = vld [vmem:[#allocation2 + $0xf8] sm:$0x7] }
 0x611   : > { %v17557_v12 = vadd.f32 %v9958_v38, %v18592_v19  ;;  %v17564_v40 = vpop.f32.mrf.mxu2  ;;  %1272 = vst [vmem:[#allocation3 + $0x6fc] sm:$0xf] %v950_v10  ;;  %v952_v10 = vshrl.u32 %v507_v62, 16  ;;  %v955_v32 = vshll.u32 %v507_v62, 16  ;;  %10466 = vmatpush.bf16.msra.mxu3 %v14601_v58  ;;  %v961_v38 = vshrl.u32 %v508_v17, 16 }
 0x612   : > { %v10205_v6 = vpop.f32.mrf.mxu0  ;;  %4132 = vst [vmem:[#allocation3 + $0x9ac] sm:$0xf] %v3981_v25  ;;  %v964_v45 = vshll.u32 %v508_v17, 16  ;;  %v14346_v2 = vld [vmem:[#allocation3 + $0xa6c] sm:$0xf]  ;;  %v974_v62 = vshll.u32 %v509_v21, 16 }
 0x613   : > { %v17560_v7 = vadd.f32 %v10205_v6, %v17477_v27  ;;  %9997 = vmatmul.bf16.gmra.mxu1 %v12720_v28  ;;  %v3991_v28 = vsel %vm17102_vm2, %v3982_v61, %v3990_v49  ;;  %4248 = vst [vmem:[#allocation3 + $0x75c] sm:$0xf] %v3981_v25  ;;  %v954_v34 = vrot.slane %v952_v10, 6  ;;  %v957_v19 = vrot.slane %v955_v32, 7  ;;  %v12817_v17 = vld [vmem:[#allocation3 + $0xacc] sm:$0xf0] }
 0x614   : > { %v10128_v50 = vpop.f32.mrf.mxu3  ;;  %4133 = vst [vmem:[#allocation3 + $0xa10] sm:$0xf] %v3991_v28  ;;  %v963_v6 = vrot.slane %v961_v38, 6  ;;  %v966_v49 = vrot.slane %v964_v45, 7 }
 0x615   : > { %10244 = vmatmul.bf16.gmra.mxu0 %v12332_v47  ;;  %v17568_v27 = vadd.f32 %v10128_v50, %v10040_v33  ;;  %4249 = vst [vmem:[#allocation3 + $0x7c0] sm:$0xf] %v3991_v28  ;;  %v971_v47 = vshrl.u32 %v509_v21, 16  ;;  %v958_v61 = vor.u32 %v957_v19, %v954_v34  ;;  %v3598_v50 = vld [vmem:[#allocation2 + $0xd4] sm:$0xe] }
 0x616   : > { %10392 = vmatmul.bf16.gmra.mxu2 %v11740_v9  ;;  %4364 = vst [vmem:[#allocation3 + $0x510] sm:$0xf] %v3981_v25  ;;  %v967_v58 = vor.u32 %v966_v49, %v963_v6  ;;  %v3599_v25 = vld [vmem:[#allocation2 + $0xd8] sm:$0xf]  ;;  %v3600_v21 = vld [vmem:[#allocation2 + $0xdc] sm:$0x3] }
 0x617   : > { %4365 = vst [vmem:[#allocation3 + $0x574] sm:$0xf] %v3991_v28  ;;  %v973_v63 = vrot.slane %v971_v47, 6  ;;  %v959_v32 = vrot.slane %v958_v61, 4  ;;  %v3993_v38 = vshrl.u32 %v3598_v50, 16  ;;  %v3996_v28 = vshll.u32 %v3598_v50, 16 }
 0x618   : > { %v9960_v36 = vpop.f32.mrf.mxu1  ;;  %v4002_v45 = vshrl.u32 %v3599_v25, 16  ;;  %v969_v34 = vrot.slane %v967_v58, 4  ;;  %v4005_v19 = vshll.u32 %v3599_v25, 16  ;;  %v12820_v47 = vor.u32 %v14346_v2, %v12817_v17 }
 0x619   : > { %v17579_v30 = vadd.f32 %v9960_v36, %v18593_v26  ;;  %10170 = vmatmul.bf16.gmra.mxu3 %v12628_v42  ;;  %v17586_v9 = vpop.f32.mrf.mxu2  ;;  %v976_v42 = vrot.slane %v974_v62, 7  ;;  %v12431_v26 = vld [vmem:[#allocation3 + $0x758] sm:$0xf]  ;;  %v968_v3 = vsel %vm16980_vm15, %v959_v32, %v967_v58  ;;  %v3995_v57 = vrot.slane %v3993_v38, 5  ;;  %v3601_v32 = vld [vmem:[#allocation2 + $0xe4] sm:$0xe] }
 0x61a   : > { %v10207_v33 = vpop.f32.mrf.mxu0  ;;  %v3998_v6 = vrot.slane %v3996_v28, 6  ;;  %1041 = vst [vmem:[#allocation3 + $0xbfc] sm:$0xf] %v968_v3  ;;  %v4004_v62 = vrot.slane %v4002_v45, 5  ;;  %v4007_v61 = vrot.slane %v4005_v19, 6  ;;  %v4012_v50 = vshrl.u32 %v3600_v21, 16 }
 0x61b   : > { %v17582_v1 = vadd.f32 %v10207_v33, %v17498_v55  ;;  %v977_v55 = vor.u32 %v976_v42, %v973_v63  ;;  %v14260_v33 = vld [vmem:[#allocation3 + $0x7b8] sm:$0xf0]  ;;  %v4015_v42 = vshll.u32 %v3600_v21, 16  ;;  %1157 = vst [vmem:[#allocation3 + $0x9b0] sm:$0xf] %v968_v3  ;;  %v10045_v21 = vadd.f32 %v17345_v43, %v17541_v13 }
 0x61c   : > { %v10131_v10 = vpop.f32.mrf.mxu3  ;;  %v3999_v63 = vor.u32 %v3998_v6, %v3995_v57  ;;  %v12432_v17 = vor.u32 %v14260_v33, %v12431_v26  ;;  %v4008_v58 = vor.u32 %v4007_v61, %v4004_v62  ;;  %v4014_v25 = vrot.slane %v4012_v50, 5  ;;  %v12725_v28 = vld [vmem:[#allocation3 + $0xa0c] sm:$0xf0]  ;;  %1273 = vst [vmem:[#allocation3 + $0x760] sm:$0xf] %v968_v3 }
 0x61d   : > { %v17588_v36 = vadd.f32 %v10131_v10, %v10043_v16  ;;  %v978_v49 = vsel %vm16980_vm15, %v969_v34, %v977_v55  ;;  %v14322_v10 = vld [vmem:[#allocation3 + $0x9ac] sm:$0xf]  ;;  %v4017_v45 = vrot.slane %v4015_v42, 6  ;;  %v4021_v26 = vshrl.u32 %v3601_v32, 16  ;;  %v11839_v62 = vld [vmem:[#allocation3 + $0x2b0] sm:$0xf] }
 0x61e   : > { %1042 = vst [vmem:[#allocation3 + $0xc60] sm:$0xf] %v978_v49  ;;  %v4000_v34 = vrot.slane %v3999_v63, 4  ;;  %v14111_v61 = vld [vmem:[#allocation3 + $0x310] sm:$0xf0] }
 0x61f   : > { %1158 = vst [vmem:[#allocation3 + $0xa14] sm:$0xf] %v978_v49  ;;  %v4018_v6 = vor.u32 %v4017_v45, %v4014_v25  ;;  %v11840_v50 = vor.u32 %v14111_v61, %v11839_v62  ;;  %v3602_v43 = vld [vmem:[#allocation2 + $0xe8] sm:$0xf]  ;;  %v3603_v13 = vld [vmem:[#allocation2 + $0xec] sm:$0x3] }
 0x620   : > { %v9963_v16 = vpop.f32.mrf.mxu1  ;;  %1274 = vst [vmem:[#allocation3 + $0x7c4] sm:$0xf] %v978_v49  ;;  %v4009_v57 = vsel %vm17102_vm2, %v4000_v34, %v4008_v58  ;;  %v4024_v49 = vshll.u32 %v3601_v32, 16  ;;  %v4030_v63 = vshrl.u32 %v3602_v43, 16  ;;  %v4033_v42 = vshll.u32 %v3602_v43, 16 }
 0x621   : > { %v17595_v2 = vadd.f32 %v9963_v16, %v17151_v44  ;;  %v17602_v19 = vpop.f32.mrf.mxu2  ;;  %v4010_v44 = vrot.slane %v4008_v58, 4  ;;  %4134 = vst [vmem:[#allocation3 + $0xa74] sm:$0xf] %v4009_v57  ;;  %v4023_v16 = vrot.slane %v4021_v26, 5  ;;  %v4040_v25 = vshrl.u32 %v3603_v13, 16 }
 0x622   : > { %v10210_v38 = vpop.f32.mrf.mxu0  ;;  %4250 = vst [vmem:[#allocation3 + $0x824] sm:$0xf] %v4009_v57  ;;  %v4035_v34 = vrot.slane %v4033_v42, 6  ;;  %v13911_v62 = vld [vmem:[#allocation3 + $0xbb8] sm:$0xf] }
 0x623   : > { %v17598_v55 = vadd.f32 %v10210_v38, %v17518_v31  ;;  %10002 = vmatmul.bf16.gmra.mxu1 %v12820_v47  ;;  %v12728_v47 = vor.u32 %v14322_v10, %v12725_v28  ;;  %v4019_v3 = vsel %vm17102_vm2, %v4010_v44, %v4018_v6  ;;  %v4043_v38 = vshll.u32 %v3603_v13, 16  ;;  %4366 = vst [vmem:[#allocation3 + $0x5d8] sm:$0xf] %v4009_v57  ;;  %v14612_v57 = vld [vmem:[%s18470_s1 + $0x638] sm:$0xff] }
 0x624   : > { %v10133_v33 = vpop.f32.mrf.mxu3  ;;  %4135 = vst [vmem:[#allocation3 + $0xad8] sm:$0xf] %v4019_v3  ;;  %v4032_v28 = vrot.slane %v4030_v63, 5  ;;  %v4042_v32 = vrot.slane %v4040_v25, 5  ;;  %10552 = vmatpush.bf16.msra.mxu0 %v14612_v57  ;;  %v14136_v57 = vld [vmem:[#allocation3 + $0x3d8] sm:$0xf0] }
 0x625   : > { %10249 = vmatmul.bf16.gmra.mxu0 %v12432_v17  ;;  %v17606_v31 = vadd.f32 %v10133_v33, %v10045_v21  ;;  %4251 = vst [vmem:[#allocation3 + $0x888] sm:$0xf] %v4019_v3  ;;  %v4026_v17 = vrot.slane %v4024_v49, 6  ;;  %v4045_v44 = vrot.slane %v4043_v38, 6  ;;  %v10048_v33 = vadd.f32 %v17367_v18, %v17557_v12  ;;  %v12531_v18 = vld [vmem:[#allocation3 + $0x820] sm:$0xf] }
 0x626   : > { %10397 = vmatmul.bf16.gmra.mxu2 %v11840_v50  ;;  %4367 = vst [vmem:[#allocation3 + $0x63c] sm:$0xf] %v4019_v3  ;;  %v4036_v61 = vor.u32 %v4035_v34, %v4032_v28  ;;  %v12917_v50 = vld [vmem:[#allocation3 + $0xb94] sm:$0xf0]  ;;  %v14285_v12 = vld [vmem:[#allocation3 + $0x880] sm:$0xf0] }
 0x627   : > { %v4027_v21 = vor.u32 %v4026_v17, %v4023_v16  ;;  %v4046_v16 = vor.u32 %v4045_v44, %v4042_v32  ;;  %v12532_v38 = vor.u32 %v14285_v12, %v12531_v18  ;;  %v10050_v44 = vadd.f32 %v17383_v20, %v17579_v30 }
 0x628   : > { %v9965_v58 = vpop.f32.mrf.mxu1  ;;  %v4038_v49 = vrot.slane %v4036_v61, 4  ;;  %v14347_v28 = vld [vmem:[#allocation3 + $0xa74] sm:$0xf] }
 0x629   : > { %v17611_v10 = vadd.f32 %v9965_v58, %v17176_v54  ;;  %10175 = vmatmul.bf16.gmra.mxu3 %v12728_v47  ;;  %v17618_v6 = vpop.f32.mrf.mxu2  ;;  %v14628_v54 = vld [vmem:[#allocation3 + $0xc18] sm:$0xf0]  ;;  %v14371_v47 = vld [vmem:[#allocation3 + $0xb34] sm:$0xf]  ;;  %v4028_v3 = vrot.slane %v4027_v21, 4 }
 0x62a   : > { %v10212_v45 = vpop.f32.mrf.mxu0  ;;  %v13912_v13 = vor.u32 %v14628_v54, %v13911_v62  ;;  %v12920_v42 = vor.u32 %v14371_v47, %v12917_v50  ;;  %v4047_v58 = vsel %vm17102_vm2, %v4038_v49, %v4046_v16  ;;  %v3604_v21 = vld [vmem:[#allocation2 + $0xf4] sm:$0xe]  ;;  %v3605_v62 = vld [vmem:[#allocation2 + $0xf8] sm:$0xf] }
 0x62b   : > { %v17614_v26 = vadd.f32 %v10212_v45, %v17536_v56  ;;  %v4037_v63 = vsel %vm17102_vm2, %v4028_v3, %v4036_v61  ;;  %4137 = vst [vmem:[#allocation3 + $0xba0] sm:$0xf] %v4047_v58  ;;  %v12825_v45 = vld [vmem:[#allocation3 + $0xad4] sm:$0xf0]  ;;  %v4049_v20 = vshrl.u32 %v3604_v21, 16  ;;  %v4052_v16 = vshll.u32 %v3604_v21, 16 }
 0x62c   : > { %v10136_v43 = vpop.f32.mrf.mxu3  ;;  %10882 = vmatpush.bf16.msra.mxu2 %v13912_v13  ;;  %4136 = vst [vmem:[#allocation3 + $0xb3c] sm:$0xf] %v4037_v63  ;;  %v11939_v54 = vld [vmem:[#allocation3 + $0x378] sm:$0xf]  ;;  %v12828_v47 = vor.u32 %v14347_v28, %v12825_v45  ;;  %v3606_v3 = vld [vmem:[#allocation2 + $0xfc] sm:$0x3] }
 0x62d   : > { %18594 = vst [vmem:[#allocation9_spill] sm:$0xff] %v17614_v26  ;;  %v17623_v56 = vadd.f32 %v10136_v43, %v10048_v33  ;;  %v11940_v50 = vor.u32 %v14136_v57, %v11939_v54  ;;  %v13879_v43 = vld [vmem:[#allocation3 + $0x578] sm:$0xf]  ;;  %v4058_v49 = vshrl.u32 %v3605_v62, 16  ;;  %v4051_v18 = vrot.slane %v4049_v20, 5 }
 0x62e   : > { %4252 = vst [vmem:[#allocation3 + $0x8ec] sm:$0xf] %v4037_v63  ;;  %v14600_v13 = vld [vmem:[%s18470_s1 + $0x5d8] sm:$0xff]  ;;  %v4061_v12 = vshll.u32 %v3605_v62, 16  ;;  %v510_v28 = vld [vmem:[#allocation2 + $0x100] sm:$0xc] }
 0x62f   : > { %4253 = vst [vmem:[#allocation3 + $0x950] sm:$0xf] %v4047_v58  ;;  %10467 = vmatpush.bf16.msra.mxu3 %v14600_v13  ;;  %v1044_v62 = vshrl.u32 %v510_v28, 16  ;;  %v14396_v20 = vld [vmem:[#allocation3 + $0xbfc] sm:$0xf] }
 0x630   : > { %v9968_v17 = vpop.f32.mrf.mxu1  ;;  %4368 = vst [vmem:[#allocation3 + $0x6a0] sm:$0xf] %v4037_v63  ;;  %v4068_v63 = vshrl.u32 %v3606_v3, 16 }
 0x631   : > { %v17630_v25 = vadd.f32 %v9968_v17, %v17201_v37  ;;  %v17637_v33 = vpop.f32.mrf.mxu2  ;;  %4369 = vst [vmem:[#allocation3 + $0x704] sm:$0xf] %v4047_v58  ;;  %v4054_v17 = vrot.slane %v4052_v16, 6  ;;  %v13017_v16 = vld [vmem:[#allocation3 + $0xc5c] sm:$0xf0] }
 0x632   : > { %v10215_v34 = vpop.f32.mrf.mxu0 }
 0x633   : > { %v17633_v32 = vadd.f32 %v10215_v34, %v17550_v11  ;;  %10007 = vmatmul.bf16.gmra.mxu1 %v12920_v42  ;;  %v14620_v11 = vld [vmem:[#allocation3 + $0x5d8] sm:$0xf0]  ;;  %v4071_v42 = vshll.u32 %v3606_v3, 16  ;;  %v511_v34 = vld [vmem:[#allocation2 + $0x104] sm:$0xf]  ;;  %v4055_v57 = vor.u32 %v4054_v17, %v4051_v18 }
 0x634   : > { %v10138_v37 = vpop.f32.mrf.mxu3  ;;  %v13880_v30 = vor.u32 %v14620_v11, %v13879_v43  ;;  %v512_v43 = vld [vmem:[#allocation2 + $0x108] sm:$0x7]  ;;  %v1047_v11 = vshll.u32 %v510_v28, 16  ;;  %v1053_v13 = vshrl.u32 %v511_v34, 16  ;;  %v1056_v28 = vshll.u32 %v511_v34, 16 }
 0x635   : > { %10254 = vmatmul.bf16.gmra.mxu0 %v12532_v38  ;;  %v17639_v61 = vadd.f32 %v10138_v37, %v10050_v44  ;;  %v4060_v38 = vrot.slane %v4058_v49, 5  ;;  %v4063_v44 = vrot.slane %v4061_v12, 6  ;;  %v4070_v37 = vrot.slane %v4068_v63, 5 }
 0x636   : > { %10402 = vmatmul.bf16.gmra.mxu2 %v11940_v50  ;;  %10869 = vmatpush.bf16.msrb.mxu1 %v13880_v30  ;;  %v4073_v21 = vrot.slane %v4071_v42, 6  ;;  %v10053_v30 = vadd.f32 %v17399_v52, %v17595_v2  ;;  %v4056_v12 = vrot.slane %v4055_v57, 4  ;;  %v1046_v63 = vrot.slane %v1044_v62, 6 }
 0x637   : > { %v1049_v18 = vrot.slane %v1047_v11, 7  ;;  %v1055_v42 = vrot.slane %v1053_v13, 6  ;;  %v1066_v26 = vshll.u32 %v512_v43, 16 }
 0x638   : > { %v9970_v58 = vpop.f32.mrf.mxu1 }
 0x639   : > { %v17645_v45 = vadd.f32 %v9970_v58, %v17220_v39  ;;  %10180 = vmatmul.bf16.gmra.mxu3 %v12828_v47  ;;  %v17652_v3 = vpop.f32.mrf.mxu2  ;;  %v4064_v39 = vor.u32 %v4063_v44, %v4060_v38  ;;  %v4074_v47 = vor.u32 %v4073_v21, %v4070_v37  ;;  %v1050_v2 = vor.u32 %v1049_v18, %v1046_v63  ;;  %v12039_v18 = vld [vmem:[#allocation3 + $0x440] sm:$0xf] }
 0x63a   : > { %v10217_v54 = vpop.f32.mrf.mxu0  ;;  %v13020_v38 = vor.u32 %v14396_v20, %v13017_v16  ;;  %v1058_v37 = vrot.slane %v1056_v28, 7  ;;  %v1068_v11 = vrot.slane %v1066_v26, 7  ;;  %v513_v16 = vld [vmem:[#allocation2 + $0x110] sm:$0xc]  ;;  %v10055_v26 = vadd.f32 %v17418_v29, %v17611_v10  ;;  %v14161_v28 = vld [vmem:[#allocation3 + $0x4a0] sm:$0xf0] }
 0x63b   : > { %v17648_v50 = vadd.f32 %v10217_v54, %v17568_v27  ;;  %v4066_v17 = vrot.slane %v4064_v39, 4  ;;  %v1063_v27 = vshrl.u32 %v512_v43, 16  ;;  %v12631_v54 = vld [vmem:[#allocation3 + $0x8e8] sm:$0xf]  ;;  %v4065_v52 = vsel %vm17102_vm2, %v4056_v12, %v4064_v39  ;;  %v515_v10 = vld [vmem:[#allocation2 + $0x118] sm:$0x7] }
 0x63c   : > { %v10141_v49 = vpop.f32.mrf.mxu3  ;;  %4138 = vst [vmem:[#allocation3 + $0xc04] sm:$0xf] %v4065_v52  ;;  %v1051_v62 = vrot.slane %v1050_v2, 4  ;;  %v1059_v39 = vor.u32 %v1058_v37, %v1055_v42  ;;  %v12040_v29 = vor.u32 %v14161_v28, %v12039_v18  ;;  %v11533_v28 = vld [vmem:[#allocation3 + $0xb4] sm:$0xf0] }
 0x63d   : > { %18595 = vst [vmem:[#allocation6_spill] sm:$0xff] %v17648_v50  ;;  %v17654_v58 = vadd.f32 %v10141_v49, %v10053_v30  ;;  %v14310_v50 = vld [vmem:[#allocation3 + $0x948] sm:$0xf0]  ;;  %v4075_v44 = vsel %vm17102_vm2, %v4066_v17, %v4074_v47  ;;  %v1065_v21 = vrot.slane %v1063_v27, 6  ;;  %v14372_v30 = vld [vmem:[#allocation3 + $0xb3c] sm:$0xf] }
 0x63e   : > { %4139 = vst [vmem:[#allocation3 + $0xc68] sm:$0xf] %v4075_v44  ;;  %v12632_v13 = vor.u32 %v14310_v50, %v12631_v54  ;;  %v12925_v49 = vld [vmem:[#allocation3 + $0xb9c] sm:$0xf0]  ;;  %v514_v47 = vld [vmem:[#allocation2 + $0x114] sm:$0xf] }
 0x63f   : > { %4254 = vst [vmem:[#allocation3 + $0x9b4] sm:$0xf] %v4065_v52  ;;  %v1069_v20 = vor.u32 %v1068_v11, %v1065_v21  ;;  %v1061_v50 = vrot.slane %v1059_v39, 4  ;;  %v12928_v17 = vor.u32 %v14372_v30, %v12925_v49  ;;  %v1072_v54 = vshrl.u32 %v513_v16, 16 }
 0x640   : > { %v9973_v57 = vpop.f32.mrf.mxu1  ;;  %4255 = vst [vmem:[#allocation3 + $0xa18] sm:$0xf] %v4075_v44  ;;  %v1081_v2 = vshrl.u32 %v514_v47, 16  ;;  %v1084_v37 = vshll.u32 %v514_v47, 16  ;;  %v1091_v11 = vshrl.u32 %v515_v10, 16  ;;  %v1094_v49 = vshll.u32 %v515_v10, 16 }
 0x641   : > { %v17661_v34 = vadd.f32 %v9973_v57, %v17238_v59  ;;  %v17668_v63 = vpop.f32.mrf.mxu2  ;;  %4370 = vst [vmem:[#allocation3 + $0x768] sm:$0xf] %v4065_v52  ;;  %v1060_v59 = vsel %vm16980_vm15, %v1051_v62, %v1059_v39  ;;  %v1075_v52 = vshll.u32 %v513_v16, 16  ;;  %v10058_v47 = vadd.f32 %v17440_v46, %v17630_v25 }
 0x642   : > { %v10220_v43 = vpop.f32.mrf.mxu0  ;;  %4371 = vst [vmem:[#allocation3 + $0x7cc] sm:$0xf] %v4075_v44  ;;  %v14599_v44 = vld [vmem:[%s18470_s1 + $0x5d0] sm:$0xff]  ;;  %v1083_v62 = vrot.slane %v1081_v2, 6  ;;  %v1086_v30 = vrot.slane %v1084_v37, 7 }
 0x643   : > { %v17664_v12 = vadd.f32 %v10220_v43, %v17588_v36  ;;  %10012 = vmatmul.bf16.gmra.mxu1 %v13020_v38  ;;  %v1070_v36 = vsel %vm16980_vm15, %v1061_v50, %v1069_v20  ;;  %1159 = vst [vmem:[#allocation3 + $0xa78] sm:$0xf] %v1060_v59  ;;  %v1074_v38 = vrot.slane %v1072_v54, 6  ;;  %v1077_v57 = vrot.slane %v1075_v52, 7  ;;  %10468 = vmatpush.bf16.msra.mxu3 %v14599_v44  ;;  %v14627_v50 = vld [vmem:[#allocation3 + $0xb50] sm:$0xf0] }
 0x644   : > { %v10143_v42 = vpop.f32.mrf.mxu3  ;;  %1160 = vst [vmem:[#allocation3 + $0xadc] sm:$0xf] %v1070_v36  ;;  %v1093_v20 = vrot.slane %v1091_v11, 6  ;;  %v1087_v18 = vor.u32 %v1086_v30, %v1083_v62  ;;  %v12731_v52 = vld [vmem:[#allocation3 + $0x9b0] sm:$0xf] }
 0x645   : > { %10259 = vmatmul.bf16.gmra.mxu0 %v12632_v13  ;;  %v17672_v27 = vadd.f32 %v10143_v42, %v10055_v26  ;;  %1275 = vst [vmem:[#allocation3 + $0x828] sm:$0xf] %v1060_v59  ;;  %v1078_v43 = vor.u32 %v1077_v57, %v1074_v38  ;;  %v13907_v59 = vld [vmem:[#allocation3 + $0xaf0] sm:$0xf]  ;;  %v1096_v42 = vrot.slane %v1094_v49, 7  ;;  %v14597_v57 = vld [vmem:[%s18470_s1 + $0x5c0] sm:$0xff] }
 0x646   : > { %1276 = vst [vmem:[#allocation3 + $0x88c] sm:$0xf] %v1070_v36  ;;  %10407 = vmatmul.bf16.gmra.mxu2 %v12040_v29  ;;  %v13908_v29 = vor.u32 %v14627_v50, %v13907_v59  ;;  %v1089_v25 = vrot.slane %v1087_v18, 4  ;;  %v14335_v2 = vld [vmem:[#allocation3 + $0xa10] sm:$0xf0] }
 0x647   : > { %v1079_v10 = vrot.slane %v1078_v43, 4  ;;  %v1097_v54 = vor.u32 %v1096_v42, %v1093_v20  ;;  %v12732_v11 = vor.u32 %v14335_v2, %v12731_v52  ;;  %v14397_v30 = vld [vmem:[#allocation3 + $0xc04] sm:$0xf]  ;;  %v516_v49 = vld [vmem:[#allocation2 + $0x120] sm:$0xc] }
 0x648   : > { %v9975_v21 = vpop.f32.mrf.mxu1  ;;  %10883 = vmatpush.bf16.msra.mxu2 %v13908_v29  ;;  %v13025_v43 = vld [vmem:[#allocation3 + $0xc64] sm:$0xf0]  ;;  %v517_v20 = vld [vmem:[#allocation2 + $0x124] sm:$0xf]  ;;  %v14186_v50 = vld [vmem:[#allocation3 + $0x568] sm:$0xf0] }
 0x649   : > { %v17680_v13 = vadd.f32 %v9975_v21, %v17252_v41  ;;  %10185 = vmatmul.bf16.gmra.mxu3 %v12928_v17  ;;  %v17687_v26 = vpop.f32.mrf.mxu2  ;;  %v14598_v41 = vld [vmem:[%s18470_s1 + $0x5c8] sm:$0xff]  ;;  %v14023_v17 = vld [vmem:[#allocation3 + $0x54] sm:$0xf]  ;;  %v1088_v38 = vsel %vm16980_vm15, %v1079_v10, %v1087_v18  ;;  %v1098_v21 = vsel %vm16980_vm15, %v1089_v25, %v1097_v54  ;;  %v13875_v10 = vld [vmem:[#allocation3 + $0x4b0] sm:$0xf]  ;;  %v1109_v25 = vshrl.u32 %v517_v20, 16 }
 0x64a   : > { %v10222_v39 = vpop.f32.mrf.mxu0  ;;  %10469 = vmatpush.bf16.msra.mxu3 %v14598_v41  ;;  %v11536_v37 = vor.u32 %v14023_v17, %v11533_v28  ;;  %1161 = vst [vmem:[#allocation3 + $0xb40] sm:$0xf] %v1088_v38  ;;  %v10060_v41 = vadd.f32 %v17456_v5, %v17645_v45  ;;  %v518_v17 = vld [vmem:[#allocation2 + $0x128] sm:$0x7]  ;;  %v1100_v28 = vshrl.u32 %v516_v49, 16  ;;  %v1112_v54 = vshll.u32 %v517_v20, 16 }
 0x64b   : > { %v17683_v16 = vadd.f32 %v10222_v39, %v17606_v31  ;;  %v14611_v31 = vld [vmem:[%s18470_s1 + $0x630] sm:$0xff]  ;;  %1162 = vst [vmem:[#allocation3 + $0xba4] sm:$0xf] %v1098_v21  ;;  %v1119_v45 = vshrl.u32 %v518_v17, 16 }
 0x64c   : > { %v10146_v36 = vpop.f32.mrf.mxu3  ;;  %10553 = vmatpush.bf16.msra.mxu0 %v14611_v31  ;;  %1277 = vst [vmem:[#allocation3 + $0x8f0] sm:$0xf] %v1088_v38  ;;  %v13028_v31 = vor.u32 %v14397_v30, %v13025_v43  ;;  %v1102_v2 = vrot.slane %v1100_v28, 6  ;;  %v1111_v38 = vrot.slane %v1109_v25, 6  ;;  %v11633_v28 = vld [vmem:[#allocation3 + $0x17c] sm:$0xf0] }
 0x64d   : > { %v17695_v46 = vadd.f32 %v10146_v36, %v10058_v47  ;;  %1278 = vst [vmem:[#allocation3 + $0x954] sm:$0xf] %v1098_v21  ;;  %v1103_v36 = vshll.u32 %v516_v49, 16  ;;  %v1122_v21 = vshll.u32 %v518_v17, 16  ;;  %v1121_v49 = vrot.slane %v1119_v45, 6 }
 0x64e   : > { %10470 = vmatpush.bf16.msra.mxu3 %v14597_v57  ;;  %v14048_v17 = vld [vmem:[#allocation3 + $0x11c] sm:$0xf] }
 0x64f   : > { %v1105_v5 = vrot.slane %v1103_v36, 7  ;;  %v14024_v45 = vld [vmem:[#allocation3 + $0x5c] sm:$0xf] }
 0x650   : > { %v9978_v44 = vpop.f32.mrf.mxu1 }
 0x651   : > { %v17705_v62 = vadd.f32 %v9978_v44, %v17273_v15  ;;  %v17712_v59 = vpop.f32.mrf.mxu2  ;;  %v12139_v15 = vld [vmem:[#allocation3 + $0x508] sm:$0xf]  ;;  %v1106_v57 = vor.u32 %v1105_v5, %v1102_v2 }
 0x652   : > { %v10225_v39 = vpop.f32.mrf.mxu0  ;;  %v12140_v42 = vor.u32 %v14186_v50, %v12139_v15  ;;  %v10063_v15 = vadd.f32 %v17472_v53, %v17661_v34  ;;  %v14360_v34 = vld [vmem:[#allocation3 + $0xad8] sm:$0xf0] }
 0x653   : > { %v17708_v47 = vadd.f32 %v10225_v39, %v17623_v56  ;;  %10293 = vmatmul.bf16.vlgmr.msra.gmra.mxu1 %v11536_v37  ;;  %v14619_v56 = vld [vmem:[#allocation3 + $0x510] sm:$0xf0]  ;;  %v1114_v37 = vrot.slane %v1112_v54, 7  ;;  %v1124_v39 = vrot.slane %v1122_v21, 7  ;;  %v1107_v20 = vrot.slane %v1106_v57, 4  ;;  %v14609_v54 = vld [vmem:[%s18470_s1 + $0x620] sm:$0xff] }
 0x654   : > { %v10148_v18 = vpop.f32.mrf.mxu3  ;;  %v13876_v52 = vor.u32 %v14619_v56, %v13875_v10  ;;  %v11636_v56 = vor.u32 %v14048_v17, %v11633_v28  ;;  %v14606_v17 = vld [vmem:[%s18470_s1 + $0x608] sm:$0xff] }
 0x655   : > { %10264 = vmatmul.bf16.gmra.mxu0 %v12732_v11  ;;  %v17714_v29 = vadd.f32 %v10148_v18, %v10060_v41  ;;  %v1115_v30 = vor.u32 %v1114_v37, %v1111_v38  ;;  %v14610_v18 = vld [vmem:[%s18470_s1 + $0x628] sm:$0xff]  ;;  %v11541_v38 = vld [vmem:[#allocation3 + $0xbc] sm:$0xf0]  ;;  %v12239_v37 = vld [vmem:[#allocation3 + $0x5d0] sm:$0xf] }
 0x656   : > { %10412 = vmatmul.bf16.gmra.mxu2 %v12140_v42  ;;  %10870 = vmatpush.bf16.msrb.mxu1 %v13876_v52  ;;  %v13903_v28 = vld [vmem:[#allocation3 + $0xa28] sm:$0xf] }
 0x657   : > { %v1117_v42 = vrot.slane %v1115_v30, 4  ;;  %10554 = vmatpush.bf16.msra.mxu0 %v14610_v18 }
 0x658   : > { %v9980_v44 = vpop.f32.mrf.mxu1 }
 0x659   : > { %v17717_v11 = vadd.f32 %v9980_v44, %v17290_v51  ;;  %10190 = vmatmul.bf16.gmra.mxu3 %v13028_v31  ;;  %v17724_v50 = vpop.f32.mrf.mxu2  ;;  %v1125_v51 = vor.u32 %v1124_v39, %v1121_v49  ;;  %v1116_v31 = vsel %vm16980_vm15, %v1107_v20, %v1115_v30  ;;  %v10065_v44 = vadd.f32 %v17494_v22, %v17680_v13  ;;  %v14211_v49 = vld [vmem:[#allocation3 + $0x630] sm:$0xf0] }
 0x65a   : > { %v10227_v43 = vpop.f32.mrf.mxu0  ;;  %1163 = vst [vmem:[#allocation3 + $0xc08] sm:$0xf] %v1116_v31  ;;  %v12240_v39 = vor.u32 %v14211_v49, %v12239_v37  ;;  %v11544_v20 = vor.u32 %v14024_v45, %v11541_v38  ;;  %v14607_v22 = vld [vmem:[%s18470_s1 + $0x610] sm:$0xff]  ;;  %v14049_v38 = vld [vmem:[#allocation3 + $0x124] sm:$0xf] }
 0x65b   : > { %v17720_v41 = vadd.f32 %v10227_v43, %v17639_v61  ;;  %v1126_v53 = vsel %vm16980_vm15, %v1117_v42, %v1125_v51  ;;  %v12831_v61 = vld [vmem:[#allocation3 + $0xa78] sm:$0xf]  ;;  %1279 = vst [vmem:[#allocation3 + $0x9b8] sm:$0xf] %v1116_v31  ;;  %10555 = vmatpush.bf16.msra.mxu0 %v14609_v54  ;;  %v10068_v42 = vadd.f32 %v17516_v0, %v17705_v62  ;;  %v14073_v31 = vld [vmem:[#allocation3 + $0x1e4] sm:$0xf] }
 0x65c   : > { %v10151_v36 = vpop.f32.mrf.mxu3  ;;  %1164 = vst [vmem:[#allocation3 + $0xc6c] sm:$0xf] %v1126_v53  ;;  %v12832_v2 = vor.u32 %v14360_v34, %v12831_v61  ;;  %v14605_v62 = vld [vmem:[%s18470_s1 + $0x600] sm:$0xff]  ;;  %v18596_v54 = vld [vmem:[#allocation17_spill] sm:$0xff] }
 0x65d   : > { %v17731_v10 = vadd.f32 %v10151_v36, %v10063_v15  ;;  %1280 = vst [vmem:[#allocation3 + $0xa1c] sm:$0xf] %v1126_v53  ;;  %v14626_v36 = vld [vmem:[#allocation3 + $0xa88] sm:$0xf0]  ;;  %v11641_v37 = vld [vmem:[#allocation3 + $0x184] sm:$0xf0] }
 0x65e   : > { %v13904_v61 = vor.u32 %v14626_v36, %v13903_v28 }
 0x660   : > { %v9983_v25 = vpop.f32.mrf.mxu1  ;;  %10884 = vmatpush.bf16.msra.mxu2 %v13904_v61  ;;  %v14098_v61 = vld [vmem:[#allocation3 + $0x2ac] sm:$0xf] }
 0x661   : > { %v17739_v52 = vadd.f32 %v9983_v25, %v17308_v4  ;;  %v17746_v57 = vpop.f32.mrf.mxu2  ;;  %v14608_v4 = vld [vmem:[%s18470_s1 + $0x618] sm:$0xff] }
 0x662   : > { %v10230_v5 = vpop.f32.mrf.mxu0  ;;  %10556 = vmatpush.bf16.msra.mxu0 %v14608_v4  ;;  %v14236_v4 = vld [vmem:[#allocation3 + $0x6f8] sm:$0xf0] }
 0x663   : > { %v17742_v21 = vadd.f32 %v10230_v5, %v17654_v58  ;;  %10298 = vmatmul.bf16.gmra.mxu1 %v11636_v56  ;;  %v12931_v56 = vld [vmem:[#allocation3 + $0xb40] sm:$0xf] }
 0x664   : > { %v10153_v30 = vpop.f32.mrf.mxu3 }
 0x665   : > { %10269 = vmatmul.bf16.gmra.mxu0 %v12832_v2  ;;  %v17751_v43 = vadd.f32 %v10153_v30, %v10065_v44  ;;  %v12339_v44 = vld [vmem:[#allocation3 + $0x698] sm:$0xf]  ;;  %v10070_v30 = vadd.f32 %v17532_v35, %v17717_v11  ;;  %v10073_v11 = vadd.f32 %v17548_v24, %v17739_v52 }
 0x666   : > { %10417 = vmatmul.bf16.gmra.mxu2 %v12240_v39  ;;  %10557 = vmatpush.bf16.msra.mxu0 %v14607_v22 }
 0x668   : > { %v9985_v58 = vpop.f32.mrf.mxu1 }
 0x669   : > { %v17757_v13 = vadd.f32 %v9985_v58, %v17322_v14  ;;  %10471 = vmatmul.bf16.vlgmr.msra.gmra.mxu3 %v11544_v20  ;;  %v17764_v51 = vpop.f32.mrf.mxu2  ;;  %v11733_v14 = vld [vmem:[#allocation3 + $0x244] sm:$0xf0]  ;;  %v12340_v58 = vor.u32 %v14236_v4, %v12339_v44  ;;  %v12439_v4 = vld [vmem:[#allocation3 + $0x760] sm:$0xf] }
 0x66a   : > { %v10232_v15 = vpop.f32.mrf.mxu0  ;;  %10558 = vmatpush.bf16.msra.mxu0 %v14606_v17  ;;  %v11736_v25 = vor.u32 %v14073_v31, %v11733_v14  ;;  %v14618_v17 = vld [vmem:[#allocation3 + $0x448] sm:$0xf0] }
 0x66b   : > { %v17760_v18 = vadd.f32 %v10232_v15, %v17672_v27  ;;  %v14385_v27 = vld [vmem:[#allocation3 + $0xba0] sm:$0xf0]  ;;  %v11644_v15 = vor.u32 %v14049_v38, %v11641_v37  ;;  %v10075_v52 = vadd.f32 %v17564_v40, %v17757_v13 }
 0x66c   : > { %v10156_v53 = vpop.f32.mrf.mxu3  ;;  %v12932_v5 = vor.u32 %v14385_v27, %v12931_v56  ;;  %v11833_v56 = vld [vmem:[#allocation3 + $0x30c] sm:$0xf0] }
 0x66d   : > { %v17769_v34 = vadd.f32 %v10156_v53, %v10068_v42  ;;  %v13871_v42 = vld [vmem:[#allocation3 + $0x3e8] sm:$0xf] }
 0x66e   : > { %10559 = vmatpush.bf16.msra.mxu0 %v14605_v62  ;;  %v13872_v28 = vor.u32 %v14618_v17, %v13871_v42  ;;  %v14410_v62 = vld [vmem:[#allocation3 + $0xc68] sm:$0xf0] }
 0x670   : > { %v9988_v0 = vpop.f32.mrf.mxu1  ;;  %10871 = vmatpush.bf16.msrb.mxu1 %v13872_v28 }
 0x671   : > { %v9989_v2 = vadd.f32 %v9988_v0, %v18596_v54  ;;  %v17780_v39 = vpop.f32.mrf.mxu2  ;;  %v13031_v0 = vld [vmem:[#allocation3 + $0xc08] sm:$0xf]  ;;  %v11836_v54 = vor.u32 %v14098_v61, %v11833_v56  ;;  %v13899_v61 = vld [vmem:[#allocation3 + $0x960] sm:$0xf]  ;;  %v14625_v56 = vld [vmem:[#allocation3 + $0x9c0] sm:$0xf0] }
 0x672   : > { %v10235_v45 = vpop.f32.mrf.mxu0  ;;  %v13032_v37 = vor.u32 %v14410_v62, %v13031_v0  ;;  %v11933_v0 = vld [vmem:[#allocation3 + $0x3d4] sm:$0xf0] }
 0x673   : > { %v17776_v49 = vadd.f32 %v10235_v45, %v17695_v46  ;;  %10303 = vmatmul.bf16.gmra.mxu1 %v11736_v25  ;;  %v18597_v46 = vld [vmem:[#allocation14_spill] sm:$0xff]  ;;  %v10078_v40 = vadd.f32 %v17586_v9, %v9989_v2  ;;  %v11841_v2 = vld [vmem:[#allocation3 + $0x314] sm:$0xf0] }
 0x674   : > { %v10158_v20 = vpop.f32.mrf.mxu3  ;;  %v18599_v45 = vld [vmem:[#allocation18_spill] sm:$0xff] }
 0x675   : > { %10274 = vmatmul.bf16.gmra.mxu0 %v12932_v5  ;;  %v17782_v22 = vadd.f32 %v10158_v20, %v10070_v30  ;;  %v11741_v30 = vld [vmem:[#allocation3 + $0x24c] sm:$0xf0]  ;;  %v14099_v9 = vld [vmem:[#allocation3 + $0x2b4] sm:$0xf] }
 0x676   : > { %10422 = vmatmul.bf16.gmra.mxu2 %v12340_v58  ;;  %v14261_v58 = vld [vmem:[#allocation3 + $0x7c0] sm:$0xf0] }
 0x677   : > { %v12440_v42 = vor.u32 %v14261_v58, %v12439_v4  ;;  %v12539_v58 = vld [vmem:[#allocation3 + $0x828] sm:$0xf] }
 0x678   : > { %v9990_v36 = vpop.f32.mrf.mxu1 }
 0x679   : > { %v9991_v31 = vadd.f32 %v9990_v36, %v18597_v46  ;;  %10476 = vmatmul.bf16.gmra.mxu3 %v11644_v15  ;;  %v17790_v53 = vpop.f32.mrf.mxu2  ;;  %v18600_v46 = vld [vmem:[#allocation16_spill] sm:$0xff] }
 0x67a   : > { %v10237_v14 = vpop.f32.mrf.mxu0 }
 0x67b   : > { %v17786_v35 = vadd.f32 %v10237_v14, %v17714_v29  ;;  %v14074_v29 = vld [vmem:[#allocation3 + $0x1ec] sm:$0xf] }
 0x67c   : > { %v10161_v27 = vpop.f32.mrf.mxu3  ;;  %v11744_v28 = vor.u32 %v14074_v29, %v11741_v30  ;;  %v18602_v30 = vld [vmem:[#allocation15_spill] sm:$0xff] }
 0x67d   : > { %18598 = vst [vmem:[#allocation11_spill] sm:$0xff] %v17786_v35  ;;  %v17792_v25 = vadd.f32 %v10161_v27, %v10073_v11  ;;  %v14123_v27 = vld [vmem:[#allocation3 + $0x374] sm:$0xf] }
 0x680   : > { %v9993_v5 = vpop.f32.mrf.mxu1 }
 0x681   : > { %v9994_v38 = vadd.f32 %v9993_v5, %v18599_v45  ;;  %v17800_v20 = vpop.f32.mrf.mxu2  ;;  %v11547_v45 = vld [vmem:[#allocation3 + $0x60] sm:$0xf] }
 0x682   : > { %v10240_v44 = vpop.f32.mrf.mxu0 }
 0x683   : > { %v17796_v24 = vadd.f32 %v10240_v44, %v17731_v10  ;;  %10308 = vmatmul.bf16.gmra.mxu1 %v11836_v54  ;;  %v13900_v54 = vor.u32 %v14625_v56, %v13899_v61  ;;  %v11936_v44 = vor.u32 %v14123_v27, %v11933_v0  ;;  %v11844_v61 = vor.u32 %v14099_v9, %v11841_v2  ;;  %v13867_v56 = vld [vmem:[#allocation3 + $0x320] sm:$0xf]  ;;  %v14617_v27 = vld [vmem:[#allocation3 + $0x380] sm:$0xf0]  ;;  %v14062_v9 = vld [vmem:[#allocation3 + $0x188] sm:$0xf0] }
 0x684   : > { %v10163_v15 = vpop.f32.mrf.mxu3  ;;  %v13868_v0 = vor.u32 %v14617_v27, %v13867_v56  ;;  %v12639_v56 = vld [vmem:[#allocation3 + $0x8f0] sm:$0xf] }
 0x685   : > { %10279 = vmatmul.bf16.gmra.mxu0 %v13032_v37  ;;  %v17802_v17 = vadd.f32 %v10163_v15, %v10075_v52  ;;  %v14037_v37 = vld [vmem:[#allocation3 + $0xc0] sm:$0xf0]  ;;  %10885 = vmatpush.bf16.msra.mxu2 %v13900_v54 }
 0x686   : > { %10427 = vmatmul.bf16.gmra.mxu2 %v12440_v42  ;;  %v11548_v4 = vor.u32 %v14037_v37, %v11547_v45  ;;  %v10080_v42 = vadd.f32 %v17602_v19, %v9991_v31  ;;  %10872 = vmatpush.bf16.msrb.mxu1 %v13868_v0  ;;  %v10083_v31 = vadd.f32 %v17618_v6, %v9994_v38  ;;  %v14311_v0 = vld [vmem:[#allocation3 + $0x950] sm:$0xf0] }
 0x688   : > { %v9995_v36 = vpop.f32.mrf.mxu1 }
 0x689   : > { %v9996_v14 = vadd.f32 %v9995_v36, %v18600_v46  ;;  %10481 = vmatmul.bf16.gmra.mxu3 %v11744_v28  ;;  %v17809_v13 = vpop.f32.mrf.mxu2  ;;  %v14286_v36 = vld [vmem:[#allocation3 + $0x888] sm:$0xf0] }
 0x68a   : > { %v10242_v10 = vpop.f32.mrf.mxu0 }
 0x68b   : > { %v17806_v11 = vadd.f32 %v10242_v10, %v17751_v43  ;;  %v12540_v10 = vor.u32 %v14286_v36, %v12539_v58  ;;  %v10085_v38 = vadd.f32 %v17637_v33, %v9996_v14 }
 0x68c   : > { %v10166_v62 = vpop.f32.mrf.mxu3 }
 0x68d   : > { %18601 = vst [vmem:[#allocation8_spill] sm:$0xff] %v17806_v11  ;;  %v17811_v5 = vadd.f32 %v10166_v62, %v10078_v40 }
 0x690   : > { %v9998_v29 = vpop.f32.mrf.mxu1 }
 0x691   : > { %v9999_v43 = vadd.f32 %v9998_v29, %v18602_v30  ;;  %v17818_v28 = vpop.f32.mrf.mxu2  ;;  %v12033_v29 = vld [vmem:[#allocation3 + $0x49c] sm:$0xf0] }
 0x692   : > { %v10245_v52 = vpop.f32.mrf.mxu0 }
 0x693   : > { %v17815_v15 = vadd.f32 %v10245_v52, %v17769_v34  ;;  %10313 = vmatmul.bf16.gmra.mxu1 %v11936_v44  ;;  %v18603_v34 = vld [vmem:[#allocation19_spill] sm:$0xff]  ;;  %v11647_v52 = vld [vmem:[#allocation3 + $0x128] sm:$0xf]  ;;  %v10088_v33 = vadd.f32 %v17652_v3, %v9999_v43  ;;  %v14149_v3 = vld [vmem:[#allocation3 + $0x444] sm:$0xf] }
 0x694   : > { %v10168_v46 = vpop.f32.mrf.mxu3  ;;  %v14148_v44 = vld [vmem:[#allocation3 + $0x43c] sm:$0xf] }
 0x695   : > { %10560 = vmatmul.bf16.vlgmr.msra.gmra.mxu0 %v11548_v4  ;;  %v17820_v40 = vadd.f32 %v10168_v46, %v10080_v42  ;;  %v12036_v2 = vor.u32 %v14148_v44, %v12033_v29  ;;  %v18605_v42 = vld [vmem:[#allocation20_spill] sm:$0xff]  ;;  %v11648_v46 = vor.u32 %v14062_v9, %v11647_v52  ;;  %v13895_v9 = vld [vmem:[#allocation3 + $0x898] sm:$0xf] }
 0x696   : > { %10432 = vmatmul.bf16.gmra.mxu2 %v12540_v10  ;;  %v18606_v29 = vld [vmem:[#allocation4_spill] sm:$0xff] }
 0x698   : > { %v10000_v62 = vpop.f32.mrf.mxu1 }
 0x699   : > { %v10001_v54 = vadd.f32 %v10000_v62, %v18603_v34  ;;  %10486 = vmatmul.bf16.gmra.mxu3 %v11844_v61  ;;  %v17827_v37 = vpop.f32.mrf.mxu2  ;;  %v11941_v61 = vld [vmem:[#allocation3 + $0x3dc] sm:$0xf0]  ;;  %v12640_v34 = vor.u32 %v14311_v0, %v12639_v56  ;;  %v14087_v56 = vld [vmem:[#allocation3 + $0x250] sm:$0xf0] }
 0x69a   : > { %v10247_v45 = vpop.f32.mrf.mxu0 }
 0x69b   : > { %v17824_v19 = vadd.f32 %v10247_v45, %v17782_v22  ;;  %v14124_v22 = vld [vmem:[#allocation3 + $0x37c] sm:$0xf] }
 0x69c   : > { %v10171_v30 = vpop.f32.mrf.mxu3 }
 0x69d   : > { %18604 = vst [vmem:[#allocation13_spill] sm:$0xff] %v17824_v19  ;;  %v17829_v4 = vadd.f32 %v10171_v30, %v10083_v31  ;;  %v11944_v31 = vor.u32 %v14124_v22, %v11941_v61  ;;  %v11747_v61 = vld [vmem:[#allocation3 + $0x1f0] sm:$0xf] }
 0x6a0   : > { %v10003_v58 = vpop.f32.mrf.mxu1 }
 0x6a1   : > { %v17832_v36 = vadd.f32 %v10003_v58, %v18605_v42  ;;  %v17838_v27 = vpop.f32.mrf.mxu2  ;;  %v14173_v58 = vld [vmem:[#allocation3 + $0x504] sm:$0xf]  ;;  %v12133_v42 = vld [vmem:[#allocation3 + $0x564] sm:$0xf0] }
 0x6a2   : > { %v10250_v10 = vpop.f32.mrf.mxu0 }
 0x6a3   : > { %v17835_v6 = vadd.f32 %v10250_v10, %v17792_v25  ;;  %10318 = vmatmul.bf16.gmra.mxu1 %v12036_v2  ;;  %v14624_v2 = vld [vmem:[#allocation3 + $0x8f8] sm:$0xf0] }
 0x6a4   : > { %v10173_v62 = vpop.f32.mrf.mxu3  ;;  %v13896_v10 = vor.u32 %v14624_v2, %v13895_v9  ;;  %v14336_v2 = vld [vmem:[#allocation3 + $0xa18] sm:$0xf0] }
 0x6a5   : > { %10565 = vmatmul.bf16.gmra.mxu0 %v11648_v46  ;;  %v17840_v45 = vadd.f32 %v10173_v62, %v10085_v38  ;;  %v12136_v38 = vor.u32 %v14173_v58, %v12133_v42  ;;  %v18608_v62 = vld [vmem:[#allocation7_spill] sm:$0xff]  ;;  %v520_v58 = vld [vmem:[#allocation2 + $0x134] sm:$0xf] }
 0x6a6   : > { %10437 = vmatmul.bf16.gmra.mxu2 %v12640_v34  ;;  %v11748_v34 = vor.u32 %v14087_v56, %v11747_v61 }
 0x6a7   : > { %10886 = vmatpush.bf16.msra.mxu2 %v13896_v10  ;;  %v521_v10 = vld [vmem:[#allocation2 + $0x138] sm:$0x7] }
 0x6a8   : > { %v10005_v44 = vpop.f32.mrf.mxu1  ;;  %v1185_v11 = vshrl.u32 %v521_v10, 16 }
 0x6a9   : > { %v17843_v30 = vadd.f32 %v10005_v44, %v18606_v29  ;;  %10491 = vmatmul.bf16.gmra.mxu3 %v11944_v31  ;;  %v17849_v14 = vpop.f32.mrf.mxu2  ;;  %v12041_v31 = vld [vmem:[#allocation3 + $0x4a4] sm:$0xf0]  ;;  %v12739_v44 = vld [vmem:[#allocation3 + $0x9b8] sm:$0xf]  ;;  %v519_v29 = vld [vmem:[#allocation2 + $0x130] sm:$0xc] }
 0x6aa   : > { %v10252_v25 = vpop.f32.mrf.mxu0  ;;  %v12044_v56 = vor.u32 %v14149_v3, %v12041_v31  ;;  %v1187_v35 = vrot.slane %v1185_v11, 6  ;;  %v11847_v11 = vld [vmem:[#allocation3 + $0x2b8] sm:$0xf] }
 0x6ab   : > { %v17846_v52 = vadd.f32 %v10252_v25, %v17802_v17 }
 0x6ac   : > { %v10176_v46 = vpop.f32.mrf.mxu3 }
 0x6ad   : > { %18607 = vst [vmem:[#allocation10_spill] sm:$0xff] %v17846_v52  ;;  %v17851_v22 = vadd.f32 %v10176_v46, %v10088_v33  ;;  %v10090_v33 = vadd.f32 %v17668_v63, %v10001_v54  ;;  %v12740_v46 = vor.u32 %v14336_v2, %v12739_v44  ;;  %v1169_v63 = vshll.u32 %v519_v29, 16 }
 0x6ae   : > { %v1175_v54 = vshrl.u32 %v520_v58, 16  ;;  %v1178_v52 = vshll.u32 %v520_v58, 16  ;;  %v1188_v44 = vshll.u32 %v521_v10, 16  ;;  %v10093_v10 = vadd.f32 %v17687_v26, %v17832_v36 }
 0x6b0   : > { %v10008_v0 = vpop.f32.mrf.mxu1  ;;  %v1177_v3 = vrot.slane %v1175_v54, 6  ;;  %v1180_v31 = vrot.slane %v1178_v52, 7  ;;  %v12233_v52 = vld [vmem:[#allocation3 + $0x62c] sm:$0xf0] }
 0x6b1   : > { %v17854_v17 = vadd.f32 %v10008_v0, %v18608_v62  ;;  %v17860_v9 = vpop.f32.mrf.mxu2  ;;  %v13863_v0 = vld [vmem:[#allocation3 + $0x258] sm:$0xf]  ;;  %v14616_v62 = vld [vmem:[#allocation3 + $0x2b8] sm:$0xf0] }
 0x6b2   : > { %v10255_v43 = vpop.f32.mrf.mxu0 }
 0x6b3   : > { %v17857_v25 = vadd.f32 %v10255_v43, %v17811_v5  ;;  %10323 = vmatmul.bf16.gmra.mxu1 %v12136_v38  ;;  %v14636_v5 = vld [vmem:[%s18472_s3 + $0x38] sm:$0xff]  ;;  %v1166_v38 = vshrl.u32 %v519_v29, 16  ;;  %v13864_v43 = vor.u32 %v14616_v62, %v13863_v0  ;;  %v1181_v62 = vor.u32 %v1180_v31, %v1177_v3  ;;  %v522_v3 = vld [vmem:[#allocation2 + $0x140] sm:$0xc] }
 0x6b4   : > { %v10178_v42 = vpop.f32.mrf.mxu3  ;;  %10960 = vmatpush.bf16.msrb.mxu3 %v14636_v5 }
 0x6b5   : > { %18609 = vst [vmem:[#allocation12_spill] sm:$0xff] %v17857_v25  ;;  %10570 = vmatmul.bf16.gmra.mxu0 %v11748_v34  ;;  %v17862_v61 = vadd.f32 %v10178_v42, %v10090_v33  ;;  %v1168_v19 = vrot.slane %v1166_v38, 6  ;;  %10873 = vmatpush.bf16.msrb.mxu1 %v13864_v43  ;;  %v1171_v34 = vrot.slane %v1169_v63, 7  ;;  %v18610_v33 = vld [vmem:[#allocation5_spill] sm:$0xff]  ;;  %v1190_v25 = vrot.slane %v1188_v44, 7 }
 0x6b6   : > { %10442 = vmatmul.bf16.gmra.mxu2 %v12740_v46  ;;  %v14198_v38 = vld [vmem:[#allocation3 + $0x5cc] sm:$0xf]  ;;  %v1183_v54 = vrot.slane %v1181_v62, 4  ;;  %v14112_v44 = vld [vmem:[#allocation3 + $0x318] sm:$0xf0] }
 0x6b7   : > { %v1172_v29 = vor.u32 %v1171_v34, %v1168_v19  ;;  %v1191_v5 = vor.u32 %v1190_v25, %v1187_v35  ;;  %v11848_v36 = vor.u32 %v14112_v44, %v11847_v11  ;;  %v14174_v25 = vld [vmem:[#allocation3 + $0x50c] sm:$0xf]  ;;  %v12141_v34 = vld [vmem:[#allocation3 + $0x56c] sm:$0xf0] }
 0x6b8   : > { %v10010_v2 = vpop.f32.mrf.mxu1 }
 0x6b9   : > { %v17868_v42 = vadd.f32 %v10010_v2, %v18610_v33  ;;  %10496 = vmatmul.bf16.gmra.mxu3 %v12044_v56  ;;  %v17875_v46 = vpop.f32.mrf.mxu2  ;;  %v1173_v63 = vrot.slane %v1172_v29, 4  ;;  %v12236_v2 = vor.u32 %v14198_v38, %v12233_v52  ;;  %v523_v33 = vld [vmem:[#allocation2 + $0x144] sm:$0xf]  ;;  %v10095_v29 = vadd.f32 %v17712_v59, %v17843_v30  ;;  %v524_v38 = vld [vmem:[#allocation2 + $0x148] sm:$0x7] }
 0x6ba   : > { %v10257_v0 = vpop.f32.mrf.mxu0  ;;  %v1197_v52 = vshll.u32 %v522_v3, 16  ;;  %v1213_v11 = vshrl.u32 %v524_v38, 16 }
 0x6bb   : > { %v17871_v58 = vadd.f32 %v10257_v0, %v17820_v40  ;;  %v1182_v19 = vsel %vm16980_vm15, %v1173_v63, %v1181_v62  ;;  %v1192_v40 = vsel %vm16980_vm15, %v1183_v54, %v1191_v5  ;;  %v12144_v5 = vor.u32 %v14174_v25, %v12141_v34 }
 0x6bc   : > { %v10181_v43 = vpop.f32.mrf.mxu3  ;;  %1281 = vst [vmem:[#allocation3 + $0xa80] sm:$0xf] %v1182_v19  ;;  %v1203_v63 = vshrl.u32 %v523_v33, 16  ;;  %v1206_v54 = vshll.u32 %v523_v33, 16  ;;  %v1199_v19 = vrot.slane %v1197_v52, 7  ;;  %v1215_v30 = vrot.slane %v1213_v11, 6 }
 0x6bd   : > { %18611 = vst [vmem:[#allocation17_spill] sm:$0xff] %v17871_v58  ;;  %v17877_v56 = vadd.f32 %v10181_v43, %v10093_v10 }
 0x6be   : > { %1282 = vst [vmem:[#allocation3 + $0xae4] sm:$0xf] %v1192_v40  ;;  %v1216_v40 = vshll.u32 %v524_v38, 16  ;;  %v1208_v59 = vrot.slane %v1206_v54, 7  ;;  %v10098_v38 = vadd.f32 %v17724_v50, %v17854_v17  ;;  %v14623_v54 = vld [vmem:[#allocation3 + $0x830] sm:$0xf0] }
 0x6bf   : > { %v14137_v50 = vld [vmem:[#allocation3 + $0x3e0] sm:$0xf0] }
 0x6c0   : > { %v10013_v26 = vpop.f32.mrf.mxu1  ;;  %v1218_v34 = vrot.slane %v1216_v40, 7  ;;  %v11947_v40 = vld [vmem:[#allocation3 + $0x380] sm:$0xf] }
 0x6c1   : > { %v17884_v35 = vadd.f32 %v10013_v26, %v17528_v8  ;;  %v17891_v62 = vpop.f32.mrf.mxu2  ;;  %v1194_v8 = vshrl.u32 %v522_v3, 16  ;;  %v1205_v26 = vrot.slane %v1203_v63, 6  ;;  %v13891_v63 = vld [vmem:[#allocation3 + $0x7d0] sm:$0xf] }
 0x6c2   : > { %v10260_v31 = vpop.f32.mrf.mxu0 }
 0x6c3   : > { %v17887_v0 = vadd.f32 %v10260_v31, %v17829_v4  ;;  %10328 = vmatmul.bf16.gmra.mxu1 %v12236_v2  ;;  %v12839_v44 = vld [vmem:[#allocation3 + $0xa80] sm:$0xf]  ;;  %v1196_v4 = vrot.slane %v1194_v8, 6 }
 0x6c4   : > { %v10183_v10 = vpop.f32.mrf.mxu3 }
 0x6c5   : > { %10575 = vmatmul.bf16.gmra.mxu0 %v11848_v36  ;;  %v17893_v43 = vadd.f32 %v10183_v10, %v10095_v29  ;;  %v14361_v2 = vld [vmem:[#allocation3 + $0xae0] sm:$0xf0]  ;;  %v1200_v25 = vor.u32 %v1199_v19, %v1196_v4  ;;  %v1209_v36 = vor.u32 %v1208_v59, %v1205_v26  ;;  %v1219_v10 = vor.u32 %v1218_v34, %v1215_v30  ;;  %v525_v30 = vld [vmem:[#allocation2 + $0x150] sm:$0xc]  ;;  %v12241_v34 = vld [vmem:[#allocation3 + $0x634] sm:$0xf0] }
 0x6c6   : > { %v12840_v58 = vor.u32 %v14361_v2, %v12839_v44  ;;  %v14223_v44 = vld [vmem:[#allocation3 + $0x694] sm:$0xf]  ;;  %v11948_v59 = vor.u32 %v14137_v50, %v11947_v40 }
 0x6c7   : > { %v1201_v33 = vrot.slane %v1200_v25, 4  ;;  %v1211_v11 = vrot.slane %v1209_v36, 4  ;;  %v14199_v25 = vld [vmem:[#allocation3 + $0x5d4] sm:$0xf] }
 0x6c8   : > { %v10015_v31 = vpop.f32.mrf.mxu1  ;;  %10447 = vmatmul.bf16.gmra.mxu2 %v12840_v58 }
 0x6c9   : > { %v17896_v3 = vadd.f32 %v10015_v31, %v17544_v60  ;;  %10501 = vmatmul.bf16.gmra.mxu3 %v12144_v5  ;;  %v17903_v52 = vpop.f32.mrf.mxu2  ;;  %v12333_v60 = vld [vmem:[#allocation3 + $0x6f4] sm:$0xf0]  ;;  %v13892_v5 = vor.u32 %v14623_v54, %v13891_v63  ;;  %v1210_v58 = vsel %vm16980_vm15, %v1201_v33, %v1209_v36 }
 0x6ca   : > { %v10262_v29 = vpop.f32.mrf.mxu0  ;;  %1283 = vst [vmem:[#allocation3 + $0xb48] sm:$0xf] %v1210_v58  ;;  %v12336_v17 = vor.u32 %v14223_v44, %v12333_v60  ;;  %v527_v54 = vld [vmem:[#allocation2 + $0x158] sm:$0x7]  ;;  %v12244_v60 = vor.u32 %v14199_v25, %v12241_v34 }
 0x6cb   : > { %v17899_v8 = vadd.f32 %v10262_v29, %v17840_v45  ;;  %v1220_v45 = vsel %vm16980_vm15, %v1211_v11, %v1219_v10  ;;  %10887 = vmatpush.bf16.msra.mxu2 %v13892_v5  ;;  %v10100_v29 = vadd.f32 %v17746_v57, %v17868_v42  ;;  %v526_v10 = vld [vmem:[#allocation2 + $0x154] sm:$0xf]  ;;  %v1225_v11 = vshll.u32 %v525_v30, 16  ;;  %v13859_v5 = vld [vmem:[#allocation3 + $0x190] sm:$0xf] }
 0x6cc   : > { %v10186_v4 = vpop.f32.mrf.mxu3  ;;  %1284 = vst [vmem:[#allocation3 + $0xbac] sm:$0xf] %v1220_v45  ;;  %v14635_v57 = vld [vmem:[%s18472_s3 + $0x30] sm:$0xff]  ;;  %v1231_v50 = vshrl.u32 %v526_v10, 16 }
 0x6cd   : > { %18612 = vst [vmem:[#allocation14_spill] sm:$0xff] %v17899_v8  ;;  %v17907_v19 = vadd.f32 %v10186_v4, %v10098_v38  ;;  %v1227_v40 = vrot.slane %v1225_v11, 7  ;;  %10961 = vmatpush.bf16.msrb.mxu3 %v14635_v57  ;;  %v13887_v11 = vld [vmem:[#allocation3 + $0x708] sm:$0xf] }
 0x6ce   : > { %v1233_v25 = vrot.slane %v1231_v50, 6 }
 0x6d0   : > { %v10294_v2 = vpop.f32.mrf.mxu1 }
 0x6d1   : > { %v17912_v26 = vadd.f32 %v10294_v2, %v17560_v7  ;;  %v17919_v33 = vpop.f32.mrf.mxu2  ;;  %v12939_v63 = vld [vmem:[#allocation3 + $0xb48] sm:$0xf]  ;;  %v1222_v7 = vshrl.u32 %v525_v30, 16  ;;  %v1241_v2 = vshrl.u32 %v527_v54, 16 }
 0x6d2   : > { %v10265_v31 = vpop.f32.mrf.mxu0 }
 0x6d3   : > { %v17915_v36 = vadd.f32 %v10265_v31, %v17851_v22  ;;  %10333 = vmatmul.bf16.gmra.mxu1 %v12336_v17  ;;  %v14386_v4 = vld [vmem:[#allocation3 + $0xba8] sm:$0xf0]  ;;  %v14615_v22 = vld [vmem:[#allocation3 + $0x1f0] sm:$0xf0]  ;;  %v1224_v42 = vrot.slane %v1222_v7, 6  ;;  %v1234_v17 = vshll.u32 %v526_v10, 16  ;;  %v10103_v10 = vadd.f32 %v17764_v51, %v17884_v35 }
 0x6d4   : > { %v10188_v38 = vpop.f32.mrf.mxu3  ;;  %v12940_v58 = vor.u32 %v14386_v4, %v12939_v63  ;;  %v13860_v45 = vor.u32 %v14615_v22, %v13859_v5  ;;  %v1244_v31 = vshll.u32 %v527_v54, 16  ;;  %v14622_v5 = vld [vmem:[#allocation3 + $0x768] sm:$0xf0] }
 0x6d5   : > { %18613 = vst [vmem:[#allocation18_spill] sm:$0xff] %v17915_v36  ;;  %10580 = vmatmul.bf16.gmra.mxu0 %v11948_v59  ;;  %v17921_v44 = vadd.f32 %v10188_v38, %v10100_v29  ;;  %v1228_v59 = vor.u32 %v1227_v40, %v1224_v42  ;;  %v1236_v34 = vrot.slane %v1234_v17, 7  ;;  %v1243_v29 = vrot.slane %v1241_v2, 6  ;;  %v12047_v17 = vld [vmem:[#allocation3 + $0x448] sm:$0xf] }
 0x6d6   : > { %10874 = vmatpush.bf16.msrb.mxu1 %v13860_v45  ;;  %v1246_v4 = vrot.slane %v1244_v31, 7  ;;  %v14248_v45 = vld [vmem:[#allocation3 + $0x75c] sm:$0xf]  ;;  %v13888_v42 = vor.u32 %v14622_v5, %v13887_v11  ;;  %v14162_v2 = vld [vmem:[#allocation3 + $0x4a8] sm:$0xf0] }
 0x6d7   : > { %v1229_v63 = vrot.slane %v1228_v59, 4  ;;  %v1237_v22 = vor.u32 %v1236_v34, %v1233_v25  ;;  %v12048_v25 = vor.u32 %v14162_v2, %v12047_v17  ;;  %v13883_v11 = vld [vmem:[#allocation3 + $0x640] sm:$0xf]  ;;  %v14621_v5 = vld [vmem:[#allocation3 + $0x6a0] sm:$0xf0] }
 0x6d8   : > { %v17926_v30 = vpop.f32.mrf.mxu1  ;;  %10452 = vmatmul.bf16.gmra.mxu2 %v12940_v58  ;;  %v1247_v40 = vor.u32 %v1246_v4, %v1243_v29  ;;  %v14224_v29 = vld [vmem:[#allocation3 + $0x69c] sm:$0xf]  ;;  %v10105_v4 = vadd.f32 %v17780_v39, %v17896_v3  ;;  %v14651_v3 = vld [vmem:[%s18474_s5 + $0x30] sm:$0xff]  ;;  %v14273_v17 = vld [vmem:[#allocation3 + $0x824] sm:$0xf] }
 0x6d9   : > { %10506 = vmatmul.bf16.gmra.mxu3 %v12244_v60  ;;  %v17933_v54 = vpop.f32.mrf.mxu2  ;;  %v12433_v60 = vld [vmem:[#allocation3 + $0x7bc] sm:$0xf0]  ;;  %v1238_v58 = vsel %vm16980_vm15, %v1229_v63, %v1237_v22  ;;  %10888 = vmatpush.bf16.msra.mxu2 %v13888_v42  ;;  %v12533_v2 = vld [vmem:[#allocation3 + $0x884] sm:$0xf0] }
 0x6da   : > { %v10267_v38 = vpop.f32.mrf.mxu0  ;;  %1285 = vst [vmem:[#allocation3 + $0xc10] sm:$0xf] %v1238_v58  ;;  %v12436_v51 = vor.u32 %v14248_v45, %v12433_v60 }
 0x6db   : > { %v17929_v7 = vadd.f32 %v10267_v38, %v17862_v61  ;;  %v1239_v61 = vrot.slane %v1237_v22, 4  ;;  %v12341_v38 = vld [vmem:[#allocation3 + $0x6fc] sm:$0xf0] }
 0x6dc   : > { %v10191_v57 = vpop.f32.mrf.mxu3  ;;  %v12344_v45 = vor.u32 %v14224_v29, %v12341_v38 }
 0x6dd   : > { %18614 = vst [vmem:[#allocation16_spill] sm:$0xff] %v17929_v7  ;;  %v17935_v50 = vadd.f32 %v10191_v57, %v10103_v10  ;;  %v1248_v35 = vsel %vm16980_vm15, %v1239_v61, %v1247_v40 }
 0x6de   : > { %1286 = vst [vmem:[#allocation3 + $0xc74] sm:$0xf] %v1248_v35  ;;  %v14650_v35 = vld [vmem:[%s18474_s5 + $0x28] sm:$0xff] }
 0x6e0   : > { %v10299_v31 = vpop.f32.mrf.mxu1 }
 0x6e1   : > { %v17942_v59 = vadd.f32 %v10299_v31, %v17598_v55  ;;  %v17949_v10 = vpop.f32.mrf.mxu2  ;;  %v14652_v55 = vld [vmem:[%s18474_s5 + $0x38] sm:$0xff]  ;;  %v13039_v60 = vld [vmem:[#allocation3 + $0xc10] sm:$0xf] }
 0x6e2   : > { %v10270_v34 = vpop.f32.mrf.mxu0  ;;  %v12147_v31 = vld [vmem:[#allocation3 + $0x510] sm:$0xf] }
 0x6e3   : > { %v17945_v63 = vadd.f32 %v10270_v34, %v17877_v56  ;;  %10338 = vmatmul.bf16.gmra.mxu1 %v12436_v51  ;;  %v13884_v56 = vor.u32 %v14621_v5, %v13883_v11  ;;  %v12536_v34 = vor.u32 %v14273_v17, %v12533_v2  ;;  %v14249_v5 = vld [vmem:[#allocation3 + $0x764] sm:$0xf] }
 0x6e4   : > { %v10193_v23 = vpop.f32.mrf.mxu3 }
 0x6e5   : > { %18615 = vst [vmem:[#allocation15_spill] sm:$0xff] %v17945_v63  ;;  %10585 = vmatmul.bf16.gmra.mxu0 %v12048_v25  ;;  %v17954_v22 = vadd.f32 %v10193_v23, %v10105_v4  ;;  %v14411_v57 = vld [vmem:[#allocation3 + $0xc70] sm:$0xf0]  ;;  %10889 = vmatpush.bf16.msra.mxu2 %v13884_v56  ;;  %v3607_v23 = vld [vmem:[#allocation2 + $0x104] sm:$0xe] }
 0x6e6   : > { %v13040_v39 = vor.u32 %v14411_v57, %v13039_v60  ;;  %v14187_v25 = vld [vmem:[#allocation3 + $0x570] sm:$0xf0]  ;;  %v4144_v17 = vshll.u32 %v3607_v23, 16 }
 0x6e7   : > { %v12148_v4 = vor.u32 %v14187_v25, %v12147_v31 }
 0x6e8   : > { %v17956_v42 = vpop.f32.mrf.mxu1  ;;  %10457 = vmatmul.bf16.gmra.mxu2 %v13040_v39  ;;  %v4141_v39 = vshrl.u32 %v3607_v23, 16  ;;  %v14614_v23 = vld [vmem:[#allocation3 + $0x128] sm:$0xf0] }
 0x6e9   : > { %11138 = vmatpush.bf16.msrb.mxu2 %v14652_v55  ;;  %10511 = vmatmul.bf16.gmra.mxu3 %v12344_v45  ;;  %v17964_v61 = vpop.f32.mrf.mxu2  ;;  %v12441_v55 = vld [vmem:[#allocation3 + $0x7c4] sm:$0xf0] }
 0x6ea   : > { %v10272_v40 = vpop.f32.mrf.mxu0  ;;  %v3608_v45 = vld [vmem:[#allocation2 + $0x108] sm:$0xf] }
 0x6eb   : > { %v17962_v58 = vadd.f32 %v10272_v40, %v17893_v43  ;;  %v14649_v43 = vld [vmem:[%s18474_s5 + $0x20] sm:$0xff]  ;;  %v3609_v40 = vld [vmem:[#allocation2 + $0x10c] sm:$0x3]  ;;  %v4150_v2 = vshrl.u32 %v3608_v45, 16  ;;  %v4153_v31 = vshll.u32 %v3608_v45, 16 }
 0x6ec   : > { %v17966_v51 = vpop.f32.mrf.mxu3  ;;  %v4163_v25 = vshll.u32 %v3609_v40, 16 }
 0x6ed   : > { %18616 = vst [vmem:[#allocation19_spill] sm:$0xff] %v17962_v58  ;;  %11139 = vmatpush.bf16.msrb.mxu2 %v14651_v3  ;;  %v12444_v3 = vor.u32 %v14249_v5, %v12441_v55  ;;  %v4155_v58 = vrot.slane %v4153_v31, 6  ;;  %v13855_v5 = vld [vmem:[#allocation3 + $0xc8] sm:$0xf] }
 0x6ee   : > { %v14634_v55 = vld [vmem:[%s18472_s3 + $0x28] sm:$0xff] }
 0x6ef   : > { %10962 = vmatpush.bf16.msrb.mxu3 %v14634_v55 }
 0x6f0   : > { %v10304_v29 = vpop.f32.mrf.mxu1 }
 0x6f1   : > { %11140 = vmatpush.bf16.msrb.mxu2 %v14650_v35  ;;  %v17975_v38 = vadd.f32 %v10304_v29, %v17633_v32  ;;  %v17980_v56 = vpop.f32.mrf.mxu2  ;;  %v14648_v32 = vld [vmem:[%s18474_s5 + $0x18] sm:$0xff]  ;;  %v4143_v35 = vrot.slane %v4141_v39, 5  ;;  %v4152_v29 = vrot.slane %v4150_v2, 5 }
 0x6f2   : > { %v10275_v11 = vpop.f32.mrf.mxu0  ;;  %18618 = vst [vmem:[#allocation4_spill] sm:$0xff] %v17980_v56 }
 0x6f3   : > { %v17978_v60 = vadd.f32 %v10275_v11, %v17907_v19  ;;  %10343 = vmatmul.bf16.gmra.mxu1 %v12536_v34  ;;  %v4160_v19 = vshrl.u32 %v3609_v40, 16  ;;  %v4146_v34 = vrot.slane %v4144_v17, 6  ;;  %v13856_v40 = vor.u32 %v14614_v23, %v13855_v5 }
 0x6f4   : > { %v17982_v57 = vpop.f32.mrf.mxu3  ;;  %v18478_v17 = vmov 998259584  }
 0x6f5   : > { %18617 = vst [vmem:[#allocation20_spill] sm:$0xff] %v17978_v60  ;;  %11141 = vmatpush.bf16.msrb.mxu2 %v14649_v43  ;;  %10590 = vmatmul.bf16.gmra.mxu0 %v12148_v4  ;;  %v14647_v43 = vld [vmem:[%s18474_s5 + $0x10] sm:$0xff]  ;;  %v4162_v7 = vrot.slane %v4160_v19, 5  ;;  %v4165_v4 = vrot.slane %v4163_v25, 6  ;;  %v4147_v45 = vor.u32 %v4146_v34, %v4143_v35  ;;  %v14298_v19 = vld [vmem:[#allocation3 + $0x8ec] sm:$0xf] }
 0x6f6   : > { %v12633_v25 = vld [vmem:[#allocation3 + $0x94c] sm:$0xf0]  ;;  %10875 = vmatpush.bf16.msrb.mxu1 %v13856_v40  ;;  %v14646_v35 = vld [vmem:[%s18474_s5 + $0x8] sm:$0xff] }
 0x6f7   : > { %v4166_v2 = vor.u32 %v4165_v4, %v4162_v7  ;;  %v12636_v4 = vor.u32 %v14298_v19, %v12633_v25  ;;  %v3612_v25 = vld [vmem:[#allocation2 + $0x11c] sm:$0x3] }
 0x6f8   : > { %v17987_v11 = vpop.f32.mrf.mxu1  ;;  %10890 = vmatmul.bf16.vlgmr.msra.gmra.mxu2 %v18478_v17  ;;  %v4191_v17 = vshll.u32 %v3612_v25, 16 }
 0x6f9   : > { %11142 = vmatpush.bf16.msrb.mxu2 %v14648_v32  ;;  %10516 = vmatmul.bf16.gmra.mxu3 %v12444_v3  ;;  %v4156_v32 = vor.u32 %v4155_v58, %v4152_v29  ;;  %v17999_v31 = vpop.f32.mrf.mxu2  ;;  %v4148_v3 = vrot.slane %v4147_v45, 4  ;;  %v14212_v58 = vld [vmem:[#allocation3 + $0x638] sm:$0xf0]  ;;  %v3610_v45 = vld [vmem:[#allocation2 + $0x114] sm:$0xe] }
 0x6fa   : > { %v10277_v39 = vpop.f32.mrf.mxu0  ;;  %18620 = vst [vmem:[#allocation5_spill] sm:$0xff] %v17999_v31 }
 0x6fb   : > { %v17997_v8 = vadd.f32 %v10277_v39, %v17921_v44  ;;  %v4158_v34 = vrot.slane %v4156_v32, 4  ;;  %v4157_v7 = vsel %vm17102_vm2, %v4148_v3, %v4156_v32  ;;  %v12247_v44 = vld [vmem:[#allocation3 + $0x5d8] sm:$0xf]  ;;  %v14274_v32 = vld [vmem:[#allocation3 + $0x82c] sm:$0xf] }
 0x6fc   : > { %v18001_v60 = vpop.f32.mrf.mxu3  ;;  %4256 = vst [vmem:[#allocation3 + $0xa7c] sm:$0xf] %v4157_v7  ;;  %v12248_v55 = vor.u32 %v14212_v58, %v12247_v44  ;;  %v3611_v39 = vld [vmem:[#allocation2 + $0x118] sm:$0xf] }
 0x6fd   : > { %18619 = vst [vmem:[#allocation7_spill] sm:$0xff] %v17997_v8  ;;  %11143 = vmatpush.bf16.msrb.mxu2 %v14647_v43  ;;  %v4167_v29 = vsel %vm17102_vm2, %v4158_v34, %v4166_v2  ;;  %v14645_v43 = vld [vmem:[%s18474_s5] sm:$0xff]  ;;  %v12541_v2 = vld [vmem:[#allocation3 + $0x88c] sm:$0xf0]  ;;  %v4181_v44 = vshll.u32 %v3611_v39, 16 }
 0x6fe   : > { %4257 = vst [vmem:[#allocation3 + $0xae0] sm:$0xf] %v4167_v29  ;;  %v12544_v58 = vor.u32 %v14274_v32, %v12541_v2  ;;  %v14323_v32 = vld [vmem:[#allocation3 + $0x9b4] sm:$0xf]  ;;  %v12733_v2 = vld [vmem:[#allocation3 + $0xa14] sm:$0xf0] }
 0x6ff   : > { %4372 = vst [vmem:[#allocation3 + $0x830] sm:$0xf] %v4157_v7  ;;  %v4178_v7 = vshrl.u32 %v3611_v39, 16 }
 0x700   : > { %v10309_v5 = vpop.f32.mrf.mxu1  ;;  %4373 = vst [vmem:[#allocation3 + $0x894] sm:$0xf] %v4167_v29 }
 0x701   : > { %11144 = vmatpush.bf16.msrb.mxu2 %v14646_v35  ;;  %v18014_v23 = vadd.f32 %v10309_v5, %v17664_v12  ;;  %v18019_v19 = vpop.f32.mrf.mxu2  ;;  %v4169_v35 = vshrl.u32 %v3610_v45, 16  ;;  %v4172_v12 = vshll.u32 %v3610_v45, 16  ;;  %v4188_v5 = vshrl.u32 %v3612_v25, 16 }
 0x702   : > { %v10280_v40 = vpop.f32.mrf.mxu0  ;;  %18622 = vst [vmem:[#allocation22_spill] sm:$0xff] %v18019_v19  ;;  %v4180_v63 = vrot.slane %v4178_v7, 5 }
 0x703   : > { %v18017_v3 = vadd.f32 %v10280_v40, %v17935_v50  ;;  %10348 = vmatmul.bf16.gmra.mxu1 %v12636_v4  ;;  %v4171_v29 = vrot.slane %v4169_v35, 5  ;;  %v4174_v8 = vrot.slane %v4172_v12, 6  ;;  %v4183_v50 = vrot.slane %v4181_v44, 6  ;;  %v14237_v35 = vld [vmem:[#allocation3 + $0x700] sm:$0xf0] }
 0x704   : > { %v18021_v34 = vpop.f32.mrf.mxu3  ;;  %v4190_v40 = vrot.slane %v4188_v5, 5  ;;  %v4193_v4 = vrot.slane %v4191_v17, 6  ;;  %v10384_v12 = vadd.f32 %v17790_v53, %v17912_v26  ;;  %v14299_v5 = vld [vmem:[#allocation3 + $0x8f4] sm:$0xf] }
 0x705   : > { %18621 = vst [vmem:[#allocation21_spill] sm:$0xff] %v18017_v3  ;;  %11145 = vmatpush.bf16.msrb.mxu2 %v14645_v43  ;;  %10595 = vmatmul.bf16.gmra.mxu0 %v12248_v55  ;;  %v4175_v19 = vor.u32 %v4174_v8, %v4171_v29  ;;  %v4184_v36 = vor.u32 %v4183_v50, %v4180_v63  ;;  %v12347_v63 = vld [vmem:[#allocation3 + $0x6a0] sm:$0xf] }
 0x706   : > { %v4194_v31 = vor.u32 %v4193_v4, %v4190_v40  ;;  %v12348_v44 = vor.u32 %v14237_v35, %v12347_v63  ;;  %v10473_v50 = vadd.f32 %v17966_v51, %v10384_v12  ;;  %v3615_v4 = vld [vmem:[#allocation2 + $0x12c] sm:$0x3] }
 0x707   : > { %v4176_v45 = vrot.slane %v4175_v19, 4  ;;  %v4186_v56 = vrot.slane %v4184_v36, 4  ;;  %v12736_v19 = vor.u32 %v14323_v32, %v12733_v2  ;;  %v18051_v2 = vld [vmem:[%s18471_s2] ss:$0 sm:$0xff]  ;;  %v4216_v51 = vshrl.u32 %v3615_v4, 16 }
 0x708   : > { %v18023_v3 = vpop.f32.mrf.mxu1 }
 0x709   : > { %10521 = vmatmul.bf16.gmra.mxu3 %v12544_v58  ;;  %v18028_v39 = vpop.f32.mrf.mxu2  ;;  %v4185_v17 = vsel %vm17102_vm2, %v4176_v45, %v4184_v36  ;;  %v4195_v8 = vsel %vm17102_vm2, %v4186_v56, %v4194_v31  ;;  %v3613_v58 = vld [vmem:[#allocation2 + $0x124] sm:$0xe]  ;;  %v3614_v36 = vld [vmem:[#allocation2 + $0x128] sm:$0xf]  ;;  %v12641_v56 = vld [vmem:[#allocation3 + $0x954] sm:$0xf0]  ;;  %v10297_v31 = vadd.f32 %v17926_v30, %v17582_v1 }
 0x70a   : > { %v10282_v43 = vpop.f32.mrf.mxu0  ;;  %4258 = vst [vmem:[#allocation3 + $0xb44] sm:$0xf] %v4185_v17  ;;  %v4206_v26 = vshrl.u32 %v3614_v36, 16  ;;  %v4209_v45 = vshll.u32 %v3614_v36, 16  ;;  %v12644_v1 = vor.u32 %v14299_v5, %v12641_v56  ;;  %v13851_v56 = vld [vmem:[#allocation3] sm:$0xf] }
 0x70b   : > { %v18026_v55 = vadd.f32 %v10282_v43, %v17954_v22  ;;  %4259 = vst [vmem:[#allocation3 + $0xba8] sm:$0xf] %v4195_v8  ;;  %v4197_v43 = vshrl.u32 %v3613_v58, 16  ;;  %v10386_v35 = vadd.f32 %v17800_v20, %v10297_v31  ;;  %v14633_v20 = vld [vmem:[%s18472_s3 + $0x20] sm:$0xff] }
 0x70c   : > { %v18030_v25 = vpop.f32.mrf.mxu3  ;;  %4374 = vst [vmem:[#allocation3 + $0x8f8] sm:$0xf] %v4185_v17  ;;  %v4211_v63 = vrot.slane %v4209_v45, 6  ;;  %10963 = vmatpush.bf16.msrb.mxu3 %v14633_v20 }
 0x70d   : > { %18623 = vst [vmem:[#allocation23_spill] sm:$0xff] %v18026_v55  ;;  %v4199_v30 = vrot.slane %v4197_v43, 5 }
 0x70e   : > { %4375 = vst [vmem:[#allocation3 + $0x95c] sm:$0xf] %v4195_v8  ;;  %v4208_v8 = vrot.slane %v4206_v26, 5 }
 0x710   : > { %v10314_v22 = vpop.f32.mrf.mxu1  ;;  %v4212_v36 = vor.u32 %v4211_v63, %v4208_v8 }
 0x711   : > { %v18039_v7 = vadd.f32 %v10314_v22, %v17708_v47  ;;  %v18044_v40 = vpop.f32.mrf.mxu2  ;;  %v4200_v47 = vshll.u32 %v3613_v58, 16  ;;  %v18057_v22 = vld [vmem:[%s18471_s2 + $0x1] ss:$0 sm:$0xff] }
 0x712   : > { %v10561_v29 = vpop.f32.mrf.mxu0 }
 0x713   : > { %10353 = vmatmul.bf16.gmra.mxu1 %v12736_v19  ;;  %v10562_v32 = vadd.f32 %v10561_v29, %v10473_v50  ;;  %v4202_v17 = vrot.slane %v4200_v47, 6  ;;  %v4219_v19 = vshll.u32 %v3615_v4, 16  ;;  %v4218_v29 = vrot.slane %v4216_v51, 5  ;;  %v14613_v50 = vld [vmem:[#allocation3 + $0x60] sm:$0xf0] }
 0x714   : > { %v18046_v53 = vpop.f32.mrf.mxu3  ;;  %v13852_v4 = vor.u32 %v14613_v50, %v13851_v56  ;;  %v4214_v47 = vrot.slane %v4212_v36, 4  ;;  %v14348_v51 = vld [vmem:[#allocation3 + $0xa7c] sm:$0xf]  ;;  %v10389_v50 = vadd.f32 %v17809_v13, %v17942_v59 }
 0x715   : > { %10600 = vmatmul.bf16.gmra.mxu0 %v12348_v44  ;;  %v4203_v58 = vor.u32 %v4202_v17, %v4199_v30  ;;  %v10475_v44 = vadd.f32 %v17982_v57, %v10386_v35  ;;  %v10643_v5 = vmul.f32 %v18051_v2, %v10562_v32  ;;  %v4221_v26 = vrot.slane %v4219_v19, 6  ;;  %v12833_v57 = vld [vmem:[#allocation3 + $0xadc] sm:$0xf0]  ;;  %v12447_v35 = vld [vmem:[#allocation3 + $0x768] sm:$0xf] }
 0x716   : > { %10876 = vmatpush.bf16.msrb.mxu1 %v13852_v4  ;;  %v14262_v19 = vld [vmem:[#allocation3 + $0x7c8] sm:$0xf0]  ;;  %v12836_v56 = vor.u32 %v14348_v51, %v12833_v57  ;;  %v10478_v51 = vadd.f32 %v18001_v60, %v10389_v50 }
 0x717   : > { %v4204_v43 = vrot.slane %v4203_v58, 4  ;;  %v10677_v8 = vadd.f32 %v18057_v22, %v10643_v5 }
 0x718   : > { %v18059_v12 = vpop.f32.mrf.mxu1 }
 0x719   : > { %10526 = vmatmul.bf16.gmra.mxu3 %v12644_v1  ;;  %v18066_v30 = vpop.f32.mrf.mxu2  ;;  %v4213_v32 = vsel %vm17102_vm2, %v4204_v43, %v4212_v36  ;;  %v4222_v1 = vor.u32 %v4221_v26, %v4218_v29  ;;  %v10709_v29 = vmax.f32 %v10677_v8, 0.0  ;;  %v14324_v43 = vld [vmem:[#allocation3 + $0x9bc] sm:$0xf]  ;;  %v12741_v26 = vld [vmem:[#allocation3 + $0xa1c] sm:$0xf0] }
 0x71a   : > { %v10563_v31 = vpop.f32.mrf.mxu0  ;;  %4260 = vst [vmem:[#allocation3 + $0xc0c] sm:$0xf] %v4213_v32 }
 0x71b   : > { %v10564_v45 = vadd.f32 %v10563_v31, %v10475_v44  ;;  %v4223_v58 = vsel %vm17102_vm2, %v4214_v47, %v4222_v1  ;;  %4376 = vst [vmem:[#allocation3 + $0x9c0] sm:$0xf] %v4213_v32  ;;  %v12448_v31 = vor.u32 %v14262_v19, %v12447_v35  ;;  %v18624_v47 = vld [vmem:[#allocation9_spill] sm:$0xff] }
 0x71c   : > { %v18068_v17 = vpop.f32.mrf.mxu3  ;;  %4261 = vst [vmem:[#allocation3 + $0xc70] sm:$0xf] %v4223_v58 }
 0x71d   : > { %v10644_v63 = vmul.f32 %v18051_v2, %v10564_v45  ;;  %4377 = vst [vmem:[#allocation3 + $0xa24] sm:$0xf] %v4223_v58  ;;  %v10302_v45 = vadd.f32 %v17956_v42, %v18624_v47  ;;  %v14373_v58 = vld [vmem:[#allocation3 + $0xb44] sm:$0xf] }
 0x71f   : > { %v10678_v44 = vadd.f32 %v18057_v22, %v10644_v63  ;;  %v10391_v1 = vadd.f32 %v17818_v28, %v10302_v45  ;;  %v12547_v28 = vld [vmem:[#allocation3 + $0x830] sm:$0xf] }
 0x720   : > { %v10319_v36 = vpop.f32.mrf.mxu1 }
 0x721   : > { %v10710_v5 = vmax.f32 %v10678_v44, 0.0  ;;  %v18080_v20 = vadd.f32 %v10319_v36, %v17742_v21  ;;  %v18085_v32 = vpop.f32.mrf.mxu2  ;;  %v12744_v21 = vor.u32 %v14324_v43, %v12741_v26  ;;  %v10480_v63 = vadd.f32 %v18021_v34, %v10391_v1  ;;  %v12933_v44 = vld [vmem:[#allocation3 + $0xba4] sm:$0xf0] }
 0x722   : > { %v10566_v4 = vpop.f32.mrf.mxu0  ;;  %v12936_v34 = vor.u32 %v14373_v58, %v12933_v44  ;;  %v12841_v1 = vld [vmem:[#allocation3 + $0xae4] sm:$0xf0] }
 0x723   : > { %v10995_v57 = vpack.c.bf16 %v10710_v5, %v10709_v29  ;;  %10358 = vmatmul.bf16.gmra.mxu1 %v12836_v56  ;;  %v10567_v59 = vadd.f32 %v10566_v4, %v10478_v51  ;;  %v14287_v29 = vld [vmem:[#allocation3 + $0x890] sm:$0xf0] }
 0x724   : > { %v18087_v13 = vpop.f32.mrf.mxu3  ;;  %v12548_v47 = vor.u32 %v14287_v29, %v12547_v28  ;;  %v3616_v51 = vld [vmem:[#allocation2 + $0x134] sm:$0xe] }
 0x725   : > { %10605 = vmatmul.bf16.gmra.mxu0 %v12448_v31  ;;  %11146 = vmatmul.bf16.vlgmr.msrb.gmra.mxu2 %v10995_v57  ;;  %v10645_v42 = vmul.f32 %v18051_v2, %v10567_v59  ;;  %v10394_v31 = vadd.f32 %v17827_v37, %v17975_v38  ;;  %v3617_v57 = vld [vmem:[#allocation2 + $0x138] sm:$0xf]  ;;  %v3618_v38 = vld [vmem:[#allocation2 + $0x13c] sm:$0x3]  ;;  %v4266_v44 = vshll.u32 %v3616_v51, 16 }
 0x726   : > { %v4275_v29 = vshll.u32 %v3617_v57, 16 }
 0x727   : > { %v10679_v50 = vadd.f32 %v18057_v22, %v10645_v42 }
 0x728   : > { %v18090_v8 = vpop.f32.mrf.mxu1 }
 0x729   : > { %10531 = vmatmul.bf16.gmra.mxu3 %v12744_v21  ;;  %v18094_v19 = vpop.f32.mrf.mxu2  ;;  %v10711_v43 = vmax.f32 %v10679_v50, 0.0  ;;  %v14349_v21 = vld [vmem:[#allocation3 + $0xa84] sm:$0xf]  ;;  %v4272_v50 = vshrl.u32 %v3617_v57, 16  ;;  %v14632_v57 = vld [vmem:[%s18472_s3 + $0x18] sm:$0xff] }
 0x72a   : > { %v10568_v60 = vpop.f32.mrf.mxu0  ;;  %v12844_v28 = vor.u32 %v14349_v21, %v12841_v1  ;;  %v2313_v1 = vld [vmem:[#allocation2 + $0x154] sm:$0xf]  ;;  %10964 = vmatpush.bf16.msrb.mxu3 %v14632_v57  ;;  %v3619_v57 = vld [vmem:[#allocation2 + $0x144] sm:$0xe] }
 0x72b   : > { %v10569_v35 = vadd.f32 %v10568_v60, %v10480_v63  ;;  %v18625_v63 = vld [vmem:[#allocation6_spill] sm:$0xff]  ;;  %v10483_v60 = vadd.f32 %v18030_v25, %v10394_v31  ;;  %v4285_v25 = vshll.u32 %v3618_v38, 16  ;;  %v4277_v31 = vrot.slane %v4275_v29, 6  ;;  %2537 = vst [vmem:[#allocation3 + $0xc14] sm:$0xf] %v2313_v1 }
 0x72c   : > { %v18096_v56 = vpop.f32.mrf.mxu3  ;;  %v10307_v42 = vadd.f32 %v17987_v11, %v18625_v63  ;;  %v4268_v11 = vrot.slane %v4266_v44, 6  ;;  %v4274_v63 = vrot.slane %v4272_v50, 5  ;;  %v13033_v44 = vld [vmem:[#allocation3 + $0xc6c] sm:$0xf0] }
 0x72d   : > { %v10646_v36 = vmul.f32 %v18051_v2, %v10569_v35  ;;  %v12941_v1 = vld [vmem:[#allocation3 + $0xbac] sm:$0xf0] }
 0x72f   : > { %v10680_v5 = vadd.f32 %v18057_v22, %v10646_v36 }
 0x730   : > { %v10324_v4 = vpop.f32.mrf.mxu1 }
 0x731   : > { %v18104_v26 = vadd.f32 %v10324_v4, %v17776_v49  ;;  %v10712_v45 = vmax.f32 %v10680_v5, 0.0  ;;  %v18109_v37 = vpop.f32.mrf.mxu2  ;;  %v4263_v49 = vshrl.u32 %v3616_v51, 16  ;;  %v4282_v5 = vshrl.u32 %v3618_v38, 16 }
 0x732   : > { %v10571_v59 = vpop.f32.mrf.mxu0  ;;  %18626 = vst [vmem:[#allocation9_spill] sm:$0xff] %v18109_v37  ;;  %v4287_v37 = vrot.slane %v4285_v25, 6 }
 0x733   : > { %10363 = vmatmul.bf16.gmra.mxu1 %v12936_v34  ;;  %v10996_v35 = vpack.c.bf16 %v10712_v45, %v10711_v43  ;;  %v10572_v36 = vadd.f32 %v10571_v59, %v10483_v60  ;;  %v4265_v4 = vrot.slane %v4263_v49, 5  ;;  %v10396_v34 = vadd.f32 %v17838_v27, %v10307_v42  ;;  %v2314_v60 = vld [vmem:[#allocation2 + $0x158] sm:$0xf] }
 0x734   : > { %v18111_v58 = vpop.f32.mrf.mxu3  ;;  %v4284_v43 = vrot.slane %v4282_v5, 5  ;;  %v4278_v59 = vor.u32 %v4277_v31, %v4274_v63  ;;  %2538 = vst [vmem:[#allocation3 + $0xc78] sm:$0xf] %v2314_v60  ;;  %v14312_v5 = vld [vmem:[#allocation3 + $0x958] sm:$0xf0]  ;;  %v10399_v63 = vadd.f32 %v17849_v14, %v18014_v23  ;;  %v4291_v60 = vshrl.u32 %v3619_v57, 16 }
 0x735   : > { %10610 = vmatmul.bf16.gmra.mxu0 %v12548_v47  ;;  %11151 = vmatmul.bf16.gmra.mxu2 %v10996_v35  ;;  %v4269_v55 = vor.u32 %v4268_v11, %v4265_v4  ;;  %v10485_v51 = vadd.f32 %v18046_v53, %v10396_v34  ;;  %v10647_v47 = vmul.f32 %v18051_v2, %v10572_v36  ;;  %v14398_v53 = vld [vmem:[#allocation3 + $0xc0c] sm:$0xf] }
 0x736   : > { %v4288_v42 = vor.u32 %v4287_v37, %v4284_v43  ;;  %v4280_v49 = vrot.slane %v4278_v59, 4  ;;  %v12647_v37 = vld [vmem:[#allocation3 + $0x8f8] sm:$0xf]  ;;  %v13036_v11 = vor.u32 %v14398_v53, %v13033_v44  ;;  %v14374_v34 = vld [vmem:[#allocation3 + $0xb4c] sm:$0xf]  ;;  %v10488_v14 = vadd.f32 %v18068_v17, %v10399_v63 }
 0x737   : > { %v4270_v27 = vrot.slane %v4269_v55, 4 }
 0x738   : > { %v18114_v45 = vpop.f32.mrf.mxu1  ;;  %v4289_v55 = vsel %vm17102_vm2, %v4280_v49, %v4288_v42  ;;  %v10312_v49 = vadd.f32 %v18023_v3, %v17683_v16 }
 0x739   : > { %10536 = vmatmul.bf16.gmra.mxu3 %v12844_v28  ;;  %v18121_v38 = vpop.f32.mrf.mxu2  ;;  %v4279_v36 = vsel %vm17102_vm2, %v4270_v27, %v4278_v59  ;;  %v10681_v28 = vadd.f32 %v18057_v22, %v10647_v47  ;;  %4379 = vst [vmem:[#allocation3 + $0xaec] sm:$0xf] %v4289_v55  ;;  %v3620_v59 = vld [vmem:[#allocation2 + $0x148] sm:$0xf]  ;;  %v4294_v27 = vshll.u32 %v3619_v57, 16 }
 0x73a   : > { %v10573_v21 = vpop.f32.mrf.mxu0  ;;  %4378 = vst [vmem:[#allocation3 + $0xa88] sm:$0xf] %v4279_v36  ;;  %v4300_v42 = vshrl.u32 %v3620_v59, 16  ;;  %v4293_v36 = vrot.slane %v4291_v60, 5  ;;  %v10401_v3 = vadd.f32 %v17860_v9, %v10312_v49  ;;  %v12747_v49 = vld [vmem:[#allocation3 + $0x9c0] sm:$0xf] }
 0x73b   : > { %v10574_v35 = vadd.f32 %v10573_v21, %v10485_v51  ;;  %v10713_v31 = vmax.f32 %v10681_v28, 0.0  ;;  %v12648_v51 = vor.u32 %v14312_v5, %v12647_v37  ;;  %v4296_v28 = vrot.slane %v4294_v27, 6 }
 0x73c   : > { %v18123_v50 = vpop.f32.mrf.mxu3  ;;  %v12944_v37 = vor.u32 %v14374_v34, %v12941_v1  ;;  %v10490_v57 = vadd.f32 %v18087_v13, %v10401_v3  ;;  %v13041_v3 = vld [vmem:[#allocation3 + $0xc74] sm:$0xf0] }
 0x73d   : > { %v10648_v29 = vmul.f32 %v18051_v2, %v10574_v35  ;;  %v4303_v35 = vshll.u32 %v3620_v59, 16 }
 0x73f   : > { %v10682_v4 = vadd.f32 %v18057_v22, %v10648_v29  ;;  %v4302_v29 = vrot.slane %v4300_v42, 5  ;;  %v4305_v5 = vrot.slane %v4303_v35, 6 }
 0x740   : > { %v10329_v25 = vpop.f32.mrf.mxu1 }
 0x741   : > { %v18135_v43 = vadd.f32 %v10329_v25, %v17796_v24  ;;  %v10714_v47 = vmax.f32 %v10682_v4, 0.0  ;;  %v18140_v53 = vpop.f32.mrf.mxu2  ;;  %v3621_v24 = vld [vmem:[#allocation2 + $0x14c] sm:$0x3]  ;;  %v4297_v25 = vor.u32 %v4296_v28, %v4293_v36  ;;  %v4306_v17 = vor.u32 %v4305_v5, %v4302_v29  ;;  %v14399_v28 = vld [vmem:[#allocation3 + $0xc14] sm:$0xf] }
 0x742   : > { %v10576_v21 = vpop.f32.mrf.mxu0  ;;  %v4310_v4 = vshrl.u32 %v3621_v24, 16  ;;  %v4313_v16 = vshll.u32 %v3621_v24, 16  ;;  %v10404_v24 = vadd.f32 %v17875_v46, %v18039_v7  ;;  %v18627_v7 = vmov 998259584  }
 0x743   : > { %10368 = vmatmul.bf16.gmra.mxu1 %v13036_v11  ;;  %v10997_v23 = vpack.c.bf16 %v10714_v47, %v10713_v31  ;;  %v10577_v55 = vadd.f32 %v10576_v21, %v10488_v14  ;;  %v4298_v31 = vrot.slane %v4297_v25, 4  ;;  %v14337_v14 = vld [vmem:[#allocation3 + $0xa20] sm:$0xf0]  ;;  %v3623_v25 = vld [vmem:[#allocation2 + $0x158] sm:$0xf] }
 0x744   : > { %v18142_v44 = vpop.f32.mrf.mxu3  ;;  %v4312_v11 = vrot.slane %v4310_v4, 5  ;;  %v4315_v47 = vrot.slane %v4313_v16, 6  ;;  %v3622_v4 = vld [vmem:[#allocation2 + $0x154] sm:$0xe]  ;;  %v10493_v46 = vadd.f32 %v18096_v56, %v10404_v24 }
 0x745   : > { %10615 = vmatmul.bf16.gmra.mxu0 %v12648_v51  ;;  %11156 = vmatmul.bf16.gmra.mxu2 %v10997_v23  ;;  %v10649_v59 = vmul.f32 %v18051_v2, %v10577_v55  ;;  %v4308_v51 = vrot.slane %v4306_v17, 4  ;;  %v4307_v34 = vsel %vm17102_vm2, %v4298_v31, %v4306_v17  ;;  %v4319_v17 = vshrl.u32 %v3622_v4, 16 }
 0x746   : > { %v4316_v1 = vor.u32 %v4315_v47, %v4312_v11  ;;  %4380 = vst [vmem:[#allocation3 + $0xb50] sm:$0xf] %v4307_v34  ;;  %v4322_v11 = vshll.u32 %v3622_v4, 16  ;;  %v4328_v31 = vshrl.u32 %v3623_v25, 16  ;;  %v4331_v47 = vshll.u32 %v3623_v25, 16 }
 0x747   : > { %v10683_v42 = vadd.f32 %v18057_v22, %v10649_v59 }
 0x748   : > { %v18145_v63 = vpop.f32.mrf.mxu1  ;;  %v4317_v27 = vsel %vm17102_vm2, %v4308_v51, %v4316_v1  ;;  %v4324_v34 = vrot.slane %v4322_v11, 6  ;;  %v4330_v1 = vrot.slane %v4328_v31, 5 }
 0x749   : > { %10541 = vmatmul.bf16.gmra.mxu3 %v12944_v37  ;;  %4381 = vst [vmem:[#allocation3 + $0xbb4] sm:$0xf] %v4317_v27  ;;  %v10715_v29 = vmax.f32 %v10683_v42, 0.0  ;;  %v12748_v37 = vor.u32 %v14337_v14, %v12747_v49  ;;  %v13044_v42 = vor.u32 %v14399_v28, %v13041_v3  ;;  %v14631_v28 = vld [vmem:[%s18472_s3 + $0x10] sm:$0xff] }
 0x74a   : > { %v10578_v21 = vpop.f32.mrf.mxu0  ;;  %10965 = vmatpush.bf16.msrb.mxu3 %v14631_v28 }
 0x74b   : > { %v10579_v60 = vadd.f32 %v10578_v21, %v10490_v57  ;;  %v18157_v35 = vpop.f32.mrf.mxu2  ;;  %v10317_v57 = vadd.f32 %v18059_v12, %v17720_v41  ;;  %v4321_v21 = vrot.slane %v4319_v17, 5 }
 0x74c   : > { %v18151_v9 = vpop.f32.mrf.mxu3 }
 0x74d   : > { %v10650_v13 = vmul.f32 %v18051_v2, %v10579_v60  ;;  %v4333_v60 = vrot.slane %v4331_v47, 6  ;;  %v4325_v41 = vor.u32 %v4324_v34, %v4321_v21  ;;  %v10406_v14 = vadd.f32 %v17891_v62, %v10317_v57  ;;  %v12847_v57 = vld [vmem:[#allocation3 + $0xa88] sm:$0xf] }
 0x74f   : > { %v10684_v23 = vadd.f32 %v18057_v22, %v10650_v13  ;;  %v4334_v12 = vor.u32 %v4333_v60, %v4330_v1  ;;  %v10495_v4 = vadd.f32 %v18111_v58, %v10406_v14 }
 0x750   : > { %v10334_v36 = vpop.f32.mrf.mxu1 }
 0x751   : > { %v18163_v55 = vadd.f32 %v10334_v36, %v17815_v15  ;;  %v10716_v5 = vmax.f32 %v10684_v23, 0.0  ;;  %v3624_v15 = vld [vmem:[#allocation2 + $0x15c] sm:$0x3]  ;;  %v4326_v36 = vrot.slane %v4325_v41, 4 }
 0x752   : > { %v10581_v16 = vpop.f32.mrf.mxu0  ;;  %v4338_v49 = vshrl.u32 %v3624_v15, 16  ;;  %v4341_v56 = vshll.u32 %v3624_v15, 16 }
 0x753   : > { %10877 = vmatmul.bf16.vlgmr.msrb.gmra.mxu1 %v18627_v7  ;;  %v10998_v59 = vpack.c.bf16 %v10716_v5, %v10715_v29  ;;  %v10582_v27 = vadd.f32 %v10581_v16, %v10493_v46  ;;  %v18171_v13 = vpop.f32.mrf.mxu2  ;;  %v4336_v29 = vrot.slane %v4334_v12, 4  ;;  %v4335_v16 = vsel %vm17102_vm2, %v4326_v36, %v4334_v12  ;;  %v14362_v46 = vld [vmem:[#allocation3 + $0xae8] sm:$0xf0] }
 0x754   : > { %v18169_v51 = vpop.f32.mrf.mxu3  ;;  %v4340_v23 = vrot.slane %v4338_v49, 5  ;;  %v4343_v5 = vrot.slane %v4341_v56, 6  ;;  %4382 = vst [vmem:[#allocation3 + $0xc18] sm:$0xf] %v4335_v16  ;;  %v12848_v1 = vor.u32 %v14362_v46, %v12847_v57  ;;  %v18628_v16 = vld [vmem:[#allocation12_spill] sm:$0xff] }
 0x755   : > { %10620 = vmatmul.bf16.gmra.mxu0 %v12748_v37  ;;  %11161 = vmatmul.bf16.gmra.mxu2 %v10998_v59  ;;  %v10651_v37 = vmul.f32 %v18051_v2, %v10582_v27  ;;  %v10409_v59 = vadd.f32 %v17903_v52, %v18080_v20  ;;  %v10322_v27 = vadd.f32 %v18090_v8, %v17760_v18 }
 0x756   : > { %v4344_v62 = vor.u32 %v4343_v5, %v4340_v23  ;;  %v14387_v5 = vld [vmem:[#allocation3 + $0xbb0] sm:$0xf0] }
 0x757   : > { %v10685_v11 = vadd.f32 %v18057_v22, %v10651_v37  ;;  %v10411_v20 = vadd.f32 %v17919_v33, %v10322_v27  ;;  %v10414_v33 = vadd.f32 %v17933_v54, %v18104_v26 }
 0x758   : > { %v18174_v24 = vpop.f32.mrf.mxu1  ;;  %v4345_v58 = vsel %vm17102_vm2, %v4336_v29, %v4344_v62  ;;  %v12947_v29 = vld [vmem:[#allocation3 + $0xb50] sm:$0xf] }
 0x759   : > { %10546 = vmatmul.bf16.gmra.mxu3 %v13044_v42  ;;  %4383 = vst [vmem:[#allocation3 + $0xc7c] sm:$0xf] %v4345_v58  ;;  %v10717_v21 = vmax.f32 %v10685_v11, 0.0  ;;  %v10498_v42 = vadd.f32 %v18123_v50, %v10409_v59  ;;  %v18629_v11 = vld [vmem:[#allocation11_spill] sm:$0xff]  ;;  %v10503_v57 = vadd.f32 %v18151_v9, %v10414_v33 }
 0x75a   : > { %v10583_v25 = vpop.f32.mrf.mxu0 }
 0x75b   : > { %v10584_v3 = vadd.f32 %v10583_v25, %v10495_v4  ;;  %v18189_v47 = vpop.f32.mrf.mxu2 }
 0x75c   : > { %v18183_v17 = vpop.f32.mrf.mxu3 }
 0x75d   : > { %v10652_v31 = vmul.f32 %v18051_v2, %v10584_v3  ;;  %v12948_v3 = vor.u32 %v14387_v5, %v12947_v29 }
 0x75f   : > { %v10686_v7 = vadd.f32 %v18057_v22, %v10652_v31  ;;  %v10327_v31 = vadd.f32 %v18114_v45, %v18629_v11  ;;  %v14630_v45 = vld [vmem:[%s18472_s3 + $0x8] sm:$0xff] }
 0x760   : > { %v10339_v15 = vpop.f32.mrf.mxu1  ;;  %10966 = vmatpush.bf16.msrb.mxu3 %v14630_v45 }
 0x761   : > { %v10718_v34 = vmax.f32 %v10686_v7, 0.0  ;;  %v18195_v48 = vadd.f32 %v10339_v15, %v17835_v6  ;;  %v10500_v6 = vadd.f32 %v18142_v44, %v10411_v20  ;;  %v10416_v54 = vadd.f32 %v17949_v10, %v10327_v31  ;;  %v13047_v10 = vld [vmem:[#allocation3 + $0xc18] sm:$0xf] }
 0x762   : > { %v10586_v60 = vpop.f32.mrf.mxu0 }
 0x763   : > { %v10999_v49 = vpack.c.bf16 %v10718_v34, %v10717_v21  ;;  %v10587_v41 = vadd.f32 %v10586_v60, %v10498_v42  ;;  %v18200_v12 = vpop.f32.mrf.mxu2  ;;  %v10505_v15 = vadd.f32 %v18169_v51, %v10416_v54 }
 0x764   : > { %v10509_v52 = vpop.f32.mrf.mxu3 }
 0x765   : > { %10625 = vmatmul.bf16.gmra.mxu0 %v12848_v1  ;;  %11166 = vmatmul.bf16.gmra.mxu2 %v10999_v49  ;;  %v10653_v14 = vmul.f32 %v18051_v2, %v10587_v41  ;;  %v14412_v49 = vld [vmem:[#allocation3 + $0xc78] sm:$0xf0]  ;;  %v10419_v41 = vadd.f32 %v17964_v61, %v18135_v43  ;;  %v18631_v61 = vld [vmem:[#allocation4_spill] sm:$0xff] }
 0x767   : > { %v10687_v18 = vadd.f32 %v18057_v22, %v10653_v14  ;;  %v10508_v5 = vadd.f32 %v18183_v17, %v10419_v41 }
 0x768   : > { %v18203_v56 = vpop.f32.mrf.mxu1 }
 0x769   : > { %v10719_v44 = vmax.f32 %v10687_v18, 0.0 }
 0x76a   : > { %v10588_v23 = vpop.f32.mrf.mxu0 }
 0x76b   : > { %v10589_v36 = vadd.f32 %v10588_v23, %v10500_v6  ;;  %v18209_v50 = vpop.f32.mrf.mxu2 }
 0x76c   : > { %v10512_v28 = vpop.f32.mrf.mxu3 }
 0x76d   : > { %v10654_v8 = vmul.f32 %v18051_v2, %v10589_v36  ;;  %v13048_v36 = vor.u32 %v14412_v49, %v13047_v10  ;;  %v18635_v49 = vld [vmem:[#allocation22_spill] sm:$0xff] }
 0x76f   : > { %v10688_v4 = vadd.f32 %v18057_v22, %v10654_v8  ;;  %v18630_v8 = vld [vmem:[#allocation8_spill] sm:$0xff] }
 0x770   : > { %v10344_v37 = vpop.f32.mrf.mxu1  ;;  %v10332_v29 = vadd.f32 %v18145_v63, %v18630_v8 }
 0x771   : > { %v10720_v25 = vmax.f32 %v10688_v4, 0.0  ;;  %v18215_v62 = vadd.f32 %v10344_v37, %v18628_v16 }
 0x772   : > { %v10591_v58 = vpop.f32.mrf.mxu0  ;;  %v10421_v43 = vadd.f32 %v18631_v61, %v10332_v29 }
 0x773   : > { %v11000_v46 = vpack.c.bf16 %v10720_v25, %v10719_v44  ;;  %v10592_v7 = vadd.f32 %v10591_v58, %v10503_v57  ;;  %v18220_v59 = vpop.f32.mrf.mxu2 }
 0x774   : > { %v10514_v9 = vpop.f32.mrf.mxu3  ;;  %v10510_v16 = vadd.f32 %v10509_v52, %v10421_v43 }
 0x775   : > { %10630 = vmatmul.bf16.gmra.mxu0 %v12948_v3  ;;  %11171 = vmatmul.bf16.gmra.mxu2 %v11000_v46  ;;  %v10655_v21 = vmul.f32 %v18051_v2, %v10592_v7  ;;  %v18632_v46 = vld [vmem:[#allocation5_spill] sm:$0xff] }
 0x776   : > { %v10424_v7 = vadd.f32 %v18632_v46, %v18163_v55 }
 0x777   : > { %v10689_v60 = vadd.f32 %v18057_v22, %v10655_v21  ;;  %v18633_v21 = vld [vmem:[#allocation18_spill] sm:$0xff] }
 0x778   : > { %v18223_v26 = vpop.f32.mrf.mxu1 }
 0x779   : > { %v10721_v6 = vmax.f32 %v10689_v60, 0.0  ;;  %v10513_v60 = vadd.f32 %v10512_v28, %v10424_v7 }
 0x77a   : > { %v10593_v34 = vpop.f32.mrf.mxu0 }
 0x77b   : > { %v10594_v1 = vadd.f32 %v10593_v34, %v10505_v15  ;;  %v18232_v42 = vpop.f32.mrf.mxu2  ;;  %v18634_v34 = vld [vmem:[#allocation13_spill] sm:$0xff] }
 0x77c   : > { %v10517_v33 = vpop.f32.mrf.mxu3 }
 0x77d   : > { %v10656_v27 = vmul.f32 %v18051_v2, %v10594_v1  ;;  %v10337_v1 = vadd.f32 %v18174_v24, %v18634_v34  ;;  %v18638_v34 = vld [vmem:[#allocation20_spill] sm:$0xff] }
 0x77f   : > { %v10690_v51 = vadd.f32 %v18057_v22, %v10656_v27 }
 0x780   : > { %v10349_v20 = vpop.f32.mrf.mxu1 }
 0x781   : > { %v10722_v14 = vmax.f32 %v10690_v51, 0.0  ;;  %v18238_v23 = vadd.f32 %v10349_v20, %v17887_v0  ;;  %v10426_v51 = vadd.f32 %v18635_v49, %v10337_v1 }
 0x782   : > { %v10596_v18 = vpop.f32.mrf.mxu0 }
 0x783   : > { %v11001_v4 = vpack.c.bf16 %v10722_v14, %v10721_v6  ;;  %v10597_v37 = vadd.f32 %v10596_v18, %v10508_v5  ;;  %v10893_v44 = vpop.f32.mrf.mxu2  ;;  %v10515_v6 = vadd.f32 %v10514_v9, %v10426_v51  ;;  %v14629_v14 = vld [vmem:[%s18472_s3] sm:$0xff]  ;;  %v10429_v5 = vadd.f32 %v18028_v39, %v18195_v48 }
 0x784   : > { %v10519_v17 = vpop.f32.mrf.mxu3  ;;  %10967 = vmatpush.bf16.msrb.mxu3 %v14629_v14 }
 0x785   : > { %10635 = vmatmul.bf16.gmra.mxu0 %v13048_v36  ;;  %11176 = vmatmul.bf16.gmra.mxu2 %v11001_v4  ;;  %v10657_v0 = vmul.f32 %v18051_v2, %v10597_v37  ;;  %v18636_v37 = vld [vmem:[#allocation15_spill] sm:$0xff] }
 0x787   : > { %v10691_v11 = vadd.f32 %v18057_v22, %v10657_v0 }
 0x788   : > { %v18244_v25 = vpop.f32.mrf.mxu1 }
 0x789   : > { %v10723_v54 = vmax.f32 %v10691_v11, 0.0 }
 0x78a   : > { %v10598_v3 = vpop.f32.mrf.mxu0 }
 0x78b   : > { %v10599_v58 = vadd.f32 %v10598_v3, %v10510_v16  ;;  %v18637_v16 = vld [vmem:[#allocation10_spill] sm:$0xff]  ;;  %v10518_v3 = vadd.f32 %v10517_v33, %v10429_v5 }
 0x78c   : > { %v10522_v41 = vpop.f32.mrf.mxu3  ;;  %v10342_v0 = vadd.f32 %v18203_v56, %v18637_v16 }
 0x78d   : > { %v10658_v63 = vmul.f32 %v18051_v2, %v10599_v58 }
 0x78f   : > { %v10692_v31 = vadd.f32 %v18057_v22, %v10658_v63  ;;  %v10431_v63 = vadd.f32 %v18044_v40, %v10342_v0 }
 0x790   : > { %v10354_v57 = vpop.f32.mrf.mxu1 }
 0x791   : > { %v10724_v15 = vmax.f32 %v10692_v31, 0.0  ;;  %v18253_v45 = vadd.f32 %v10354_v57, %v18633_v21  ;;  %v10520_v57 = vadd.f32 %v10519_v17, %v10431_v63  ;;  %v10434_v21 = vadd.f32 %v18066_v30, %v18215_v62 }
 0x792   : > { %v10601_v52 = vpop.f32.mrf.mxu0 }
 0x793   : > { %v11002_v27 = vpack.c.bf16 %v10724_v15, %v10723_v54  ;;  %v10602_v10 = vadd.f32 %v10601_v52, %v10513_v60  ;;  %v18639_v60 = vld [vmem:[#allocation17_spill] sm:$0xff] }
 0x794   : > { %v10524_v61 = vpop.f32.mrf.mxu3 }
 0x795   : > { %11181 = vmatmul.bf16.gmra.mxu2 %v11002_v27  ;;  %v10659_v55 = vmul.f32 %v18051_v2, %v10602_v10  ;;  %v10347_v27 = vadd.f32 %v18223_v26, %v18639_v60  ;;  %v10523_v10 = vadd.f32 %v10522_v41, %v10434_v21 }
 0x797   : > { %v10693_v24 = vadd.f32 %v18057_v22, %v10659_v55  ;;  %v10436_v55 = vadd.f32 %v18085_v32, %v10347_v27 }
 0x798   : > { %v18258_v20 = vpop.f32.mrf.mxu1 }
 0x799   : > { %v10725_v9 = vmax.f32 %v10693_v24, 0.0 }
 0x79a   : > { %v10603_v36 = vpop.f32.mrf.mxu0 }
 0x79b   : > { %v10604_v18 = vadd.f32 %v10603_v36, %v10515_v6  ;;  %v10525_v36 = vadd.f32 %v10524_v61, %v10436_v55  ;;  %v18641_v61 = vld [vmem:[#allocation14_spill] sm:$0xff] }
 0x79c   : > { %v10527_v7 = vpop.f32.mrf.mxu3 }
 0x79d   : > { %v10660_v28 = vmul.f32 %v18051_v2, %v10604_v18 }
 0x79f   : > { %v10694_v8 = vadd.f32 %v18057_v22, %v10660_v28 }
 0x7a0   : > { %v10359_v29 = vpop.f32.mrf.mxu1 }
 0x7a1   : > { %v10726_v4 = vmax.f32 %v10694_v8, 0.0  ;;  %v18270_v44 = vadd.f32 %v10359_v29, %v18636_v37  ;;  %v10439_v29 = vadd.f32 %v18094_v19, %v18238_v23 }
 0x7a2   : > { %v10606_v43 = vpop.f32.mrf.mxu0 }
 0x7a3   : > { %v11003_v58 = vpack.c.bf16 %v10726_v4, %v10725_v9  ;;  %v10607_v11 = vadd.f32 %v10606_v43, %v10518_v3  ;;  %v18640_v9 = vld [vmem:[#allocation21_spill] sm:$0xff]  ;;  %v10352_v43 = vadd.f32 %v18244_v25, %v18641_v61  ;;  %v10528_v16 = vadd.f32 %v10527_v7, %v10439_v29 }
 0x7a4   : > { %v10529_v6 = vpop.f32.mrf.mxu3 }
 0x7a5   : > { %11186 = vmatmul.bf16.gmra.mxu2 %v11003_v58  ;;  %v10661_v39 = vmul.f32 %v18051_v2, %v10607_v11  ;;  %v18642_v58 = vld [vmem:[#allocation9_spill] sm:$0xff] }
 0x7a6   : > { %v10441_v11 = vadd.f32 %v18642_v58, %v10352_v43 }
 0x7a7   : > { %v10695_v54 = vadd.f32 %v18057_v22, %v10661_v39 }
 0x7a8   : > { %v18275_v31 = vpop.f32.mrf.mxu1 }
 0x7a9   : > { %v10727_v52 = vmax.f32 %v10695_v54, 0.0 }
 0x7aa   : > { %v10608_v48 = vpop.f32.mrf.mxu0 }
 0x7ab   : > { %v10609_v46 = vadd.f32 %v10608_v48, %v10520_v57  ;;  %v10530_v57 = vadd.f32 %v10529_v6, %v10441_v11 }
 0x7ac   : > { %v10532_v41 = vpop.f32.mrf.mxu3 }
 0x7ad   : > { %v10662_v15 = vmul.f32 %v18051_v2, %v10609_v46 }
 0x7af   : > { %v10696_v56 = vadd.f32 %v18057_v22, %v10662_v15  ;;  %v18308_v15 = vpop.f32.mrf.mxu2 }
 0x7b0   : > { %v10364_v33 = vpop.f32.mrf.mxu1 }
 0x7b1   : > { %v10728_v40 = vmax.f32 %v10696_v56, 0.0  ;;  %v18284_v1 = vadd.f32 %v10364_v33, %v18638_v34  ;;  %v10444_v56 = vadd.f32 %v18121_v38, %v18253_v45  ;;  %v18643_v34 = vld [vmem:[#allocation16_spill] sm:$0xff] }
 0x7b2   : > { %v10611_v17 = vpop.f32.mrf.mxu0 }
 0x7b3   : > { %v11004_v49 = vpack.c.bf16 %v10728_v40, %v10727_v52  ;;  %v10612_v51 = vadd.f32 %v10611_v17, %v10523_v10  ;;  %v10357_v17 = vadd.f32 %v18258_v20, %v18643_v34  ;;  %v10533_v60 = vadd.f32 %v10532_v41, %v10444_v56 }
 0x7b4   : > { %v10534_v23 = vpop.f32.mrf.mxu3 }
 0x7b5   : > { %11191 = vmatmul.bf16.gmra.mxu2 %v11004_v49  ;;  %v10663_v30 = vmul.f32 %v18051_v2, %v10612_v51  ;;  %v10446_v6 = vadd.f32 %v18140_v53, %v10357_v17 }
 0x7b7   : > { %v10697_v24 = vadd.f32 %v18057_v22, %v10663_v30  ;;  %v10535_v38 = vadd.f32 %v10534_v23, %v10446_v6 }
 0x7b8   : > { %v18289_v14 = vpop.f32.mrf.mxu1 }
 0x7b9   : > { %v10729_v5 = vmax.f32 %v10697_v24, 0.0 }
 0x7ba   : > { %v10613_v62 = vpop.f32.mrf.mxu0 }
 0x7bb   : > { %v10614_v18 = vadd.f32 %v10613_v62, %v10525_v36  ;;  %v18317_v36 = vpop.f32.mrf.mxu2 }
 0x7bc   : > { %v10537_v49 = vpop.f32.mrf.mxu3 }
 0x7bd   : > { %v10664_v28 = vmul.f32 %v18051_v2, %v10614_v18 }
 0x7bf   : > { %v10698_v26 = vadd.f32 %v18057_v22, %v10664_v28  ;;  %v10449_v28 = vadd.f32 %v18157_v35, %v18270_v44 }
 0x7c0   : > { %v10369_v8 = vpop.f32.mrf.mxu1 }
 0x7c1   : > { %v10730_v32 = vmax.f32 %v10698_v26, 0.0  ;;  %v18298_v4 = vadd.f32 %v10369_v8, %v18640_v9  ;;  %v18644_v8 = vld [vmem:[#allocation19_spill] sm:$0xff] }
 0x7c2   : > { %v10616_v37 = vpop.f32.mrf.mxu0  ;;  %v10362_v29 = vadd.f32 %v18275_v31, %v18644_v8 }
 0x7c3   : > { %v11005_v0 = vpack.c.bf16 %v10730_v32, %v10729_v5  ;;  %v10617_v3 = vadd.f32 %v10616_v37, %v10528_v16  ;;  %v18327_v5 = vpop.f32.mrf.mxu2  ;;  %v10538_v32 = vadd.f32 %v10537_v49, %v10449_v28 }
 0x7c4   : > { %v10539_v18 = vpop.f32.mrf.mxu3  ;;  %v10451_v61 = vadd.f32 %v18171_v13, %v10362_v29  ;;  %v14643_v29 = vld [vmem:[%s18475_s6 + $0x30] sm:$0xff] }
 0x7c5   : > { %11196 = vmatmul.bf16.gmra.mxu2 %v11005_v0  ;;  %v10665_v19 = vmul.f32 %v18051_v2, %v10617_v3 }
 0x7c6   : > { %v10540_v16 = vadd.f32 %v10539_v18, %v10451_v61  ;;  %v14638_v61 = vld [vmem:[%s18475_s6 + $0x8] sm:$0xff] }
 0x7c7   : > { %v10699_v46 = vadd.f32 %v18057_v22, %v10665_v19 }
 0x7c8   : > { %v18303_v63 = vpop.f32.mrf.mxu1 }
 0x7c9   : > { %v10731_v33 = vmax.f32 %v10699_v46, 0.0 }
 0x7ca   : > { %v10618_v39 = vpop.f32.mrf.mxu0 }
 0x7cb   : > { %v10619_v48 = vadd.f32 %v10618_v39, %v10530_v57  ;;  %v18331_v44 = vpop.f32.mrf.mxu2  ;;  %v10454_v57 = vadd.f32 %v18189_v47, %v18284_v1 }
 0x7cc   : > { %v10542_v43 = vpop.f32.mrf.mxu3 }
 0x7cd   : > { %v10666_v54 = vmul.f32 %v18051_v2, %v10619_v48  ;;  %v18645_v48 = vld [vmem:[#allocation7_spill] sm:$0xff] }
 0x7ce   : > { %v10367_v46 = vadd.f32 %v18289_v14, %v18645_v48 }
 0x7cf   : > { %v10700_v25 = vadd.f32 %v18057_v22, %v10666_v54  ;;  %v10543_v54 = vadd.f32 %v10542_v43, %v10454_v57  ;;  %v14637_v43 = vld [vmem:[%s18475_s6] sm:$0xff] }
 0x7d0   : > { %v10878_v7 = vpop.f32.mrf.mxu1 }
 0x7d1   : > { %v10732_v21 = vmax.f32 %v10700_v25, 0.0  ;;  %v10892_v52 = vadd.f32 %v18232_v42, %v10878_v7 }
 0x7d2   : > { %v10621_v40 = vpop.f32.mrf.mxu0 }
 0x7d3   : > { %v10895_v27 = vpack.c.bf16 %v10892_v52, %v10892_v52  ;;  %v11006_v10 = vpack.c.bf16 %v10732_v21, %v10731_v33  ;;  %v10622_v51 = vadd.f32 %v10621_v40, %v10533_v60  ;;  %v18340_v56 = vpop.f32.mrf.mxu2  ;;  %v10456_v33 = vadd.f32 %v18200_v12, %v10367_v46 }
 0x7d4   : > { %v10544_v13 = vpop.f32.mrf.mxu3 }
 0x7d5   : > { %11201 = vmatmul.bf16.gmra.mxu2 %v11006_v10  ;;  %10968 = vmatmul.bf16.vlgmr.msrb.gmra.mxu3 %v10895_v27  ;;  %v10667_v45 = vmul.f32 %v18051_v2, %v10622_v51  ;;  %v10545_v21 = vadd.f32 %v10544_v13, %v10456_v33  ;;  %v10459_v27 = vadd.f32 %v18209_v50, %v18298_v4  ;;  %v18646_v51 = vld [vmem:[#allocation23_spill] sm:$0xff] }
 0x7d6   : > { %v10372_v6 = vadd.f32 %v18303_v63, %v18646_v51 }
 0x7d7   : > { %v10701_v62 = vadd.f32 %v18057_v22, %v10667_v45 }
 0x7d8   : > { %v10880_v55 = vpop.f32.mrf.mxu1 }
 0x7d9   : > { %v10733_v26 = vmax.f32 %v10701_v62, 0.0  ;;  %v14681_v62 = vld [vmem:[%s18471_s2] ss:$0 sm:$0xff] }
 0x7da   : > { %v10623_v42 = vpop.f32.mrf.mxu0 }
 0x7db   : > { %v10624_v30 = vadd.f32 %v10623_v42, %v10535_v38  ;;  %v18347_v60 = vpop.f32.mrf.mxu2 }
 0x7dc   : > { %v10547_v1 = vpop.f32.mrf.mxu3 }
 0x7dd   : > { %v10668_v20 = vmul.f32 %v18051_v2, %v10624_v30  ;;  %v10548_v55 = vadd.f32 %v10547_v1, %v10459_v27 }
 0x7df   : > { %v10702_v24 = vadd.f32 %v18057_v22, %v10668_v20 }
 0x7e1   : > { %v10734_v53 = vmax.f32 %v10702_v24, 0.0 }
 0x7e2   : > { %v10626_v41 = vpop.f32.mrf.mxu0 }
 0x7e3   : > { %v11007_v9 = vpack.c.bf16 %v10734_v53, %v10733_v26  ;;  %v10627_v37 = vadd.f32 %v10626_v41, %v10538_v32  ;;  %v18357_v4 = vpop.f32.mrf.mxu2  ;;  %v14641_v32 = vld [vmem:[%s18475_s6 + $0x20] sm:$0xff] }
 0x7e4   : > { %v10549_v42 = vpop.f32.mrf.mxu3 }
 0x7e5   : > { %11206 = vmatmul.bf16.gmra.mxu2 %v11007_v9  ;;  %v10669_v0 = vmul.f32 %v18051_v2, %v10627_v37  ;;  %v14640_v9 = vld [vmem:[%s18475_s6 + $0x18] sm:$0xff]  ;;  %v14639_v37 = vld [vmem:[%s18475_s6 + $0x10] sm:$0xff] }
 0x7e7   : > { %v10703_v58 = vadd.f32 %v18057_v22, %v10669_v0 }
 0x7e9   : > { %v10735_v19 = vmax.f32 %v10703_v58, 0.0 }
 0x7ea   : > { %v10628_v3 = vpop.f32.mrf.mxu0 }
 0x7eb   : > { %v10629_v35 = vadd.f32 %v10628_v3, %v10540_v16  ;;  %v18361_v8 = vpop.f32.mrf.mxu2  ;;  %v10973_v16 = vld [vmem:[%s18473_s4] sm:$0x1]  ;;  %v10975_v3 = vld [vmem:[%s18473_s4 + $0x1] sm:$0x1] }
 0x7ed   : > { %v10670_v31 = vmul.f32 %v18051_v2, %v10629_v35 }
 0x7ef   : > { %v10704_v11 = vadd.f32 %v18057_v22, %v10670_v31 }
 0x7f1   : > { %v10736_v23 = vmax.f32 %v10704_v11, 0.0 }
 0x7f2   : > { %v10631_v39 = vpop.f32.mrf.mxu0 }
 0x7f3   : > { %v11008_v25 = vpack.c.bf16 %v10736_v23, %v10735_v19  ;;  %v10632_v7 = vadd.f32 %v10631_v39, %v10543_v54  ;;  %v18393_v19 = vpop.f32.mrf.mxu2 }
 0x7f5   : > { %11211 = vmatmul.bf16.gmra.mxu2 %v11008_v25  ;;  %v10671_v52 = vmul.f32 %v18051_v2, %v10632_v7 }
 0x7f7   : > { %v10705_v34 = vadd.f32 %v18057_v22, %v10671_v52 }
 0x7f9   : > { %v10737_v10 = vmax.f32 %v10705_v34, 0.0 }
 0x7fa   : > { %v10633_v40 = vpop.f32.mrf.mxu0 }
 0x7fb   : > { %v10634_v47 = vadd.f32 %v10633_v40, %v10545_v21  ;;  %v18395_v23 = vpop.f32.mrf.mxu2  ;;  %v11027_v40 = vld [vmem:[%s18476_s7] sm:$0x1] }
 0x7fd   : > { %v10672_v17 = vmul.f32 %v18051_v2, %v10634_v47  ;;  %v10461_v2 = vadd.f32 %v18220_v59, %v10372_v6  ;;  %v14644_v59 = vld [vmem:[%s18475_s6 + $0x38] sm:$0xff] }
 0x7fe   : > { %11076 = vmatpush.bf16.msra.mxu1 %v14644_v59 }
 0x7ff   : > { %v10706_v14 = vadd.f32 %v18057_v22, %v10672_v17  ;;  %v10550_v30 = vadd.f32 %v10549_v42, %v10461_v2 }
 0x801   : > { %v10738_v49 = vmax.f32 %v10706_v14, 0.0 }
 0x802   : > { %v10636_v12 = vpop.f32.mrf.mxu0  ;;  %11077 = vmatpush.bf16.msra.mxu1 %v14643_v29 }
 0x803   : > { %v11009_v38 = vpack.c.bf16 %v10738_v49, %v10737_v10  ;;  %v10637_v45 = vadd.f32 %v10636_v12, %v10548_v55  ;;  %v18397_v13 = vpop.f32.mrf.mxu2 }
 0x805   : > { %11216 = vmatmul.bf16.gmra.mxu2 %v11009_v38  ;;  %v10673_v20 = vmul.f32 %v14681_v62, %v10637_v45 }
 0x807   : > { %v10707_v24 = vadd.f32 %v18057_v22, %v10673_v20 }
 0x809   : > { %v10739_v26 = vmax.f32 %v10707_v24, 0.0 }
 0x80a   : > { %v10638_v50 = vpop.f32.mrf.mxu0 }
 0x80b   : > { %v10639_v18 = vadd.f32 %v10638_v50, %v10550_v30  ;;  %v18399_v39 = vpop.f32.mrf.mxu2 }
 0x80d   : > { %v10674_v63 = vmul.f32 %v14681_v62, %v10639_v18 }
 0x80f   : > { %v10708_v28 = vadd.f32 %v18057_v22, %v10674_v63  ;;  %v14642_v22 = vld [vmem:[%s18475_s6 + $0x28] sm:$0xff] }
 0x810   : > { %11078 = vmatpush.bf16.msra.mxu1 %v14642_v22 }
 0x811   : > { %v10740_v53 = vmax.f32 %v10708_v28, 0.0 }
 0x813   : > { %v11010_v41 = vpack.c.bf16 %v10740_v53, %v10739_v26  ;;  %v18401_v48 = vpop.f32.mrf.mxu2 }
 0x814   : > { %11079 = vmatpush.bf16.msra.mxu1 %v14641_v32 }
 0x815   : > { %11221 = vmatmul.bf16.gmra.mxu2 %v11010_v41 }
 0x818   : > { %11080 = vmatpush.bf16.msra.mxu1 %v14640_v9 }
 0x81b   : > { %v18403_v46 = vpop.f32.mrf.mxu2 }
 0x81c   : > { %11081 = vmatpush.bf16.msra.mxu1 %v14639_v37 }
 0x820   : > { %11082 = vmatpush.bf16.msra.mxu1 %v14638_v61 }
 0x823   : > { %v18405_v54 = vpop.f32.mrf.mxu2 }
 0x824   : > { %11083 = vmatpush.bf16.msra.mxu1 %v14637_v43 }
 0x82b   : > { %v18407_v25 = vpop.f32.mrf.mxu2 }
 0x833   : > { %v11187_v7 = vpop.f32.mrf.mxu2 }
 0x83b   : > { %v11189_v33 = vpop.f32.mrf.mxu2 }
 0x843   : > { %v11192_v52 = vpop.f32.mrf.mxu2 }
 0x84b   : > { %v11194_v17 = vpop.f32.mrf.mxu2 }
 0x853   : > { %v11197_v6 = vpop.f32.mrf.mxu2 }
 0x858   : > { %v10969_v0 = vpop.f32.mrf.mxu3 }
 0x859   : > { %v10974_v35 = vmul.f32 %v10973_v16, %v10969_v0 }
 0x85b   : > { %v10976_v58 = vadd.f32 %v10975_v3, %v10974_v35  ;;  %v11199_v42 = vpop.f32.mrf.mxu2 }
 0x85d   : > { %v10977_v31 = vmax.f32 %v10976_v58, 0.0 }
 0x85f   : > { %v10978_v11 = vpack.c.bf16 %v10977_v31, %v10977_v31 }
 0x860   : > { %v10971_v57 = vpop.f32.mrf.mxu3 }
 0x861   : > { %11084 = vmatmul.bf16.vlgmr.msra.gmra.mxu1 %v10978_v11 }
 0x863   : > { %v11202_v18 = vpop.f32.mrf.mxu2 }
 0x86b   : > { %v11204_v26 = vpop.f32.mrf.mxu2 }
 0x873   : > { %v11207_v22 = vpop.f32.mrf.mxu2 }
 0x87b   : > { %v11209_v61 = vpop.f32.mrf.mxu2 }
 0x883   : > { %v11212_v58 = vpop.f32.mrf.mxu2 }
 0x8de   : > { %v11085_v21 = vpop.f32.mrf.mxu1 }
 0x8df   : > { %v11086_v1 = vadd.f32 %v11085_v21, %v11027_v40 }
 0x8e1   : > { %v18412_v34 = vperm.slane %v11086_v1, 0 }
 0x8e3   : > { %v11148_v14 = vadd.f32 %v18308_v15, %v18412_v34  ;;  %v11188_v27 = vadd.f32 %v11187_v7, %v18412_v34  ;;  %v11150_v12 = vadd.f32 %v18317_v36, %v18412_v34  ;;  %v11190_v51 = vadd.f32 %v11189_v33, %v18412_v34  ;;  %v11214_v7 = vpop.f32.mrf.mxu2 }
 0x8e4   : > { %v11153_v45 = vadd.f32 %v18327_v5, %v18412_v34  ;;  %v11193_v15 = vadd.f32 %v11192_v52, %v18412_v34  ;;  %v11155_v36 = vadd.f32 %v18331_v44, %v18412_v34  ;;  %v11195_v62 = vadd.f32 %v11194_v17, %v18412_v34 }
 0x8e5   : > { %v11227_v10 = vmax.f32 %v11148_v14, 0.0  ;;  %v11243_v49 = vmax.f32 %v11188_v27, 0.0  ;;  %v11244_v55 = vmax.f32 %v11190_v51, 0.0  ;;  %v11228_v38 = vmax.f32 %v11150_v12, 0.0 }
 0x8e6   : > { %v11087_v47 = vpop.f32.mrf.mxu1  ;;  %v11229_v2 = vmax.f32 %v11153_v45, 0.0  ;;  %v11245_v30 = vmax.f32 %v11193_v15, 0.0  ;;  %v11246_v20 = vmax.f32 %v11195_v62, 0.0  ;;  %v11230_v50 = vmax.f32 %v11155_v36, 0.0 }
 0x8e7   : > { %11259 = vxpose.xlu0.b32.start [1/16] (narrow) %v11227_v10, 16  ;;  %11291 = vxpose.xlu1.b32.start [1/16] (narrow) %v11243_v49, 16  ;;  %v11158_v5 = vadd.f32 %v18340_v56, %v18412_v34  ;;  %v11198_v24 = vadd.f32 %v11197_v6, %v18412_v34  ;;  %v11160_v44 = vadd.f32 %v18347_v60, %v18412_v34 }
 0x8e8   : > { %v11200_v53 = vadd.f32 %v11199_v42, %v18412_v34  ;;  %v11163_v29 = vadd.f32 %v18357_v4, %v18412_v34  ;;  %v11203_v56 = vadd.f32 %v11202_v18, %v18412_v34  ;;  %v11165_v37 = vadd.f32 %v18361_v8, %v18412_v34 }
 0x8e9   : > { %v11231_v63 = vmax.f32 %v11158_v5, 0.0  ;;  %v11247_v28 = vmax.f32 %v11198_v24, 0.0  ;;  %v11232_v59 = vmax.f32 %v11160_v44, 0.0  ;;  %v11205_v60 = vadd.f32 %v11204_v26, %v18412_v34 }
 0x8ea   : > { %v11248_v41 = vmax.f32 %v11200_v53, 0.0  ;;  %v11233_v32 = vmax.f32 %v11163_v29, 0.0  ;;  %v11249_v9 = vmax.f32 %v11203_v56, 0.0  ;;  %v11234_v16 = vmax.f32 %v11165_v37, 0.0 }
 0x8eb   : > { %v11250_v43 = vmax.f32 %v11205_v60, 0.0  ;;  %v11168_v4 = vadd.f32 %v18393_v19, %v18412_v34  ;;  %v11208_v0 = vadd.f32 %v11207_v22, %v18412_v34  ;;  %v11170_v8 = vadd.f32 %v18395_v23, %v18412_v34  ;;  %v11217_v47 = vpop.f32.mrf.mxu2 }
 0x8ec   : > { %v11210_v31 = vadd.f32 %v11209_v61, %v18412_v34  ;;  %v11173_v19 = vadd.f32 %v18397_v13, %v18412_v34  ;;  %v11213_v33 = vadd.f32 %v11212_v58, %v18412_v34  ;;  %v11175_v40 = vadd.f32 %v18399_v39, %v18412_v34 }
 0x8ed   : > { %v11235_v3 = vmax.f32 %v11168_v4, 0.0  ;;  %v11251_v35 = vmax.f32 %v11208_v0, 0.0  ;;  %v11236_v11 = vmax.f32 %v11170_v8, 0.0  ;;  %v11215_v23 = vadd.f32 %v11214_v7, %v18412_v34 }
 0x8ee   : > { %v11252_v57 = vmax.f32 %v11210_v31, 0.0  ;;  %v11237_v21 = vmax.f32 %v11173_v19, 0.0  ;;  %v11253_v52 = vmax.f32 %v11213_v33, 0.0  ;;  %v11238_v1 = vmax.f32 %v11175_v40, 0.0 }
 0x8ef   : > { %11260 = vxpose.xlu0.b32.cont [2/16] (narrow) %v11228_v38, 16  ;;  %11292 = vxpose.xlu1.b32.cont [2/16] (narrow) %v11244_v55, 16  ;;  %v11254_v17 = vmax.f32 %v11215_v23, 0.0  ;;  %v11178_v14 = vadd.f32 %v18401_v48, %v18412_v34  ;;  %v11218_v13 = vadd.f32 %v11217_v47, %v18412_v34  ;;  %v11180_v39 = vadd.f32 %v18403_v46, %v18412_v34 }
 0x8f0   : > { %v11183_v48 = vadd.f32 %v18405_v54, %v18412_v34  ;;  %v11185_v46 = vadd.f32 %v18407_v25, %v18412_v34 }
 0x8f1   : > { %v11239_v10 = vmax.f32 %v11178_v14, 0.0  ;;  %v11255_v49 = vmax.f32 %v11218_v13, 0.0  ;;  %v11240_v51 = vmax.f32 %v11180_v39, 0.0 }
 0x8f2   : > { %v11241_v45 = vmax.f32 %v11183_v48, 0.0 }
 0x8f3   : > { %v11219_v27 = vpop.f32.mrf.mxu2 }
 0x8f4   : > { %v11220_v12 = vadd.f32 %v11219_v27, %v18412_v34 }
 0x8f6   : > { %v11256_v6 = vmax.f32 %v11220_v12, 0.0 }
 0x8f7   : > { %11261 = vxpose.xlu0.b32.cont [3/16] (narrow) %v11229_v2, 16  ;;  %11293 = vxpose.xlu1.b32.cont [3/16] (narrow) %v11245_v30, 16  ;;  %v11242_v30 = vmax.f32 %v11185_v46, 0.0 }
 0x8fb   : > { %v11222_v55 = vpop.f32.mrf.mxu2 }
 0x8fc   : > { %v11223_v38 = vadd.f32 %v11222_v55, %v18412_v34 }
 0x8fe   : > { %v11257_v15 = vmax.f32 %v11223_v38, 0.0 }
 0x8ff   : > { %11262 = vxpose.xlu0.b32.cont [4/16] (narrow) %v11230_v50, 16  ;;  %11294 = vxpose.xlu1.b32.cont [4/16] (narrow) %v11246_v20, 16 }
 0x903   : > { %v11224_v42 = vpop.f32.mrf.mxu2 }
 0x904   : > { %v11225_v2 = vadd.f32 %v11224_v42, %v18412_v34 }
 0x906   : > { %v11258_v36 = vmax.f32 %v11225_v2, 0.0 }
 0x907   : > { %11263 = vxpose.xlu0.b32.cont [5/16] (narrow) %v11231_v63, 16  ;;  %11295 = vxpose.xlu1.b32.cont [5/16] (narrow) %v11247_v28, 16 }
 0x90f   : > { %11264 = vxpose.xlu0.b32.cont [6/16] (narrow) %v11232_v59, 16  ;;  %11296 = vxpose.xlu1.b32.cont [6/16] (narrow) %v11248_v41, 16 }
 0x917   : > { %11297 = vxpose.xlu1.b32.cont [7/16] (narrow) %v11249_v9, 16  ;;  %11265 = vxpose.xlu0.b32.cont [7/16] (narrow) %v11233_v32, 16 }
 0x91f   : > { %11298 = vxpose.xlu1.b32.cont [8/16] (narrow) %v11250_v43, 16  ;;  %11266 = vxpose.xlu0.b32.cont [8/16] (narrow) %v11234_v16, 16 }
 0x927   : > { %11299 = vxpose.xlu1.b32.cont [9/16] (narrow) %v11251_v35, 16  ;;  %11267 = vxpose.xlu0.b32.cont [9/16] (narrow) %v11235_v3, 16 }
 0x92f   : > { %11300 = vxpose.xlu1.b32.cont [10/16] (narrow) %v11252_v57, 16  ;;  %11268 = vxpose.xlu0.b32.cont [10/16] (narrow) %v11236_v11, 16 }
 0x937   : > { %11301 = vxpose.xlu1.b32.cont [11/16] (narrow) %v11253_v52, 16  ;;  %11269 = vxpose.xlu0.b32.cont [11/16] (narrow) %v11237_v21, 16 }
 0x93f   : > { %11302 = vxpose.xlu1.b32.cont [12/16] (narrow) %v11254_v17, 16  ;;  %11270 = vxpose.xlu0.b32.cont [12/16] (narrow) %v11238_v1, 16 }
 0x947   : > { %11303 = vxpose.xlu1.b32.cont [13/16] (narrow) %v11255_v49, 16  ;;  %11271 = vxpose.xlu0.b32.cont [13/16] (narrow) %v11239_v10, 16 }
 0x94f   : > { %11304 = vxpose.xlu1.b32.cont [14/16] (narrow) %v11256_v6, 16  ;;  %11272 = vxpose.xlu0.b32.cont [14/16] (narrow) %v11240_v51, 16 }
 0x957   : > { %11305 = vxpose.xlu1.b32.cont [15/16] (narrow) %v11257_v15, 16  ;;  %11273 = vxpose.xlu0.b32.cont [15/16] (narrow) %v11241_v45, 16 }
 0x95f   : > { %11306 = vxpose.xlu1.b32.end [16/16] (narrow) %v11258_v36, 16  ;;  %11274 = vxpose.xlu0.b32.end [16/16] (narrow) %v11242_v30, 16 }
 0x98b   : > { %v11307_v54 = vpop.trf.xlu1  ;;  %v11275_v62 = vpop.trf.xlu0 }
 0x98c   : > { %11324 = vst [vmem:[%s305_s15 + $0x8] sm:$0xff] %v11307_v54 }
 0x98d   : > { %11323 = vst [vmem:[%s305_s15] sm:$0xff] %v11275_v62 }
 0x993   : > { %v11308_v20 = vpop.trf.xlu1  ;;  %v11276_v50 = vpop.trf.xlu0 }
 0x994   : > { %11326 = vst [vmem:[%s305_s15 + $0x18] sm:$0xff] %v11308_v20 }
 0x995   : > { %11325 = vst [vmem:[%s305_s15 + $0x10] sm:$0xff] %v11276_v50 }
 0x996 PF: > { %s18_s27 = sadd.s32 1, %s14688_s27  }
 0x997   : > { %p15_p4 = scmp.ge.s32.totalorder %s18_s27, 4  }
 0x999   :  { %17 = sbr.rel (!%p15_p4) target bundleno = 1 (0x1), region = 83 }

</bundles_post_ra>
